<compile_context>
chip_gen: v6e
topology: v6e:2x2x1
jax: 0.10.0
libtpu: 0.0.40
codegen_flags: <defaults>
</compile_context>

<pallas_src>
import functools

import jax
import jax.numpy as jnp
from jax.experimental import pallas as pl
from jax.experimental.pallas import tpu as pltpu


def _round_up(x, m):
    return (x + m - 1) // m * m


def _softplus(x):
    # PyTorch nn.Softplus(beta=1, threshold=20): x if x > 20 else log(1 + exp(x)).
    # Clamped log(1+exp) form; the threshold guard keeps it exact vs. log1p to f32 noise.
    return jnp.where(x > 20.0, x, jnp.log(1.0 + jnp.exp(jnp.minimum(x, 20.0))))


# ---------------------------------------------------------------------------
# Fused (bf16 matmul + f32 bias + softplus) Pallas kernel — used for conv GEMMs
# ---------------------------------------------------------------------------
def _fused_matmul_kernel(a_ref, b_ref, bias_ref, o_ref, *, softplus):
    acc = jnp.dot(a_ref[...], b_ref[...], preferred_element_type=jnp.float32)
    acc = acc + bias_ref[...]
    if softplus:
        acc = _softplus(acc)
    o_ref[...] = acc.astype(o_ref.dtype)


def fused_matmul(a, b_padded, bias_padded, n_out, *, softplus):
    """out = [softplus](a @ b + bias).

    a:           (M, K) f32 activation (cast/padded per call).
    b_padded:    (Kp, Np) bf16, pre-padded at init (Kp, Np multiples of 128).
    bias_padded: (1, Np) f32, pre-padded at init.
    Returns (M, n_out) f32.
    """
    M, K = a.shape
    Kp, Np = b_padded.shape
    assert Kp >= K and Np >= n_out

    # Pad M only to a multiple of 8 (not to the full tile size).
    tm = min(512, _round_up(M, 8))
    Mp = _round_up(M, tm)
    tn = 256 if Np % 256 == 0 else 128
    tn = min(tn, Np)

    a_bf16 = a.astype(jnp.bfloat16)
    if Mp == M and Kp == K:
        a_p = a_bf16
    else:
        a_p = jnp.zeros((Mp, Kp), jnp.bfloat16).at[:M, :K].set(a_bf16)

    out = pl.pallas_call(
        functools.partial(_fused_matmul_kernel, softplus=softplus),
        out_shape=jax.ShapeDtypeStruct((Mp, Np), jnp.float32),
        grid_spec=pltpu.PrefetchScalarGridSpec(
            num_scalar_prefetch=0,
            grid=(Mp // tm, Np // tn),
            in_specs=[
                pl.BlockSpec((tm, Kp), lambda i, j: (i, 0)),
                pl.BlockSpec((Kp, tn), lambda i, j: (0, j)),
                pl.BlockSpec((1, tn), lambda i, j: (0, j)),
            ],
            out_specs=pl.BlockSpec((tm, tn), lambda i, j: (i, j)),
        ),
        compiler_params=pltpu.CompilerParams(
            dimension_semantics=("parallel", "parallel")),
    )(a_p, b_padded, bias_padded)
    return out[:M, :n_out]


# ---------------------------------------------------------------------------
# Fused 3-layer FC stack in a single pallas_call (weights resident in VMEM)
# ---------------------------------------------------------------------------
def _fc_stack_kernel(x_ref, w1_ref, b1_ref, w2_ref, b2_ref, w3_ref, b3_ref, o_ref):
    h = jnp.dot(x_ref[...], w1_ref[...], preferred_element_type=jnp.float32)
    h = _softplus(h + b1_ref[...])
    h = jnp.dot(h.astype(jnp.bfloat16), w2_ref[...],
                preferred_element_type=jnp.float32)
    h = _softplus(h + b2_ref[...])
    h = jnp.dot(h.astype(jnp.bfloat16), w3_ref[...],
                preferred_element_type=jnp.float32)
    o_ref[...] = (h + b3_ref[...]).astype(o_ref.dtype)


def fc_stack(x, w1, b1, w2, b2, w3, b3, n_out):
    """softplus(softplus(x@w1+b1)@w2+b2)@w3+b3; weights pre-padded bf16."""
    M, K = x.shape
    Kp, H1 = w1.shape
    H1b, H2 = w2.shape
    H2b, Np = w3.shape
    assert Kp >= K and H1 == H1b and H2 == H2b

    Mp = _round_up(M, 8)
    x_bf16 = x.astype(jnp.bfloat16)
    if Mp == M and Kp == K:
        x_p = x_bf16
    else:
        x_p = jnp.zeros((Mp, Kp), jnp.bfloat16).at[:M, :K].set(x_bf16)

    out = pl.pallas_call(
        _fc_stack_kernel,
        out_shape=jax.ShapeDtypeStruct((Mp, Np), jnp.float32),
        grid_spec=pltpu.PrefetchScalarGridSpec(
            num_scalar_prefetch=0,
            grid=(1,),
            in_specs=[
                pl.BlockSpec((Mp, Kp), lambda i: (0, 0)),
                pl.BlockSpec((Kp, H1), lambda i: (0, 0)),
                pl.BlockSpec((1, H1), lambda i: (0, 0)),
                pl.BlockSpec((H1, H2), lambda i: (0, 0)),
                pl.BlockSpec((1, H2), lambda i: (0, 0)),
                pl.BlockSpec((H2, Np), lambda i: (0, 0)),
                pl.BlockSpec((1, Np), lambda i: (0, 0)),
            ],
            out_specs=pl.BlockSpec((Mp, Np), lambda i: (0, 0)),
        ),
        compiler_params=pltpu.CompilerParams(dimension_semantics=("arbitrary",)),
    )(x_p, w1, b1, w2, b2, w3, b3)
    return out[:M, :n_out]


# ---------------------------------------------------------------------------
# MaxPool2d(kernel_size=3, stride=2) — fused pairwise-max tree in plain XLA.
# Pooling is mem-bound; a dedicated Pallas kernel buys nothing and this avoids a
# 9x-stacked HBM materialization + an extra kernel launch.
# TODO(synk): fuse the maxpool into the conv GEMM epilogue tile-wise once strided
# in-kernel window extraction is validated on Mosaic.
# ---------------------------------------------------------------------------
def maxpool_3x3_s2(x):
    """x: (N, H, W, C) -> (N, Ho, Wo, C); PyTorch MaxPool2d(3, 2) semantics."""
    N, H, W, C = x.shape
    Ho = (H - 3) // 2 + 1
    Wo = (W - 3) // 2 + 1
    out = None
    for di in range(3):
        for dj in range(3):
            tap = jax.lax.slice(
                x,
                (0, di, dj, 0),
                (N, di + 2 * (Ho - 1) + 1, dj + 2 * (Wo - 1) + 1, C),
                (1, 2, 2, 1),
            )
            out = tap if out is None else jnp.maximum(out, tap)
    return out


# ---------------------------------------------------------------------------
# Conv2d(stride=1, pad) + Softplus, as im2col GEMM on the MXU
# ---------------------------------------------------------------------------
def conv2d_softplus(x, w_padded, bias_padded, cout, *, k, pad):
    """x:(N,H,W,Cin); w_padded:(Kp,Np) bf16 (pre-padded (k*k*Cin, cout))."""
    N, H, W, Cin = x.shape
    xp = jnp.pad(x, ((0, 0), (pad, pad), (pad, pad), (0, 0)))
    Ho = H + 2 * pad - k + 1
    Wo = W + 2 * pad - k + 1
    patches = []
    for di in range(k):
        for dj in range(k):
            patches.append(xp[:, di:di + Ho, dj:dj + Wo, :])
    # (N, Ho, Wo, k*k, Cin) -> (N*Ho*Wo, k*k*Cin); ordering matches weight reshape.
    pmat = jnp.stack(patches, axis=3).reshape(N * Ho * Wo, k * k * Cin)
    out = fused_matmul(pmat, w_padded, bias_padded, cout, softplus=True)
    return out.reshape(N, Ho, Wo, cout)


# ---------------------------------------------------------------------------
# Parameters (pre-padded, bf16 weights / f32 biases) + forward
# ---------------------------------------------------------------------------
def _feature_spatial(hw):
    h = hw                        # conv1: k5 p2 s1 (preserves)
    h = (h - 3) // 2 + 1          # maxpool 3/2
    h = h                         # conv2: k5 p2 s1 (preserves)
    h = (h - 3) // 2 + 1          # maxpool 3/2
    h = h + 2 * 1 - 5 + 1         # conv3: k5 p1 s1
    h = (h - 3) // 2 + 1          # maxpool 3/2
    return h


def _pad_weight(w2d):
    K, N = w2d.shape
    Kp, Np = _round_up(K, 128), _round_up(N, 128)
    return jnp.zeros((Kp, Np), jnp.bfloat16).at[:K, :N].set(w2d.astype(jnp.bfloat16))


def _pad_bias(b):
    (N,) = b.shape
    Np = _round_up(N, 128)
    return jnp.zeros((1, Np), jnp.float32).at[0, :N].set(b.astype(jnp.float32))


def init_params(key, inputs, outputs, hw):
    hf = _feature_spatial(hw)
    flat = hf * hf * 128
    ks = jax.random.split(key, 12)

    def w(k, shape, fan_in):
        return jax.random.normal(k, shape, jnp.float32) / jnp.sqrt(float(fan_in))

    def conv(kw_key, kb_key, kh, cin, cout):
        wt = w(kw_key, (kh, kh, cin, cout), kh * kh * cin).reshape(kh * kh * cin, cout)
        bt = w(kb_key, (cout,), kh * kh * cin)
        return _pad_weight(wt), _pad_bias(bt)

    c1w, c1b = conv(ks[0], ks[1], 5, inputs, 32)
    c2w, c2b = conv(ks[2], ks[3], 5, 32, 64)
    c3w, c3b = conv(ks[4], ks[5], 5, 64, 128)
    return {
        "conv1_w": c1w, "conv1_b": c1b,
        "conv2_w": c2w, "conv2_b": c2b,
        "conv3_w": c3w, "conv3_b": c3b,
        "fc1_w": _pad_weight(w(ks[6], (flat, 1000), flat)),
        "fc1_b": _pad_bias(w(ks[7], (1000,), flat)),
        "fc2_w": _pad_weight(w(ks[8], (1000, 1000), 1000)),
        "fc2_b": _pad_bias(w(ks[9], (1000,), 1000)),
        "fc3_w": _pad_weight(w(ks[10], (1000, outputs), 1000)),
        "fc3_b": _pad_bias(w(ks[11], (outputs,), 1000)),
    }


def f4conv3fc_forward(params, x_nchw, *, outputs):
    x = jnp.transpose(x_nchw, (0, 2, 3, 1))  # NCHW -> NHWC for kernel compute
    x = conv2d_softplus(x, params["conv1_w"], params["conv1_b"], 32, k=5, pad=2)
    x = maxpool_3x3_s2(x)
    x = conv2d_softplus(x, params["conv2_w"], params["conv2_b"], 64, k=5, pad=2)
    x = maxpool_3x3_s2(x)
    x = conv2d_softplus(x, params["conv3_w"], params["conv3_b"], 128, k=5, pad=1)
    x = maxpool_3x3_s2(x)
    # FlattenLayer: flatten in PyTorch NCHW (C, H, W) order.
    n = x.shape[0]
    x = jnp.transpose(x, (0, 3, 1, 2)).reshape(n, -1)
    return fc_stack(x, params["fc1_w"], params["fc1_b"],
                    params["fc2_w"], params["fc2_b"],
                    params["fc3_w"], params["fc3_b"], outputs)


if __name__ == "__main__":
    key = jax.random.PRNGKey(0)
    k_x, k_p = jax.random.split(key)
    # CIFAR-10-like small shapes; 32x32 is the smallest spatial size the
    # conv/pool stack of the original module supports without collapsing to 0.
    batch, in_ch, hw, outputs = 2, 3, 32, 10
    x = jax.random.normal(k_x, (batch, in_ch, hw, hw), jnp.float32)  # NCHW input
    params = init_params(k_p, inputs=in_ch, outputs=outputs, hw=hw)

    fwd = jax.jit(functools.partial(f4conv3fc_forward, outputs=outputs))
    out = jax.block_until_ready(fwd(params, x))
    assert out.shape == (batch, outputs), out.shape
    assert bool(jnp.all(jnp.isfinite(out)))
    print("KERNEL_OK")
</pallas_src>

<mosaic_0001>
module attributes {stable_mosaic.version = 11 : i64} {
  func.func @_fused_matmul_kernel(%arg0: i32, %arg1: i32, %arg2: memref<512x128xbf16, #tpu.memory_space<vmem>>, %arg3: memref<128x128xbf16, #tpu.memory_space<vmem>>, %arg4: memref<1x128xf32, #tpu.memory_space<vmem>>, %arg5: memref<512x128xf32, #tpu.memory_space<vmem>>) attributes {dimension_semantics = [#tpu.dimension_semantics<parallel>, #tpu.dimension_semantics<parallel>], iteration_bounds = array<i64: 4, 1>, scalar_prefetch = 0 : i64, scratch_operands = 0 : i64, tpu.core_type = #tpu.core_type<tc>, window_params = [{transform_indices = @transform_0, window_bounds = array<i64: 512, 128>}, {transform_indices = @transform_1, window_bounds = array<i64: 128, 128>}, {transform_indices = @transform_2, window_bounds = array<i64: 1, 128>}, {transform_indices = @transform_3, window_bounds = array<i64: 512, 128>}]} {
    %c0 = arith.constant 0 : index
    %c0_0 = arith.constant 0 : index
    %0 = vector.load %arg2[%c0, %c0_0] : memref<512x128xbf16, #tpu.memory_space<vmem>>, vector<512x128xbf16>
    %c0_1 = arith.constant 0 : index
    %c0_2 = arith.constant 0 : index
    %1 = vector.load %arg3[%c0_1, %c0_2] : memref<128x128xbf16, #tpu.memory_space<vmem>>, vector<128x128xbf16>
    %cst = arith.constant dense<0.000000e+00> : vector<512x128xf32>
    %2 = tpu.matmul %0, %1, %cst {dimension_numbers = #tpu.dot_dimension_numbers<[1], [0], [0], [1], [0, 0, 1, 1], [], []>} : vector<512x128xbf16>, vector<128x128xbf16>, vector<512x128xf32> -> vector<512x128xf32>
    %c0_3 = arith.constant 0 : index
    %c0_4 = arith.constant 0 : index
    %3 = vector.load %arg4[%c0_3, %c0_4] : memref<1x128xf32, #tpu.memory_space<vmem>>, vector<1x128xf32>
    %4 = vector.broadcast %3 : vector<1x128xf32> to vector<512x128xf32>
    %5 = arith.addf %2, %4 : vector<512x128xf32>
    %cst_5 = arith.constant 2.000000e+01 : f32
    %6 = vector.broadcast %cst_5 : f32 to vector<512x128xf32>
    %7 = arith.cmpf ogt, %5, %6 : vector<512x128xf32>
    %cst_6 = arith.constant 2.000000e+01 : f32
    %8 = vector.broadcast %cst_6 : f32 to vector<512x128xf32>
    %9 = arith.minimumf %5, %8 : vector<512x128xf32>
    %10 = math.exp %9 : vector<512x128xf32>
    %cst_7 = arith.constant 1.000000e+00 : f32
    %11 = vector.broadcast %cst_7 : f32 to vector<512x128xf32>
    %12 = arith.addf %11, %10 : vector<512x128xf32>
    %13 = math.log %12 : vector<512x128xf32>
    %14 = arith.select %7, %5, %13 : vector<512x128xi1>, vector<512x128xf32>
    %c0_8 = arith.constant 0 : index
    %c0_9 = arith.constant 0 : index
    %15 = vector.load %arg5[%c0_8, %c0_9] : memref<512x128xf32, #tpu.memory_space<vmem>>, vector<512x128xf32>
    tpu.vector_store %arg5[%c0_8, %c0_9], %14 {strides = array<i32>} : memref<512x128xf32, #tpu.memory_space<vmem>>, vector<512x128xf32>,
    return
  }
  func.func @transform_0(%arg0: i32, %arg1: i32) -> (i32, i32) {
    %c0_i32 = arith.constant 0 : i32
    %c0_i32_0 = arith.constant 0 : i32
    return %arg0, %c0_i32 : i32, i32
  }
  func.func @transform_1(%arg0: i32, %arg1: i32) -> (i32, i32) {
    %c0_i32 = arith.constant 0 : i32
    %c0_i32_0 = arith.constant 0 : i32
    return %c0_i32, %arg1 : i32, i32
  }
  func.func @transform_2(%arg0: i32, %arg1: i32) -> (i32, i32) {
    %c0_i32 = arith.constant 0 : i32
    %c0_i32_0 = arith.constant 0 : i32
    return %c0_i32, %arg1 : i32, i32
  }
  func.func @transform_3(%arg0: i32, %arg1: i32) -> (i32, i32) {
    %c0_i32 = arith.constant 0 : i32
    return %arg0, %arg1 : i32, i32
  }
}

module attributes {stable_mosaic.version = 11 : i64} {
  func.func @_fused_matmul_kernel(%arg0: i32, %arg1: i32, %arg2: memref<456x896xbf16, #tpu.memory_space<vmem>>, %arg3: memref<896x128xbf16, #tpu.memory_space<vmem>>, %arg4: memref<1x128xf32, #tpu.memory_space<vmem>>, %arg5: memref<456x128xf32, #tpu.memory_space<vmem>>) attributes {dimension_semantics = [#tpu.dimension_semantics<parallel>, #tpu.dimension_semantics<parallel>], iteration_bounds = array<i64: 1, 1>, scalar_prefetch = 0 : i64, scratch_operands = 0 : i64, tpu.core_type = #tpu.core_type<tc>, window_params = [{transform_indices = @transform_0, window_bounds = array<i64: 456, 896>}, {transform_indices = @transform_1, window_bounds = array<i64: 896, 128>}, {transform_indices = @transform_2, window_bounds = array<i64: 1, 128>}, {transform_indices = @transform_3, window_bounds = array<i64: 456, 128>}]} {
    %c0 = arith.constant 0 : index
    %c0_0 = arith.constant 0 : index
    %0 = vector.load %arg2[%c0, %c0_0] : memref<456x896xbf16, #tpu.memory_space<vmem>>, vector<456x896xbf16>
    %c0_1 = arith.constant 0 : index
    %c0_2 = arith.constant 0 : index
    %1 = vector.load %arg3[%c0_1, %c0_2] : memref<896x128xbf16, #tpu.memory_space<vmem>>, vector<896x128xbf16>
    %cst = arith.constant dense<0.000000e+00> : vector<456x128xf32>
    %2 = tpu.matmul %0, %1, %cst {dimension_numbers = #tpu.dot_dimension_numbers<[1], [0], [0], [1], [0, 0, 1, 1], [], []>} : vector<456x896xbf16>, vector<896x128xbf16>, vector<456x128xf32> -> vector<456x128xf32>
    %c0_3 = arith.constant 0 : index
    %c0_4 = arith.constant 0 : index
    %3 = vector.load %arg4[%c0_3, %c0_4] : memref<1x128xf32, #tpu.memory_space<vmem>>, vector<1x128xf32>
    %4 = vector.broadcast %3 : vector<1x128xf32> to vector<456x128xf32>
    %5 = arith.addf %2, %4 : vector<456x128xf32>
    %cst_5 = arith.constant 2.000000e+01 : f32
    %6 = vector.broadcast %cst_5 : f32 to vector<456x128xf32>
    %7 = arith.cmpf ogt, %5, %6 : vector<456x128xf32>
    %cst_6 = arith.constant 2.000000e+01 : f32
    %8 = vector.broadcast %cst_6 : f32 to vector<456x128xf32>
    %9 = arith.minimumf %5, %8 : vector<456x128xf32>
    %10 = math.exp %9 : vector<456x128xf32>
    %cst_7 = arith.constant 1.000000e+00 : f32
    %11 = vector.broadcast %cst_7 : f32 to vector<456x128xf32>
    %12 = arith.addf %11, %10 : vector<456x128xf32>
    %13 = math.log %12 : vector<456x128xf32>
    %14 = arith.select %7, %5, %13 : vector<456x128xi1>, vector<456x128xf32>
    %c0_8 = arith.constant 0 : index
    %c0_9 = arith.constant 0 : index
    %15 = vector.load %arg5[%c0_8, %c0_9] : memref<456x128xf32, #tpu.memory_space<vmem>>, vector<456x128xf32>
    tpu.vector_store %arg5[%c0_8, %c0_9], %14 {strides = array<i32>} : memref<456x128xf32, #tpu.memory_space<vmem>>, vector<456x128xf32>,
    return
  }
  func.func @transform_0(%arg0: i32, %arg1: i32) -> (i32, i32) {
    %c0_i32 = arith.constant 0 : i32
    %c0_i32_0 = arith.constant 0 : i32
    return %arg0, %c0_i32 : i32, i32
  }
  func.func @transform_1(%arg0: i32, %arg1: i32) -> (i32, i32) {
    %c0_i32 = arith.constant 0 : i32
    %c0_i32_0 = arith.constant 0 : i32
    return %c0_i32, %arg1 : i32, i32
  }
  func.func @transform_2(%arg0: i32, %arg1: i32) -> (i32, i32) {
    %c0_i32 = arith.constant 0 : i32
    %c0_i32_0 = arith.constant 0 : i32
    return %c0_i32, %arg1 : i32, i32
  }
  func.func @transform_3(%arg0: i32, %arg1: i32) -> (i32, i32) {
    %c0_i32 = arith.constant 0 : i32
    return %arg0, %arg1 : i32, i32
  }
}

module attributes {stable_mosaic.version = 11 : i64} {
  func.func @_fused_matmul_kernel(%arg0: i32, %arg1: i32, %arg2: memref<56x1664xbf16, #tpu.memory_space<vmem>>, %arg3: memref<1664x128xbf16, #tpu.memory_space<vmem>>, %arg4: memref<1x128xf32, #tpu.memory_space<vmem>>, %arg5: memref<56x128xf32, #tpu.memory_space<vmem>>) attributes {dimension_semantics = [#tpu.dimension_semantics<parallel>, #tpu.dimension_semantics<parallel>], iteration_bounds = array<i64: 1, 1>, scalar_prefetch = 0 : i64, scratch_operands = 0 : i64, tpu.core_type = #tpu.core_type<tc>, window_params = [{transform_indices = @transform_0, window_bounds = array<i64: 56, 1664>}, {transform_indices = @transform_1, window_bounds = array<i64: 1664, 128>}, {transform_indices = @transform_2, window_bounds = array<i64: 1, 128>}, {transform_indices = @transform_3, window_bounds = array<i64: 56, 128>}]} {
    %c0 = arith.constant 0 : index
    %c0_0 = arith.constant 0 : index
    %0 = vector.load %arg2[%c0, %c0_0] : memref<56x1664xbf16, #tpu.memory_space<vmem>>, vector<56x1664xbf16>
    %c0_1 = arith.constant 0 : index
    %c0_2 = arith.constant 0 : index
    %1 = vector.load %arg3[%c0_1, %c0_2] : memref<1664x128xbf16, #tpu.memory_space<vmem>>, vector<1664x128xbf16>
    %cst = arith.constant dense<0.000000e+00> : vector<56x128xf32>
    %2 = tpu.matmul %0, %1, %cst {dimension_numbers = #tpu.dot_dimension_numbers<[1], [0], [0], [1], [0, 0, 1, 1], [], []>} : vector<56x1664xbf16>, vector<1664x128xbf16>, vector<56x128xf32> -> vector<56x128xf32>
    %c0_3 = arith.constant 0 : index
    %c0_4 = arith.constant 0 : index
    %3 = vector.load %arg4[%c0_3, %c0_4] : memref<1x128xf32, #tpu.memory_space<vmem>>, vector<1x128xf32>
    %4 = vector.broadcast %3 : vector<1x128xf32> to vector<56x128xf32>
    %5 = arith.addf %2, %4 : vector<56x128xf32>
    %cst_5 = arith.constant 2.000000e+01 : f32
    %6 = vector.broadcast %cst_5 : f32 to vector<56x128xf32>
    %7 = arith.cmpf ogt, %5, %6 : vector<56x128xf32>
    %cst_6 = arith.constant 2.000000e+01 : f32
    %8 = vector.broadcast %cst_6 : f32 to vector<56x128xf32>
    %9 = arith.minimumf %5, %8 : vector<56x128xf32>
    %10 = math.exp %9 : vector<56x128xf32>
    %cst_7 = arith.constant 1.000000e+00 : f32
    %11 = vector.broadcast %cst_7 : f32 to vector<56x128xf32>
    %12 = arith.addf %11, %10 : vector<56x128xf32>
    %13 = math.log %12 : vector<56x128xf32>
    %14 = arith.select %7, %5, %13 : vector<56x128xi1>, vector<56x128xf32>
    %c0_8 = arith.constant 0 : index
    %c0_9 = arith.constant 0 : index
    %15 = vector.load %arg5[%c0_8, %c0_9] : memref<56x128xf32, #tpu.memory_space<vmem>>, vector<56x128xf32>
    tpu.vector_store %arg5[%c0_8, %c0_9], %14 {strides = array<i32>} : memref<56x128xf32, #tpu.memory_space<vmem>>, vector<56x128xf32>,
    return
  }
  func.func @transform_0(%arg0: i32, %arg1: i32) -> (i32, i32) {
    %c0_i32 = arith.constant 0 : i32
    %c0_i32_0 = arith.constant 0 : i32
    return %arg0, %c0_i32 : i32, i32
  }
  func.func @transform_1(%arg0: i32, %arg1: i32) -> (i32, i32) {
    %c0_i32 = arith.constant 0 : i32
    %c0_i32_0 = arith.constant 0 : i32
    return %c0_i32, %arg1 : i32, i32
  }
  func.func @transform_2(%arg0: i32, %arg1: i32) -> (i32, i32) {
    %c0_i32 = arith.constant 0 : i32
    %c0_i32_0 = arith.constant 0 : i32
    return %c0_i32, %arg1 : i32, i32
  }
  func.func @transform_3(%arg0: i32, %arg1: i32) -> (i32, i32) {
    %c0_i32 = arith.constant 0 : i32
    return %arg0, %arg1 : i32, i32
  }
}

module attributes {stable_mosaic.version = 11 : i64} {
  func.func @_fc_stack_kernel(%arg0: i32, %arg1: memref<8x512xbf16, #tpu.memory_space<vmem>>, %arg2: memref<512x1024xbf16, #tpu.memory_space<vmem>>, %arg3: memref<1x1024xf32, #tpu.memory_space<vmem>>, %arg4: memref<1024x1024xbf16, #tpu.memory_space<vmem>>, %arg5: memref<1x1024xf32, #tpu.memory_space<vmem>>, %arg6: memref<1024x128xbf16, #tpu.memory_space<vmem>>, %arg7: memref<1x128xf32, #tpu.memory_space<vmem>>, %arg8: memref<8x128xf32, #tpu.memory_space<vmem>>) attributes {dimension_semantics = [#tpu.dimension_semantics<arbitrary>], iteration_bounds = array<i64: 1>, scalar_prefetch = 0 : i64, scratch_operands = 0 : i64, tpu.core_type = #tpu.core_type<tc>, window_params = [{pipeline_mode = #tpu.pipeline_mode<synchronous>, transform_indices = @transform_0, window_bounds = array<i64: 8, 512>}, {pipeline_mode = #tpu.pipeline_mode<synchronous>, transform_indices = @transform_1, window_bounds = array<i64: 512, 1024>}, {pipeline_mode = #tpu.pipeline_mode<synchronous>, transform_indices = @transform_2, window_bounds = array<i64: 1, 1024>}, {pipeline_mode = #tpu.pipeline_mode<synchronous>, transform_indices = @transform_3, window_bounds = array<i64: 1024, 1024>}, {pipeline_mode = #tpu.pipeline_mode<synchronous>, transform_indices = @transform_4, window_bounds = array<i64: 1, 1024>}, {pipeline_mode = #tpu.pipeline_mode<synchronous>, transform_indices = @transform_5, window_bounds = array<i64: 1024, 128>}, {pipeline_mode = #tpu.pipeline_mode<synchronous>, transform_indices = @transform_6, window_bounds = array<i64: 1, 128>}, {pipeline_mode = #tpu.pipeline_mode<synchronous>, transform_indices = @transform_7, window_bounds = array<i64: 8, 128>}]} {
    %c0 = arith.constant 0 : index
    %c0_0 = arith.constant 0 : index
    %0 = vector.load %arg1[%c0, %c0_0] : memref<8x512xbf16, #tpu.memory_space<vmem>>, vector<8x512xbf16>
    %c0_1 = arith.constant 0 : index
    %c0_2 = arith.constant 0 : index
    %1 = vector.load %arg2[%c0_1, %c0_2] : memref<512x1024xbf16, #tpu.memory_space<vmem>>, vector<512x1024xbf16>
    %cst = arith.constant dense<0.000000e+00> : vector<8x1024xf32>
    %2 = tpu.matmul %0, %1, %cst {dimension_numbers = #tpu.dot_dimension_numbers<[1], [0], [0], [1], [0, 0, 1, 1], [], []>} : vector<8x512xbf16>, vector<512x1024xbf16>, vector<8x1024xf32> -> vector<8x1024xf32>
    %c0_3 = arith.constant 0 : index
    %c0_4 = arith.constant 0 : index
    %3 = vector.load %arg3[%c0_3, %c0_4] : memref<1x1024xf32, #tpu.memory_space<vmem>>, vector<1x1024xf32>
    %4 = vector.broadcast %3 : vector<1x1024xf32> to vector<8x1024xf32>
    %5 = arith.addf %2, %4 : vector<8x1024xf32>
    %cst_5 = arith.constant 2.000000e+01 : f32
    %6 = vector.broadcast %cst_5 : f32 to vector<8x1024xf32>
    %7 = arith.cmpf ogt, %5, %6 : vector<8x1024xf32>
    %cst_6 = arith.constant 2.000000e+01 : f32
    %8 = vector.broadcast %cst_6 : f32 to vector<8x1024xf32>
    %9 = arith.minimumf %5, %8 : vector<8x1024xf32>
    %10 = math.exp %9 : vector<8x1024xf32>
    %cst_7 = arith.constant 1.000000e+00 : f32
    %11 = vector.broadcast %cst_7 : f32 to vector<8x1024xf32>
    %12 = arith.addf %11, %10 : vector<8x1024xf32>
    %13 = math.log %12 : vector<8x1024xf32>
    %14 = arith.select %7, %5, %13 : vector<8x1024xi1>, vector<8x1024xf32>
    %15 = arith.truncf %14 : vector<8x1024xf32> to vector<8x1024xbf16>
    %c0_8 = arith.constant 0 : index
    %c0_9 = arith.constant 0 : index
    %16 = vector.load %arg4[%c0_8, %c0_9] : memref<1024x1024xbf16, #tpu.memory_space<vmem>>, vector<1024x1024xbf16>
    %cst_10 = arith.constant dense<0.000000e+00> : vector<8x1024xf32>
    %17 = tpu.matmul %15, %16, %cst_10 {dimension_numbers = #tpu.dot_dimension_numbers<[1], [0], [0], [1], [0, 0, 1, 1], [], []>} : vector<8x1024xbf16>, vector<1024x1024xbf16>, vector<8x1024xf32> -> vector<8x1024xf32>
    %c0_11 = arith.constant 0 : index
    %c0_12 = arith.constant 0 : index
    %18 = vector.load %arg5[%c0_11, %c0_12] : memref<1x1024xf32, #tpu.memory_space<vmem>>, vector<1x1024xf32>
    %19 = vector.broadcast %18 : vector<1x1024xf32> to vector<8x1024xf32>
    %20 = arith.addf %17, %19 : vector<8x1024xf32>
    %cst_13 = arith.constant 2.000000e+01 : f32
    %21 = vector.broadcast %cst_13 : f32 to vector<8x1024xf32>
    %22 = arith.cmpf ogt, %20, %21 : vector<8x1024xf32>
    %cst_14 = arith.constant 2.000000e+01 : f32
    %23 = vector.broadcast %cst_14 : f32 to vector<8x1024xf32>
    %24 = arith.minimumf %20, %23 : vector<8x1024xf32>
    %25 = math.exp %24 : vector<8x1024xf32>
    %cst_15 = arith.constant 1.000000e+00 : f32
    %26 = vector.broadcast %cst_15 : f32 to vector<8x1024xf32>
    %27 = arith.addf %26, %25 : vector<8x1024xf32>
    %28 = math.log %27 : vector<8x1024xf32>
    %29 = arith.select %22, %20, %28 : vector<8x1024xi1>, vector<8x1024xf32>
    %30 = arith.truncf %29 : vector<8x1024xf32> to vector<8x1024xbf16>
    %c0_16 = arith.constant 0 : index
    %c0_17 = arith.constant 0 : index
    %31 = vector.load %arg6[%c0_16, %c0_17] : memref<1024x128xbf16, #tpu.memory_space<vmem>>, vector<1024x128xbf16>
    %cst_18 = arith.constant dense<0.000000e+00> : vector<8x128xf32>
    %32 = tpu.matmul %30, %31, %cst_18 {dimension_numbers = #tpu.dot_dimension_numbers<[1], [0], [0], [1], [0, 0, 1, 1], [], []>} : vector<8x1024xbf16>, vector<1024x128xbf16>, vector<8x128xf32> -> vector<8x128xf32>
    %c0_19 = arith.constant 0 : index
    %c0_20 = arith.constant 0 : index
    %33 = vector.load %arg7[%c0_19, %c0_20] : memref<1x128xf32, #tpu.memory_space<vmem>>, vector<1x128xf32>
    %34 = vector.broadcast %33 : vector<1x128xf32> to vector<8x128xf32>
    %35 = arith.addf %32, %34 : vector<8x128xf32>
    %c0_21 = arith.constant 0 : index
    %c0_22 = arith.constant 0 : index
    %36 = vector.load %arg8[%c0_21, %c0_22] : memref<8x128xf32, #tpu.memory_space<vmem>>, vector<8x128xf32>
    tpu.vector_store %arg8[%c0_21, %c0_22], %35 {strides = array<i32>} : memref<8x128xf32, #tpu.memory_space<vmem>>, vector<8x128xf32>,
    return
  }
  func.func @transform_0(%arg0: i32) -> (i32, i32) {
    %c0_i32 = arith.constant 0 : i32
    %c0_i32_0 = arith.constant 0 : i32
    %c0_i32_1 = arith.constant 0 : i32
    return %c0_i32, %c0_i32_0 : i32, i32
  }
  func.func @transform_1(%arg0: i32) -> (i32, i32) {
    %c0_i32 = arith.constant 0 : i32
    %c0_i32_0 = arith.constant 0 : i32
    %c0_i32_1 = arith.constant 0 : i32
    return %c0_i32, %c0_i32_0 : i32, i32
  }
  func.func @transform_2(%arg0: i32) -> (i32, i32) {
    %c0_i32 = arith.constant 0 : i32
    %c0_i32_0 = arith.constant 0 : i32
    %c0_i32_1 = arith.constant 0 : i32
    return %c0_i32, %c0_i32_0 : i32, i32
  }
  func.func @transform_3(%arg0: i32) -> (i32, i32) {
    %c0_i32 = arith.constant 0 : i32
    %c0_i32_0 = arith.constant 0 : i32
    %c0_i32_1 = arith.constant 0 : i32
    return %c0_i32, %c0_i32_0 : i32, i32
  }
  func.func @transform_4(%arg0: i32) -> (i32, i32) {
    %c0_i32 = arith.constant 0 : i32
    %c0_i32_0 = arith.constant 0 : i32
    %c0_i32_1 = arith.constant 0 : i32
    return %c0_i32, %c0_i32_0 : i32, i32
  }
  func.func @transform_5(%arg0: i32) -> (i32, i32) {
    %c0_i32 = arith.constant 0 : i32
    %c0_i32_0 = arith.constant 0 : i32
    %c0_i32_1 = arith.constant 0 : i32
    return %c0_i32, %c0_i32_0 : i32, i32
  }
  func.func @transform_6(%arg0: i32) -> (i32, i32) {
    %c0_i32 = arith.constant 0 : i32
    %c0_i32_0 = arith.constant 0 : i32
    %c0_i32_1 = arith.constant 0 : i32
    return %c0_i32, %c0_i32_0 : i32, i32
  }
  func.func @transform_7(%arg0: i32) -> (i32, i32) {
    %c0_i32 = arith.constant 0 : i32
    %c0_i32_0 = arith.constant 0 : i32
    %c0_i32_1 = arith.constant 0 : i32
    return %c0_i32, %c0_i32_0 : i32, i32
  }
}

</mosaic_0001>

<bundles_post_ra>
// kernel: f4conv3fc_forward.4
= control target key start
LH: loop header
LB: loop body
LE: loop exit
PB: predicated region body
PF: predicated region fallthrough
CT: control target
= control target key end

     0   :  { %s2075_s12 = smov 0   ;;  %s2077_s13 = smov 0   ;;  %s2702_s0 = inlined_call_operand.vmem [shape: bf16[2048,128], index: 0, kind: input, shape index: {}]   ;;  %s2703_s1 = inlined_call_operand.vmem [shape: bf16[128,128], index: 1, kind: input, shape index: {}]   ;;  %s2704_s2 = inlined_call_operand.vmem [shape: f32[1,128], index: 2, kind: input, shape index: {}]   ;;  %s2705_s3 = inlined_call_operand.vmem [shape: f32[2048,128], index: 3, kind: output, shape index: {}]  }
   0x1   :  { %s2079_s14 = smov 0  }
   0x2 LB: > { %s25_s15 = sadd.s32 1, %s2049_s13  ;;  %p1526_p0 = scmp.ge.s32.totalorder %s2053_s14, 1  ;;  %s2053_s14 = sphi %s2079_s14, %s13_s14   ;;  %s2049_s13 = sphi %s2077_s13, %s2707_s13   ;;  %s2045_s12 = sphi %s2075_s12, %s2706_s12  }
   0x3   : > { %p27_p1 = scmp.ge.s32.totalorder %s25_s15, 4  ;;  %p169_p2 = scmp.lt.s32.totalorder %s2053_s14, 5 }
   0x5   : > { %s2709_s15 = smov (%p27_p1, %s25_s15), 0  ;;  %p170_p3 = pnand %p1526_p0, %p169_p2 }
   0x6   : > { %s1527_s18 = sshll.u32 (!%p170_p3), %s2045_s12, 6 }
   0x7   : > { %173 = sbr.rel (%p170_p3) target bundleno = 410 (0x19a), region = 32  ;;  %p204_p4 = scmp.lt.s32.totalorder (!%p170_p3), %s1527_s18, 255 }
   0xc   : > { %v1734_v0 = vld [vmem:[%s2703_s1 + $0x38] sm:$0xff]   ;;  %v1735_v1 = vld [vmem:[%s2703_s1 + $0x30] sm:$0xff]   ;;  %s2711_s18 = smov (!%p204_p4, %s1527_s18), 255  ;;  %v1736_v2 = vld [vmem:[%s2703_s1 + $0x28] sm:$0xff]  }
   0xd   : > { %1614 = vmatprep.subr.bf16.mxu0 %v1734_v0  ;;  %1694 = vmatprep.subr.bf16.mxu1 %v1734_v0  ;;  %s1528_s23 = sshll.u32 %s2711_s18, 2  ;;  %v1737_v3 = vld [vmem:[%s2703_s1 + $0x20] sm:$0xff]   ;;  %v1738_v6 = vld [vmem:[%s2703_s1 + $0x18] sm:$0xff]   ;;  %v1739_v7 = vld [vmem:[%s2703_s1 + $0x10] sm:$0xff]   ;;  %s1530_s12 = sshll.u32 %s2711_s18, 3 }
   0xe   : > { %1615 = vmatpush3.bf16.msra.mxu0 %v1734_v0  ;;  %1702 = vmatpush3.bf16.msra.mxu1 %v1734_v0  ;;  %s2108_s26 = scalar_lea.vmem %s2702_s0, %s1528_s23  ;;  %v1740_v8 = vld [vmem:[%s2703_s1 + $0x8] sm:$0xff]   ;;  %v1741_v9 = vld [vmem:[%s2703_s1] sm:$0xff]   ;;  %s2266_s18 = scalar_lea.vmem %s2705_s3, %s1530_s12 }
   0xf   : > { %1616 = vmatprep.subr.bf16.mxu0 %v1735_v1  ;;  %1695 = vmatprep.subr.bf16.mxu1 %v1735_v1  ;;  %v1742_v4 = vld [vmem:[%s2108_s26] sm:$0xff]   ;;  %v1744_v10 = vld [vmem:[%s2108_s26 + $0x8] sm:$0xff]   ;;  %v1746_v12 = vld [vmem:[%s2108_s26 + $0x10] sm:$0xff]  }
  0x10   : > { %v1743_v5 = vld [vmem:[%s2108_s26 + $0x80] sm:$0xff]   ;;  %1630 = vmatprep.mubr.bf16.mxu0 %v1742_v4  ;;  %v1745_v11 = vld [vmem:[%s2108_s26 + $0x88] sm:$0xff]   ;;  %v1747_v13 = vld [vmem:[%s2108_s26 + $0x90] sm:$0xff]  }
  0x11   : > { %1662 = vmatprep.mubr.bf16.mxu1 %v1743_v5  ;;  %v1748_v14 = vld [vmem:[%s2108_s26 + $0x18] sm:$0xff]   ;;  %v1750_v16 = vld [vmem:[%s2108_s26 + $0x20] sm:$0xff]   ;;  %v1752_v18 = vld [vmem:[%s2108_s26 + $0x28] sm:$0xff]  }
  0x12   : > { %1617 = vmatpush3.bf16.msra.mxu0 %v1735_v1  ;;  %1703 = vmatpush3.bf16.msra.mxu1 %v1735_v1  ;;  %v1749_v15 = vld [vmem:[%s2108_s26 + $0x98] sm:$0xff]   ;;  %v1751_v17 = vld [vmem:[%s2108_s26 + $0xa0] sm:$0xff]   ;;  %v1753_v19 = vld [vmem:[%s2108_s26 + $0xa8] sm:$0xff]  }
  0x13   : > { %1618 = vmatprep.subr.bf16.mxu0 %v1736_v2  ;;  %1696 = vmatprep.subr.bf16.mxu1 %v1736_v2  ;;  %v1754_v20 = vld [vmem:[%s2108_s26 + $0x30] sm:$0xff]   ;;  %v1756_v22 = vld [vmem:[%s2108_s26 + $0x38] sm:$0xff]   ;;  %v1758_v24 = vld [vmem:[%s2108_s26 + $0x40] sm:$0xff]  }
  0x14   : > { %v1755_v21 = vld [vmem:[%s2108_s26 + $0xb0] sm:$0xff]   ;;  %v1757_v23 = vld [vmem:[%s2108_s26 + $0xb8] sm:$0xff]   ;;  %v1759_v25 = vld [vmem:[%s2108_s26 + $0xc0] sm:$0xff]  }
  0x15   : > { %v1760_v26 = vld [vmem:[%s2108_s26 + $0x48] sm:$0xff]   ;;  %v1762_v28 = vld [vmem:[%s2108_s26 + $0x50] sm:$0xff]   ;;  %v1764_v30 = vld [vmem:[%s2108_s26 + $0x58] sm:$0xff]  }
  0x16   : > { %1619 = vmatpush3.bf16.msra.mxu0 %v1736_v2  ;;  %1704 = vmatpush3.bf16.msra.mxu1 %v1736_v2  ;;  %v1761_v27 = vld [vmem:[%s2108_s26 + $0xc8] sm:$0xff]   ;;  %v1763_v29 = vld [vmem:[%s2108_s26 + $0xd0] sm:$0xff]   ;;  %v1765_v31 = vld [vmem:[%s2108_s26 + $0xd8] sm:$0xff]  }
  0x17   : > { %1620 = vmatprep.subr.bf16.mxu0 %v1737_v3  ;;  %1697 = vmatprep.subr.bf16.mxu1 %v1737_v3  ;;  %v1766_v32 = vld [vmem:[%s2108_s26 + $0x60] sm:$0xff]   ;;  %v1768_v34 = vld [vmem:[%s2108_s26 + $0x68] sm:$0xff]   ;;  %v1770_v36 = vld [vmem:[%s2108_s26 + $0x70] sm:$0xff]  }
  0x18   : > { %v1767_v33 = vld [vmem:[%s2108_s26 + $0xe0] sm:$0xff]   ;;  %v1769_v35 = vld [vmem:[%s2108_s26 + $0xe8] sm:$0xff]   ;;  %v1771_v37 = vld [vmem:[%s2108_s26 + $0xf0] sm:$0xff]  }
  0x19   : > { %v1772_v38 = vld [vmem:[%s2108_s26 + $0x78] sm:$0xff]   ;;  %v2160_v40 = vld [vmem:[%s2704_s2] ss:$0 sm:$0xff] }
  0x1a   : > { %1621 = vmatpush3.bf16.msra.mxu0 %v1737_v3  ;;  %1705 = vmatpush3.bf16.msra.mxu1 %v1737_v3  ;;  %v1773_v39 = vld [vmem:[%s2108_s26 + $0xf8] sm:$0xff]  }
  0x1b   : > { %1622 = vmatprep.subr.bf16.mxu0 %v1738_v6  ;;  %1698 = vmatprep.subr.bf16.mxu1 %v1738_v6 }
  0x1e   : > { %1623 = vmatpush3.bf16.msra.mxu0 %v1738_v6  ;;  %1706 = vmatpush3.bf16.msra.mxu1 %v1738_v6 }
  0x1f   : > { %1624 = vmatprep.subr.bf16.mxu0 %v1739_v7  ;;  %1699 = vmatprep.subr.bf16.mxu1 %v1739_v7 }
  0x22   : > { %1625 = vmatpush3.bf16.msra.mxu0 %v1739_v7  ;;  %1707 = vmatpush3.bf16.msra.mxu1 %v1739_v7 }
  0x23   : > { %1626 = vmatprep.subr.bf16.mxu0 %v1740_v8  ;;  %1700 = vmatprep.subr.bf16.mxu1 %v1740_v8 }
  0x26   : > { %1627 = vmatpush3.bf16.msra.mxu0 %v1740_v8  ;;  %1708 = vmatpush3.bf16.msra.mxu1 %v1740_v8 }
  0x27   : > { %1628 = vmatprep.subr.bf16.mxu0 %v1741_v9  ;;  %1701 = vmatprep.subr.bf16.mxu1 %v1741_v9 }
  0x2a   : > { %1629 = vmatpush3.bf16.msra.mxu0 %v1741_v9  ;;  %1709 = vmatpush3.bf16.msra.mxu1 %v1741_v9 }
  0x2d   : > { %1631 = vmatmul.mubr.bf16.vlgmr.msra.gmra.mxu0 %v1744_v10  ;;  %1663 = vmatmul.mubr.bf16.vlgmr.msra.gmra.mxu1 %v1745_v11 }
  0x2e   : > { %1634 = vmatprep.mubr.bf16.mxu0 %v1746_v12  ;;  %1666 = vmatprep.mubr.bf16.mxu1 %v1747_v13 }
  0x35   : > { %1635 = vmatmul.mubr.bf16.gmra.mxu0 %v1748_v14  ;;  %1667 = vmatmul.mubr.bf16.gmra.mxu1 %v1749_v15 }
  0x36   : > { %1638 = vmatprep.mubr.bf16.mxu0 %v1750_v16  ;;  %1670 = vmatprep.mubr.bf16.mxu1 %v1751_v17 }
  0x3d   : > { %1639 = vmatmul.mubr.bf16.gmra.mxu0 %v1752_v18  ;;  %1671 = vmatmul.mubr.bf16.gmra.mxu1 %v1753_v19 }
  0x3e   : > { %1642 = vmatprep.mubr.bf16.mxu0 %v1754_v20  ;;  %1674 = vmatprep.mubr.bf16.mxu1 %v1755_v21 }
  0x45   : > { %1643 = vmatmul.mubr.bf16.gmra.mxu0 %v1756_v22  ;;  %1675 = vmatmul.mubr.bf16.gmra.mxu1 %v1757_v23 }
  0x46   : > { %1646 = vmatprep.mubr.bf16.mxu0 %v1758_v24  ;;  %1678 = vmatprep.mubr.bf16.mxu1 %v1759_v25 }
  0x4d   : > { %1647 = vmatmul.mubr.bf16.gmra.mxu0 %v1760_v26  ;;  %1679 = vmatmul.mubr.bf16.gmra.mxu1 %v1761_v27 }
  0x4e   : > { %1650 = vmatprep.mubr.bf16.mxu0 %v1762_v28  ;;  %1682 = vmatprep.mubr.bf16.mxu1 %v1763_v29 }
  0x55   : > { %1651 = vmatmul.mubr.bf16.gmra.mxu0 %v1764_v30  ;;  %1683 = vmatmul.mubr.bf16.gmra.mxu1 %v1765_v31 }
  0x56   : > { %1654 = vmatprep.mubr.bf16.mxu0 %v1766_v32  ;;  %1686 = vmatprep.mubr.bf16.mxu1 %v1767_v33 }
  0x5d   : > { %1655 = vmatmul.mubr.bf16.gmra.mxu0 %v1768_v34  ;;  %1687 = vmatmul.mubr.bf16.gmra.mxu1 %v1769_v35 }
  0x5e   : > { %1658 = vmatprep.mubr.bf16.mxu0 %v1770_v36  ;;  %1690 = vmatprep.mubr.bf16.mxu1 %v1771_v37 }
  0x65   : > { %1659 = vmatmul.mubr.bf16.gmra.mxu0 %v1772_v38  ;;  %1691 = vmatmul.mubr.bf16.gmra.mxu1 %v1773_v39 }
  0xed   : > { %v1632_v41 = vpop.f32.mrf.mxu0  ;;  %v1664_v42 = vpop.f32.mrf.mxu1 }
  0xee   : > { %v2163_v43 = vadd.f32 %v1632_v41, %v2160_v40  ;;  %v2166_v44 = vadd.f32 %v1664_v42, %v2160_v40 }
  0xef   : > { %v587_v45 = vpop.f32.mrf.mxu0  ;;  %v715_v46 = vpop.f32.mrf.mxu1 }
  0xf0   : > { %v908_v47 = vmin.f32 %v2163_v43, 20.0  ;;  %v940_v48 = vmin.f32 %v2166_v44, 20.0  ;;  %v2171_v49 = vadd.f32 %v2160_v40, %v587_v45  ;;  %v2174_v50 = vadd.f32 %v2160_v40, %v715_v46 }
  0xf1   : > { %v1633_v51 = vpop.f32.mrf.mxu0  ;;  %v1665_v52 = vpop.f32.mrf.mxu1  ;;  %vm844_vm0 = vcmp.gt.f32.partialorder %v2163_v43, 20.0  ;;  %vm876_vm1 = vcmp.gt.f32.partialorder %v2166_v44, 20.0 }
  0xf2   : > { %v974_v53 = vmul.f32 1.442695, %v908_v47  ;;  %v1038_v54 = vmul.f32 1.442695, %v940_v48  ;;  %v2177_v55 = vadd.f32 %v1633_v51, %v2160_v40  ;;  %v2180_v56 = vadd.f32 %v1665_v52, %v2160_v40 }
  0xf3   : > { %v906_v57 = vmin.f32 %v2171_v49, 20.0  ;;  %v938_v58 = vmin.f32 %v2174_v50, 20.0  ;;  %v590_v59 = vpop.f32.mrf.mxu0  ;;  %v718_v60 = vpop.f32.mrf.mxu1  ;;  %vm842_vm2 = vcmp.gt.f32.partialorder %v2171_v49, 20.0  ;;  %vm874_vm3 = vcmp.gt.f32.partialorder %v2174_v50, 20.0 }
  0xf4   : > { %1774 = vpow2.f32 %v974_v53  ;;  %v909_v61 = vmin.f32 %v2177_v55, 20.0  ;;  %v941_v0 = vmin.f32 %v2180_v56, 20.0  ;;  %v2187_v4 = vadd.f32 %v2160_v40, %v590_v59 }
  0xf5   : > { %1776 = vpow2.f32 %v1038_v54  ;;  %v970_v62 = vmul.f32 1.442695, %v906_v57  ;;  %v1034_v63 = vmul.f32 1.442695, %v938_v58  ;;  %v1636_v1 = vpop.f32.mrf.mxu0  ;;  %v1668_v2 = vpop.f32.mrf.mxu1  ;;  %v2190_v5 = vadd.f32 %v2160_v40, %v718_v60 }
  0xf6   : > { %v976_v3 = vmul.f32 1.442695, %v909_v61  ;;  %v2193_v6 = vadd.f32 %v1636_v1, %v2160_v40  ;;  %v1040_v7 = vmul.f32 1.442695, %v941_v0  ;;  %v2196_v8 = vadd.f32 %v1668_v2, %v2160_v40 }
  0xf7   : > { %1778 = vpow2.f32 %v970_v62  ;;  %v603_v9 = vpop.f32.mrf.mxu0  ;;  %v731_v10 = vpop.f32.mrf.mxu1  ;;  %v907_v11 = vmin.f32 %v2187_v4, 20.0  ;;  %v939_v12 = vmin.f32 %v2190_v5, 20.0  ;;  %vm845_vm4 = vcmp.gt.f32.partialorder %v2177_v55, 20.0 }
  0xf8   : > { %1780 = vpow2.f32 %v1034_v63  ;;  %v912_v13 = vmin.f32 %v2193_v6, 20.0  ;;  %v944_v17 = vmin.f32 %v2196_v8, 20.0  ;;  %v2203_v20 = vadd.f32 %v2160_v40, %v603_v9 }
  0xf9   : > { %1782 = vpow2.f32 %v976_v3  ;;  %v1637_v14 = vpop.f32.mrf.mxu0  ;;  %v1669_v15 = vpop.f32.mrf.mxu1  ;;  %v972_v16 = vmul.f32 1.442695, %v907_v11  ;;  %v1036_v18 = vmul.f32 1.442695, %v939_v12  ;;  %v2206_v21 = vadd.f32 %v2160_v40, %v731_v10 }
  0xfa   : > { %1784 = vpow2.f32 %v1040_v7  ;;  %v982_v19 = vmul.f32 1.442695, %v912_v13  ;;  %v1046_v23 = vmul.f32 1.442695, %v944_v17  ;;  %v2209_v24 = vadd.f32 %v1637_v14, %v2160_v40 }
  0xfb   : > { %v606_v22 = vpop.f32.mrf.mxu0  ;;  %1786 = vpow2.f32 %v972_v16  ;;  %v2212_v25 = vadd.f32 %v1669_v15, %v2160_v40  ;;  %v734_v26 = vpop.f32.mrf.mxu1  ;;  %v910_v27 = vmin.f32 %v2203_v20, 20.0  ;;  %v942_v28 = vmin.f32 %v2206_v21, 20.0 }
  0xfc   : > { %1788 = vpow2.f32 %v1036_v18  ;;  %v913_v29 = vmin.f32 %v2209_v24, 20.0  ;;  %v2219_v35 = vadd.f32 %v2160_v40, %v606_v22  ;;  %v2223_v47 = vadd.f32 %v2160_v40, %v734_v26 }
  0xfd   : > { %1790 = vpow2.f32 %v982_v19  ;;  %v1640_v30 = vpop.f32.mrf.mxu0  ;;  %v978_v31 = vmul.f32 1.442695, %v910_v27  ;;  %v945_v32 = vmin.f32 %v2212_v25, 20.0  ;;  %v1042_v33 = vmul.f32 1.442695, %v942_v28  ;;  %v1672_v36 = vpop.f32.mrf.mxu1 }
  0xfe   : > { %1792 = vpow2.f32 %v1046_v23  ;;  %v984_v34 = vmul.f32 1.442695, %v913_v29  ;;  %v911_v46 = vmin.f32 %v2219_v35, 20.0  ;;  %v2226_v58 = vadd.f32 %v1640_v30, %v2160_v40 }
  0xff   : > { %1794 = vpow2.f32 %v978_v31  ;;  %v1048_v41 = vmul.f32 1.442695, %v945_v32  ;;  %v619_v42 = vpop.f32.mrf.mxu0  ;;  %v747_v51 = vpop.f32.mrf.mxu1  ;;  %v2229_v59 = vadd.f32 %v1672_v36, %v2160_v40  ;;  %v943_v0 = vmin.f32 %v2223_v47, 20.0 }
 0x100   : > { %1796 = vpow2.f32 %v1042_v33  ;;  %v980_v63 = vmul.f32 1.442695, %v911_v46  ;;  %v2233_v2 = vadd.f32 %v2160_v40, %v619_v42  ;;  %v2236_v9 = vadd.f32 %v2160_v40, %v747_v51 }
 0x101   : > { %v1775_v37 = vpop.eup %1774  ;;  %1798 = vpow2.f32 %v984_v34  ;;  %v1641_v60 = vpop.f32.mrf.mxu0  ;;  %v916_v13 = vmin.f32 %v2226_v58, 20.0  ;;  %v1044_v16 = vmul.f32 1.442695, %v943_v0  ;;  %v948_v17 = vmin.f32 %v2229_v59, 20.0 }
 0x102   : > { %v1777_v38 = vpop.eup %1776  ;;  %v1100_v39 = vadd.f32 1.0, %v1775_v37  ;;  %v1673_v3 = vpop.f32.mrf.mxu1  ;;  %v2239_v10 = vadd.f32 %v1641_v60, %v2160_v40  ;;  %v914_v23 = vmin.f32 %v2233_v2, 20.0  ;;  %v946_v29 = vmin.f32 %v2236_v9, 20.0 }
 0x103   : > { %v1132_v45 = vadd.f32 1.0, %v1777_v38  ;;  %v622_v18 = vpop.f32.mrf.mxu0  ;;  %v2247_v26 = vadd.f32 %v1673_v3, %v2160_v40  ;;  %v990_v32 = vmul.f32 1.442695, %v916_v13  ;;  %v1054_v37 = vmul.f32 1.442695, %v948_v17 }
 0x104   : > { %v1779_v48 = vpop.eup %1778  ;;  %1800 = vlog2.f32 %v1100_v39  ;;  %v750_v27 = vpop.f32.mrf.mxu1  ;;  %v917_v30 = vmin.f32 %v2239_v10, 20.0  ;;  %v2253_v33 = vadd.f32 %v2160_v40, %v622_v18  ;;  %vm877_vm5 = vcmp.gt.f32.partialorder %v2180_v56, 20.0 }
 0x105   : > { %v1781_v52 = vpop.eup %1780  ;;  %1802 = vlog2.f32 %v1132_v45  ;;  %v1098_v53 = vadd.f32 1.0, %v1779_v48  ;;  %v949_v38 = vmin.f32 %v2247_v26, 20.0  ;;  %v1644_v39 = vpop.f32.mrf.mxu0  ;;  %v986_v45 = vmul.f32 1.442695, %v914_v23 }
 0x106   : > { %v1783_v54 = vpop.eup %1782  ;;  %v1130_v57 = vadd.f32 1.0, %v1781_v52  ;;  %1804 = vpow2.f32 %v1048_v41  ;;  %v2260_v46 = vadd.f32 %v2160_v40, %v750_v27  ;;  %v1676_v48 = vpop.f32.mrf.mxu1  ;;  %vm843_vm6 = vcmp.gt.f32.partialorder %v2187_v4, 20.0 }
 0x107   : > { %v1785_v61 = vpop.eup %1784  ;;  %1806 = vlog2.f32 %v1098_v53  ;;  %v1101_v62 = vadd.f32 1.0, %v1783_v54  ;;  %v1050_v53 = vmul.f32 1.442695, %v946_v29  ;;  %v992_v54 = vmul.f32 1.442695, %v917_v30 }
 0x108   : > { %1808 = vlog2.f32 %v1130_v57  ;;  %v1133_v1 = vadd.f32 1.0, %v1785_v61  ;;  %v1787_v7 = vpop.eup %1786  ;;  %v915_v61 = vmin.f32 %v2253_v33, 20.0  ;;  %v2274_v3 = vadd.f32 %v1676_v48, %v2160_v40 }
 0x109   : > { %1810 = vlog2.f32 %v1101_v62  ;;  %v1789_v11 = vpop.eup %1788  ;;  %v1099_v12 = vadd.f32 1.0, %v1787_v7  ;;  %v2270_v62 = vadd.f32 %v1644_v39, %v2160_v40  ;;  %v635_v7 = vpop.f32.mrf.mxu0  ;;  %vm875_vm7 = vcmp.gt.f32.partialorder %v2190_v5, 20.0 }
 0x10a   : > { %1812 = vlog2.f32 %v1133_v1  ;;  %v1791_v14 = vpop.eup %1790  ;;  %v1131_v15 = vadd.f32 1.0, %v1789_v11  ;;  %v1056_v1 = vmul.f32 1.442695, %v949_v38  ;;  %vm848_vm8 = vcmp.gt.f32.partialorder %v2193_v6, 20.0 }
 0x10b   : > { %1814 = vpow2.f32 %v980_v63  ;;  %v1793_v19 = vpop.eup %1792  ;;  %v1104_v22 = vadd.f32 1.0, %v1791_v14  ;;  %v947_v14 = vmin.f32 %v2260_v46, 20.0  ;;  %v920_v18 = vmin.f32 %v2270_v62, 20.0 }
 0x10c   : > { %1816 = vlog2.f32 %v1099_v12  ;;  %v1136_v28 = vadd.f32 1.0, %v1793_v19  ;;  %v1795_v31 = vpop.eup %1794  ;;  %vm880_vm9 = vcmp.gt.f32.partialorder %v2196_v8, 20.0  ;;  %v2290_v23 = vadd.f32 %v2160_v40, %v635_v7 }
 0x10d   : > { %1818 = vlog2.f32 %v1131_v15  ;;  %v1797_v34 = vpop.eup %1796  ;;  %v1102_v36 = vadd.f32 1.0, %v1795_v31  ;;  %v952_v29 = vmin.f32 %v2274_v3, 20.0  ;;  %vm846_vm10 = vcmp.gt.f32.partialorder %v2203_v20, 20.0 }
 0x10e   : > { %1820 = vlog2.f32 %v1104_v22  ;;  %v1799_v41 = vpop.eup %1798  ;;  %v1134_v42 = vadd.f32 1.0, %v1797_v34  ;;  %v988_v22 = vmul.f32 1.442695, %v915_v61  ;;  %v1052_v34 = vmul.f32 1.442695, %v947_v14 }
 0x10f   : > { %1822 = vlog2.f32 %v1136_v28  ;;  %v1105_v52 = vadd.f32 1.0, %v1799_v41  ;;  %vm878_vm11 = vcmp.gt.f32.partialorder %v2206_v21, 20.0  ;;  %v998_v39 = vmul.f32 1.442695, %v920_v18  ;;  %v1645_v41 = vpop.f32.mrf.mxu0 }
 0x110   : > { %1824 = vpow2.f32 %v1044_v16  ;;  %v918_v48 = vmin.f32 %v2290_v23, 20.0  ;;  %vm849_vm12 = vcmp.gt.f32.partialorder %v2209_v24, 20.0  ;;  %vm881_vm13 = vcmp.gt.f32.partialorder %v2212_v25, 20.0 }
 0x111   : > { %v1801_v51 = vpop.eup %1800  ;;  %1826 = vlog2.f32 %v1102_v36  ;;  %v763_v36 = vpop.f32.mrf.mxu1  ;;  %vm847_vm14 = vcmp.gt.f32.partialorder %v2219_v35, 20.0  ;;  %vm879_vm15 = vcmp.gt.f32.partialorder %v2223_v47, 20.0 }
 0x112   : > { %v1803_v57 = vpop.eup %1802  ;;  %v1167_v60 = vmul.f32 0.6931472, %v1801_v51  ;;  %1828 = vlog2.f32 %v1134_v42 }
 0x113   : > { %v1805_v63 = vpop.eup %1804  ;;  %v1231_v0 = vmul.f32 0.6931472, %v1803_v57  ;;  %1830 = vlog2.f32 %v1105_v52  ;;  %v1062_v52 = vmul.f32 1.442695, %v952_v29 }
 0x114   : > { %v1807_v11 = vpop.eup %1806  ;;  %v1292_v12 = vsel %vm844_vm0, %v2163_v43, %v1167_v60  ;;  %v1137_v13 = vadd.f32 1.0, %v1805_v63  ;;  %1832 = vpow2.f32 %v990_v32  ;;  %v2319_v60 = vadd.f32 %v1645_v41, %v2160_v40 }
 0x115   : > { %v1809_v15 = vpop.eup %1808  ;;  %1356 = vst [vmem:[%s2266_s18 + $0x10] sm:$0xff] %v1292_v12  ;;  %v1324_v16 = vsel %vm876_vm1, %v2166_v44, %v1231_v0  ;;  %v1163_v17 = vmul.f32 0.6931472, %v1807_v11  ;;  %1834 = vpow2.f32 %v1054_v37  ;;  %vm852_vm0 = vcmp.gt.f32.partialorder %v2226_v58, 20.0 }
 0x116   : > { %v1811_v43 = vpop.eup %1810  ;;  %1388 = vst [vmem:[%s2266_s18 + $0x110] sm:$0xff] %v1324_v16  ;;  %v1227_v19 = vmul.f32 0.6931472, %v1809_v15  ;;  %1836 = vlog2.f32 %v1137_v13  ;;  %v1677_v13 = vpop.f32.mrf.mxu1  ;;  %vm884_vm1 = vcmp.gt.f32.partialorder %v2229_v59, 20.0 }
 0x117   : > { %v1813_v27 = vpop.eup %1812  ;;  %v1290_v44 = vsel %vm842_vm2, %v2171_v49, %v1163_v17  ;;  %v1169_v28 = vmul.f32 0.6931472, %v1811_v43  ;;  %1838 = vpow2.f32 %v986_v45  ;;  %v638_v16 = vpop.f32.mrf.mxu0  ;;  %v921_v43 = vmin.f32 %v2319_v60, 20.0 }
 0x118   : > { %v1815_v30 = vpop.eup %1814  ;;  %1354 = vst [vmem:[%s2266_s18] sm:$0xff] %v1290_v44  ;;  %v1322_v31 = vsel %vm874_vm3, %v2174_v50, %v1227_v19  ;;  %v1233_v32 = vmul.f32 0.6931472, %v1813_v27  ;;  %1840 = vpow2.f32 %v1050_v53  ;;  %v2313_v53 = vadd.f32 %v2160_v40, %v763_v36 }
 0x119   : > { %v1817_v37 = vpop.eup %1816  ;;  %1386 = vst [vmem:[%s2266_s18 + $0x100] sm:$0xff] %v1322_v31  ;;  %v1293_v49 = vsel %vm845_vm4, %v2177_v55, %v1169_v28  ;;  %v1103_v38 = vadd.f32 1.0, %v1815_v30  ;;  %1842 = vpow2.f32 %v992_v54  ;;  %v2341_v27 = vadd.f32 %v1677_v13, %v2160_v40  ;;  %v766_v31 = vpop.f32.mrf.mxu1 }
 0x11a   : > { %v1819_v50 = vpop.eup %1818  ;;  %1357 = vst [vmem:[%s2266_s18 + $0x18] sm:$0xff] %v1293_v49  ;;  %v1325_v42 = vsel %vm877_vm5, %v2180_v56, %v1233_v32  ;;  %v1165_v45 = vmul.f32 0.6931472, %v1817_v37  ;;  %1844 = vpow2.f32 %v1056_v1  ;;  %v994_v1 = vmul.f32 1.442695, %v918_v48  ;;  %v1648_v37 = vpop.f32.mrf.mxu0 }
 0x11b   : > { %v1821_v51 = vpop.eup %1820  ;;  %1389 = vst [vmem:[%s2266_s18 + $0x118] sm:$0xff] %v1325_v42  ;;  %v1229_v55 = vmul.f32 0.6931472, %v1819_v50  ;;  %1846 = vlog2.f32 %v1103_v38  ;;  %v950_v12 = vmin.f32 %v2313_v53, 20.0  ;;  %v1000_v30 = vmul.f32 1.442695, %v921_v43  ;;  %v1680_v48 = vpop.f32.mrf.mxu1 }
 0x11c   : > { %v1823_v54 = vpop.eup %1822  ;;  %v1291_v57 = vsel %vm843_vm6, %v2187_v4, %v1165_v45  ;;  %v1175_v56 = vmul.f32 0.6931472, %v1821_v51  ;;  %1848 = vpow2.f32 %v988_v22  ;;  %v953_v36 = vmin.f32 %v2341_v27, 20.0 }
 0x11d   : > { %v1825_v61 = vpop.eup %1824  ;;  %1355 = vst [vmem:[%s2266_s18 + $0x8] sm:$0xff] %v1291_v57  ;;  %v1323_v63 = vsel %vm875_vm7, %v2190_v5, %v1229_v55  ;;  %v1239_v0 = vmul.f32 0.6931472, %v1823_v54  ;;  %1850 = vpow2.f32 %v1052_v34  ;;  %v1058_v18 = vmul.f32 1.442695, %v950_v12  ;;  %v651_v57 = vpop.f32.mrf.mxu0 }
 0x11e   : > { %v1827_v7 = vpop.eup %1826  ;;  %1387 = vst [vmem:[%s2266_s18 + $0x108] sm:$0xff] %v1323_v63  ;;  %v1296_v4 = vsel %vm848_vm8, %v2193_v6, %v1175_v56  ;;  %v1135_v11 = vadd.f32 1.0, %v1825_v61  ;;  %1852 = vpow2.f32 %v998_v39  ;;  %v2359_v45 = vadd.f32 %v2160_v40, %v766_v31  ;;  %v779_v12 = vpop.f32.mrf.mxu1 }
 0x11f   : > { %v1829_v14 = vpop.eup %1828  ;;  %1360 = vst [vmem:[%s2266_s18 + $0x30] sm:$0xff] %v1296_v4  ;;  %v1328_v5 = vsel %vm880_vm9, %v2196_v8, %v1239_v0  ;;  %v1171_v15 = vmul.f32 0.6931472, %v1827_v7  ;;  %1854 = vpow2.f32 %v1062_v52  ;;  %v1064_v52 = vmul.f32 1.442695, %v953_v36 }
 0x120   : > { %v1831_v17 = vpop.eup %1830  ;;  %1392 = vst [vmem:[%s2266_s18 + $0x130] sm:$0xff] %v1328_v5  ;;  %v1235_v6 = vmul.f32 0.6931472, %v1829_v14  ;;  %1856 = vlog2.f32 %v1135_v11  ;;  %v2364_v63 = vadd.f32 %v1648_v37, %v2160_v40  ;;  %v951_v4 = vmin.f32 %v2359_v45, 20.0 }
 0x121   : > { %v1833_v19 = vpop.eup %1832  ;;  %v1294_v22 = vsel %vm846_vm10, %v2203_v20, %v1171_v15  ;;  %v1177_v8 = vmul.f32 0.6931472, %v1831_v17  ;;  %1858 = vpow2.f32 %v994_v1  ;;  %v2370_v11 = vadd.f32 %v1680_v48, %v2160_v40 }
 0x122   : > { %v1835_v44 = vpop.eup %1834  ;;  %1358 = vst [vmem:[%s2266_s18 + $0x20] sm:$0xff] %v1294_v22  ;;  %v1326_v28 = vsel %vm878_vm11, %v2206_v21, %v1235_v6  ;;  %v1108_v29 = vadd.f32 1.0, %v1833_v19  ;;  %1860 = vpow2.f32 %v1058_v18  ;;  %v2354_v21 = vadd.f32 %v2160_v40, %v638_v16  ;;  %v1649_v16 = vpop.f32.mrf.mxu0 }
 0x123   : > { %v1837_v32 = vpop.eup %1836  ;;  %1390 = vst [vmem:[%s2266_s18 + $0x120] sm:$0xff] %v1326_v28  ;;  %v1297_v20 = vsel %vm849_vm12, %v2209_v24, %v1177_v8  ;;  %v1140_v34 = vadd.f32 1.0, %v1835_v44  ;;  %v924_v18 = vmin.f32 %v2364_v63, 20.0  ;;  %v956_v43 = vmin.f32 %v2370_v11, 20.0 }
 0x124   : > { %v1839_v49 = vpop.eup %1838  ;;  %1361 = vst [vmem:[%s2266_s18 + $0x38] sm:$0xff] %v1297_v20  ;;  %v1241_v38 = vmul.f32 0.6931472, %v1837_v32  ;;  %1862 = vlog2.f32 %v1108_v29  ;;  %v919_v54 = vmin.f32 %v2354_v21, 20.0  ;;  %v2382_v8 = vadd.f32 %v2160_v40, %v779_v12 }
 0x125   : > { %v1841_v39 = vpop.eup %1840  ;;  %1864 = vlog2.f32 %v1140_v34  ;;  %v1106_v41 = vadd.f32 1.0, %v1839_v49  ;;  %vm850_vm2 = vcmp.gt.f32.partialorder %v2233_v2, 20.0  ;;  %v2386_v29 = vadd.f32 %v1649_v16, %v2160_v40  ;;  %v1681_v34 = vpop.f32.mrf.mxu1 }
 0x126   : > { %v1843_v50 = vpop.eup %1842  ;;  %v1329_v24 = vsel %vm881_vm13, %v2212_v25, %v1241_v38  ;;  %v1138_v42 = vadd.f32 1.0, %v1841_v39  ;;  %1866 = vpow2.f32 %v1000_v30  ;;  %v996_v15 = vmul.f32 1.442695, %v919_v54  ;;  %v654_v38 = vpop.f32.mrf.mxu0 }
 0x127   : > { %v1845_v51 = vpop.eup %1844  ;;  %1393 = vst [vmem:[%s2266_s18 + $0x138] sm:$0xff] %v1329_v24  ;;  %1868 = vlog2.f32 %v1106_v41  ;;  %v1109_v55 = vadd.f32 1.0, %v1843_v50  ;;  %vm882_vm3 = vcmp.gt.f32.partialorder %v2236_v9, 20.0  ;;  %v1060_v32 = vmul.f32 1.442695, %v951_v4 }
 0x128   : > { %v1847_v56 = vpop.eup %1846  ;;  %1870 = vlog2.f32 %v1138_v42  ;;  %v1141_v61 = vadd.f32 1.0, %v1845_v51  ;;  %vm853_vm4 = vcmp.gt.f32.partialorder %v2239_v10, 20.0  ;;  %v1006_v49 = vmul.f32 1.442695, %v924_v18 }
 0x129   : > { %v1849_v25 = vpop.eup %1848  ;;  %v1173_v0 = vmul.f32 0.6931472, %v1847_v56  ;;  %1872 = vlog2.f32 %v1109_v55  ;;  %vm885_vm5 = vcmp.gt.f32.partialorder %v2247_v26, 20.0  ;;  %v1070_v41 = vmul.f32 1.442695, %v956_v43 }
 0x12a   : > { %v1851_v1 = vpop.eup %1850  ;;  %1874 = vlog2.f32 %v1141_v61  ;;  %v1107_v7 = vadd.f32 1.0, %v1849_v25  ;;  %v954_v50 = vmin.f32 %v2382_v8, 20.0  ;;  %v2399_v48 = vadd.f32 %v1681_v34, %v2160_v40 }
 0x12b   : > { %v1853_v13 = vpop.eup %1852  ;;  %v1295_v14 = vsel %vm847_vm14, %v2219_v35, %v1173_v0  ;;  %v1139_v5 = vadd.f32 1.0, %v1851_v1  ;;  %1876 = vpow2.f32 %v1064_v52  ;;  %v2379_v35 = vadd.f32 %v2160_v40, %v651_v57  ;;  %v782_v0 = vpop.f32.mrf.mxu1 }
 0x12c   : > { %v1855_v17 = vpop.eup %1854  ;;  %1359 = vst [vmem:[%s2266_s18 + $0x28] sm:$0xff] %v1295_v14  ;;  %1878 = vlog2.f32 %v1107_v7  ;;  %v1112_v6 = vadd.f32 1.0, %v1853_v13  ;;  %vm851_vm6 = vcmp.gt.f32.partialorder %v2253_v33, 20.0  ;;  %v2403_v54 = vadd.f32 %v2160_v40, %v654_v38 }
 0x12d   : > { %v1857_v19 = vpop.eup %1856  ;;  %1880 = vlog2.f32 %v1139_v5  ;;  %v1144_v22 = vadd.f32 1.0, %v1855_v17  ;;  %v922_v20 = vmin.f32 %v2379_v35, 20.0  ;;  %v1066_v25 = vmul.f32 1.442695, %v954_v50 }
 0x12e   : > { %v1859_v44 = vpop.eup %1858  ;;  %v1237_v28 = vmul.f32 0.6931472, %v1857_v19  ;;  %1882 = vlog2.f32 %v1112_v6  ;;  %vm883_vm7 = vcmp.gt.f32.partialorder %v2260_v46, 20.0  ;;  %v1652_v19 = vpop.f32.mrf.mxu0  ;;  %vm856_vm8 = vcmp.gt.f32.partialorder %v2270_v62, 20.0 }
 0x12f   : > { %v1861_v30 = vpop.eup %1860  ;;  %1884 = vlog2.f32 %v1144_v22  ;;  %v1110_v31 = vadd.f32 1.0, %v1859_v44  ;;  %v1002_v52 = vmul.f32 1.442695, %v922_v20  ;;  %v1684_v22 = vpop.f32.mrf.mxu1  ;;  %v2432_v20 = vadd.f32 %v2160_v40, %v782_v0 }
 0x130   : > { %v1327_v36 = vsel %vm879_vm15, %v2223_v47, %v1237_v28  ;;  %v1142_v37 = vadd.f32 1.0, %v1861_v30  ;;  %1886 = vpow2.f32 %v996_v15  ;;  %v925_v47 = vmin.f32 %v2386_v29, 20.0 }
 0x131   : > { %v1863_v39 = vpop.eup %1862  ;;  %1391 = vst [vmem:[%s2266_s18 + $0x128] sm:$0xff] %v1327_v36  ;;  %1888 = vlog2.f32 %v1110_v31  ;;  %vm888_vm9 = vcmp.gt.f32.partialorder %v2274_v3, 20.0  ;;  %vm854_vm10 = vcmp.gt.f32.partialorder %v2290_v23, 20.0  ;;  %vm886_vm11 = vcmp.gt.f32.partialorder %v2313_v53, 20.0 }
 0x132   : > { %v1865_v24 = vpop.eup %1864  ;;  %v1183_v42 = vmul.f32 0.6931472, %v1863_v39  ;;  %1890 = vlog2.f32 %v1142_v37  ;;  %v1008_v12 = vmul.f32 1.442695, %v925_v47  ;;  %v2439_v37 = vadd.f32 %v1684_v22, %v2160_v40  ;;  %v667_v39 = vpop.f32.mrf.mxu0 }
 0x133   : > { %v1867_v51 = vpop.eup %1866  ;;  %v1247_v55 = vmul.f32 0.6931472, %v1865_v24  ;;  %1892 = vpow2.f32 %v1060_v32  ;;  %vm857_vm12 = vcmp.gt.f32.partialorder %v2319_v60, 20.0  ;;  %vm889_vm13 = vcmp.gt.f32.partialorder %v2341_v27, 20.0 }
 0x134   : > { %v1869_v57 = vpop.eup %1868  ;;  %v1300_v56 = vsel %vm852_vm0, %v2226_v58, %v1183_v42  ;;  %v1113_v61 = vadd.f32 1.0, %v1867_v51  ;;  %1894 = vpow2.f32 %v1006_v49  ;;  %v957_v58 = vmin.f32 %v2399_v48, 20.0 }
 0x135   : > { %v1871_v1 = vpop.eup %1870  ;;  %1364 = vst [vmem:[%s2266_s18 + $0x50] sm:$0xff] %v1300_v56  ;;  %v1332_v7 = vsel %vm884_vm1, %v2229_v59, %v1247_v55  ;;  %v1179_v4 = vmul.f32 0.6931472, %v1869_v57  ;;  %1896 = vpow2.f32 %v1070_v41  ;;  %v923_v59 = vmin.f32 %v2403_v54, 20.0 }
 0x136   : > { %v1873_v13 = vpop.eup %1872  ;;  %1396 = vst [vmem:[%s2266_s18 + $0x150] sm:$0xff] %v1332_v7  ;;  %v1243_v14 = vmul.f32 0.6931472, %v1871_v1  ;;  %1898 = vlog2.f32 %v1113_v61  ;;  %v1072_v43 = vmul.f32 1.442695, %v957_v58  ;;  %v955_v42 = vmin.f32 %v2432_v20, 20.0 }
 0x137   : > { %v1875_v5 = vpop.eup %1874  ;;  %v1298_v15 = vsel %vm850_vm2, %v2233_v2, %v1179_v4  ;;  %v1185_v16 = vmul.f32 0.6931472, %v1873_v13  ;;  %1900 = vpow2.f32 %v1002_v52  ;;  %v1004_v30 = vmul.f32 1.442695, %v923_v59  ;;  %v795_v52 = vpop.f32.mrf.mxu1 }
 0x138   : > { %v1877_v17 = vpop.eup %1876  ;;  %1362 = vst [vmem:[%s2266_s18 + $0x40] sm:$0xff] %v1298_v15  ;;  %v1330_v6 = vsel %vm882_vm3, %v2236_v9, %v1243_v14  ;;  %v1249_v18 = vmul.f32 0.6931472, %v1875_v5  ;;  %1902 = vpow2.f32 %v1066_v25  ;;  %v1068_v61 = vmul.f32 1.442695, %v955_v42  ;;  %v1653_v4 = vpop.f32.mrf.mxu0 }
 0x139   : > { %v1879_v44 = vpop.eup %1878  ;;  %1394 = vst [vmem:[%s2266_s18 + $0x140] sm:$0xff] %v1330_v6  ;;  %v1301_v2 = vsel %vm853_vm4, %v2239_v10, %v1185_v16  ;;  %v1145_v28 = vadd.f32 1.0, %v1877_v17  ;;  %1904 = vpow2.f32 %v1008_v12  ;;  %v2436_v10 = vadd.f32 %v1652_v19, %v2160_v40  ;;  %v1685_v16 = vpop.f32.mrf.mxu1 }
 0x13a   : > { %v1881_v31 = vpop.eup %1880  ;;  %1365 = vst [vmem:[%s2266_s18 + $0x58] sm:$0xff] %v1301_v2  ;;  %v1333_v9 = vsel %vm885_vm5, %v2247_v26, %v1249_v18  ;;  %v1181_v32 = vmul.f32 0.6931472, %v1879_v44  ;;  %1906 = vpow2.f32 %v1072_v43  ;;  %v960_v25 = vmin.f32 %v2439_v37, 20.0  ;;  %v670_v19 = vpop.f32.mrf.mxu0 }
 0x13b   : > { %v1883_v34 = vpop.eup %1882  ;;  %1397 = vst [vmem:[%s2266_s18 + $0x158] sm:$0xff] %v1333_v9  ;;  %v1245_v36 = vmul.f32 0.6931472, %v1881_v31  ;;  %1908 = vlog2.f32 %v1145_v28  ;;  %v928_v55 = vmin.f32 %v2436_v10, 20.0  ;;  %v2460_v7 = vadd.f32 %v2160_v40, %v667_v39 }
 0x13c   : > { %v1885_v49 = vpop.eup %1884  ;;  %v1299_v26 = vsel %vm851_vm6, %v2253_v33, %v1181_v32  ;;  %v1191_v38 = vmul.f32 0.6931472, %v1883_v34  ;;  %1910 = vpow2.f32 %v1004_v30  ;;  %v1078_v15 = vmul.f32 1.442695, %v960_v25 }
 0x13d   : > { %v1887_v41 = vpop.eup %1886  ;;  %1363 = vst [vmem:[%s2266_s18 + $0x48] sm:$0xff] %v1299_v26  ;;  %v1331_v50 = vsel %vm883_vm7, %v2260_v46, %v1245_v36  ;;  %v1255_v24 = vmul.f32 0.6931472, %v1885_v49  ;;  %v926_v6 = vmin.f32 %v2460_v7, 20.0  ;;  %v2479_v2 = vadd.f32 %v1685_v16, %v2160_v40  ;;  %v798_v26 = vpop.f32.mrf.mxu1 }
 0x13e   : > { %v1889_v47 = vpop.eup %1888  ;;  %1395 = vst [vmem:[%s2266_s18 + $0x148] sm:$0xff] %v1331_v50  ;;  %v1304_v33 = vsel %vm856_vm8, %v2270_v62, %v1191_v38  ;;  %v1111_v51 = vadd.f32 1.0, %v1887_v41  ;;  %v1014_v62 = vmul.f32 1.442695, %v928_v55  ;;  %vm855_vm14 = vcmp.gt.f32.partialorder %v2354_v21, 20.0 }
 0x13f   : > { %v1891_v57 = vpop.eup %1890  ;;  %1368 = vst [vmem:[%s2266_s18 + $0x70] sm:$0xff] %v1304_v33  ;;  %v1336_v46 = vsel %vm888_vm9, %v2274_v3, %v1255_v24  ;;  %v1187_v56 = vmul.f32 0.6931472, %v1889_v47  ;;  %v1010_v36 = vmul.f32 1.442695, %v926_v6  ;;  %v961_v47 = vmin.f32 %v2479_v2, 20.0 }
 0x140   : > { %v1893_v0 = vpop.eup %1892  ;;  %1400 = vst [vmem:[%s2266_s18 + $0x170] sm:$0xff] %v1336_v46  ;;  %v1251_v1 = vmul.f32 0.6931472, %v1891_v57  ;;  %1912 = vlog2.f32 %v1111_v51  ;;  %v2488_v51 = vadd.f32 %v2160_v40, %v670_v19  ;;  %v2491_v55 = vadd.f32 %v2160_v40, %v798_v26 }
 0x141   : > { %v1895_v12 = vpop.eup %1894  ;;  %v1302_v3 = vsel %vm854_vm10, %v2290_v23, %v1187_v56  ;;  %v1143_v13 = vadd.f32 1.0, %v1893_v0  ;;  %1914 = vpow2.f32 %v1068_v61  ;;  %v2471_v23 = vadd.f32 %v2160_v40, %v795_v52  ;;  %v1688_v56 = vpop.f32.mrf.mxu1 }
 0x142   : > { %v1897_v14 = vpop.eup %1896  ;;  %1366 = vst [vmem:[%s2266_s18 + $0x60] sm:$0xff] %v1302_v3  ;;  %v1334_v58 = vsel %vm886_vm11, %v2313_v53, %v1251_v1  ;;  %v1116_v5 = vadd.f32 1.0, %v1895_v12  ;;  %1916 = vpow2.f32 %v1014_v62  ;;  %v2475_v53 = vadd.f32 %v1653_v4, %v2160_v40  ;;  %v2509_v12 = vld [vmem:[%s2704_s2] ss:$0 sm:$0xff] }
 0x143   : > { %v1899_v59 = vpop.eup %1898  ;;  %1398 = vst [vmem:[%s2266_s18 + $0x160] sm:$0xff] %v1334_v58  ;;  %1918 = vlog2.f32 %v1143_v13  ;;  %v1148_v17 = vadd.f32 1.0, %v1897_v14  ;;  %v958_v9 = vmin.f32 %v2471_v23, 20.0  ;;  %v1080_v57 = vmul.f32 1.442695, %v961_v47 }
 0x144   : > { %v1901_v18 = vpop.eup %1900  ;;  %v1193_v43 = vmul.f32 0.6931472, %v1899_v59  ;;  %1920 = vlog2.f32 %v1116_v5  ;;  %v929_v49 = vmin.f32 %v2475_v53, 20.0  ;;  %vm887_vm15 = vcmp.gt.f32.partialorder %v2359_v45, 20.0  ;;  %v811_v5 = vpop.f32.mrf.mxu1 }
 0x145   : > { %v1903_v22 = vpop.eup %1902  ;;  %1922 = vlog2.f32 %v1148_v17  ;;  %v1114_v44 = vadd.f32 1.0, %v1901_v18  ;;  %v1074_v41 = vmul.f32 1.442695, %v958_v9  ;;  %vm860_vm0 = vcmp.gt.f32.partialorder %v2364_v63, 20.0 }
 0x146   : > { %v1905_v28 = vpop.eup %1904  ;;  %v1305_v30 = vsel %vm857_vm12, %v2319_v60, %v1193_v43  ;;  %v1146_v31 = vadd.f32 1.0, %v1903_v22  ;;  %1924 = vpow2.f32 %v1078_v15  ;;  %v1656_v60 = vpop.f32.mrf.mxu0  ;;  %v1016_v42 = vmul.f32 1.442695, %v929_v49 }
 0x147   : > { %v1907_v32 = vpop.eup %1906  ;;  %1369 = vst [vmem:[%s2266_s18 + $0x78] sm:$0xff] %v1305_v30  ;;  %1926 = vlog2.f32 %v1114_v44  ;;  %v1117_v34 = vadd.f32 1.0, %v1905_v28  ;;  %v2497_v46 = vadd.f32 %v1656_v60, %v2160_v40  ;;  %v927_v61 = vmin.f32 %v2488_v51, 20.0  ;;  %v1689_v60 = vpop.f32.mrf.mxu1 }
 0x148   : > { %v1909_v38 = vpop.eup %1908  ;;  %1928 = vlog2.f32 %v1146_v31  ;;  %v1149_v39 = vadd.f32 1.0, %v1907_v32  ;;  %vm892_vm1 = vcmp.gt.f32.partialorder %v2370_v11, 20.0  ;;  %v683_v1 = vpop.f32.mrf.mxu0  ;;  %v2512_v3 = vadd.f32 %v2509_v12, %v1688_v56 }
 0x149   : > { %v1911_v50 = vpop.eup %1910  ;;  %v1257_v24 = vmul.f32 0.6931472, %v1909_v38  ;;  %1930 = vlog2.f32 %v1117_v34  ;;  %v932_v0 = vmin.f32 %v2497_v46, 20.0  ;;  %v1012_v4 = vmul.f32 1.442695, %v927_v61 }
 0x14a   : > { %1932 = vlog2.f32 %v1149_v39  ;;  %v1115_v33 = vadd.f32 1.0, %v1911_v50  ;;  %vm858_vm2 = vcmp.gt.f32.partialorder %v2379_v35, 20.0  ;;  %v964_v43 = vmin.f32 %v2512_v3, 20.0  ;;  %v1657_v22 = vpop.f32.mrf.mxu0 }
 0x14b   : > { %v1337_v52 = vsel %vm889_vm13, %v2341_v27, %v1257_v24  ;;  %1934 = vpow2.f32 %v1010_v36  ;;  %v959_v27 = vmin.f32 %v2491_v55, 20.0  ;;  %v1022_v17 = vmul.f32 1.442695, %v932_v0 }
 0x14c   : > { %1401 = vst [vmem:[%s2266_s18 + $0x178] sm:$0xff] %v1337_v52  ;;  %1936 = vlog2.f32 %v1115_v33  ;;  %v2521_v19 = vadd.f32 %v2509_v12, %v683_v1  ;;  %vm890_vm3 = vcmp.gt.f32.partialorder %v2382_v8, 20.0  ;;  %v1086_v32 = vmul.f32 1.442695, %v964_v43 }
 0x14d   : > { %v1913_v25 = vpop.eup %1912  ;;  %1938 = vpow2.f32 %v1074_v41  ;;  %v1076_v58 = vmul.f32 1.442695, %v959_v27  ;;  %v2535_v26 = vadd.f32 %v2509_v12, %v1657_v22  ;;  %vm861_vm4 = vcmp.gt.f32.partialorder %v2386_v29, 20.0 }
 0x14e   : > { %v1915_v40 = vpop.eup %1914  ;;  %v1189_v62 = vmul.f32 0.6931472, %v1913_v25  ;;  %1940 = vpow2.f32 %v1016_v42  ;;  %v930_v41 = vmin.f32 %v2521_v19, 20.0  ;;  %vm893_vm5 = vcmp.gt.f32.partialorder %v2399_v48, 20.0 }
 0x14f   : > { %v1917_v13 = vpop.eup %1916  ;;  %v1147_v14 = vadd.f32 1.0, %v1915_v40  ;;  %1942 = vpow2.f32 %v1080_v57  ;;  %v933_v25 = vmin.f32 %v2535_v26, 20.0  ;;  %v2559_v1 = vadd.f32 %v2509_v12, %v1689_v60  ;;  %v686_v40 = vpop.f32.mrf.mxu0 }
 0x150   : > { %v1919_v15 = vpop.eup %1918  ;;  %v1303_v16 = vsel %vm855_vm14, %v2354_v21, %v1189_v62  ;;  %v1120_v59 = vadd.f32 1.0, %v1917_v13  ;;  %1944 = vpow2.f32 %v1012_v4  ;;  %v2525_v21 = vadd.f32 %v2509_v12, %v811_v5  ;;  %v814_v62 = vpop.f32.mrf.mxu1 }
 0x151   : > { %v1921_v6 = vpop.eup %1920  ;;  %1367 = vst [vmem:[%s2266_s18 + $0x68] sm:$0xff] %v1303_v16  ;;  %v1253_v18 = vmul.f32 0.6931472, %v1919_v15  ;;  %1946 = vlog2.f32 %v1147_v14  ;;  %v1018_v33 = vmul.f32 1.442695, %v930_v41  ;;  %vm859_vm6 = vcmp.gt.f32.partialorder %v2403_v54, 20.0  ;;  %v1660_v22 = vpop.f32.mrf.mxu0 }
 0x152   : > { %v1923_v44 = vpop.eup %1922  ;;  %v1199_v28 = vmul.f32 0.6931472, %v1921_v6  ;;  %1948 = vlog2.f32 %v1120_v59  ;;  %v962_v24 = vmin.f32 %v2525_v21, 20.0  ;;  %v1024_v14 = vmul.f32 1.442695, %v933_v25 }
 0x153   : > { %v1925_v30 = vpop.eup %1924  ;;  %v1335_v31 = vsel %vm887_vm15, %v2359_v45, %v1253_v18  ;;  %v1263_v9 = vmul.f32 0.6931472, %v1923_v44  ;;  %1950 = vpow2.f32 %v1076_v58  ;;  %v965_v5 = vmin.f32 %v2559_v1, 20.0  ;;  %v1692_v44 = vpop.f32.mrf.mxu1 }
 0x154   : > { %v1927_v34 = vpop.eup %1926  ;;  %1399 = vst [vmem:[%s2266_s18 + $0x168] sm:$0xff] %v1335_v31  ;;  %v1308_v36 = vsel %vm860_vm0, %v2364_v63, %v1199_v28  ;;  %v1152_v49 = vadd.f32 1.0, %v1925_v30  ;;  %1952 = vpow2.f32 %v1022_v17  ;;  %v1082_v61 = vmul.f32 1.442695, %v962_v24  ;;  %v699_v60 = vpop.f32.mrf.mxu0 }
 0x155   : > { %v1929_v38 = vpop.eup %1928  ;;  %1372 = vst [vmem:[%s2266_s18 + $0x90] sm:$0xff] %v1308_v36  ;;  %v1340_v45 = vsel %vm892_vm1, %v2370_v11, %v1263_v9  ;;  %v1195_v39 = vmul.f32 0.6931472, %v1927_v34  ;;  %1954 = vpow2.f32 %v1086_v32  ;;  %v2570_v17 = vadd.f32 %v2509_v12, %v686_v40 }
 0x156   : > { %v1931_v50 = vpop.eup %1930  ;;  %1404 = vst [vmem:[%s2266_s18 + $0x190] sm:$0xff] %v1340_v45  ;;  %v1259_v63 = vmul.f32 0.6931472, %v1929_v38  ;;  %1956 = vlog2.f32 %v1152_v49  ;;  %v1088_v18 = vmul.f32 1.442695, %v965_v5  ;;  %v2574_v43 = vadd.f32 %v2509_v12, %v814_v62 }
 0x157   : > { %v1933_v42 = vpop.eup %1932  ;;  %v1306_v11 = vsel %vm858_vm2, %v2379_v35, %v1195_v39  ;;  %v1201_v47 = vmul.f32 0.6931472, %v1931_v50  ;;  %1958 = vpow2.f32 %v1018_v33  ;;  %vm891_vm7 = vcmp.gt.f32.partialorder %v2432_v20, 20.0  ;;  %v827_v50 = vpop.f32.mrf.mxu1 }
 0x158   : > { %v1935_v52 = vpop.eup %1934  ;;  %1370 = vst [vmem:[%s2266_s18 + $0x80] sm:$0xff] %v1306_v11  ;;  %v1338_v57 = vsel %vm890_vm3, %v2382_v8, %v1259_v63  ;;  %v1265_v56 = vmul.f32 0.6931472, %v1933_v42  ;;  %1960 = vpow2.f32 %v1082_v61  ;;  %v963_v32 = vmin.f32 %v2574_v43, 20.0 }
 0x159   : > { %v1937_v27 = vpop.eup %1936  ;;  %1402 = vst [vmem:[%s2266_s18 + $0x180] sm:$0xff] %v1338_v57  ;;  %v1309_v35 = vsel %vm861_vm4, %v2386_v29, %v1201_v47  ;;  %v1118_v0 = vadd.f32 1.0, %v1935_v52  ;;  %v2580_v38 = vadd.f32 %v2509_v12, %v1660_v22  ;;  %vm864_vm8 = vcmp.gt.f32.partialorder %v2436_v10, 20.0  ;;  %v1693_v62 = vpop.f32.mrf.mxu1 }
 0x15a   : > { %v1939_v4 = vpop.eup %1938  ;;  %1373 = vst [vmem:[%s2266_s18 + $0x98] sm:$0xff] %v1309_v35  ;;  %v1341_v8 = vsel %vm893_vm5, %v2399_v48, %v1265_v56  ;;  %v1197_v13 = vmul.f32 0.6931472, %v1937_v27  ;;  %v1084_v11 = vmul.f32 1.442695, %v963_v32  ;;  %v2592_v56 = vadd.f32 %v2509_v12, %v699_v60  ;;  %v1661_v27 = vpop.f32.mrf.mxu0 }
 0x15b   : > { %v1941_v58 = vpop.eup %1940  ;;  %1405 = vst [vmem:[%s2266_s18 + $0x198] sm:$0xff] %v1341_v8  ;;  %1962 = vlog2.f32 %v1118_v0  ;;  %v1150_v29 = vadd.f32 1.0, %v1939_v4  ;;  %v936_v52 = vmin.f32 %v2580_v38, 20.0  ;;  %vm896_vm9 = vcmp.gt.f32.partialorder %v2439_v37, 20.0 }
 0x15c   : > { %v1943_v15 = vpop.eup %1942  ;;  %v1307_v16 = vsel %vm859_vm6, %v2403_v54, %v1197_v13  ;;  %v1121_v59 = vadd.f32 1.0, %v1941_v58  ;;  %1964 = vpow2.f32 %v1024_v14  ;;  %v931_v54 = vmin.f32 %v2570_v17, 20.0 }
 0x15d   : > { %v1945_v48 = vpop.eup %1944  ;;  %1371 = vst [vmem:[%s2266_s18 + $0x88] sm:$0xff] %v1307_v16  ;;  %1966 = vlog2.f32 %v1150_v29  ;;  %v1153_v6 = vadd.f32 1.0, %v1943_v15  ;;  %v1030_v61 = vmul.f32 1.442695, %v936_v52  ;;  %vm862_vm10 = vcmp.gt.f32.partialorder %v2460_v7, 20.0 }
 0x15e   : > { %v1947_v28 = vpop.eup %1946  ;;  %1968 = vlog2.f32 %v1121_v59  ;;  %v1119_v30 = vadd.f32 1.0, %v1945_v48  ;;  %v1020_v49 = vmul.f32 1.442695, %v931_v54  ;;  %v934_v40 = vmin.f32 %v2592_v56, 20.0  ;;  %v702_v48 = vpop.f32.mrf.mxu0 }
 0x15f   : > { %v1949_v31 = vpop.eup %1948  ;;  %v1261_v9 = vmul.f32 0.6931472, %v1947_v28  ;;  %1970 = vlog2.f32 %v1153_v6  ;;  %vm894_vm11 = vcmp.gt.f32.partialorder %v2471_v23, 20.0  ;;  %vm865_vm12 = vcmp.gt.f32.partialorder %v2475_v53, 20.0 }
 0x160   : > { %v1951_v34 = vpop.eup %1950  ;;  %v1207_v36 = vmul.f32 0.6931472, %v1949_v31  ;;  %1972 = vlog2.f32 %v1119_v30  ;;  %v1026_v16 = vmul.f32 1.442695, %v934_v40  ;;  %v2610_v59 = vadd.f32 %v2509_v12, %v1693_v62 }
 0x161   : > { %v1953_v45 = vpop.eup %1952  ;;  %v1339_v39 = vsel %vm891_vm7, %v2432_v20, %v1261_v9  ;;  %v1151_v41 = vadd.f32 1.0, %v1951_v34  ;;  %1974 = vpow2.f32 %v1088_v18  ;;  %v2589_v20 = vadd.f32 %v2509_v12, %v1692_v44 }
 0x162   : > { %v1955_v63 = vpop.eup %1954  ;;  %1403 = vst [vmem:[%s2266_s18 + $0x188] sm:$0xff] %v1339_v39  ;;  %v1312_v24 = vsel %vm864_vm8, %v2436_v10, %v1207_v36  ;;  %v1124_v42 = vadd.f32 1.0, %v1953_v45  ;;  %1976 = vpow2.f32 %v1020_v49  ;;  %v2595_v10 = vadd.f32 %v2509_v12, %v827_v50 }
 0x163   : > { %v1957_v47 = vpop.eup %1956  ;;  %1376 = vst [vmem:[%s2266_s18 + $0xb0] sm:$0xff] %v1312_v24  ;;  %1978 = vlog2.f32 %v1151_v41  ;;  %v1156_v33 = vadd.f32 1.0, %v1955_v63  ;;  %v968_v25 = vmin.f32 %v2589_v20, 20.0  ;;  %vm897_vm13 = vcmp.gt.f32.partialorder %v2479_v2, 20.0  ;;  %v830_v63 = vpop.f32.mrf.mxu1 }
 0x164   : > { %v1271_v57 = vmul.f32 0.6931472, %v1957_v47  ;;  %1980 = vlog2.f32 %v1124_v42  ;;  %v1959_v35 = vpop.eup %1958  ;;  %v966_v29 = vmin.f32 %v2595_v10, 20.0  ;;  %v969_v32 = vmin.f32 %v2610_v59, 20.0 }
 0x165   : > { %1982 = vlog2.f32 %v1156_v33  ;;  %v1961_v4 = vpop.eup %1960  ;;  %v1122_v8 = vadd.f32 1.0, %v1959_v35  ;;  %v1094_v13 = vmul.f32 1.442695, %v968_v25  ;;  %v2620_v34 = vadd.f32 %v2509_v12, %v702_v48 }
 0x166   : > { %v1344_v0 = vsel %vm896_vm9, %v2439_v37, %v1271_v57  ;;  %1984 = vpow2.f32 %v1084_v11  ;;  %v1154_v58 = vadd.f32 1.0, %v1961_v4  ;;  %v2607_v37 = vadd.f32 %v2509_v12, %v1661_v27 }
 0x167   : > { %1408 = vst [vmem:[%s2266_s18 + $0x1b0] sm:$0xff] %v1344_v0  ;;  %1986 = vpow2.f32 %v1030_v61  ;;  %v1090_v22 = vmul.f32 1.442695, %v966_v29  ;;  %v1096_v50 = vmul.f32 1.442695, %v969_v32  ;;  %vm863_vm14 = vcmp.gt.f32.partialorder %v2488_v51, 20.0 }
 0x168   : > { %v1963_v14 = vpop.eup %1962  ;;  %1988 = vlog2.f32 %v1122_v8  ;;  %v937_v54 = vmin.f32 %v2607_v37, 20.0  ;;  %v935_v33 = vmin.f32 %v2620_v34, 20.0  ;;  %v2639_v61 = vadd.f32 %v2509_v12, %v830_v63 }
 0x169   : > { %v1965_v5 = vpop.eup %1964  ;;  %v1203_v15 = vmul.f32 0.6931472, %v1963_v14  ;;  %1990 = vlog2.f32 %v1154_v58  ;;  %vm895_vm15 = vcmp.gt.f32.partialorder %v2491_v55, 20.0  ;;  %vm868_vm0 = vcmp.gt.f32.partialorder %v2497_v46, 20.0 }
 0x16a   : > { %v1967_v6 = vpop.eup %1966  ;;  %v1125_v18 = vadd.f32 1.0, %v1965_v5  ;;  %1992 = vpow2.f32 %v1094_v13  ;;  %v1032_v45 = vmul.f32 1.442695, %v937_v54  ;;  %v1028_v27 = vmul.f32 1.442695, %v935_v33 }
 0x16b   : > { %v1969_v44 = vpop.eup %1968  ;;  %v1310_v28 = vsel %vm862_vm10, %v2460_v7, %v1203_v15  ;;  %v1267_v30 = vmul.f32 0.6931472, %v1967_v6  ;;  %v967_v40 = vmin.f32 %v2639_v61, 20.0  ;;  %vm900_vm1 = vcmp.gt.f32.partialorder %v2512_v3, 20.0 }
 0x16c   : > { %v1971_v31 = vpop.eup %1970  ;;  %1374 = vst [vmem:[%s2266_s18 + $0xa0] sm:$0xff] %v1310_v28  ;;  %v1209_v9 = vmul.f32 0.6931472, %v1969_v44  ;;  %1994 = vlog2.f32 %v1125_v18  ;;  %vm866_vm2 = vcmp.gt.f32.partialorder %v2521_v19, 20.0  ;;  %vm898_vm3 = vcmp.gt.f32.partialorder %v2525_v21, 20.0 }
 0x16d   : > { %v1973_v36 = vpop.eup %1972  ;;  %v1342_v7 = vsel %vm894_vm11, %v2471_v23, %v1267_v30  ;;  %v1273_v49 = vmul.f32 0.6931472, %v1971_v31  ;;  %1996 = vpow2.f32 %v1026_v16  ;;  %v1092_v14 = vmul.f32 1.442695, %v967_v40 }
 0x16e   : > { %v1975_v39 = vpop.eup %1974  ;;  %1406 = vst [vmem:[%s2266_s18 + $0x1a0] sm:$0xff] %v1342_v7  ;;  %v1313_v41 = vsel %vm865_vm12, %v2475_v53, %v1209_v9  ;;  %v1205_v60 = vmul.f32 0.6931472, %v1973_v36  ;;  %1998 = vpow2.f32 %v1090_v22  ;;  %vm869_vm4 = vcmp.gt.f32.partialorder %v2535_v26, 20.0 }
 0x16f   : > { %v1977_v24 = vpop.eup %1976  ;;  %1377 = vst [vmem:[%s2266_s18 + $0xb8] sm:$0xff] %v1313_v41  ;;  %v1345_v23 = vsel %vm897_vm13, %v2479_v2, %v1273_v49  ;;  %v1157_v42 = vadd.f32 1.0, %v1975_v39  ;;  %2000 = vpow2.f32 %v1032_v45  ;;  %vm901_vm5 = vcmp.gt.f32.partialorder %v2559_v1, 20.0 }
 0x170   : > { %v1979_v11 = vpop.eup %1978  ;;  %1409 = vst [vmem:[%s2266_s18 + $0x1b8] sm:$0xff] %v1345_v23  ;;  %v1311_v47 = vsel %vm863_vm14, %v2488_v51, %v1205_v60  ;;  %v1123_v53 = vadd.f32 1.0, %v1977_v24  ;;  %2002 = vpow2.f32 %v1096_v50  ;;  %vm867_vm6 = vcmp.gt.f32.partialorder %v2570_v17, 20.0 }
 0x171   : > { %v1981_v52 = vpop.eup %1980  ;;  %1375 = vst [vmem:[%s2266_s18 + $0xa8] sm:$0xff] %v1311_v47  ;;  %v1269_v57 = vmul.f32 0.6931472, %v1979_v11  ;;  %2004 = vlog2.f32 %v1157_v42  ;;  %vm899_vm7 = vcmp.gt.f32.partialorder %v2574_v43, 20.0  ;;  %vm872_vm8 = vcmp.gt.f32.partialorder %v2580_v38, 20.0 }
 0x172   : > { %v1983_v2 = vpop.eup %1982  ;;  %v1215_v25 = vmul.f32 0.6931472, %v1981_v52  ;;  %2006 = vlog2.f32 %v1123_v53  ;;  %vm904_vm9 = vcmp.gt.f32.partialorder %v2589_v20, 20.0  ;;  %vm870_vm10 = vcmp.gt.f32.partialorder %v2592_v56, 20.0 }
 0x173   : > { %v1985_v51 = vpop.eup %1984  ;;  %v1343_v35 = vsel %vm895_vm15, %v2491_v55, %v1269_v57  ;;  %v1279_v0 = vmul.f32 0.6931472, %v1983_v2  ;;  %2008 = vpow2.f32 %v1028_v27  ;;  %vm902_vm11 = vcmp.gt.f32.partialorder %v2595_v10, 20.0 }
 0x174   : > { %v1987_v62 = vpop.eup %1986  ;;  %1407 = vst [vmem:[%s2266_s18 + $0x1a8] sm:$0xff] %v1343_v35  ;;  %v1316_v12 = vsel %vm868_vm0, %v2497_v46, %v1215_v25  ;;  %v1155_v4 = vadd.f32 1.0, %v1985_v51  ;;  %vm873_vm12 = vcmp.gt.f32.partialorder %v2607_v37, 20.0  ;;  %vm905_vm13 = vcmp.gt.f32.partialorder %v2610_v59, 20.0 }
 0x175   : > { %1380 = vst [vmem:[%s2266_s18 + $0xd0] sm:$0xff] %v1316_v12  ;;  %v1348_v8 = vsel %vm900_vm1, %v2512_v3, %v1279_v0  ;;  %v1128_v13 = vadd.f32 1.0, %v1987_v62  ;;  %v1989_v55 = vpop.eup %1988  ;;  %vm871_vm14 = vcmp.gt.f32.partialorder %v2620_v34, 20.0  ;;  %vm903_vm15 = vcmp.gt.f32.partialorder %v2639_v61, 20.0 }
 0x176   : > { %1412 = vst [vmem:[%s2266_s18 + $0x1d0] sm:$0xff] %v1348_v8  ;;  %2010 = vlog2.f32 %v1155_v4  ;;  %v1991_v58 = vpop.eup %1990  ;;  %v1211_v29 = vmul.f32 0.6931472, %v1989_v55 }
 0x177   : > { %2012 = vlog2.f32 %v1128_v13  ;;  %v1993_v5 = vpop.eup %1992  ;;  %v1275_v46 = vmul.f32 0.6931472, %v1991_v58 }
 0x178   : > { %2014 = vpow2.f32 %v1092_v14  ;;  %v1314_v16 = vsel %vm866_vm2, %v2521_v19, %v1211_v29  ;;  %v1160_v3 = vadd.f32 1.0, %v1993_v5 }
 0x179   : > { %v1995_v15 = vpop.eup %1994  ;;  %1378 = vst [vmem:[%s2266_s18 + $0xc0] sm:$0xff] %v1314_v16  ;;  %v1346_v6 = vsel %vm898_vm3, %v2525_v21, %v1275_v46 }
 0x17a   : > { %v1997_v48 = vpop.eup %1996  ;;  %v1217_v18 = vmul.f32 0.6931472, %v1995_v15  ;;  %1410 = vst [vmem:[%s2266_s18 + $0x1c0] sm:$0xff] %v1346_v6  ;;  %2016 = vlog2.f32 %v1160_v3 }
 0x17b   : > { %v1999_v22 = vpop.eup %1998  ;;  %v1126_v44 = vadd.f32 1.0, %v1997_v48 }
 0x17c   : > { %v2001_v28 = vpop.eup %2000  ;;  %v1317_v30 = vsel %vm869_vm4, %v2535_v26, %v1217_v18  ;;  %v1158_v54 = vadd.f32 1.0, %v1999_v22 }
 0x17d   : > { %v2003_v19 = vpop.eup %2002  ;;  %1381 = vst [vmem:[%s2266_s18 + $0xd8] sm:$0xff] %v1317_v30  ;;  %2018 = vlog2.f32 %v1126_v44  ;;  %v1129_v31 = vadd.f32 1.0, %v2001_v28 }
 0x17e   : > { %v2005_v9 = vpop.eup %2004  ;;  %2020 = vlog2.f32 %v1158_v54  ;;  %v1161_v21 = vadd.f32 1.0, %v2003_v19 }
 0x17f   : > { %v2007_v32 = vpop.eup %2006  ;;  %v1281_v36 = vmul.f32 0.6931472, %v2005_v9  ;;  %2022 = vlog2.f32 %v1129_v31 }
 0x180   : > { %v1213_v7 = vmul.f32 0.6931472, %v2007_v32  ;;  %2024 = vlog2.f32 %v1161_v21  ;;  %v2009_v49 = vpop.eup %2008 }
 0x181   : > { %v1349_v26 = vsel %vm901_vm5, %v2559_v1, %v1281_v36  ;;  %v1127_v39 = vadd.f32 1.0, %v2009_v49 }
 0x182   : > { %1413 = vst [vmem:[%s2266_s18 + $0x1d8] sm:$0xff] %v1349_v26  ;;  %v1315_v45 = vsel %vm867_vm6, %v2570_v17, %v1213_v7 }
 0x183   : > { %v2011_v41 = vpop.eup %2010  ;;  %1379 = vst [vmem:[%s2266_s18 + $0xc8] sm:$0xff] %v1315_v45  ;;  %2026 = vlog2.f32 %v1127_v39 }
 0x184   : > { %v2013_v60 = vpop.eup %2012  ;;  %v1277_v50 = vmul.f32 0.6931472, %v2011_v41 }
 0x185   : > { %v2015_v63 = vpop.eup %2014  ;;  %v1223_v24 = vmul.f32 0.6931472, %v2013_v60 }
 0x186   : > { %v1347_v1 = vsel %vm899_vm7, %v2574_v43, %v1277_v50  ;;  %v1159_v23 = vadd.f32 1.0, %v2015_v63 }
 0x187   : > { %1411 = vst [vmem:[%s2266_s18 + $0x1c8] sm:$0xff] %v1347_v1  ;;  %v1320_v17 = vsel %vm872_vm8, %v2580_v38, %v1223_v24  ;;  %v2017_v42 = vpop.eup %2016 }
 0x188   : > { %1384 = vst [vmem:[%s2266_s18 + $0xf0] sm:$0xff] %v1320_v17  ;;  %2028 = vlog2.f32 %v1159_v23  ;;  %v1287_v11 = vmul.f32 0.6931472, %v2017_v42 }
 0x18a   : > { %v2019_v47 = vpop.eup %2018  ;;  %v1352_v33 = vsel %vm904_vm9, %v2589_v20, %v1287_v11 }
 0x18b   : > { %v2021_v53 = vpop.eup %2020  ;;  %v1219_v52 = vmul.f32 0.6931472, %v2019_v47  ;;  %1416 = vst [vmem:[%s2266_s18 + $0x1f0] sm:$0xff] %v1352_v33 }
 0x18c   : > { %v2023_v43 = vpop.eup %2022  ;;  %v1283_v38 = vmul.f32 0.6931472, %v2021_v53 }
 0x18d   : > { %v2025_v57 = vpop.eup %2024  ;;  %v1318_v2 = vsel %vm870_vm10, %v2592_v56, %v1219_v52  ;;  %v1225_v25 = vmul.f32 0.6931472, %v2023_v43 }
 0x18e   : > { %1382 = vst [vmem:[%s2266_s18 + $0xe0] sm:$0xff] %v1318_v2  ;;  %v1350_v27 = vsel %vm902_vm11, %v2595_v10, %v1283_v38  ;;  %v1289_v20 = vmul.f32 0.6931472, %v2025_v57 }
 0x18f   : > { %1414 = vst [vmem:[%s2266_s18 + $0x1e0] sm:$0xff] %v1350_v27  ;;  %v1321_v51 = vsel %vm873_vm12, %v2607_v37, %v1225_v25 }
 0x190   : > { %1385 = vst [vmem:[%s2266_s18 + $0xf8] sm:$0xff] %v1321_v51  ;;  %v1353_v35 = vsel %vm905_vm13, %v2610_v59, %v1289_v20  ;;  %v2027_v56 = vpop.eup %2026 }
 0x191   : > { %1417 = vst [vmem:[%s2266_s18 + $0x1f8] sm:$0xff] %v1353_v35  ;;  %v1221_v0 = vmul.f32 0.6931472, %v2027_v56 }
 0x193   : > { %v1319_v40 = vsel %vm871_vm14, %v2620_v34, %v1221_v0 }
 0x194   : > { %1383 = vst [vmem:[%s2266_s18 + $0xe8] sm:$0xff] %v1319_v40 }
 0x195   : > { %v2029_v10 = vpop.eup %2028 }
 0x196   : > { %v1285_v62 = vmul.f32 0.6931472, %v2029_v10 }
 0x198   : > { %v1351_v12 = vsel %vm903_vm15, %v2639_v61, %v1285_v62 }
 0x199   : > { %1415 = vst [vmem:[%s2266_s18 + $0x1e8] sm:$0xff] %v1351_v12 }
 0x19a PF: > { %s13_s14 = sadd.s32 1, %s2053_s14   ;;  %s2706_s12 = smov %s2049_s13 }
 0x19b   : > { %p10_p5 = scmp.ge.s32.totalorder %s13_s14, 6   ;;  %s2707_s13 = smov %s2709_s15 }
 0x19d   :  { %12 = sbr.rel (!%p10_p5) target bundleno = 2 (0x2), region = 68 }

// kernel: f4conv3fc_forward.5
= control target key start
LH: loop header
LB: loop body
LE: loop exit
PB: predicated region body
PF: predicated region fallthrough
CT: control target
= control target key end

     0   :  { %v4308_v0 = vmov 0   ;;  %v5905_v40 = vmov 0.0   ;;  %vm4310_vm0 = vmmov 0   ;;  %s5901_s1 = inlined_call_operand.vmem [shape: bf16[896,128], index: 1, kind: input, shape index: {}]   ;;  %s5902_s0 = inlined_call_operand.vmem [shape: bf16[456,896], index: 0, kind: input, shape index: {}]   ;;  %s5903_s2 = inlined_call_operand.vmem [shape: f32[1,128], index: 2, kind: input, shape index: {}]   ;;  %s5904_s3 = inlined_call_operand.vmem [shape: f32[456,128], index: 3, kind: output, shape index: {}]  }
   0x1   :  { %1731 = vmatprep.subr.bf16.mxu0 %v4308_v0  ;;  %1995 = vmatprep.subr.bf16.mxu1 %v4308_v0  ;;  %v3736_v1 = vld [vmem:[%s5901_s1 + $0x38] sm:$0xff]   ;;  %v3738_v3 = vld [vmem:[%s5901_s1 + $0x30] sm:$0xff]   ;;  %v3740_v5 = vld [vmem:[%s5901_s1 + $0x28] sm:$0xff]  }
   0x2   :  { %v3737_v2 = vld [vmem:[%s5901_s1 + $0xb8] sm:$0xff]   ;;  %1732 = vmatpush1.bf16.msra.mxu0 %v3736_v1  ;;  %v3739_v4 = vld [vmem:[%s5901_s1 + $0xb0] sm:$0xff]   ;;  %v3741_v6 = vld [vmem:[%s5901_s1 + $0xa8] sm:$0xff]  }
   0x3   :  { %1996 = vmatpush1.bf16.msra.mxu1 %v3737_v2  ;;  %1733 = vmatprep.subr.bf16.mxu0 %v4308_v0  ;;  %v3742_v7 = vld [vmem:[%s5901_s1 + $0x20] sm:$0xff]   ;;  %v3744_v9 = vld [vmem:[%s5901_s1 + $0x18] sm:$0xff]   ;;  %v3746_v11 = vld [vmem:[%s5901_s1 + $0x10] sm:$0xff]  }
   0x4   :  { %1997 = vmatprep.subr.bf16.mxu1 %v4308_v0  ;;  %v3743_v8 = vld [vmem:[%s5901_s1 + $0xa0] sm:$0xff]   ;;  %v3745_v10 = vld [vmem:[%s5901_s1 + $0x98] sm:$0xff]   ;;  %v3747_v12 = vld [vmem:[%s5901_s1 + $0x90] sm:$0xff]  }
   0x5   :  { %v3748_v13 = vld [vmem:[%s5901_s1 + $0x8] sm:$0xff]   ;;  %v3750_v15 = vld [vmem:[%s5901_s1] sm:$0xff]   ;;  %v3752_v17 = vld [vmem:[%s5901_s1 + $0x78] sm:$0xff]  }
   0x6   :  { %1734 = vmatpush1.bf16.msra.mxu0 %v3738_v3  ;;  %v3749_v14 = vld [vmem:[%s5901_s1 + $0x88] sm:$0xff]   ;;  %v3751_v16 = vld [vmem:[%s5901_s1 + $0x80] sm:$0xff]   ;;  %v3753_v18 = vld [vmem:[%s5901_s1 + $0xf8] sm:$0xff]  }
   0x7   :  { %1998 = vmatpush1.bf16.msra.mxu1 %v3739_v4  ;;  %1735 = vmatprep.subr.bf16.mxu0 %v4308_v0  ;;  %v3770_v19 = vld [vmem:[%s5902_s0 + $0x4] ss:$28 sps:$4 sm:$0xff]   ;;  %v3754_v20 = vld [vmem:[%s5901_s1 + $0x70] sm:$0xff]   ;;  %v3773_v21 = vld [vmem:[%s5902_s0 + $0xc] ss:$28 sps:$4 sm:$0xff]  }
   0x8   :  { %1999 = vmatprep.subr.bf16.mxu1 %v4308_v0  ;;  %v3755_v22 = vld [vmem:[%s5901_s1 + $0xf0] sm:$0xff]   ;;  %1763 = vmatprep.mubr.bf16.mxu0 %v3770_v19  ;;  %v3756_v23 = vld [vmem:[%s5901_s1 + $0x68] sm:$0xff]   ;;  %v3758_v25 = vld [vmem:[%s5901_s1 + $0x60] sm:$0xff]  }
   0x9   :  { %2027 = vmatprep.mubr.bf16.mxu1 %v3773_v21  ;;  %v3757_v24 = vld [vmem:[%s5901_s1 + $0xe8] sm:$0xff]   ;;  %v3759_v26 = vld [vmem:[%s5901_s1 + $0xe0] sm:$0xff]   ;;  %v3760_v27 = vld [vmem:[%s5901_s1 + $0x58] sm:$0xff]  }
   0xa   :  { %1736 = vmatpush1.bf16.msra.mxu0 %v3740_v5  ;;  %v3761_v28 = vld [vmem:[%s5901_s1 + $0xd8] sm:$0xff]   ;;  %v3762_v29 = vld [vmem:[%s5901_s1 + $0x50] sm:$0xff]   ;;  %v3764_v31 = vld [vmem:[%s5901_s1 + $0x48] sm:$0xff]  }
   0xb   :  { %2000 = vmatpush1.bf16.msra.mxu1 %v3741_v6  ;;  %1737 = vmatprep.subr.bf16.mxu0 %v4308_v0  ;;  %v3763_v30 = vld [vmem:[%s5901_s1 + $0xd0] sm:$0xff]   ;;  %v3765_v32 = vld [vmem:[%s5901_s1 + $0xc8] sm:$0xff]   ;;  %v3766_v33 = vld [vmem:[%s5901_s1 + $0x40] sm:$0xff]  }
   0xc   :  { %2001 = vmatprep.subr.bf16.mxu1 %v4308_v0  ;;  %v3767_v34 = vld [vmem:[%s5901_s1 + $0xc0] sm:$0xff]   ;;  %v3774_v37 = vld [vmem:[%s5901_s1 + $0x138] sm:$0xff]   ;;  %v3788_v42 = vld [vmem:[%s5901_s1 + $0x130] sm:$0xff]  }
   0xd   :  { %v3768_v35 = vld [vmem:[%s5902_s0] ss:$28 sps:$4 sm:$0xff]   ;;  %v3771_v36 = vld [vmem:[%s5902_s0 + $0x8] ss:$28 sps:$4 sm:$0xff]   ;;  %v3802_v43 = vld [vmem:[%s5901_s1 + $0x1b0] sm:$0xff]  }
   0xe   :  { %1738 = vmatpush1.bf16.msra.mxu0 %v3742_v7  ;;  %v3775_v38 = vld [vmem:[%s5901_s1 + $0x1b8] sm:$0xff]   ;;  %v3778_v41 = vld [vmem:[%s5902_s0 + $0x44] ss:$28 sps:$4 sm:$0xff]   ;;  %v3782_v46 = vld [vmem:[%s5902_s0 + $0x74] ss:$28 sps:$4 sm:$0xff]  }
   0xf   :  { %2002 = vmatpush1.bf16.msra.mxu1 %v3743_v8  ;;  %1739 = vmatprep.subr.bf16.mxu0 %v4308_v0  ;;  %v3776_v39 = vld [vmem:[%s5902_s0 + $0x3c] ss:$28 sps:$4 sm:$0xff]   ;;  %v3795_v48 = vld [vmem:[%s5901_s1 + $0x128] sm:$0xff]   ;;  %v3809_v51 = vld [vmem:[%s5901_s1 + $0x120] sm:$0xff]  }
  0x10   :  { %2003 = vmatprep.subr.bf16.mxu1 %v4308_v0  ;;  %v3780_v44 = vld [vmem:[%s5902_s0 + $0x38] ss:$28 sps:$4 sm:$0xff]   ;;  %v3781_v45 = vld [vmem:[%s5902_s0 + $0x40] ss:$28 sps:$4 sm:$0xff]   ;;  %v3823_v49 = vld [vmem:[%s5901_s1 + $0x1a8] sm:$0xff]  }
  0x11   :  { %v3784_v47 = vld [vmem:[%s5902_s0 + $0x7c] ss:$28 sps:$4 sm:$0xff]   ;;  %v3786_v50 = vld [vmem:[%s5902_s0 + $0x70] ss:$28 sps:$4 sm:$0xff]   ;;  %v3850_v52 = vld [vmem:[%s5901_s1 + $0x1a0] sm:$0xff]  }
  0x12   :  { %1740 = vmatpush1.bf16.msra.mxu0 %v3744_v9  ;;  %v3787_v53 = vld [vmem:[%s5902_s0 + $0x78] ss:$28 sps:$4 sm:$0xff]   ;;  %v3789_v54 = vld [vmem:[%s5902_s0 + $0xac] ss:$28 sps:$4 sm:$0xff]   ;;  %v3796_v60 = vld [vmem:[%s5902_s0 + $0xe4] ss:$28 sps:$4 sm:$0xff]  }
  0x13   :  { %2004 = vmatpush1.bf16.msra.mxu1 %v3745_v10  ;;  %1741 = vmatprep.subr.bf16.mxu0 %v4308_v0  ;;  %v3791_v55 = vld [vmem:[%s5902_s0 + $0xb4] ss:$28 sps:$4 sm:$0xff]   ;;  %v3822_v56 = vld [vmem:[%s5901_s1 + $0x118] sm:$0xff]   ;;  %v3793_v57 = vld [vmem:[%s5902_s0 + $0xa8] ss:$28 sps:$4 sm:$0xff]  }
  0x14   :  { %2005 = vmatprep.subr.bf16.mxu1 %v4308_v0  ;;  %v3836_v58 = vld [vmem:[%s5901_s1 + $0x110] sm:$0xff]   ;;  %v3798_v61 = vld [vmem:[%s5902_s0 + $0xec] ss:$28 sps:$4 sm:$0xff]   ;;  %v3875_v63 = vld [vmem:[%s5901_s1 + $0x198] sm:$0xff]  }
  0x15   :  { %v3794_v59 = vld [vmem:[%s5902_s0 + $0xb0] ss:$28 sps:$4 sm:$0xff]   ;;  %v3861_v1 = vld [vmem:[%s5901_s1 + $0x100] sm:$0xff]   ;;  %v3803_v4 = vld [vmem:[%s5902_s0 + $0x11c] ss:$28 sps:$4 sm:$0xff]  }
  0x16   :  { %1742 = vmatpush1.bf16.msra.mxu0 %v3746_v11  ;;  %v3849_v62 = vld [vmem:[%s5901_s1 + $0x108] sm:$0xff]   ;;  %v3800_v2 = vld [vmem:[%s5902_s0 + $0xe0] ss:$28 sps:$4 sm:$0xff]   ;;  %v3884_v7 = vld [vmem:[%s5901_s1 + $0x170] sm:$0xff]  }
  0x17   :  { %2006 = vmatpush1.bf16.msra.mxu1 %v3747_v12  ;;  %1743 = vmatprep.subr.bf16.mxu0 %v4308_v0  ;;  %v3801_v3 = vld [vmem:[%s5902_s0 + $0xe8] ss:$28 sps:$4 sm:$0xff]   ;;  %v3870_v6 = vld [vmem:[%s5901_s1 + $0x178] sm:$0xff]   ;;  %v3898_v8 = vld [vmem:[%s5901_s1 + $0x190] sm:$0xff]  }
  0x18   :  { %2007 = vmatprep.subr.bf16.mxu1 %v4308_v0  ;;  %v3805_v5 = vld [vmem:[%s5902_s0 + $0x124] ss:$28 sps:$4 sm:$0xff]   ;;  %v3807_v9 = vld [vmem:[%s5902_s0 + $0x118] ss:$28 sps:$4 sm:$0xff]  }
  0x19   :  { %v3808_v10 = vld [vmem:[%s5902_s0 + $0x120] ss:$28 sps:$4 sm:$0xff]   ;;  %v3810_v11 = vld [vmem:[%s5902_s0 + $0x154] ss:$28 sps:$4 sm:$0xff]   ;;  %v3820_v21 = vld [vmem:[%s5902_s0 + $0x188] ss:$28 sps:$4 sm:$0xff]  }
  0x1a   :  { %1744 = vmatpush1.bf16.msra.mxu0 %v3748_v13  ;;  %v3812_v12 = vld [vmem:[%s5902_s0 + $0x15c] ss:$28 sps:$4 sm:$0xff]   ;;  %v3897_v13 = vld [vmem:[%s5901_s1 + $0x168] sm:$0xff]  }
  0x1b   :  { %2008 = vmatpush1.bf16.msra.mxu1 %v3749_v14  ;;  %1745 = vmatprep.subr.bf16.mxu0 %v4308_v0  ;;  %v3911_v14 = vld [vmem:[%s5901_s1 + $0x160] sm:$0xff]   ;;  %v3922_v19 = vld [vmem:[%s5901_s1 + $0x158] sm:$0xff]  }
  0x1c   :  { %2009 = vmatprep.subr.bf16.mxu1 %v4308_v0 }
  0x1e   :  { %1746 = vmatpush1.bf16.msra.mxu0 %v3750_v15  ;;  %v3814_v15 = vld [vmem:[%s5902_s0 + $0x150] ss:$28 sps:$4 sm:$0xff]  }
  0x1f   :  { %2010 = vmatpush1.bf16.msra.mxu1 %v3751_v16  ;;  %1747 = vmatprep.subr.bf16.mxu0 %v4308_v0  ;;  %v3815_v16 = vld [vmem:[%s5902_s0 + $0x158] ss:$28 sps:$4 sm:$0xff]  }
  0x20   :  { %2011 = vmatprep.subr.bf16.mxu1 %v4308_v0 }
  0x22   :  { %1748 = vmatpush2.bf16.msra.mxu0 %v3752_v17  ;;  %v3816_v17 = vld [vmem:[%s5902_s0 + $0x18c] ss:$28 sps:$4 sm:$0xff]  }
  0x23   :  { %2012 = vmatpush2.bf16.msra.mxu1 %v3753_v18  ;;  %1749 = vmatprep.subr.bf16.mxu0 %v4308_v0  ;;  %v3818_v18 = vld [vmem:[%s5902_s0 + $0x194] ss:$28 sps:$4 sm:$0xff]  }
  0x24   :  { %2013 = vmatprep.subr.bf16.mxu1 %v4308_v0 }
  0x26   :  { %1750 = vmatpush2.bf16.msra.mxu0 %v3754_v20  ;;  %v3925_v20 = vld [vmem:[%s5901_s1 + $0x188] sm:$0xff]  }
  0x27   :  { %2014 = vmatpush2.bf16.msra.mxu1 %v3755_v22  ;;  %1751 = vmatprep.subr.bf16.mxu0 %v4308_v0  ;;  %v3821_v22 = vld [vmem:[%s5902_s0 + $0x190] ss:$28 sps:$4 sm:$0xff]  }
  0x28   :  { %2015 = vmatprep.subr.bf16.mxu1 %v4308_v0 }
  0x2a   :  { %1752 = vmatpush2.bf16.msra.mxu0 %v3756_v23  ;;  %v3824_v23 = vld [vmem:[%s5902_s0 + $0x1c4] ss:$28 sps:$4 sm:$0xff]  }
  0x2b   :  { %2016 = vmatpush2.bf16.msra.mxu1 %v3757_v24  ;;  %1753 = vmatprep.subr.bf16.mxu0 %v4308_v0  ;;  %v3826_v24 = vld [vmem:[%s5902_s0 + $0x1cc] ss:$28 sps:$4 sm:$0xff]  }
  0x2c   :  { %2017 = vmatprep.subr.bf16.mxu1 %v4308_v0 }
  0x2e   :  { %1754 = vmatpush2.bf16.msra.mxu0 %v3758_v25  ;;  %v3932_v25 = vld [vmem:[%s5901_s1 + $0x150] sm:$0xff]  }
  0x2f   :  { %2018 = vmatpush2.bf16.msra.mxu1 %v3759_v26  ;;  %1755 = vmatprep.subr.bf16.mxu0 %v4308_v0  ;;  %v3828_v26 = vld [vmem:[%s5902_s0 + $0x1c0] ss:$28 sps:$4 sm:$0xff]  }
  0x30   :  { %2019 = vmatprep.subr.bf16.mxu1 %v4308_v0 }
  0x32   :  { %1756 = vmatpush2.bf16.msra.mxu0 %v3760_v27  ;;  %v3829_v27 = vld [vmem:[%s5902_s0 + $0x1c8] ss:$28 sps:$4 sm:$0xff]  }
  0x33   :  { %2020 = vmatpush2.bf16.msra.mxu1 %v3761_v28  ;;  %1757 = vmatprep.subr.bf16.mxu0 %v4308_v0  ;;  %v3830_v28 = vld [vmem:[%s5902_s0 + $0x1fc] ss:$28 sps:$4 sm:$0xff]  }
  0x34   :  { %2021 = vmatprep.subr.bf16.mxu1 %v4308_v0 }
  0x36   :  { %1758 = vmatpush2.bf16.msra.mxu0 %v3762_v29  ;;  %v3832_v29 = vld [vmem:[%s5902_s0 + $0x204] ss:$28 sps:$4 sm:$0xff]  }
  0x37   :  { %2022 = vmatpush2.bf16.msra.mxu1 %v3763_v30  ;;  %1759 = vmatprep.subr.bf16.mxu0 %v4308_v0  ;;  %v3834_v30 = vld [vmem:[%s5902_s0 + $0x1f8] ss:$28 sps:$4 sm:$0xff]  }
  0x38   :  { %2023 = vmatprep.subr.bf16.mxu1 %v4308_v0 }
  0x3a   :  { %1760 = vmatpush2.bf16.msra.mxu0 %v3764_v31  ;;  %v3835_v31 = vld [vmem:[%s5902_s0 + $0x200] ss:$28 sps:$4 sm:$0xff]  }
  0x3b   :  { %2024 = vmatpush2.bf16.msra.mxu1 %v3765_v32  ;;  %1761 = vmatprep.subr.bf16.mxu0 %v4308_v0  ;;  %v3837_v32 = vld [vmem:[%s5902_s0 + $0x234] ss:$28 sps:$4 sm:$0xff]  }
  0x3c   :  { %2025 = vmatprep.subr.bf16.mxu1 %v4308_v0 }
  0x3e   :  { %1762 = vmatpush2.bf16.msra.mxu0 %v3766_v33  ;;  %v3839_v33 = vld [vmem:[%s5902_s0 + $0x23c] ss:$28 sps:$4 sm:$0xff]  }
  0x3f   :  { %2026 = vmatpush2.bf16.msra.mxu1 %v3767_v34  ;;  %2259 = vmatprep.subr.bf16.mxu0 %v4308_v0  ;;  %v3841_v34 = vld [vmem:[%s5902_s0 + $0x230] ss:$28 sps:$4 sm:$0xff]  }
  0x40   :  { %3601 = vmatprep.subr.bf16.mxu1 %v5905_v40 }
  0x41   :  { %1764 = vmatmul.mubr.bf16.vlgmr.msra.gmra.mxu0 %v3768_v35  ;;  %v3842_v35 = vld [vmem:[%s5902_s0 + $0x238] ss:$28 sps:$4 sm:$0xff]  }
  0x42   :  { %2028 = vmatmul.mubr.bf16.vlgmr.msra.gmra.mxu1 %v3771_v36  ;;  %2260 = vmatpush1.bf16.msra.mxu0 %v3774_v37  ;;  %v3843_v36 = vld [vmem:[%s5902_s0 + $0x26c] ss:$28 sps:$4 sm:$0xff]   ;;  %v3845_v37 = vld [vmem:[%s5902_s0 + $0x274] ss:$28 sps:$4 sm:$0xff]  }
  0x43   :  { %3602 = vmatpush3.bf16.msra.mxu1 %v3775_v38  ;;  %1771 = vmatprep.mubr.bf16.mxu0 %v3776_v39  ;;  %v3945_v38 = vld [vmem:[%s5901_s1 + $0x148] sm:$0xff]   ;;  %v3946_v39 = vld [vmem:[%s5901_s1 + $0x180] sm:$0xff]  }
  0x44   :  { %2035 = vmatprep.mubr.bf16.mxu1 %v3778_v41  ;;  %2261 = vmatprep.subr.bf16.mxu0 %v4308_v0  ;;  %v3847_v41 = vld [vmem:[%s5902_s0 + $0x268] ss:$28 sps:$4 sm:$0xff]  }
  0x45   :  { %3603 = vmatprep.subr.bf16.mxu1 %v5905_v40 }
  0x46   :  { %2262 = vmatpush1.bf16.msra.mxu0 %v3788_v42  ;;  %v3848_v42 = vld [vmem:[%s5902_s0 + $0x270] ss:$28 sps:$4 sm:$0xff]  }
  0x47   :  { %2263 = vmatprep.subr.bf16.mxu0 %v4308_v0  ;;  %3604 = vmatpush3.bf16.msra.mxu1 %v3802_v43  ;;  %v3851_v43 = vld [vmem:[%s5902_s0 + $0x2a4] ss:$28 sps:$4 sm:$0xff]  }
  0x48   :  { %3605 = vmatprep.subr.bf16.mxu1 %v5905_v40 }
  0x49   :  { %1772 = vmatmul.mubr.bf16.gmra.mxu0 %v3780_v44  ;;  %v3853_v44 = vld [vmem:[%s5902_s0 + $0x2ac] ss:$28 sps:$4 sm:$0xff]  }
  0x4a   :  { %2036 = vmatmul.mubr.bf16.gmra.mxu1 %v3781_v45  ;;  %1779 = vmatprep.mubr.bf16.mxu0 %v3782_v46  ;;  %v3855_v45 = vld [vmem:[%s5902_s0 + $0x2a0] ss:$28 sps:$4 sm:$0xff]   ;;  %v3856_v46 = vld [vmem:[%s5902_s0 + $0x2a8] ss:$28 sps:$4 sm:$0xff]  }
  0x4b   :  { %2043 = vmatprep.mubr.bf16.mxu1 %v3784_v47  ;;  %2264 = vmatpush1.bf16.msra.mxu0 %v3795_v48  ;;  %v3857_v47 = vld [vmem:[%s5902_s0 + $0x2dc] ss:$28 sps:$4 sm:$0xff]   ;;  %v3859_v48 = vld [vmem:[%s5902_s0 + $0x2e4] ss:$28 sps:$4 sm:$0xff]  }
  0x4c   :  { %2265 = vmatprep.subr.bf16.mxu0 %v4308_v0  ;;  %3606 = vmatpush3.bf16.msra.mxu1 %v3823_v49  ;;  %v3862_v49 = vld [vmem:[%s5902_s0 + $0x2d8] ss:$28 sps:$4 sm:$0xff]  }
  0x4d   :  { %3607 = vmatprep.subr.bf16.mxu1 %v5905_v40 }
  0x4f   :  { %2266 = vmatpush1.bf16.msra.mxu0 %v3809_v51  ;;  %v3864_v51 = vld [vmem:[%s5902_s0 + $0x314] ss:$28 sps:$4 sm:$0xff]  }
  0x50   :  { %2267 = vmatprep.subr.bf16.mxu0 %v4308_v0  ;;  %3608 = vmatpush3.bf16.msra.mxu1 %v3850_v52  ;;  %v3866_v52 = vld [vmem:[%s5902_s0 + $0x31c] ss:$28 sps:$4 sm:$0xff]  }
  0x51   :  { %1780 = vmatmul.mubr.bf16.gmra.mxu0 %v3786_v50  ;;  %3609 = vmatprep.subr.bf16.mxu1 %v5905_v40  ;;  %v3863_v50 = vld [vmem:[%s5902_s0 + $0x2e0] ss:$28 sps:$4 sm:$0xff]  }
  0x52   :  { %2044 = vmatmul.mubr.bf16.gmra.mxu1 %v3787_v53  ;;  %1787 = vmatprep.mubr.bf16.mxu0 %v3789_v54  ;;  %v3868_v53 = vld [vmem:[%s5902_s0 + $0x310] ss:$28 sps:$4 sm:$0xff]   ;;  %v3869_v54 = vld [vmem:[%s5902_s0 + $0x318] ss:$28 sps:$4 sm:$0xff]  }
  0x53   :  { %2051 = vmatprep.mubr.bf16.mxu1 %v3791_v55  ;;  %2268 = vmatpush1.bf16.msra.mxu0 %v3822_v56  ;;  %v3871_v55 = vld [vmem:[%s5902_s0 + $0x34c] ss:$28 sps:$4 sm:$0xff]   ;;  %v3873_v56 = vld [vmem:[%s5902_s0 + $0x354] ss:$28 sps:$4 sm:$0xff]  }
  0x54   :  { %2269 = vmatprep.subr.bf16.mxu0 %v4308_v0  ;;  %3610 = vmatpush3.bf16.msra.mxu1 %v3875_v63  ;;  %v3885_v63 = vld [vmem:[%s5902_s0 + $0x3bc] ss:$28 sps:$4 sm:$0xff]  }
  0x55   :  { %3611 = vmatprep.subr.bf16.mxu1 %v5905_v40 }
  0x57   :  { %2270 = vmatpush1.bf16.msra.mxu0 %v3836_v58  ;;  %v3877_v58 = vld [vmem:[%s5902_s0 + $0x350] ss:$28 sps:$4 sm:$0xff]  }
  0x58   :  { %2271 = vmatprep.subr.bf16.mxu0 %v4308_v0  ;;  %3612 = vmatpush3.bf16.msra.mxu1 %v3898_v8  ;;  %v3899_v8 = vld [vmem:[%s5902_s0 + $0x42c] ss:$28 sps:$4 sm:$0xff]  }
  0x59   :  { %1788 = vmatmul.mubr.bf16.gmra.mxu0 %v3793_v57  ;;  %3613 = vmatprep.subr.bf16.mxu1 %v5905_v40  ;;  %v3876_v57 = vld [vmem:[%s5902_s0 + $0x348] ss:$28 sps:$4 sm:$0xff]  }
  0x5a   :  { %2052 = vmatmul.mubr.bf16.gmra.mxu1 %v3794_v59  ;;  %1795 = vmatprep.mubr.bf16.mxu0 %v3796_v60  ;;  %v3878_v59 = vld [vmem:[%s5902_s0 + $0x384] ss:$28 sps:$4 sm:$0xff]   ;;  %v3880_v60 = vld [vmem:[%s5902_s0 + $0x38c] ss:$28 sps:$4 sm:$0xff]  }
  0x5b   :  { %2059 = vmatprep.mubr.bf16.mxu1 %v3798_v61  ;;  %2272 = vmatpush1.bf16.msra.mxu0 %v3849_v62  ;;  %v3882_v61 = vld [vmem:[%s5902_s0 + $0x380] ss:$28 sps:$4 sm:$0xff]   ;;  %v3883_v62 = vld [vmem:[%s5902_s0 + $0x388] ss:$28 sps:$4 sm:$0xff]  }
  0x5c   :  { %2273 = vmatprep.subr.bf16.mxu0 %v4308_v0  ;;  %3614 = vmatpush3.bf16.msra.mxu1 %v3925_v20  ;;  %v3918_v20 = vld [vmem:[%s5902_s0 + $0x4d4] ss:$28 sps:$4 sm:$0xff]  }
  0x5d   :  { %3615 = vmatprep.subr.bf16.mxu1 %v5905_v40 }
  0x5f   :  { %2274 = vmatpush1.bf16.msra.mxu0 %v3861_v1  ;;  %v3887_v1 = vld [vmem:[%s5902_s0 + $0x3c4] ss:$28 sps:$4 sm:$0xff]  }
  0x60   :  { %2275 = vmatprep.subr.bf16.mxu0 %v4308_v0  ;;  %3616 = vmatpush3.bf16.msra.mxu1 %v3946_v39 }
  0x61   :  { %1796 = vmatmul.mubr.bf16.gmra.mxu0 %v3800_v2  ;;  %v3889_v2 = vld [vmem:[%s5902_s0 + $0x3b8] ss:$28 sps:$4 sm:$0xff]  }
  0x62   :  { %2060 = vmatmul.mubr.bf16.gmra.mxu1 %v3801_v3  ;;  %1803 = vmatprep.mubr.bf16.mxu0 %v3803_v4  ;;  %v3890_v3 = vld [vmem:[%s5902_s0 + $0x3c0] ss:$28 sps:$4 sm:$0xff]   ;;  %v3891_v4 = vld [vmem:[%s5902_s0 + $0x3f4] ss:$28 sps:$4 sm:$0xff]  }
  0x63   :  { %2067 = vmatprep.mubr.bf16.mxu1 %v3805_v5  ;;  %2276 = vmatpush2.bf16.msra.mxu0 %v3870_v6  ;;  %v3893_v5 = vld [vmem:[%s5902_s0 + $0x3fc] ss:$28 sps:$4 sm:$0xff]   ;;  %v3895_v6 = vld [vmem:[%s5902_s0 + $0x3f0] ss:$28 sps:$4 sm:$0xff]  }
  0x64   :  { %2277 = vmatprep.subr.bf16.mxu0 %v4308_v0 }
  0x67   :  { %2278 = vmatpush2.bf16.msra.mxu0 %v3884_v7  ;;  %v3896_v7 = vld [vmem:[%s5902_s0 + $0x3f8] ss:$28 sps:$4 sm:$0xff]  }
  0x68   :  { %2279 = vmatprep.subr.bf16.mxu0 %v4308_v0 }
  0x69   :  { %1804 = vmatmul.mubr.bf16.gmra.mxu0 %v3807_v9  ;;  %v3901_v9 = vld [vmem:[%s5902_s0 + $0x434] ss:$28 sps:$4 sm:$0xff]  }
  0x6a   :  { %2068 = vmatmul.mubr.bf16.gmra.mxu1 %v3808_v10  ;;  %1811 = vmatprep.mubr.bf16.mxu0 %v3810_v11  ;;  %v3903_v10 = vld [vmem:[%s5902_s0 + $0x428] ss:$28 sps:$4 sm:$0xff]   ;;  %v3904_v11 = vld [vmem:[%s5902_s0 + $0x430] ss:$28 sps:$4 sm:$0xff]  }
  0x6b   :  { %2075 = vmatprep.mubr.bf16.mxu1 %v3812_v12  ;;  %2280 = vmatpush2.bf16.msra.mxu0 %v3897_v13  ;;  %v3905_v12 = vld [vmem:[%s5902_s0 + $0x464] ss:$28 sps:$4 sm:$0xff]   ;;  %v3907_v13 = vld [vmem:[%s5902_s0 + $0x46c] ss:$28 sps:$4 sm:$0xff]  }
  0x6c   :  { %2281 = vmatprep.subr.bf16.mxu0 %v4308_v0 }
  0x6f   :  { %2282 = vmatpush2.bf16.msra.mxu0 %v3911_v14  ;;  %v3909_v14 = vld [vmem:[%s5902_s0 + $0x460] ss:$28 sps:$4 sm:$0xff]  }
  0x70   :  { %2283 = vmatprep.subr.bf16.mxu0 %v4308_v0 }
  0x71   :  { %1812 = vmatmul.mubr.bf16.gmra.mxu0 %v3814_v15  ;;  %v3910_v15 = vld [vmem:[%s5902_s0 + $0x468] ss:$28 sps:$4 sm:$0xff]  }
  0x72   :  { %2076 = vmatmul.mubr.bf16.gmra.mxu1 %v3815_v16  ;;  %1819 = vmatprep.mubr.bf16.mxu0 %v3816_v17  ;;  %v3912_v16 = vld [vmem:[%s5902_s0 + $0x49c] ss:$28 sps:$4 sm:$0xff]   ;;  %v3914_v17 = vld [vmem:[%s5902_s0 + $0x4a4] ss:$28 sps:$4 sm:$0xff]  }
  0x73   :  { %2083 = vmatprep.mubr.bf16.mxu1 %v3818_v18  ;;  %2284 = vmatpush2.bf16.msra.mxu0 %v3922_v19  ;;  %v3916_v18 = vld [vmem:[%s5902_s0 + $0x498] ss:$28 sps:$4 sm:$0xff]   ;;  %v3917_v19 = vld [vmem:[%s5902_s0 + $0x4a0] ss:$28 sps:$4 sm:$0xff]  }
  0x74   :  { %2285 = vmatprep.subr.bf16.mxu0 %v4308_v0 }
  0x77   :  { %2286 = vmatpush2.bf16.msra.mxu0 %v3932_v25  ;;  %v3928_v25 = vld [vmem:[%s5902_s0 + $0x514] ss:$28 sps:$4 sm:$0xff]  }
  0x78   :  { %2287 = vmatprep.subr.bf16.mxu0 %v4308_v0 }
  0x79   :  { %1820 = vmatmul.mubr.bf16.gmra.mxu0 %v3820_v21  ;;  %v3920_v21 = vld [vmem:[%s5902_s0 + $0x4dc] ss:$28 sps:$4 sm:$0xff]  }
  0x7a   :  { %2084 = vmatmul.mubr.bf16.gmra.mxu1 %v3821_v22  ;;  %1827 = vmatprep.mubr.bf16.mxu0 %v3824_v23  ;;  %v3923_v22 = vld [vmem:[%s5902_s0 + $0x4d0] ss:$28 sps:$4 sm:$0xff]   ;;  %v3924_v23 = vld [vmem:[%s5902_s0 + $0x4d8] ss:$28 sps:$4 sm:$0xff]  }
  0x7b   :  { %2091 = vmatprep.mubr.bf16.mxu1 %v3826_v24  ;;  %2288 = vmatpush2.bf16.msra.mxu0 %v3945_v38  ;;  %v3926_v24 = vld [vmem:[%s5902_s0 + $0x50c] ss:$28 sps:$4 sm:$0xff]  }
  0x7c   :  { %2289 = vmatprep.subr.bf16.mxu0 %v4308_v0  ;;  %v3959_v0 = vld [vmem:[%s5901_s1 + $0x140] sm:$0xff]  }
  0x7f   :  { %2290 = vmatpush2.bf16.msra.mxu0 %v3959_v0  ;;  %v3947_v0 = vld [vmem:[%s5902_s0 + $0x5b4] ss:$28 sps:$4 sm:$0xff]  }
  0x81   :  { %1828 = vmatmul.mubr.bf16.gmra.mxu0 %v3828_v26  ;;  %v3930_v26 = vld [vmem:[%s5902_s0 + $0x508] ss:$28 sps:$4 sm:$0xff]  }
  0x82   :  { %2092 = vmatmul.mubr.bf16.gmra.mxu1 %v3829_v27  ;;  %1835 = vmatprep.mubr.bf16.mxu0 %v3830_v28  ;;  %v3931_v27 = vld [vmem:[%s5902_s0 + $0x510] ss:$28 sps:$4 sm:$0xff]   ;;  %v3933_v28 = vld [vmem:[%s5902_s0 + $0x544] ss:$28 sps:$4 sm:$0xff]  }
  0x83   :  { %2099 = vmatprep.mubr.bf16.mxu1 %v3832_v29  ;;  %v3935_v29 = vld [vmem:[%s5902_s0 + $0x54c] ss:$28 sps:$4 sm:$0xff]  }
  0x89   :  { %1836 = vmatmul.mubr.bf16.gmra.mxu0 %v3834_v30  ;;  %v3937_v30 = vld [vmem:[%s5902_s0 + $0x540] ss:$28 sps:$4 sm:$0xff]  }
  0x8a   :  { %2100 = vmatmul.mubr.bf16.gmra.mxu1 %v3835_v31  ;;  %1843 = vmatprep.mubr.bf16.mxu0 %v3837_v32  ;;  %v3938_v31 = vld [vmem:[%s5902_s0 + $0x548] ss:$28 sps:$4 sm:$0xff]   ;;  %v3939_v32 = vld [vmem:[%s5902_s0 + $0x57c] ss:$28 sps:$4 sm:$0xff]  }
  0x8b   :  { %2107 = vmatprep.mubr.bf16.mxu1 %v3839_v33  ;;  %v4861_v33 = vld [vmem:[%s5903_s2] ss:$0 sm:$0xff] }
  0x91   :  { %1844 = vmatmul.mubr.bf16.gmra.mxu0 %v3841_v34  ;;  %v3941_v34 = vld [vmem:[%s5902_s0 + $0x584] ss:$28 sps:$4 sm:$0xff]  }
  0x92   :  { %2108 = vmatmul.mubr.bf16.gmra.mxu1 %v3842_v35  ;;  %1851 = vmatprep.mubr.bf16.mxu0 %v3843_v36 }
  0x93   :  { %2115 = vmatprep.mubr.bf16.mxu1 %v3845_v37 }
  0x99   :  { %1852 = vmatmul.mubr.bf16.gmra.mxu0 %v3847_v41 }
  0x9a   :  { %2116 = vmatmul.mubr.bf16.gmra.mxu1 %v3848_v42  ;;  %1859 = vmatprep.mubr.bf16.mxu0 %v3851_v43  ;;  %v3943_v43 = vld [vmem:[%s5902_s0 + $0x578] ss:$28 sps:$4 sm:$0xff]  }
  0x9b   :  { %2123 = vmatprep.mubr.bf16.mxu1 %v3853_v44 }
  0xa1   :  { %1860 = vmatmul.mubr.bf16.gmra.mxu0 %v3855_v45 }
  0xa2   :  { %2124 = vmatmul.mubr.bf16.gmra.mxu1 %v3856_v46  ;;  %1867 = vmatprep.mubr.bf16.mxu0 %v3857_v47  ;;  %v3944_v46 = vld [vmem:[%s5902_s0 + $0x580] ss:$28 sps:$4 sm:$0xff]  }
  0xa3   :  { %2131 = vmatprep.mubr.bf16.mxu1 %v3859_v48  ;;  %v3949_v48 = vld [vmem:[%s5902_s0 + $0x5bc] ss:$28 sps:$4 sm:$0xff]  }
  0xa9   :  { %1868 = vmatmul.mubr.bf16.gmra.mxu0 %v3862_v49 }
  0xaa   :  { %2132 = vmatmul.mubr.bf16.gmra.mxu1 %v3863_v50  ;;  %1875 = vmatprep.mubr.bf16.mxu0 %v3864_v51 }
  0xab   :  { %2139 = vmatprep.mubr.bf16.mxu1 %v3866_v52 }
  0xb1   :  { %1876 = vmatmul.mubr.bf16.gmra.mxu0 %v3868_v53 }
  0xb2   :  { %2140 = vmatmul.mubr.bf16.gmra.mxu1 %v3869_v54  ;;  %1883 = vmatprep.mubr.bf16.mxu0 %v3871_v55 }
  0xb3   :  { %2147 = vmatprep.mubr.bf16.mxu1 %v3873_v56 }
  0xb9   :  { %1884 = vmatmul.mubr.bf16.gmra.mxu0 %v3876_v57 }
  0xba   :  { %2148 = vmatmul.mubr.bf16.gmra.mxu1 %v3877_v58  ;;  %1891 = vmatprep.mubr.bf16.mxu0 %v3878_v59  ;;  %v3951_v58 = vld [vmem:[%s5902_s0 + $0x5b0] ss:$28 sps:$4 sm:$0xff]  }
  0xbb   :  { %2155 = vmatprep.mubr.bf16.mxu1 %v3880_v60 }
  0xc1   :  { %1892 = vmatmul.mubr.bf16.gmra.mxu0 %v3882_v61  ;;  %v3952_v61 = vld [vmem:[%s5902_s0 + $0x5b8] ss:$28 sps:$4 sm:$0xff]  }
  0xc2   :  { %2156 = vmatmul.mubr.bf16.gmra.mxu1 %v3883_v62  ;;  %1899 = vmatprep.mubr.bf16.mxu0 %v3885_v63  ;;  %v3953_v62 = vld [vmem:[%s5902_s0 + $0x5ec] ss:$28 sps:$4 sm:$0xff]  }
  0xc3   :  { %2163 = vmatprep.mubr.bf16.mxu1 %v3887_v1  ;;  %v3955_v1 = vld [vmem:[%s5902_s0 + $0x5f4] ss:$28 sps:$4 sm:$0xff]  }
  0xc9   :  { %1900 = vmatmul.mubr.bf16.gmra.mxu0 %v3889_v2 }
  0xca   :  { %2164 = vmatmul.mubr.bf16.gmra.mxu1 %v3890_v3  ;;  %1907 = vmatprep.mubr.bf16.mxu0 %v3891_v4 }
  0xcb   :  { %2171 = vmatprep.mubr.bf16.mxu1 %v3893_v5 }
  0xd1   :  { %1908 = vmatmul.mubr.bf16.gmra.mxu0 %v3895_v6 }
  0xd2   :  { %2172 = vmatmul.mubr.bf16.gmra.mxu1 %v3896_v7  ;;  %1915 = vmatprep.mubr.bf16.mxu0 %v3899_v8  ;;  %v239_v8 = vld [vmem:[%s5902_s0 + $0x620] sm:$0xff] }
  0xd3   :  { %2179 = vmatprep.mubr.bf16.mxu1 %v3901_v9 }
  0xd9   :  { %1916 = vmatmul.mubr.bf16.gmra.mxu0 %v3903_v10 }
  0xda   :  { %2180 = vmatmul.mubr.bf16.gmra.mxu1 %v3904_v11  ;;  %1923 = vmatprep.mubr.bf16.mxu0 %v3905_v12  ;;  %v240_v11 = vld [vmem:[%s5902_s0 + $0x628] sm:$0xff] }
  0xdb   :  { %2187 = vmatprep.mubr.bf16.mxu1 %v3907_v13  ;;  %v3957_v13 = vld [vmem:[%s5902_s0 + $0x5e8] ss:$28 sps:$4 sm:$0xff]  }
  0xe1   :  { %1924 = vmatmul.mubr.bf16.gmra.mxu0 %v3909_v14 }
  0xe2   :  { %2188 = vmatmul.mubr.bf16.gmra.mxu1 %v3910_v15  ;;  %1931 = vmatprep.mubr.bf16.mxu0 %v3912_v16  ;;  %v3958_v16 = vld [vmem:[%s5902_s0 + $0x5f0] ss:$28 sps:$4 sm:$0xff]  }
  0xe3   :  { %2195 = vmatprep.mubr.bf16.mxu1 %v3914_v17  ;;  %v3502_v17 = vcombine.high %v239_v8, %v239_v8 }
  0xe9   :  { %1932 = vmatmul.mubr.bf16.gmra.mxu0 %v3916_v18 }
  0xea   :  { %2196 = vmatmul.mubr.bf16.gmra.mxu1 %v3917_v19  ;;  %1939 = vmatprep.mubr.bf16.mxu0 %v3918_v20  ;;  %v3504_v19 = vcombine.high %v240_v11, %v240_v11 }
  0xeb   :  { %2203 = vmatprep.mubr.bf16.mxu1 %v3920_v21 }
  0xf1   :  { %1940 = vmatmul.mubr.bf16.gmra.mxu0 %v3923_v22 }
  0xf2   :  { %2204 = vmatmul.mubr.bf16.gmra.mxu1 %v3924_v23  ;;  %1947 = vmatprep.mubr.bf16.mxu0 %v3926_v24 }
  0xf3   :  { %2211 = vmatprep.mubr.bf16.mxu1 %v3928_v25 }
  0xf9   :  { %1948 = vmatmul.mubr.bf16.gmra.mxu0 %v3930_v26 }
  0xfa   :  { %2212 = vmatmul.mubr.bf16.gmra.mxu1 %v3931_v27  ;;  %1955 = vmatprep.mubr.bf16.mxu0 %v3933_v28 }
  0xfb   :  { %2219 = vmatprep.mubr.bf16.mxu1 %v3935_v29  ;;  %v3501_v29 = vcombine.low %v239_v8, %v239_v8 }
 0x101   :  { %v1765_v35 = vpop.f32.mrf.mxu0  ;;  %1956 = vmatmul.mubr.bf16.gmra.mxu0 %v3937_v30 }
 0x102   :  { %v1766_v36 = vadd.f32 %v4861_v33, %v1765_v35  ;;  %v2029_v37 = vpop.f32.mrf.mxu1  ;;  %2220 = vmatmul.mubr.bf16.gmra.mxu1 %v3938_v31  ;;  %1963 = vmatprep.mubr.bf16.mxu0 %v3939_v32  ;;  %v3503_v32 = vcombine.low %v240_v11, %v240_v11 }
 0x103   :  { %v1767_v38 = vpop.f32.mrf.mxu0  ;;  %2227 = vmatprep.mubr.bf16.mxu1 %v3941_v34  ;;  %v3966_v34 = vld [vmem:[%s5902_s0 + $0x14] ss:$28 sps:$4 sm:$0xff]  }
 0x104   :  { %v4867_v39 = vadd.f32 %v2029_v37, %v1766_v36  ;;  %v2031_v41 = vpop.f32.mrf.mxu1 }
 0x105   :  { %v1768_v42 = vpop.f32.mrf.mxu0 }
 0x106   :  { %v1769_v44 = vadd.f32 %v4861_v33, %v1768_v42  ;;  %v2032_v45 = vpop.f32.mrf.mxu1 }
 0x107   :  { %v1770_v47 = vpop.f32.mrf.mxu0 }
 0x108   :  { %v4882_v49 = vadd.f32 %v2032_v45, %v1769_v44  ;;  %v2034_v50 = vpop.f32.mrf.mxu1 }
 0x109   :  { %v1773_v51 = vpop.f32.mrf.mxu0  ;;  %1964 = vmatmul.mubr.bf16.gmra.mxu0 %v3943_v43  ;;  %v3967_v50 = vld [vmem:[%s5902_s0 + $0x18] ss:$28 sps:$4 sm:$0xff]  }
 0x10a   :  { %v1774_v52 = vadd.f32 %v4861_v33, %v1773_v51  ;;  %v2037_v53 = vpop.f32.mrf.mxu1  ;;  %2228 = vmatmul.mubr.bf16.gmra.mxu1 %v3944_v46  ;;  %1971 = vmatprep.mubr.bf16.mxu0 %v3947_v0  ;;  %v3964_v0 = vld [vmem:[%s5902_s0 + $0x10] ss:$28 sps:$4 sm:$0xff]  }
 0x10b   :  { %v1775_v54 = vpop.f32.mrf.mxu0  ;;  %2235 = vmatprep.mubr.bf16.mxu1 %v3949_v48  ;;  %v3970_v51 = vld [vmem:[%s5902_s0 + $0x4c] ss:$28 sps:$4 sm:$0xff]  }
 0x10c   :  { %v4885_v55 = vadd.f32 %v2037_v53, %v1774_v52  ;;  %v2039_v56 = vpop.f32.mrf.mxu1 }
 0x10d   :  { %v1776_v57 = vpop.f32.mrf.mxu0 }
 0x10e   :  { %v1777_v59 = vadd.f32 %v4861_v33, %v1776_v57  ;;  %v2040_v60 = vpop.f32.mrf.mxu1 }
 0x10f   :  { %v1778_v63 = vpop.f32.mrf.mxu0 }
 0x110   :  { %v4900_v2 = vadd.f32 %v2040_v60, %v1777_v59  ;;  %v2042_v3 = vpop.f32.mrf.mxu1  ;;  %v3968_v63 = vld [vmem:[%s5902_s0 + $0x48] ss:$28 sps:$4 sm:$0xff]  }
 0x111   :  { %v1781_v4 = vpop.f32.mrf.mxu0  ;;  %1972 = vmatmul.mubr.bf16.gmra.mxu0 %v3951_v58 }
 0x112   :  { %v1782_v5 = vadd.f32 %v4861_v33, %v1781_v4  ;;  %v2045_v6 = vpop.f32.mrf.mxu1  ;;  %2236 = vmatmul.mubr.bf16.gmra.mxu1 %v3952_v61  ;;  %1979 = vmatprep.mubr.bf16.mxu0 %v3953_v62  ;;  %v3971_v4 = vld [vmem:[%s5902_s0 + $0x50] ss:$28 sps:$4 sm:$0xff]  }
 0x113   :  { %v1783_v7 = vpop.f32.mrf.mxu0  ;;  %2243 = vmatprep.mubr.bf16.mxu1 %v3955_v1 }
 0x114   :  { %v4906_v9 = vadd.f32 %v2045_v6, %v1782_v5  ;;  %v2047_v10 = vpop.f32.mrf.mxu1  ;;  %v3974_v5 = vld [vmem:[%s5902_s0 + $0x84] ss:$28 sps:$4 sm:$0xff]  }
 0x115   :  { %v1784_v12 = vpop.f32.mrf.mxu0 }
 0x116   :  { %v1785_v14 = vadd.f32 %v4861_v33, %v1784_v12  ;;  %v2048_v15 = vpop.f32.mrf.mxu1 }
 0x117   :  { %v1786_v18 = vpop.f32.mrf.mxu0 }
 0x118   :  { %v4918_v20 = vadd.f32 %v2048_v15, %v1785_v14  ;;  %v2050_v21 = vpop.f32.mrf.mxu1 }
 0x119   :  { %v1789_v22 = vpop.f32.mrf.mxu0  ;;  %1980 = vmatmul.mubr.bf16.gmra.mxu0 %v3957_v13  ;;  %v3975_v21 = vld [vmem:[%s5902_s0 + $0x88] ss:$28 sps:$4 sm:$0xff]  }
 0x11a   :  { %v1790_v23 = vadd.f32 %v4861_v33, %v1789_v22  ;;  %v2053_v24 = vpop.f32.mrf.mxu1  ;;  %2244 = vmatmul.mubr.bf16.gmra.mxu1 %v3958_v16  ;;  %1987 = vmatprep.mubr.bf16.mxu0 %v3502_v17  ;;  %v3972_v17 = vld [vmem:[%s5902_s0 + $0x80] ss:$28 sps:$4 sm:$0xff]  }
 0x11b   :  { %v1791_v25 = vpop.f32.mrf.mxu0  ;;  %2251 = vmatprep.mubr.bf16.mxu1 %v3504_v19  ;;  %v3978_v22 = vld [vmem:[%s5902_s0 + $0xbc] ss:$28 sps:$4 sm:$0xff]  }
 0x11c   :  { %v4921_v26 = vadd.f32 %v2053_v24, %v1790_v23  ;;  %v2055_v27 = vpop.f32.mrf.mxu1 }
 0x11d   :  { %v1792_v28 = vpop.f32.mrf.mxu0 }
 0x11e   :  { %v1793_v30 = vadd.f32 %v4861_v33, %v1792_v28  ;;  %v2056_v31 = vpop.f32.mrf.mxu1 }
 0x11f   :  { %v1794_v35 = vpop.f32.mrf.mxu0 }
 0x120   :  { %v4927_v36 = vadd.f32 %v2056_v31, %v1793_v30  ;;  %v2058_v37 = vpop.f32.mrf.mxu1  ;;  %v3976_v35 = vld [vmem:[%s5902_s0 + $0xb8] ss:$28 sps:$4 sm:$0xff]  }
 0x121   :  { %v1797_v38 = vpop.f32.mrf.mxu0  ;;  %1988 = vmatmul.mubr.bf16.gmra.mxu0 %v3501_v29 }
 0x122   :  { %v1798_v41 = vadd.f32 %v4861_v33, %v1797_v38  ;;  %v2061_v42 = vpop.f32.mrf.mxu1  ;;  %2252 = vmatmul.mubr.bf16.gmra.mxu1 %v3503_v32  ;;  %2291 = vmatprep.mubr.bf16.mxu0 %v3966_v34 }
 0x123   :  { %v1799_v43 = vpop.f32.mrf.mxu0  ;;  %3617 = vmatprep.mubr.msk.bf16.mxu1 %vm4310_vm0, %v5905_v40 }
 0x124   :  { %v4932_v44 = vadd.f32 %v2061_v42, %v1798_v41  ;;  %v2063_v45 = vpop.f32.mrf.mxu1  ;;  %v3979_v41 = vld [vmem:[%s5902_s0 + $0xc0] ss:$28 sps:$4 sm:$0xff]   ;;  %v3982_v42 = vld [vmem:[%s5902_s0 + $0xf4] ss:$28 sps:$4 sm:$0xff]  }
 0x125   :  { %v1800_v46 = vpop.f32.mrf.mxu0 }
 0x126   :  { %v1801_v47 = vadd.f32 %v4861_v33, %v1800_v46  ;;  %v2064_v48 = vpop.f32.mrf.mxu1 }
 0x127   :  { %v1802_v52 = vpop.f32.mrf.mxu0 }
 0x128   :  { %v4944_v53 = vadd.f32 %v2064_v48, %v1801_v47  ;;  %v2066_v54 = vpop.f32.mrf.mxu1 }
 0x129   :  { %v1805_v56 = vpop.f32.mrf.mxu0  ;;  %2292 = vmatmul.mubr.bf16.vlgmr.msra.gmra.mxu0 %v3964_v0 }
 0x12a   :  { %v1806_v57 = vadd.f32 %v4861_v33, %v1805_v56  ;;  %v2069_v58 = vpop.f32.mrf.mxu1  ;;  %3618 = vmatmul.mubr.bf16.vlgmr.msra.gmra.mxu1 %v3967_v50  ;;  %2299 = vmatprep.mubr.bf16.mxu0 %v3970_v51  ;;  %v3980_v56 = vld [vmem:[%s5902_s0 + $0xf0] ss:$28 sps:$4 sm:$0xff]  }
 0x12b   :  { %v1807_v59 = vpop.f32.mrf.mxu0  ;;  %3621 = vmatprep.mubr.msk.bf16.mxu1 %vm4310_vm0, %v5905_v40 }
 0x12c   :  { %v4949_v60 = vadd.f32 %v2069_v58, %v1806_v57  ;;  %v2071_v61 = vpop.f32.mrf.mxu1  ;;  %v3983_v59 = vld [vmem:[%s5902_s0 + $0xf8] ss:$28 sps:$4 sm:$0xff]  }
 0x12d   :  { %v1808_v62 = vpop.f32.mrf.mxu0  ;;  %v3986_v61 = vld [vmem:[%s5902_s0 + $0x12c] ss:$28 sps:$4 sm:$0xff]  }
 0x12e   :  { %v1809_v1 = vadd.f32 %v4861_v33, %v1808_v62  ;;  %v2072_v3 = vpop.f32.mrf.mxu1 }
 0x12f   :  { %v1810_v6 = vpop.f32.mrf.mxu0 }
 0x130   :  { %v4961_v7 = vadd.f32 %v2072_v3, %v1809_v1  ;;  %v2074_v8 = vpop.f32.mrf.mxu1 }
 0x131   :  { %v1813_v10 = vpop.f32.mrf.mxu0  ;;  %2300 = vmatmul.mubr.bf16.gmra.mxu0 %v3968_v63 }
 0x132   :  { %v1814_v11 = vadd.f32 %v4861_v33, %v1813_v10  ;;  %v2077_v12 = vpop.f32.mrf.mxu1  ;;  %3622 = vmatmul.mubr.bf16.gmra.mxu1 %v3971_v4  ;;  %2307 = vmatprep.mubr.bf16.mxu0 %v3974_v5 }
 0x133   :  { %v1815_v13 = vpop.f32.mrf.mxu0  ;;  %3625 = vmatprep.mubr.msk.bf16.mxu1 %vm4310_vm0, %v5905_v40 }
 0x134   :  { %v4966_v14 = vadd.f32 %v2077_v12, %v1814_v11  ;;  %v2079_v15 = vpop.f32.mrf.mxu1  ;;  %v3984_v12 = vld [vmem:[%s5902_s0 + $0x128] ss:$28 sps:$4 sm:$0xff]  }
 0x135   :  { %v1816_v16 = vpop.f32.mrf.mxu0 }
 0x136   :  { %v1817_v18 = vadd.f32 %v4861_v33, %v1816_v16  ;;  %v2080_v19 = vpop.f32.mrf.mxu1  ;;  %v3987_v16 = vld [vmem:[%s5902_s0 + $0x130] ss:$28 sps:$4 sm:$0xff]  }
 0x137   :  { %v1818_v23 = vpop.f32.mrf.mxu0 }
 0x138   :  { %v4978_v24 = vadd.f32 %v2080_v19, %v1817_v18  ;;  %v2082_v25 = vpop.f32.mrf.mxu1 }
 0x139   :  { %v1821_v27 = vpop.f32.mrf.mxu0  ;;  %2308 = vmatmul.mubr.bf16.gmra.mxu0 %v3972_v17  ;;  %v3990_v17 = vld [vmem:[%s5902_s0 + $0x164] ss:$28 sps:$4 sm:$0xff]  }
 0x13a   :  { %v1822_v28 = vadd.f32 %v4861_v33, %v1821_v27  ;;  %v2085_v29 = vpop.f32.mrf.mxu1  ;;  %3626 = vmatmul.mubr.bf16.gmra.mxu1 %v3975_v21  ;;  %2315 = vmatprep.mubr.bf16.mxu0 %v3978_v22 }
 0x13b   :  { %v1823_v30 = vpop.f32.mrf.mxu0  ;;  %3629 = vmatprep.mubr.msk.bf16.mxu1 %vm4310_vm0, %v5905_v40 }
 0x13c   :  { %v4983_v31 = vadd.f32 %v2085_v29, %v1822_v28  ;;  %v2087_v32 = vpop.f32.mrf.mxu1 }
 0x13d   :  { %v1824_v34 = vpop.f32.mrf.mxu0  ;;  %v3988_v32 = vld [vmem:[%s5902_s0 + $0x160] ss:$28 sps:$4 sm:$0xff]  }
 0x13e   :  { %v1825_v37 = vadd.f32 %v4861_v33, %v1824_v34  ;;  %v2088_v38 = vpop.f32.mrf.mxu1 }
 0x13f   :  { %v1826_v43 = vpop.f32.mrf.mxu0 }
 0x140   :  { %v4995_v45 = vadd.f32 %v2088_v38, %v1825_v37  ;;  %v2090_v46 = vpop.f32.mrf.mxu1  ;;  %v3991_v37 = vld [vmem:[%s5902_s0 + $0x168] ss:$28 sps:$4 sm:$0xff]   ;;  %v3994_v38 = vld [vmem:[%s5902_s0 + $0x19c] ss:$28 sps:$4 sm:$0xff]  }
 0x141   :  { %v1829_v0 = vpop.f32.mrf.mxu0  ;;  %2316 = vmatmul.mubr.bf16.gmra.mxu0 %v3976_v35 }
 0x142   :  { %v1830_v47 = vadd.f32 %v4861_v33, %v1829_v0  ;;  %v2093_v48 = vpop.f32.mrf.mxu1  ;;  %3630 = vmatmul.mubr.bf16.gmra.mxu1 %v3979_v41  ;;  %2323 = vmatprep.mubr.bf16.mxu0 %v3982_v42 }
 0x143   :  { %v1831_v50 = vpop.f32.mrf.mxu0  ;;  %3633 = vmatprep.mubr.msk.bf16.mxu1 %vm4310_vm0, %v5905_v40 }
 0x144   :  { %v5000_v51 = vadd.f32 %v2093_v48, %v1830_v47  ;;  %v2095_v52 = vpop.f32.mrf.mxu1 }
 0x145   :  { %v1832_v54 = vpop.f32.mrf.mxu0 }
 0x146   :  { %v1833_v57 = vadd.f32 %v4861_v33, %v1832_v54  ;;  %v2096_v58 = vpop.f32.mrf.mxu1 }
 0x147   :  { %v1834_v62 = vpop.f32.mrf.mxu0 }
 0x148   :  { %v5012_v63 = vadd.f32 %v2096_v58, %v1833_v57  ;;  %v2098_v1 = vpop.f32.mrf.mxu1 }
 0x149   :  { %v1837_v3 = vpop.f32.mrf.mxu0  ;;  %2324 = vmatmul.mubr.bf16.gmra.mxu0 %v3980_v56  ;;  %v3992_v56 = vld [vmem:[%s5902_s0 + $0x198] ss:$28 sps:$4 sm:$0xff]  }
 0x14a   :  { %v1838_v4 = vadd.f32 %v4861_v33, %v1837_v3  ;;  %v2101_v5 = vpop.f32.mrf.mxu1  ;;  %3634 = vmatmul.mubr.bf16.gmra.mxu1 %v3983_v59  ;;  %2331 = vmatprep.mubr.bf16.mxu0 %v3986_v61  ;;  %v3995_v59 = vld [vmem:[%s5902_s0 + $0x1a0] ss:$28 sps:$4 sm:$0xff]   ;;  %v3998_v61 = vld [vmem:[%s5902_s0 + $0x1d4] ss:$28 sps:$4 sm:$0xff]  }
 0x14b   :  { %v1839_v6 = vpop.f32.mrf.mxu0  ;;  %3637 = vmatprep.mubr.msk.bf16.mxu1 %vm4310_vm0, %v5905_v40 }
 0x14c   :  { %v5017_v8 = vadd.f32 %v2101_v5, %v1838_v4  ;;  %v2103_v10 = vpop.f32.mrf.mxu1 }
 0x14d   :  { %v1840_v11 = vpop.f32.mrf.mxu0 }
 0x14e   :  { %v1841_v13 = vadd.f32 %v4861_v33, %v1840_v11  ;;  %v2104_v15 = vpop.f32.mrf.mxu1 }
 0x14f   :  { %v1842_v18 = vpop.f32.mrf.mxu0 }
 0x150   :  { %v5029_v19 = vadd.f32 %v2104_v15, %v1841_v13  ;;  %v2106_v21 = vpop.f32.mrf.mxu1  ;;  %v3996_v15 = vld [vmem:[%s5902_s0 + $0x1d0] ss:$28 sps:$4 sm:$0xff]   ;;  %v3999_v18 = vld [vmem:[%s5902_s0 + $0x1d8] ss:$28 sps:$4 sm:$0xff]  }
 0x151   :  { %v1845_v22 = vpop.f32.mrf.mxu0  ;;  %2332 = vmatmul.mubr.bf16.gmra.mxu0 %v3984_v12  ;;  %v4002_v21 = vld [vmem:[%s5902_s0 + $0x20c] ss:$28 sps:$4 sm:$0xff]  }
 0x152   :  { %v1846_v23 = vadd.f32 %v4861_v33, %v1845_v22  ;;  %v2109_v25 = vpop.f32.mrf.mxu1  ;;  %3638 = vmatmul.mubr.bf16.gmra.mxu1 %v3987_v16  ;;  %2339 = vmatprep.mubr.bf16.mxu0 %v3990_v17 }
 0x153   :  { %v1847_v27 = vpop.f32.mrf.mxu0  ;;  %3641 = vmatprep.mubr.msk.bf16.mxu1 %vm4310_vm0, %v5905_v40 }
 0x154   :  { %v5034_v28 = vadd.f32 %v2109_v25, %v1846_v23  ;;  %v2111_v29 = vpop.f32.mrf.mxu1 }
 0x155   :  { %v1848_v30 = vpop.f32.mrf.mxu0 }
 0x156   :  { %v1849_v34 = vadd.f32 %v4861_v33, %v1848_v30  ;;  %v2112_v35 = vpop.f32.mrf.mxu1 }
 0x157   :  { %v1850_v41 = vpop.f32.mrf.mxu0 }
 0x158   :  { %v5046_v42 = vadd.f32 %v2112_v35, %v1849_v34  ;;  %v2114_v43 = vpop.f32.mrf.mxu1 }
 0x159   :  { %v1853_v46 = vpop.f32.mrf.mxu0  ;;  %2340 = vmatmul.mubr.bf16.gmra.mxu0 %v3988_v32 }
 0x15a   :  { %v1854_v0 = vadd.f32 %v4861_v33, %v1853_v46  ;;  %v2117_v47 = vpop.f32.mrf.mxu1  ;;  %3642 = vmatmul.mubr.bf16.gmra.mxu1 %v3991_v37  ;;  %2347 = vmatprep.mubr.bf16.mxu0 %v3994_v38  ;;  %v4000_v38 = vld [vmem:[%s5902_s0 + $0x208] ss:$28 sps:$4 sm:$0xff]   ;;  %v4003_v46 = vld [vmem:[%s5902_s0 + $0x210] ss:$28 sps:$4 sm:$0xff]  }
 0x15b   :  { %v1855_v48 = vpop.f32.mrf.mxu0  ;;  %3645 = vmatprep.mubr.msk.bf16.mxu1 %vm4310_vm0, %v5905_v40 }
 0x15c   :  { %v5051_v50 = vadd.f32 %v2117_v47, %v1854_v0  ;;  %v2119_v52 = vpop.f32.mrf.mxu1  ;;  %v4006_v0 = vld [vmem:[%s5902_s0 + $0x244] ss:$28 sps:$4 sm:$0xff]  }
 0x15d   :  { %v1856_v54 = vpop.f32.mrf.mxu0 }
 0x15e   :  { %v1857_v57 = vadd.f32 %v4861_v33, %v1856_v54  ;;  %v2120_v58 = vpop.f32.mrf.mxu1 }
 0x15f   :  { %v1858_v62 = vpop.f32.mrf.mxu0 }
 0x160   :  { %v5063_v1 = vadd.f32 %v2120_v58, %v1857_v57  ;;  %v2122_v3 = vpop.f32.mrf.mxu1 }
 0x161   :  { %v1861_v4 = vpop.f32.mrf.mxu0  ;;  %2348 = vmatmul.mubr.bf16.gmra.mxu0 %v3992_v56  ;;  %v4004_v3 = vld [vmem:[%s5902_s0 + $0x240] ss:$28 sps:$4 sm:$0xff]  }
 0x162   :  { %v1862_v5 = vadd.f32 %v4861_v33, %v1861_v4  ;;  %v2125_v6 = vpop.f32.mrf.mxu1  ;;  %3646 = vmatmul.mubr.bf16.gmra.mxu1 %v3995_v59  ;;  %2355 = vmatprep.mubr.bf16.mxu0 %v3998_v61 }
 0x163   :  { %v1863_v10 = vpop.f32.mrf.mxu0  ;;  %3649 = vmatprep.mubr.msk.bf16.mxu1 %vm4310_vm0, %v5905_v40 }
 0x164   :  { %v5068_v11 = vadd.f32 %v2125_v6, %v1862_v5  ;;  %v2127_v12 = vpop.f32.mrf.mxu1  ;;  %v4007_v6 = vld [vmem:[%s5902_s0 + $0x248] ss:$28 sps:$4 sm:$0xff]   ;;  %v4010_v10 = vld [vmem:[%s5902_s0 + $0x27c] ss:$28 sps:$4 sm:$0xff]  }
 0x165   :  { %v1864_v13 = vpop.f32.mrf.mxu0 }
 0x166   :  { %v1865_v16 = vadd.f32 %v4861_v33, %v1864_v13  ;;  %v2128_v17 = vpop.f32.mrf.mxu1 }
 0x167   :  { %v1866_v22 = vpop.f32.mrf.mxu0 }
 0x168   :  { %v5080_v23 = vadd.f32 %v2128_v17, %v1865_v16  ;;  %v2130_v25 = vpop.f32.mrf.mxu1 }
 0x169   :  { %v1869_v27 = vpop.f32.mrf.mxu0  ;;  %2356 = vmatmul.mubr.bf16.gmra.mxu0 %v3996_v15 }
 0x16a   :  { %v1870_v29 = vadd.f32 %v4861_v33, %v1869_v27  ;;  %v2133_v30 = vpop.f32.mrf.mxu1  ;;  %3650 = vmatmul.mubr.bf16.gmra.mxu1 %v3999_v18  ;;  %2363 = vmatprep.mubr.bf16.mxu0 %v4002_v21 }
 0x16b   :  { %v1871_v32 = vpop.f32.mrf.mxu0  ;;  %3653 = vmatprep.mubr.msk.bf16.mxu1 %vm4310_vm0, %v5905_v40 }
 0x16c   :  { %v5085_v34 = vadd.f32 %v2133_v30, %v1870_v29  ;;  %v2135_v35 = vpop.f32.mrf.mxu1  ;;  %v4008_v29 = vld [vmem:[%s5902_s0 + $0x278] ss:$28 sps:$4 sm:$0xff]  }
 0x16d   :  { %v1872_v37 = vpop.f32.mrf.mxu0  ;;  %v4011_v35 = vld [vmem:[%s5902_s0 + $0x280] ss:$28 sps:$4 sm:$0xff]  }
 0x16e   :  { %v1873_v41 = vadd.f32 %v4861_v33, %v1872_v37  ;;  %v2136_v43 = vpop.f32.mrf.mxu1  ;;  %v4014_v37 = vld [vmem:[%s5902_s0 + $0x2b4] ss:$28 sps:$4 sm:$0xff]  }
 0x16f   :  { %v1874_v47 = vpop.f32.mrf.mxu0 }
 0x170   :  { %v5097_v48 = vadd.f32 %v2136_v43, %v1873_v41  ;;  %v2138_v52 = vpop.f32.mrf.mxu1 }
 0x171   :  { %v1877_v54 = vpop.f32.mrf.mxu0  ;;  %2364 = vmatmul.mubr.bf16.gmra.mxu0 %v4000_v38 }
 0x172   :  { %v1878_v56 = vadd.f32 %v4861_v33, %v1877_v54  ;;  %v2141_v57 = vpop.f32.mrf.mxu1  ;;  %3654 = vmatmul.mubr.bf16.gmra.mxu1 %v4003_v46  ;;  %2371 = vmatprep.mubr.bf16.mxu0 %v4006_v0 }
 0x173   :  { %v1879_v58 = vpop.f32.mrf.mxu0  ;;  %3657 = vmatprep.mubr.msk.bf16.mxu1 %vm4310_vm0, %v5905_v40 }
 0x174   :  { %v5102_v59 = vadd.f32 %v2141_v57, %v1878_v56  ;;  %v2143_v61 = vpop.f32.mrf.mxu1  ;;  %v4012_v58 = vld [vmem:[%s5902_s0 + $0x2b0] ss:$28 sps:$4 sm:$0xff]  }
 0x175   :  { %v1880_v62 = vpop.f32.mrf.mxu0 }
 0x176   :  { %v1881_v4 = vadd.f32 %v4861_v33, %v1880_v62  ;;  %v2144_v5 = vpop.f32.mrf.mxu1 }
 0x177   :  { %v1882_v12 = vpop.f32.mrf.mxu0 }
 0x178   :  { %v5114_v13 = vadd.f32 %v2144_v5, %v1881_v4  ;;  %v2146_v15 = vpop.f32.mrf.mxu1  ;;  %v4018_v4 = vld [vmem:[%s5902_s0 + $0x2ec] ss:$28 sps:$4 sm:$0xff]  }
 0x179   :  { %v1885_v16 = vpop.f32.mrf.mxu0  ;;  %2372 = vmatmul.mubr.bf16.gmra.mxu0 %v4004_v3  ;;  %v4015_v3 = vld [vmem:[%s5902_s0 + $0x2b8] ss:$28 sps:$4 sm:$0xff]  }
 0x17a   :  { %v1886_v17 = vadd.f32 %v4861_v33, %v1885_v16  ;;  %v2149_v18 = vpop.f32.mrf.mxu1  ;;  %3658 = vmatmul.mubr.bf16.gmra.mxu1 %v4007_v6  ;;  %2379 = vmatprep.mubr.bf16.mxu0 %v4010_v10 }
 0x17b   :  { %v1887_v21 = vpop.f32.mrf.mxu0  ;;  %3661 = vmatprep.mubr.msk.bf16.mxu1 %vm4310_vm0, %v5905_v40 }
 0x17c   :  { %v5119_v22 = vadd.f32 %v2149_v18, %v1886_v17  ;;  %v2151_v25 = vpop.f32.mrf.mxu1 }
 0x17d   :  { %v1888_v27 = vpop.f32.mrf.mxu0 }
 0x17e   :  { %v1889_v30 = vadd.f32 %v4861_v33, %v1888_v27  ;;  %v2152_v32 = vpop.f32.mrf.mxu1  ;;  %v4016_v27 = vld [vmem:[%s5902_s0 + $0x2e8] ss:$28 sps:$4 sm:$0xff]  }
 0x17f   :  { %v1890_v38 = vpop.f32.mrf.mxu0 }
 0x180   :  { %v5131_v41 = vadd.f32 %v2152_v32, %v1889_v30  ;;  %v2154_v43 = vpop.f32.mrf.mxu1  ;;  %v4019_v32 = vld [vmem:[%s5902_s0 + $0x2f0] ss:$28 sps:$4 sm:$0xff]  }
 0x181   :  { %v1893_v46 = vpop.f32.mrf.mxu0  ;;  %2380 = vmatmul.mubr.bf16.gmra.mxu0 %v4008_v29 }
 0x182   :  { %v1894_v0 = vadd.f32 %v4861_v33, %v1893_v46  ;;  %v2157_v47 = vpop.f32.mrf.mxu1  ;;  %3662 = vmatmul.mubr.bf16.gmra.mxu1 %v4011_v35  ;;  %2387 = vmatprep.mubr.bf16.mxu0 %v4014_v37  ;;  %v4022_v35 = vld [vmem:[%s5902_s0 + $0x324] ss:$28 sps:$4 sm:$0xff]  }
 0x183   :  { %v1895_v52 = vpop.f32.mrf.mxu0  ;;  %3665 = vmatprep.mubr.msk.bf16.mxu1 %vm4310_vm0, %v5905_v40 }
 0x184   :  { %v5136_v54 = vadd.f32 %v2157_v47, %v1894_v0  ;;  %v2159_v56 = vpop.f32.mrf.mxu1 }
 0x185   :  { %v1896_v57 = vpop.f32.mrf.mxu0 }
 0x186   :  { %v1897_v61 = vadd.f32 %v4861_v33, %v1896_v57  ;;  %v2160_v62 = vpop.f32.mrf.mxu1 }
 0x187   :  { %v1898_v5 = vpop.f32.mrf.mxu0 }
 0x188   :  { %v5148_v6 = vadd.f32 %v2160_v62, %v1897_v61  ;;  %v2162_v10 = vpop.f32.mrf.mxu1  ;;  %v4020_v61 = vld [vmem:[%s5902_s0 + $0x320] ss:$28 sps:$4 sm:$0xff]  }
 0x189   :  { %v1901_v12 = vpop.f32.mrf.mxu0  ;;  %2388 = vmatmul.mubr.bf16.gmra.mxu0 %v4012_v58  ;;  %v4026_v5 = vld [vmem:[%s5902_s0 + $0x35c] ss:$28 sps:$4 sm:$0xff]  }
 0x18a   :  { %v1902_v15 = vadd.f32 %v4861_v33, %v1901_v12  ;;  %v2165_v16 = vpop.f32.mrf.mxu1  ;;  %3666 = vmatmul.mubr.bf16.gmra.mxu1 %v4015_v3  ;;  %2395 = vmatprep.mubr.bf16.mxu0 %v4018_v4  ;;  %v4023_v4 = vld [vmem:[%s5902_s0 + $0x328] ss:$28 sps:$4 sm:$0xff]  }
 0x18b   :  { %v1903_v17 = vpop.f32.mrf.mxu0  ;;  %3669 = vmatprep.mubr.msk.bf16.mxu1 %vm4310_vm0, %v5905_v40 }
 0x18c   :  { %v5153_v18 = vadd.f32 %v2165_v16, %v1902_v15  ;;  %v2167_v21 = vpop.f32.mrf.mxu1 }
 0x18d   :  { %v1904_v25 = vpop.f32.mrf.mxu0 }
 0x18e   :  { %v1905_v29 = vadd.f32 %v4861_v33, %v1904_v25  ;;  %v2168_v30 = vpop.f32.mrf.mxu1 }
 0x18f   :  { %v1906_v37 = vpop.f32.mrf.mxu0 }
 0x190   :  { %v5165_v38 = vadd.f32 %v2168_v30, %v1905_v29  ;;  %v2170_v43 = vpop.f32.mrf.mxu1 }
 0x191   :  { %v1909_v46 = vpop.f32.mrf.mxu0  ;;  %2396 = vmatmul.mubr.bf16.gmra.mxu0 %v4016_v27  ;;  %v4027_v43 = vld [vmem:[%s5902_s0 + $0x360] ss:$28 sps:$4 sm:$0xff]  }
 0x192   :  { %v1910_v0 = vadd.f32 %v4861_v33, %v1909_v46  ;;  %v2173_v47 = vpop.f32.mrf.mxu1  ;;  %3670 = vmatmul.mubr.bf16.gmra.mxu1 %v4019_v32  ;;  %2403 = vmatprep.mubr.bf16.mxu0 %v4022_v35  ;;  %v4024_v32 = vld [vmem:[%s5902_s0 + $0x358] ss:$28 sps:$4 sm:$0xff]  }
 0x193   :  { %v1911_v52 = vpop.f32.mrf.mxu0  ;;  %3673 = vmatprep.mubr.msk.bf16.mxu1 %vm4310_vm0, %v5905_v40  ;;  %v4030_v46 = vld [vmem:[%s5902_s0 + $0x394] ss:$28 sps:$4 sm:$0xff]  }
 0x194   :  { %v5170_v56 = vadd.f32 %v2173_v47, %v1910_v0  ;;  %v2175_v57 = vpop.f32.mrf.mxu1 }
 0x195   :  { %v1912_v58 = vpop.f32.mrf.mxu0 }
 0x196   :  { %v1913_v62 = vadd.f32 %v4861_v33, %v1912_v58  ;;  %v2176_v3 = vpop.f32.mrf.mxu1 }
 0x197   :  { %v1914_v10 = vpop.f32.mrf.mxu0 }
 0x198   :  { %v5182_v12 = vadd.f32 %v2176_v3, %v1913_v62  ;;  %v2178_v15 = vpop.f32.mrf.mxu1  ;;  %v4028_v10 = vld [vmem:[%s5902_s0 + $0x390] ss:$28 sps:$4 sm:$0xff]  }
 0x199   :  { %v1917_v16 = vpop.f32.mrf.mxu0  ;;  %2404 = vmatmul.mubr.bf16.gmra.mxu0 %v4020_v61 }
 0x19a   :  { %v1918_v17 = vadd.f32 %v4861_v33, %v1917_v16  ;;  %v2181_v21 = vpop.f32.mrf.mxu1  ;;  %3674 = vmatmul.mubr.bf16.gmra.mxu1 %v4023_v4  ;;  %2411 = vmatprep.mubr.bf16.mxu0 %v4026_v5 }
 0x19b   :  { %v1919_v25 = vpop.f32.mrf.mxu0  ;;  %3677 = vmatprep.mubr.msk.bf16.mxu1 %vm4310_vm0, %v5905_v40 }
 0x19c   :  { %v5187_v27 = vadd.f32 %v2181_v21, %v1918_v17  ;;  %v2183_v29 = vpop.f32.mrf.mxu1  ;;  %v4031_v17 = vld [vmem:[%s5902_s0 + $0x398] ss:$28 sps:$4 sm:$0xff]   ;;  %v4034_v21 = vld [vmem:[%s5902_s0 + $0x3cc] ss:$28 sps:$4 sm:$0xff]  }
 0x19d   :  { %v1920_v30 = vpop.f32.mrf.mxu0 }
 0x19e   :  { %v1921_v35 = vadd.f32 %v4861_v33, %v1920_v30  ;;  %v2184_v37 = vpop.f32.mrf.mxu1 }
 0x19f   :  { %v1922_v0 = vpop.f32.mrf.mxu0 }
 0x1a0   :  { %v5199_v47 = vadd.f32 %v2184_v37, %v1921_v35  ;;  %v2186_v52 = vpop.f32.mrf.mxu1 }
 0x1a1   :  { %v1925_v57 = vpop.f32.mrf.mxu0  ;;  %2412 = vmatmul.mubr.bf16.gmra.mxu0 %v4024_v32 }
 0x1a2   :  { %v1926_v58 = vadd.f32 %v4861_v33, %v1925_v57  ;;  %v2189_v61 = vpop.f32.mrf.mxu1  ;;  %3678 = vmatmul.mubr.bf16.gmra.mxu1 %v4027_v43  ;;  %2419 = vmatprep.mubr.bf16.mxu0 %v4030_v46  ;;  %v4032_v57 = vld [vmem:[%s5902_s0 + $0x3c8] ss:$28 sps:$4 sm:$0xff]  }
 0x1a3   :  { %v1927_v62 = vpop.f32.mrf.mxu0  ;;  %3681 = vmatprep.mubr.msk.bf16.mxu1 %vm4310_vm0, %v5905_v40 }
 0x1a4   :  { %v5204_v3 = vadd.f32 %v2189_v61, %v1926_v58  ;;  %v2191_v4 = vpop.f32.mrf.mxu1  ;;  %v4035_v62 = vld [vmem:[%s5902_s0 + $0x3d0] ss:$28 sps:$4 sm:$0xff]  }
 0x1a5   :  { %v1928_v5 = vpop.f32.mrf.mxu0  ;;  %v4038_v4 = vld [vmem:[%s5902_s0 + $0x404] ss:$28 sps:$4 sm:$0xff]  }
 0x1a6   :  { %v1929_v15 = vadd.f32 %v4861_v33, %v1928_v5  ;;  %v2192_v16 = vpop.f32.mrf.mxu1 }
 0x1a7   :  { %v1930_v25 = vpop.f32.mrf.mxu0 }
 0x1a8   :  { %v5216_v29 = vadd.f32 %v2192_v16, %v1929_v15  ;;  %v2194_v30 = vpop.f32.mrf.mxu1 }
 0x1a9   :  { %v1933_v32 = vpop.f32.mrf.mxu0  ;;  %2420 = vmatmul.mubr.bf16.gmra.mxu0 %v4028_v10 }
 0x1aa   :  { %v1934_v35 = vadd.f32 %v4861_v33, %v1933_v32  ;;  %v2197_v37 = vpop.f32.mrf.mxu1  ;;  %3682 = vmatmul.mubr.bf16.gmra.mxu1 %v4031_v17  ;;  %2427 = vmatprep.mubr.bf16.mxu0 %v4034_v21 }
 0x1ab   :  { %v1935_v43 = vpop.f32.mrf.mxu0  ;;  %3685 = vmatprep.mubr.msk.bf16.mxu1 %vm4310_vm0, %v5905_v40 }
 0x1ac   :  { %v5221_v46 = vadd.f32 %v2197_v37, %v1934_v35  ;;  %v2199_v0 = vpop.f32.mrf.mxu1  ;;  %v4036_v37 = vld [vmem:[%s5902_s0 + $0x400] ss:$28 sps:$4 sm:$0xff]  }
 0x1ad   :  { %v1936_v52 = vpop.f32.mrf.mxu0 }
 0x1ae   :  { %v1937_v58 = vadd.f32 %v4861_v33, %v1936_v52  ;;  %v2200_v61 = vpop.f32.mrf.mxu1  ;;  %v4039_v52 = vld [vmem:[%s5902_s0 + $0x408] ss:$28 sps:$4 sm:$0xff]  }
 0x1af   :  { %v1938_v5 = vpop.f32.mrf.mxu0 }
 0x1b0   :  { %v5233_v10 = vadd.f32 %v2200_v61, %v1937_v58  ;;  %v2202_v15 = vpop.f32.mrf.mxu1 }
 0x1b1   :  { %v1941_v16 = vpop.f32.mrf.mxu0  ;;  %2428 = vmatmul.mubr.bf16.gmra.mxu0 %v4032_v57  ;;  %v4042_v57 = vld [vmem:[%s5902_s0 + $0x43c] ss:$28 sps:$4 sm:$0xff]  }
 0x1b2   :  { %v1942_v17 = vadd.f32 %v4861_v33, %v1941_v16  ;;  %v2205_v21 = vpop.f32.mrf.mxu1  ;;  %3686 = vmatmul.mubr.bf16.gmra.mxu1 %v4035_v62  ;;  %2435 = vmatprep.mubr.bf16.mxu0 %v4038_v4 }
 0x1b3   :  { %v1943_v25 = vpop.f32.mrf.mxu0  ;;  %3689 = vmatprep.mubr.msk.bf16.mxu1 %vm4310_vm0, %v5905_v40 }
 0x1b4   :  { %v5238_v30 = vadd.f32 %v2205_v21, %v1942_v17  ;;  %v2207_v32 = vpop.f32.mrf.mxu1 }
 0x1b5   :  { %v1944_v35 = vpop.f32.mrf.mxu0  ;;  %v4040_v32 = vld [vmem:[%s5902_s0 + $0x438] ss:$28 sps:$4 sm:$0xff]  }
 0x1b6   :  { %v1945_v43 = vadd.f32 %v4861_v33, %v1944_v35  ;;  %v2208_v0 = vpop.f32.mrf.mxu1 }
 0x1b7   :  { %v1946_v58 = vpop.f32.mrf.mxu0 }
 0x1b8   :  { %v5250_v61 = vadd.f32 %v2208_v0, %v1945_v43  ;;  %v2210_v62 = vpop.f32.mrf.mxu1  ;;  %v4043_v43 = vld [vmem:[%s5902_s0 + $0x440] ss:$28 sps:$4 sm:$0xff]   ;;  %v4046_v0 = vld [vmem:[%s5902_s0 + $0x474] ss:$28 sps:$4 sm:$0xff]  }
 0x1b9   :  { %v1949_v4 = vpop.f32.mrf.mxu0  ;;  %2436 = vmatmul.mubr.bf16.gmra.mxu0 %v4036_v37 }
 0x1ba   :  { %5906 = vst [vmem:[#allocation2_spill] sm:$0xff] %v5250_v61  ;;  %v1950_v5 = vadd.f32 %v4861_v33, %v1949_v4  ;;  %v2213_v15 = vpop.f32.mrf.mxu1  ;;  %3690 = vmatmul.mubr.bf16.gmra.mxu1 %v4039_v52  ;;  %2443 = vmatprep.mubr.bf16.mxu0 %v4042_v57  ;;  %v5918_v61 = vmov 0.0  }
 0x1bb   :  { %v1951_v16 = vpop.f32.mrf.mxu0  ;;  %3693 = vmatprep.mubr.msk.bf16.mxu1 %vm4310_vm0, %v5905_v40 }
 0x1bc   :  { %v5255_v17 = vadd.f32 %v2213_v15, %v1950_v5  ;;  %v2215_v21 = vpop.f32.mrf.mxu1 }
 0x1bd   :  { %v1952_v25 = vpop.f32.mrf.mxu0 }
 0x1be   :  { %5907 = vst [vmem:[#allocation3_spill] sm:$0xff] %v5255_v17  ;;  %v1953_v35 = vadd.f32 %v4861_v33, %v1952_v25  ;;  %v2216_v37 = vpop.f32.mrf.mxu1 }
 0x1bf   :  { %v1954_v52 = vpop.f32.mrf.mxu0 }
 0x1c0   :  { %v5267_v57 = vadd.f32 %v2216_v37, %v1953_v35  ;;  %v2218_v58 = vpop.f32.mrf.mxu1  ;;  %v4044_v35 = vld [vmem:[%s5902_s0 + $0x470] ss:$28 sps:$4 sm:$0xff]  }
 0x1c1   :  { %v1957_v62 = vpop.f32.mrf.mxu0  ;;  %2444 = vmatmul.mubr.bf16.gmra.mxu0 %v4040_v32 }
 0x1c2   :  { %5908 = vst [vmem:[#allocation4_spill] sm:$0xff] %v5267_v57  ;;  %v1958_v4 = vadd.f32 %v4861_v33, %v1957_v62  ;;  %v2221_v5 = vpop.f32.mrf.mxu1  ;;  %3694 = vmatmul.mubr.bf16.gmra.mxu1 %v4043_v43  ;;  %2451 = vmatprep.mubr.bf16.mxu0 %v4046_v0  ;;  %v4047_v43 = vld [vmem:[%s5902_s0 + $0x478] ss:$28 sps:$4 sm:$0xff]   ;;  %v4050_v0 = vld [vmem:[%s5902_s0 + $0x4ac] ss:$28 sps:$4 sm:$0xff]  }
 0x1c3   :  { %v1959_v15 = vpop.f32.mrf.mxu0  ;;  %3697 = vmatprep.mubr.msk.bf16.mxu1 %vm4310_vm0, %v5905_v40 }
 0x1c4   :  { %v5272_v16 = vadd.f32 %v2221_v5, %v1958_v4  ;;  %v2223_v21 = vpop.f32.mrf.mxu1 }
 0x1c5   :  { %v1960_v25 = vpop.f32.mrf.mxu0 }
 0x1c6   :  { %5909 = vst [vmem:[#allocation5_spill] sm:$0xff] %v5272_v16  ;;  %v1961_v37 = vadd.f32 %v4861_v33, %v1960_v25  ;;  %v2224_v32 = vpop.f32.mrf.mxu1 }
 0x1c7   :  { %v1962_v52 = vpop.f32.mrf.mxu0 }
 0x1c8   :  { %v5284_v58 = vadd.f32 %v2224_v32, %v1961_v37  ;;  %v2226_v62 = vpop.f32.mrf.mxu1  ;;  %v4048_v37 = vld [vmem:[%s5902_s0 + $0x4a8] ss:$28 sps:$4 sm:$0xff]  }
 0x1c9   :  { %v1965_v4 = vpop.f32.mrf.mxu0  ;;  %2452 = vmatmul.mubr.bf16.gmra.mxu0 %v4044_v35 }
 0x1ca   :  { %5910 = vst [vmem:[#allocation6_spill] sm:$0xff] %v5284_v58  ;;  %v1966_v5 = vadd.f32 %v4861_v33, %v1965_v4  ;;  %v2229_v15 = vpop.f32.mrf.mxu1  ;;  %3698 = vmatmul.mubr.bf16.gmra.mxu1 %v4047_v43  ;;  %2459 = vmatprep.mubr.bf16.mxu0 %v4050_v0  ;;  %v4051_v43 = vld [vmem:[%s5902_s0 + $0x4b0] ss:$28 sps:$4 sm:$0xff]   ;;  %v4054_v0 = vld [vmem:[%s5902_s0 + $0x4e4] ss:$28 sps:$4 sm:$0xff]  }
 0x1cb   :  { %v1967_v21 = vpop.f32.mrf.mxu0  ;;  %3701 = vmatprep.mubr.msk.bf16.mxu1 %vm4310_vm0, %v5905_v40 }
 0x1cc   :  { %v5289_v25 = vadd.f32 %v2229_v15, %v1966_v5  ;;  %v2231_v16 = vpop.f32.mrf.mxu1 }
 0x1cd   :  { %v1968_v57 = vpop.f32.mrf.mxu0 }
 0x1ce   :  { %5911 = vst [vmem:[#allocation7_spill] sm:$0xff] %v5289_v25  ;;  %v1969_v32 = vadd.f32 %v4861_v33, %v1968_v57  ;;  %v2232_v35 = vpop.f32.mrf.mxu1 }
 0x1cf   :  { %v1970_v52 = vpop.f32.mrf.mxu0 }
 0x1d0   :  { %v5301_v62 = vadd.f32 %v2232_v35, %v1969_v32  ;;  %v2234_v16 = vpop.f32.mrf.mxu1  ;;  %v4052_v32 = vld [vmem:[%s5902_s0 + $0x4e0] ss:$28 sps:$4 sm:$0xff]  }
 0x1d1   :  { %v1973_v4 = vpop.f32.mrf.mxu0  ;;  %2460 = vmatmul.mubr.bf16.gmra.mxu0 %v4048_v37  ;;  %v4307_v37 = vld [vmem:[%s5903_s2] ss:$0 sm:$0xff] }
 0x1d2   :  { %5912 = vst [vmem:[#allocation8_spill] sm:$0xff] %v5301_v62  ;;  %v1974_v5 = vadd.f32 %v4861_v33, %v1973_v4  ;;  %v2237_v15 = vpop.f32.mrf.mxu1  ;;  %3702 = vmatmul.mubr.bf16.gmra.mxu1 %v4051_v43  ;;  %2467 = vmatprep.mubr.bf16.mxu0 %v4054_v0  ;;  %v4055_v43 = vld [vmem:[%s5902_s0 + $0x4e8] ss:$28 sps:$4 sm:$0xff]   ;;  %v4058_v0 = vld [vmem:[%s5902_s0 + $0x51c] ss:$28 sps:$4 sm:$0xff]  }
 0x1d3   :  { %v1975_v57 = vpop.f32.mrf.mxu0  ;;  %3705 = vmatprep.mubr.msk.bf16.mxu1 %vm4310_vm0, %v5905_v40 }
 0x1d4   :  { %v5306_v21 = vadd.f32 %v2237_v15, %v1974_v5  ;;  %v2239_v25 = vpop.f32.mrf.mxu1 }
 0x1d5   :  { %v1976_v58 = vpop.f32.mrf.mxu0 }
 0x1d6   :  { %5913 = vst [vmem:[#allocation9_spill] sm:$0xff] %v5306_v21  ;;  %v1977_v33 = vadd.f32 %v4307_v37, %v1976_v58  ;;  %v2240_v35 = vpop.f32.mrf.mxu1 }
 0x1d7   :  { %v1978_v25 = vpop.f32.mrf.mxu0 }
 0x1d8   :  { %v5320_v52 = vadd.f32 %v2240_v35, %v1977_v33  ;;  %v2242_v16 = vpop.f32.mrf.mxu1  ;;  %v4056_v33 = vld [vmem:[%s5902_s0 + $0x518] ss:$28 sps:$4 sm:$0xff]  }
 0x1d9   :  { %v1981_v4 = vpop.f32.mrf.mxu0  ;;  %2468 = vmatmul.mubr.bf16.gmra.mxu0 %v4052_v32  ;;  %v4059_v32 = vld [vmem:[%s5902_s0 + $0x520] ss:$28 sps:$4 sm:$0xff]  }
 0x1da   :  { %5914 = vst [vmem:[#allocation10_spill] sm:$0xff] %v5320_v52  ;;  %v1982_v5 = vadd.f32 %v4307_v37, %v1981_v4  ;;  %v2245_v15 = vpop.f32.mrf.mxu1  ;;  %3706 = vmatmul.mubr.bf16.gmra.mxu1 %v4055_v43  ;;  %2475 = vmatprep.mubr.bf16.mxu0 %v4058_v0  ;;  %v4062_v43 = vld [vmem:[%s5902_s0 + $0x554] ss:$28 sps:$4 sm:$0xff]  }
 0x1db   :  { %v1983_v58 = vpop.f32.mrf.mxu0  ;;  %3709 = vmatprep.mubr.msk.bf16.mxu1 %vm4310_vm0, %v5905_v40 }
 0x1dc   :  { %v5324_v57 = vadd.f32 %v2245_v15, %v1982_v5  ;;  %v2247_v21 = vpop.f32.mrf.mxu1 }
 0x1dd   :  { %v1984_v62 = vpop.f32.mrf.mxu0 }
 0x1de   :  { %5915 = vst [vmem:[#allocation11_spill] sm:$0xff] %v5324_v57  ;;  %v1985_v35 = vadd.f32 %v4307_v37, %v1984_v62  ;;  %v2248_v25 = vpop.f32.mrf.mxu1 }
 0x1df   :  { %v1986_v0 = vpop.f32.mrf.mxu0 }
 0x1e0   :  { %v5335_v16 = vadd.f32 %v2248_v25, %v1985_v35  ;;  %v2250_v4 = vpop.f32.mrf.mxu1  ;;  %v4060_v35 = vld [vmem:[%s5902_s0 + $0x550] ss:$28 sps:$4 sm:$0xff]  }
 0x1e1   :  { %v1989_v21 = vpop.f32.mrf.mxu0  ;;  %2476 = vmatmul.mubr.bf16.gmra.mxu0 %v4056_v33  ;;  %v4066_v33 = vld [vmem:[%s5902_s0 + $0x58c] ss:$28 sps:$4 sm:$0xff]  }
 0x1e2   :  { %5916 = vst [vmem:[#allocation12_spill] sm:$0xff] %v5335_v16  ;;  %v1990_v5 = vadd.f32 %v4307_v37, %v1989_v21  ;;  %v2253_v15 = vpop.f32.mrf.mxu1  ;;  %3710 = vmatmul.mubr.bf16.gmra.mxu1 %v4059_v32  ;;  %2483 = vmatprep.mubr.bf16.mxu0 %v4062_v43  ;;  %v4063_v37 = vld [vmem:[%s5902_s0 + $0x558] ss:$28 sps:$4 sm:$0xff]  }
 0x1e3   :  { %v1991_v62 = vpop.f32.mrf.mxu0  ;;  %3713 = vmatprep.mubr.msk.bf16.mxu1 %vm4310_vm0, %v5905_v40 }
 0x1e4   :  { %v5339_v58 = vadd.f32 %v2253_v15, %v1990_v5  ;;  %v2255_v57 = vpop.f32.mrf.mxu1  ;;  %v4064_v62 = vld [vmem:[%s5902_s0 + $0x588] ss:$28 sps:$4 sm:$0xff]  }
 0x1e5   :  { %v1992_v52 = vpop.f32.mrf.mxu0 }
 0x1e6   :  { %5917 = vst [vmem:[#allocation13_spill] sm:$0xff] %v5339_v58  ;;  %v2256_v25 = vpop.f32.mrf.mxu1 }
 0x1e7   :  { %v1993_v32 = vpop.f32.mrf.mxu0 }
 0x1e8   :  { %v2257_v43 = vpop.f32.mrf.mxu1 }
 0x1e9   :  { %v2293_v0 = vpop.f32.mrf.mxu0  ;;  %2484 = vmatmul.mubr.bf16.gmra.mxu0 %v4060_v35 }
 0x1ea   :  { %v2294_v57 = vadd.f32 %v2293_v0, %v4867_v39  ;;  %v2557_v52 = vpop.f32.mrf.mxu1  ;;  %3714 = vmatmul.mubr.bf16.gmra.mxu1 %v4063_v37  ;;  %2491 = vmatprep.mubr.bf16.mxu0 %v4066_v33  ;;  %v4067_v37 = vld [vmem:[%s5902_s0 + $0x590] ss:$28 sps:$4 sm:$0xff]   ;;  %v4070_v33 = vld [vmem:[%s5902_s0 + $0x5c4] ss:$28 sps:$4 sm:$0xff]  }
 0x1eb   :  { %v2295_v4 = vpop.f32.mrf.mxu0  ;;  %3717 = vmatprep.mubr.msk.bf16.mxu1 %vm4310_vm0, %v5905_v40 }
 0x1ec   :  { %v5353_v21 = vadd.f32 %v2557_v52, %v2294_v57  ;;  %v3619_v5 = vpop.f32.mrf.mxu1 }
 0x1ed   :  { %v2296_v15 = vpop.f32.mrf.mxu0 }
 0x1ee   :  { %v2844_v25 = vmin.f32 %v5353_v21, 20.0  ;;  %v2297_v35 = vadd.f32 %v2296_v15, %v4882_v49  ;;  %v2560_v39 = vpop.f32.mrf.mxu1  ;;  %vm2787_vm1 = vcmp.gt.f32.partialorder %v5353_v21, 20.0 }
 0x1ef   :  { %v2298_v32 = vpop.f32.mrf.mxu0 }
 0x1f0   :  { %v2901_v43 = vmul.f32 1.442695, %v2844_v25  ;;  %v5366_v0 = vadd.f32 %v2560_v39, %v2297_v35  ;;  %v3620_v57 = vpop.f32.mrf.mxu1 }
 0x1f1   :  { %v2301_v52 = vpop.f32.mrf.mxu0  ;;  %2492 = vmatmul.mubr.bf16.gmra.mxu0 %v4064_v62  ;;  %v4068_v62 = vld [vmem:[%s5902_s0 + $0x5c0] ss:$28 sps:$4 sm:$0xff]  }
 0x1f2   :  { %4079 = vpow2.f32 %v2901_v43  ;;  %v2845_v4 = vmin.f32 %v5366_v0, 20.0  ;;  %v2302_v49 = vadd.f32 %v2301_v52, %v4885_v55  ;;  %v2565_v5 = vpop.f32.mrf.mxu1  ;;  %3718 = vmatmul.mubr.bf16.gmra.mxu1 %v4067_v37  ;;  %2499 = vmatprep.mubr.bf16.mxu0 %v4070_v33  ;;  %v4071_v33 = vld [vmem:[%s5902_s0 + $0x5c8] ss:$28 sps:$4 sm:$0xff]   ;;  %v4074_v43 = vld [vmem:[%s5902_s0 + $0x5fc] ss:$28 sps:$4 sm:$0xff]   ;;  %vm2788_vm2 = vcmp.gt.f32.partialorder %v5366_v0, 20.0 }
 0x1f3   :  { %v2303_v15 = vpop.f32.mrf.mxu0  ;;  %3721 = vmatprep.mubr.msk.bf16.mxu1 %vm4310_vm0, %v5905_v40 }
 0x1f4   :  { %v2903_v58 = vmul.f32 1.442695, %v2845_v4  ;;  %v5372_v32 = vadd.f32 %v2565_v5, %v2302_v49  ;;  %v3623_v25 = vpop.f32.mrf.mxu1 }
 0x1f5   :  { %v2304_v35 = vpop.f32.mrf.mxu0 }
 0x1f6   :  { %4081 = vpow2.f32 %v2903_v58  ;;  %v2846_v39 = vmin.f32 %v5372_v32, 20.0  ;;  %v2305_v55 = vadd.f32 %v2304_v35, %v4900_v2  ;;  %v2568_v37 = vpop.f32.mrf.mxu1  ;;  %v241_v35 = vld [vmem:[%s5902_s0 + $0x630] sm:$0xff]  ;;  %vm2789_vm3 = vcmp.gt.f32.partialorder %v5372_v32, 20.0 }
 0x1f7   :  { %v2306_v57 = vpop.f32.mrf.mxu0 }
 0x1f8   :  { %v2905_v52 = vmul.f32 1.442695, %v2846_v39  ;;  %v5385_v4 = vadd.f32 %v2568_v37, %v2305_v55  ;;  %v3624_v49 = vpop.f32.mrf.mxu1 }
 0x1f9   :  { %v2309_v5 = vpop.f32.mrf.mxu0  ;;  %2500 = vmatmul.mubr.bf16.gmra.mxu0 %v4068_v62  ;;  %v3506_v49 = vcombine.high %v241_v35, %v241_v35 }
 0x1fa   :  { %4083 = vpow2.f32 %v2905_v52  ;;  %v2847_v58 = vmin.f32 %v5385_v4, 20.0  ;;  %v2310_v2 = vadd.f32 %v2309_v5, %v4906_v9  ;;  %v2573_v15 = vpop.f32.mrf.mxu1  ;;  %3722 = vmatmul.mubr.bf16.gmra.mxu1 %v4071_v33  ;;  %2507 = vmatprep.mubr.bf16.mxu0 %v4074_v43  ;;  %v4072_v9 = vld [vmem:[%s5902_s0 + $0x5f8] ss:$28 sps:$4 sm:$0xff]   ;;  %v4075_v52 = vld [vmem:[%s5902_s0 + $0x600] ss:$28 sps:$4 sm:$0xff]   ;;  %vm2790_vm4 = vcmp.gt.f32.partialorder %v5385_v4, 20.0 }
 0x1fb   :  { %v2311_v25 = vpop.f32.mrf.mxu0  ;;  %3725 = vmatprep.mubr.msk.bf16.mxu1 %vm4310_vm0, %v5905_v40 }
 0x1fc   :  { %v2907_v39 = vmul.f32 1.442695, %v2847_v58  ;;  %v5394_v55 = vadd.f32 %v2573_v15, %v2310_v2  ;;  %v3627_v62 = vpop.f32.mrf.mxu1 }
 0x1fd   :  { %v2312_v37 = vpop.f32.mrf.mxu0 }
 0x1fe   :  { %4085 = vpow2.f32 %v2907_v39  ;;  %v2848_v33 = vmin.f32 %v5394_v55, 20.0  ;;  %v2313_v43 = vadd.f32 %v2312_v37, %v4918_v20  ;;  %v2576_v57 = vpop.f32.mrf.mxu1  ;;  %vm2791_vm5 = vcmp.gt.f32.partialorder %v5394_v55, 20.0 }
 0x1ff   :  { %v4080_v5 = vpop.eup %4079  ;;  %v2314_v58 = vpop.f32.mrf.mxu0 }
 0x200   :  { %v3015_v2 = vadd.f32 1.0, %v4080_v5  ;;  %v2909_v15 = vmul.f32 1.442695, %v2848_v33  ;;  %v5404_v25 = vadd.f32 %v2576_v57, %v2313_v43  ;;  %v3628_v62 = vpop.f32.mrf.mxu1  ;;  %v3505_v58 = vcombine.low %v241_v35, %v241_v35 }
 0x201   :  { %v2317_v40 = vpop.f32.mrf.mxu0  ;;  %2508 = vmatmul.mubr.bf16.gmra.mxu0 %v4072_v9 }
 0x202   :  { %4087 = vlog2.f32 %v3015_v2  ;;  %v2849_v39 = vmin.f32 %v5404_v25, 20.0  ;;  %v2318_v20 = vadd.f32 %v2317_v40, %v4921_v26  ;;  %v2581_v37 = vpop.f32.mrf.mxu1  ;;  %3726 = vmatmul.mubr.bf16.gmra.mxu1 %v4075_v52  ;;  %2515 = vmatprep.mubr.bf16.mxu0 %v3506_v49  ;;  %vm2792_vm6 = vcmp.gt.f32.partialorder %v5404_v25, 20.0 }
 0x203   :  { %v4082_v16 = vpop.eup %4081  ;;  %4089 = vpow2.f32 %v2909_v15  ;;  %v2319_v17 = vpop.f32.mrf.mxu0  ;;  %3729 = vmatprep.mubr.msk.bf16.mxu1 %vm4310_vm0, %v5918_v61 }
 0x204   :  { %v3016_v33 = vadd.f32 1.0, %v4082_v16  ;;  %v2911_v43 = vmul.f32 1.442695, %v2849_v39  ;;  %v5410_v57 = vadd.f32 %v2581_v37, %v2318_v20  ;;  %v3631_v5 = vpop.f32.mrf.mxu1  ;;  %v4078_v17 = vld [vmem:[%s5902_s0 + $0x638] ss:$0 sps:$4 sm:$0xff]  }
 0x205   :  { %v2320_v9 = vpop.f32.mrf.mxu0 }
 0x206   :  { %4091 = vlog2.f32 %v3016_v33  ;;  %v2850_v2 = vmin.f32 %v5410_v57, 20.0  ;;  %v2321_v40 = vadd.f32 %v2320_v9, %v4927_v36  ;;  %v2584_v26 = vpop.f32.mrf.mxu1  ;;  %vm2793_vm7 = vcmp.gt.f32.partialorder %v5410_v57, 20.0 }
 0x207   :  { %v4084_v52 = vpop.eup %4083  ;;  %4093 = vpow2.f32 %v2911_v43  ;;  %v2322_v61 = vpop.f32.mrf.mxu0 }
 0x208   :  { %v3017_v16 = vadd.f32 1.0, %v4084_v52  ;;  %v2913_v49 = vmul.f32 1.442695, %v2850_v2  ;;  %v5417_v15 = vadd.f32 %v2584_v26, %v2321_v40  ;;  %v3632_v62 = vpop.f32.mrf.mxu1 }
 0x209   :  { %v2325_v39 = vpop.f32.mrf.mxu0  ;;  %2516 = vmatmul.mubr.bf16.gmra.mxu0 %v3505_v58 }
 0x20a   :  { %4095 = vlog2.f32 %v3017_v16  ;;  %v2851_v35 = vmin.f32 %v5417_v15, 20.0  ;;  %v2326_v36 = vadd.f32 %v2325_v39, %v4932_v44  ;;  %v2589_v20 = vpop.f32.mrf.mxu1  ;;  %3730 = vmatmul.mubr.bf16.gmra.mxu1 %v4078_v17  ;;  %vm2794_vm8 = vcmp.gt.f32.partialorder %v5417_v15, 20.0 }
 0x20b   :  { %v4086_v37 = vpop.eup %4085  ;;  %4097 = vpow2.f32 %v2913_v49  ;;  %v2327_v33 = vpop.f32.mrf.mxu0 }
 0x20c   :  { %v3018_v5 = vadd.f32 1.0, %v4086_v37  ;;  %v2915_v43 = vmul.f32 1.442695, %v2851_v35  ;;  %v5421_v9 = vadd.f32 %v2589_v20, %v2326_v36  ;;  %v3635_v2 = vpop.f32.mrf.mxu1 }
 0x20d   :  { %v2328_v40 = vpop.f32.mrf.mxu0 }
 0x20e   :  { %4099 = vlog2.f32 %v3018_v5  ;;  %v2852_v26 = vmin.f32 %v5421_v9, 20.0  ;;  %v2329_v58 = vadd.f32 %v2328_v40, %v4944_v53  ;;  %v2592_v52 = vpop.f32.mrf.mxu1  ;;  %vm2795_vm9 = vcmp.gt.f32.partialorder %v5421_v9, 20.0 }
 0x20f   :  { %v4088_v61 = vpop.eup %4087  ;;  %4101 = vpow2.f32 %v2915_v43  ;;  %v2330_v44 = vpop.f32.mrf.mxu0 }
 0x210   :  { %v4090_v16 = vpop.eup %4089  ;;  %v3073_v17 = vmul.f32 0.6931472, %v4088_v61  ;;  %v2917_v62 = vmul.f32 1.442695, %v2852_v26  ;;  %v5425_v49 = vadd.f32 %v2592_v52, %v2329_v58  ;;  %v3636_v39 = vpop.f32.mrf.mxu1 }
 0x211   :  { %v3019_v35 = vadd.f32 1.0, %v4090_v16  ;;  %v2333_v36 = vpop.f32.mrf.mxu0 }
 0x212   :  { %v3186_v20 = vsel %vm2787_vm1, %v5353_v21, %v3073_v17  ;;  %4103 = vpow2.f32 %v2917_v62  ;;  %v2853_v37 = vmin.f32 %v5425_v49, 20.0  ;;  %v2597_v53 = vpop.f32.mrf.mxu1  ;;  %v2334_v5 = vadd.f32 %v2333_v36, %v4949_v60 }
 0x213   :  { %v4092_v33 = vpop.eup %4091  ;;  %3243 = vst [vmem:[%s5904_s3] sm:$0xff] %v3186_v20  ;;  %4105 = vlog2.f32 %v3019_v35  ;;  %v2335_v43 = vpop.f32.mrf.mxu0  ;;  %vm2796_vm10 = vcmp.gt.f32.partialorder %v5425_v49, 20.0 }
 0x214   :  { %v4094_v2 = vpop.eup %4093  ;;  %v3075_v40 = vmul.f32 0.6931472, %v4092_v33  ;;  %v2919_v26 = vmul.f32 1.442695, %v2853_v37  ;;  %v3639_v58 = vpop.f32.mrf.mxu1  ;;  %v5435_v52 = vadd.f32 %v2597_v53, %v2334_v5 }
 0x215   :  { %v3020_v21 = vadd.f32 1.0, %v4094_v2  ;;  %v2336_v61 = vpop.f32.mrf.mxu0 }
 0x216   :  { %v3187_v44 = vsel %vm2788_vm2, %v5366_v0, %v3075_v40  ;;  %4107 = vpow2.f32 %v2919_v26  ;;  %v2337_v16 = vadd.f32 %v2336_v61, %v4961_v7  ;;  %v2600_v17 = vpop.f32.mrf.mxu1  ;;  %v2854_v60 = vmin.f32 %v5435_v52, 20.0 }
 0x217   :  { %v4096_v62 = vpop.eup %4095  ;;  %3244 = vst [vmem:[%s5904_s3 + $0x8] sm:$0xff] %v3187_v44  ;;  %4109 = vlog2.f32 %v3020_v21  ;;  %v2338_v39 = vpop.f32.mrf.mxu0  ;;  %vm2797_vm11 = vcmp.gt.f32.partialorder %v5435_v52, 20.0 }
 0x218   :  { %v4098_v35 = vpop.eup %4097  ;;  %v3077_v36 = vmul.f32 0.6931472, %v4096_v62  ;;  %v5443_v20 = vadd.f32 %v2600_v17, %v2337_v16  ;;  %v3640_v37 = vpop.f32.mrf.mxu1  ;;  %v2921_v53 = vmul.f32 1.442695, %v2854_v60 }
 0x219   :  { %v3021_v0 = vadd.f32 1.0, %v4098_v35  ;;  %v2341_v7 = vpop.f32.mrf.mxu0 }
 0x21a   :  { %v3188_v33 = vsel %vm2789_vm3, %v5372_v32, %v3077_v36  ;;  %v2855_v5 = vmin.f32 %v5443_v20, 20.0  ;;  %v2342_v43 = vadd.f32 %v2341_v7, %v4966_v14  ;;  %v2605_v2 = vpop.f32.mrf.mxu1  ;;  %vm2798_vm12 = vcmp.gt.f32.partialorder %v5443_v20, 20.0 }
 0x21b   :  { %v4100_v40 = vpop.eup %4099  ;;  %3245 = vst [vmem:[%s5904_s3 + $0x10] sm:$0xff] %v3188_v33  ;;  %4111 = vlog2.f32 %v3021_v0  ;;  %v2343_v26 = vpop.f32.mrf.mxu0 }
 0x21c   :  { %v4102_v58 = vpop.eup %4101  ;;  %v3079_v21 = vmul.f32 0.6931472, %v4100_v40  ;;  %4113 = vpow2.f32 %v2921_v53  ;;  %v2923_v61 = vmul.f32 1.442695, %v2855_v5  ;;  %v5452_v44 = vadd.f32 %v2605_v2, %v2342_v43  ;;  %v3643_v16 = vpop.f32.mrf.mxu1 }
 0x21d   :  { %v3022_v32 = vadd.f32 1.0, %v4102_v58  ;;  %v2344_v17 = vpop.f32.mrf.mxu0 }
 0x21e   :  { %v3189_v14 = vsel %vm2790_vm4, %v5385_v4, %v3079_v21  ;;  %4115 = vpow2.f32 %v2923_v61  ;;  %v2856_v62 = vmin.f32 %v5452_v44, 20.0  ;;  %v2608_v60 = vpop.f32.mrf.mxu1  ;;  %v2345_v35 = vadd.f32 %v2344_v17, %v4978_v24 }
 0x21f   :  { %v4104_v39 = vpop.eup %4103  ;;  %3246 = vst [vmem:[%s5904_s3 + $0x18] sm:$0xff] %v3189_v14  ;;  %4117 = vlog2.f32 %v3022_v32  ;;  %v2346_v36 = vpop.f32.mrf.mxu0  ;;  %vm2799_vm13 = vcmp.gt.f32.partialorder %v5452_v44, 20.0 }
 0x220   :  { %v4106_v37 = vpop.eup %4105  ;;  %v3023_v0 = vadd.f32 1.0, %v4104_v39  ;;  %v2925_v53 = vmul.f32 1.442695, %v2856_v62  ;;  %v3644_v7 = vpop.f32.mrf.mxu1  ;;  %v5461_v5 = vadd.f32 %v2608_v60, %v2345_v35 }
 0x221   :  { %v3081_v33 = vmul.f32 0.6931472, %v4106_v37  ;;  %v2349_v4 = vpop.f32.mrf.mxu0 }
 0x222   :  { %4119 = vlog2.f32 %v3023_v0  ;;  %v2350_v43 = vadd.f32 %v2349_v4, %v4983_v31  ;;  %v2613_v2 = vpop.f32.mrf.mxu1  ;;  %v2857_v24 = vmin.f32 %v5461_v5, 20.0  ;;  %vm2800_vm14 = vcmp.gt.f32.partialorder %v5461_v5, 20.0 }
 0x223   :  { %v4108_v40 = vpop.eup %4107  ;;  %v3190_v26 = vsel %vm2791_vm5, %v5394_v55, %v3081_v33  ;;  %4121 = vpow2.f32 %v2925_v53  ;;  %v2351_v58 = vpop.f32.mrf.mxu0 }
 0x224   :  { %v4110_v21 = vpop.eup %4109  ;;  %3247 = vst [vmem:[%s5904_s3 + $0x20] sm:$0xff] %v3190_v26  ;;  %v3024_v61 = vadd.f32 1.0, %v4108_v40  ;;  %v5470_v16 = vadd.f32 %v2613_v2, %v2350_v43  ;;  %v3647_v32 = vpop.f32.mrf.mxu1  ;;  %v2927_v14 = vmul.f32 1.442695, %v2857_v24 }
 0x225   :  { %v3083_v17 = vmul.f32 0.6931472, %v4110_v21  ;;  %v2352_v31 = vpop.f32.mrf.mxu0 }
 0x226   :  { %4123 = vlog2.f32 %v3024_v61  ;;  %v2858_v55 = vmin.f32 %v5470_v16, 20.0  ;;  %v2353_v62 = vadd.f32 %v2352_v31, %v4995_v45  ;;  %v2616_v60 = vpop.f32.mrf.mxu1  ;;  %vm2801_vm15 = vcmp.gt.f32.partialorder %v5470_v16, 20.0 }
 0x227   :  { %v3191_v39 = vsel %vm2792_vm6, %v5404_v25, %v3083_v17  ;;  %4125 = vpow2.f32 %v2927_v14  ;;  %v2354_v35 = vpop.f32.mrf.mxu0 }
 0x228   :  { %v4112_v36 = vpop.eup %4111  ;;  %3248 = vst [vmem:[%s5904_s3 + $0x28] sm:$0xff] %v3191_v39  ;;  %v2929_v37 = vmul.f32 1.442695, %v2858_v55  ;;  %v5479_v0 = vadd.f32 %v2616_v60, %v2353_v62  ;;  %v3648_v53 = vpop.f32.mrf.mxu1 }
 0x229   :  { %v4114_v7 = vpop.eup %4113  ;;  %v3085_v33 = vmul.f32 0.6931472, %v4112_v36  ;;  %v2357_v4 = vpop.f32.mrf.mxu0 }
 0x22a   :  { %v3025_v45 = vadd.f32 1.0, %v4114_v7  ;;  %4127 = vpow2.f32 %v2929_v37  ;;  %v2859_v25 = vmin.f32 %v5479_v0, 20.0  ;;  %v2621_v43 = vpop.f32.mrf.mxu1  ;;  %v2358_v26 = vadd.f32 %v2357_v4, %v5000_v51 }
 0x22b   :  { %v4116_v2 = vpop.eup %4115  ;;  %v3192_v40 = vsel %vm2793_vm7, %v5410_v57, %v3085_v33  ;;  %v2359_v24 = vpop.f32.mrf.mxu0  ;;  %vm2802_vm0 = vcmp.gt.f32.partialorder %v5479_v0, 20.0 }
 0x22c   :  { %v4118_v58 = vpop.eup %4117  ;;  %3249 = vst [vmem:[%s5904_s3 + $0x30] sm:$0xff] %v3192_v40  ;;  %4129 = vlog2.f32 %v3025_v45  ;;  %v3026_v21 = vadd.f32 1.0, %v4116_v2  ;;  %v2931_v61 = vmul.f32 1.442695, %v2859_v25  ;;  %v3651_v32 = vpop.f32.mrf.mxu1  ;;  %v5488_v14 = vadd.f32 %v2621_v43, %v2358_v26 }
 0x22d   :  { %v3087_v17 = vmul.f32 0.6931472, %v4118_v58  ;;  %v2360_v31 = vpop.f32.mrf.mxu0 }
 0x22e   :  { %4131 = vlog2.f32 %v3026_v21  ;;  %v2361_v57 = vadd.f32 %v2360_v31, %v5012_v63  ;;  %v2624_v51 = vpop.f32.mrf.mxu1  ;;  %v2860_v60 = vmin.f32 %v5488_v14, 20.0  ;;  %vm2803_vm1 = vcmp.gt.f32.partialorder %v5488_v14, 20.0 }
 0x22f   :  { %v4120_v55 = vpop.eup %4119  ;;  %v3193_v62 = vsel %vm2794_vm8, %v5417_v15, %v3087_v17  ;;  %4133 = vpow2.f32 %v2931_v61  ;;  %v2362_v39 = vpop.f32.mrf.mxu0 }
 0x230   :  { %v4122_v35 = vpop.eup %4121  ;;  %3250 = vst [vmem:[%s5904_s3 + $0x38] sm:$0xff] %v3193_v62  ;;  %v3089_v36 = vmul.f32 0.6931472, %v4120_v55  ;;  %v5497_v37 = vadd.f32 %v2624_v51, %v2361_v57  ;;  %v3652_v53 = vpop.f32.mrf.mxu1  ;;  %v2933_v7 = vmul.f32 1.442695, %v2860_v60 }
 0x231   :  { %v3027_v63 = vadd.f32 1.0, %v4122_v35  ;;  %v2365_v33 = vpop.f32.mrf.mxu0 }
 0x232   :  { %v3194_v15 = vsel %vm2795_vm9, %v5421_v9, %v3089_v36  ;;  %v2861_v4 = vmin.f32 %v5497_v37, 20.0  ;;  %v2366_v45 = vadd.f32 %v2365_v33, %v5017_v8  ;;  %v2629_v25 = vpop.f32.mrf.mxu1  ;;  %vm2804_vm2 = vcmp.gt.f32.partialorder %v5497_v37, 20.0 }
 0x233   :  { %v4124_v43 = vpop.eup %4123  ;;  %3251 = vst [vmem:[%s5904_s3 + $0x40] sm:$0xff] %v3194_v15  ;;  %4135 = vlog2.f32 %v3027_v63  ;;  %v2367_v2 = vpop.f32.mrf.mxu0 }
 0x234   :  { %v4126_v40 = vpop.eup %4125  ;;  %v3091_v26 = vmul.f32 0.6931472, %v4124_v43  ;;  %4137 = vpow2.f32 %v2933_v7  ;;  %v2935_v24 = vmul.f32 1.442695, %v2861_v4  ;;  %v5506_v58 = vadd.f32 %v2629_v25, %v2366_v45  ;;  %v3655_v21 = vpop.f32.mrf.mxu1 }
 0x235   :  { %v3028_v9 = vadd.f32 1.0, %v4126_v40  ;;  %v2368_v61 = vpop.f32.mrf.mxu0 }
 0x236   :  { %v3195_v8 = vsel %vm2796_vm10, %v5425_v49, %v3091_v26  ;;  %4139 = vpow2.f32 %v2935_v24  ;;  %v2862_v32 = vmin.f32 %v5506_v58, 20.0  ;;  %v2632_v17 = vpop.f32.mrf.mxu1  ;;  %v2369_v57 = vadd.f32 %v2368_v61, %v5029_v19 }
 0x237   :  { %v4128_v31 = vpop.eup %4127  ;;  %3252 = vst [vmem:[%s5904_s3 + $0x48] sm:$0xff] %v3195_v8  ;;  %4141 = vlog2.f32 %v3028_v9  ;;  %v2370_v51 = vpop.f32.mrf.mxu0  ;;  %vm2805_vm3 = vcmp.gt.f32.partialorder %v5506_v58, 20.0 }
 0x238   :  { %v3029_v55 = vadd.f32 1.0, %v4128_v31  ;;  %v2937_v62 = vmul.f32 1.442695, %v2862_v32  ;;  %v3656_v60 = vpop.f32.mrf.mxu1  ;;  %v5515_v35 = vadd.f32 %v2632_v17, %v2369_v57 }
 0x239   :  { %v4130_v39 = vpop.eup %4129  ;;  %v2373_v49 = vpop.f32.mrf.mxu0 }
 0x23a   :  { %v3093_v36 = vmul.f32 0.6931472, %v4130_v39  ;;  %4143 = vlog2.f32 %v3029_v55  ;;  %v2374_v53 = vadd.f32 %v2373_v49, %v5034_v28  ;;  %v2637_v63 = vpop.f32.mrf.mxu1  ;;  %v2863_v33 = vmin.f32 %v5515_v35, 20.0 }
 0x23b   :  { %v4132_v7 = vpop.eup %4131  ;;  %4145 = vpow2.f32 %v2937_v62  ;;  %v2375_v19 = vpop.f32.mrf.mxu0  ;;  %vm2806_vm4 = vcmp.gt.f32.partialorder %v5515_v35, 20.0 }
 0x23c   :  { %v4134_v15 = vpop.eup %4133  ;;  %v3196_v4 = vsel %vm2797_vm11, %v5435_v52, %v3093_v36  ;;  %v3095_v45 = vmul.f32 0.6931472, %v4132_v7  ;;  %v5521_v25 = vadd.f32 %v2637_v63, %v2374_v53  ;;  %v3659_v43 = vpop.f32.mrf.mxu1  ;;  %v2939_v2 = vmul.f32 1.442695, %v2863_v33 }
 0x23d   :  { %3253 = vst [vmem:[%s5904_s3 + $0x50] sm:$0xff] %v3196_v4  ;;  %v3030_v28 = vadd.f32 1.0, %v4134_v15  ;;  %v2376_v40 = vpop.f32.mrf.mxu0 }
 0x23e   :  { %v3197_v26 = vsel %vm2798_vm12, %v5443_v20, %v3095_v45  ;;  %v2864_v24 = vmin.f32 %v5521_v25, 20.0  ;;  %v2377_v21 = vadd.f32 %v2376_v40, %v5046_v42  ;;  %v2640_v52 = vpop.f32.mrf.mxu1  ;;  %vm2807_vm5 = vcmp.gt.f32.partialorder %v5521_v25, 20.0 }
 0x23f   :  { %3254 = vst [vmem:[%s5904_s3 + $0x58] sm:$0xff] %v3197_v26  ;;  %4147 = vlog2.f32 %v3030_v28  ;;  %v2378_v9 = vpop.f32.mrf.mxu0 }
 0x240   :  { %v4136_v61 = vpop.eup %4135  ;;  %4149 = vpow2.f32 %v2939_v2  ;;  %v2941_v8 = vmul.f32 1.442695, %v2864_v24  ;;  %v5533_v32 = vadd.f32 %v2640_v52, %v2377_v21  ;;  %v3660_v17 = vpop.f32.mrf.mxu1 }
 0x241   :  { %v4138_v31 = vpop.eup %4137  ;;  %v3097_v57 = vmul.f32 0.6931472, %v4136_v61  ;;  %v2381_v20 = vpop.f32.mrf.mxu0 }
 0x242   :  { %v3031_v51 = vadd.f32 1.0, %v4138_v31  ;;  %4151 = vpow2.f32 %v2941_v8  ;;  %v2865_v42 = vmin.f32 %v5533_v32, 20.0  ;;  %v2645_v55 = vpop.f32.mrf.mxu1  ;;  %v2382_v39 = vadd.f32 %v2381_v20, %v5051_v50 }
 0x243   :  { %v4140_v62 = vpop.eup %4139  ;;  %v3198_v60 = vsel %vm2799_vm13, %v5452_v44, %v3097_v57  ;;  %v2383_v49 = vpop.f32.mrf.mxu0  ;;  %vm2808_vm6 = vcmp.gt.f32.partialorder %v5533_v32, 20.0 }
 0x244   :  { %v4142_v36 = vpop.eup %4141  ;;  %3255 = vst [vmem:[%s5904_s3 + $0x60] sm:$0xff] %v3198_v60  ;;  %4153 = vlog2.f32 %v3031_v51  ;;  %v3032_v53 = vadd.f32 1.0, %v4140_v62  ;;  %v2943_v63 = vmul.f32 1.442695, %v2865_v42  ;;  %v3663_v7 = vpop.f32.mrf.mxu1  ;;  %v5542_v19 = vadd.f32 %v2645_v55, %v2382_v39 }
 0x245   :  { %v3099_v33 = vmul.f32 0.6931472, %v4142_v36  ;;  %v2384_v15 = vpop.f32.mrf.mxu0 }
 0x246   :  { %4155 = vlog2.f32 %v3032_v53  ;;  %v2385_v44 = vadd.f32 %v2384_v15, %v5063_v1  ;;  %v2648_v50 = vpop.f32.mrf.mxu1  ;;  %v2866_v43 = vmin.f32 %v5542_v19, 20.0  ;;  %vm2809_vm7 = vcmp.gt.f32.partialorder %v5542_v19, 20.0 }
 0x247   :  { %v4144_v4 = vpop.eup %4143  ;;  %v3199_v45 = vsel %vm2800_vm14, %v5461_v5, %v3099_v33  ;;  %4157 = vpow2.f32 %v2943_v63  ;;  %v2386_v28 = vpop.f32.mrf.mxu0 }
 0x248   :  { %v4146_v2 = vpop.eup %4145  ;;  %3256 = vst [vmem:[%s5904_s3 + $0x68] sm:$0xff] %v3199_v45  ;;  %v3101_v40 = vmul.f32 0.6931472, %v4144_v4  ;;  %v5551_v26 = vadd.f32 %v2648_v50, %v2385_v44  ;;  %v3664_v24 = vpop.f32.mrf.mxu1  ;;  %v2945_v21 = vmul.f32 1.442695, %v2866_v43 }
 0x249   :  { %v3033_v1 = vadd.f32 1.0, %v4146_v2  ;;  %v2389_v52 = vpop.f32.mrf.mxu0 }
 0x24a   :  { %v3200_v5 = vsel %vm2801_vm15, %v5470_v16, %v3101_v40  ;;  %v2867_v9 = vmin.f32 %v5551_v26, 20.0  ;;  %v2390_v61 = vadd.f32 %v2389_v52, %v5068_v11  ;;  %v2653_v8 = vpop.f32.mrf.mxu1  ;;  %vm2810_vm8 = vcmp.gt.f32.partialorder %v5551_v26, 20.0 }
 0x24b   :  { %3257 = vst [vmem:[%s5904_s3 + $0x70] sm:$0xff] %v3200_v5  ;;  %4159 = vlog2.f32 %v3033_v1  ;;  %v2391_v17 = vpop.f32.mrf.mxu0 }
 0x24c   :  { %v4148_v31 = vpop.eup %4147  ;;  %4161 = vpow2.f32 %v2945_v21  ;;  %v2947_v57 = vmul.f32 1.442695, %v2867_v9  ;;  %v5560_v20 = vadd.f32 %v2653_v8, %v2390_v61  ;;  %v3667_v51 = vpop.f32.mrf.mxu1 }
 0x24d   :  { %v4150_v42 = vpop.eup %4149  ;;  %v3103_v55 = vmul.f32 0.6931472, %v4148_v31  ;;  %v2392_v16 = vpop.f32.mrf.mxu0 }
 0x24e   :  { %v3034_v62 = vadd.f32 1.0, %v4150_v42  ;;  %4163 = vpow2.f32 %v2947_v57  ;;  %v2868_v11 = vmin.f32 %v5560_v20, 20.0  ;;  %v2656_v60 = vpop.f32.mrf.mxu1  ;;  %v2393_v36 = vadd.f32 %v2392_v16, %v5080_v23 }
 0x24f   :  { %v4152_v39 = vpop.eup %4151  ;;  %v3201_v49 = vsel %vm2802_vm0, %v5479_v0, %v3103_v55  ;;  %v2394_v53 = vpop.f32.mrf.mxu0  ;;  %vm2811_vm9 = vcmp.gt.f32.partialorder %v5560_v20, 20.0 }
 0x250   :  { %3258 = vst [vmem:[%s5904_s3 + $0x78] sm:$0xff] %v3201_v49  ;;  %4165 = vlog2.f32 %v3034_v62  ;;  %v3035_v63 = vadd.f32 1.0, %v4152_v39  ;;  %v2949_v7 = vmul.f32 1.442695, %v2868_v11  ;;  %v3668_v33 = vpop.f32.mrf.mxu1  ;;  %v5569_v44 = vadd.f32 %v2656_v60, %v2393_v36 }
 0x251   :  { %v4154_v15 = vpop.eup %4153  ;;  %v2397_v50 = vpop.f32.mrf.mxu0 }
 0x252   :  { %v3105_v4 = vmul.f32 0.6931472, %v4154_v15  ;;  %4167 = vlog2.f32 %v3035_v63  ;;  %v2398_v45 = vadd.f32 %v2397_v50, %v5085_v34  ;;  %v2661_v0 = vpop.f32.mrf.mxu1  ;;  %v2869_v23 = vmin.f32 %v5569_v44, 20.0 }
 0x253   :  { %v4156_v43 = vpop.eup %4155  ;;  %4169 = vpow2.f32 %v2949_v7  ;;  %v2399_v28 = vpop.f32.mrf.mxu0  ;;  %vm2812_vm10 = vcmp.gt.f32.partialorder %v5569_v44, 20.0 }
 0x254   :  { %v4158_v2 = vpop.eup %4157  ;;  %v3202_v40 = vsel %vm2803_vm1, %v5488_v14, %v3105_v4  ;;  %v3107_v24 = vmul.f32 0.6931472, %v4156_v43  ;;  %v5575_v1 = vadd.f32 %v2661_v0, %v2398_v45  ;;  %v3671_v21 = vpop.f32.mrf.mxu1  ;;  %v2951_v52 = vmul.f32 1.442695, %v2869_v23 }
 0x255   :  { %3259 = vst [vmem:[%s5904_s3 + $0x80] sm:$0xff] %v3202_v40  ;;  %v3036_v34 = vadd.f32 1.0, %v4158_v2  ;;  %v2400_v5 = vpop.f32.mrf.mxu0 }
 0x256   :  { %v3203_v9 = vsel %vm2804_vm2, %v5497_v37, %v3107_v24  ;;  %v2870_v61 = vmin.f32 %v5575_v1, 20.0  ;;  %v2401_v8 = vadd.f32 %v2400_v5, %v5097_v48  ;;  %v2664_v14 = vpop.f32.mrf.mxu1  ;;  %vm2813_vm11 = vcmp.gt.f32.partialorder %v5575_v1, 20.0 }
 0x257   :  { %3260 = vst [vmem:[%s5904_s3 + $0x88] sm:$0xff] %v3203_v9  ;;  %4171 = vlog2.f32 %v3036_v34  ;;  %v2402_v17 = vpop.f32.mrf.mxu0 }
 0x258   :  { %v4160_v31 = vpop.eup %4159  ;;  %4173 = vpow2.f32 %v2951_v52  ;;  %v2953_v57 = vmul.f32 1.442695, %v2870_v61  ;;  %v5587_v51 = vadd.f32 %v2664_v14, %v2401_v8  ;;  %v3672_v42 = vpop.f32.mrf.mxu1 }
 0x259   :  { %v4162_v55 = vpop.eup %4161  ;;  %v3109_v16 = vmul.f32 0.6931472, %v4160_v31  ;;  %v2405_v37 = vpop.f32.mrf.mxu0 }
 0x25a   :  { %v3037_v62 = vadd.f32 1.0, %v4162_v55  ;;  %4175 = vpow2.f32 %v2953_v57  ;;  %v2871_v48 = vmin.f32 %v5587_v51, 20.0  ;;  %v2669_v11 = vpop.f32.mrf.mxu1  ;;  %v2406_v49 = vadd.f32 %v2405_v37, %v5102_v59 }
 0x25b   :  { %v4164_v60 = vpop.eup %4163  ;;  %v3204_v39 = vsel %vm2805_vm3, %v5506_v58, %v3109_v16  ;;  %v2407_v36 = vpop.f32.mrf.mxu0  ;;  %vm2814_vm12 = vcmp.gt.f32.partialorder %v5587_v51, 20.0 }
 0x25c   :  { %3261 = vst [vmem:[%s5904_s3 + $0x90] sm:$0xff] %v3204_v39  ;;  %4177 = vlog2.f32 %v3037_v62  ;;  %v3038_v53 = vadd.f32 1.0, %v4164_v60  ;;  %v2955_v63 = vmul.f32 1.442695, %v2871_v48  ;;  %v3675_v7 = vpop.f32.mrf.mxu1  ;;  %v5596_v15 = vadd.f32 %v2669_v11, %v2406_v49 }
 0x25d   :  { %v4166_v33 = vpop.eup %4165  ;;  %v2408_v50 = vpop.f32.mrf.mxu0 }
 0x25e   :  { %v3111_v4 = vmul.f32 0.6931472, %v4166_v33  ;;  %4179 = vlog2.f32 %v3038_v53  ;;  %v2409_v45 = vadd.f32 %v2408_v50, %v5114_v13  ;;  %v2672_v58 = vpop.f32.mrf.mxu1  ;;  %v2872_v59 = vmin.f32 %v5596_v15, 20.0 }
 0x25f   :  { %v4168_v0 = vpop.eup %4167  ;;  %4181 = vpow2.f32 %v2955_v63  ;;  %v2410_v43 = vpop.f32.mrf.mxu0  ;;  %vm2815_vm13 = vcmp.gt.f32.partialorder %v5596_v15, 20.0 }
 0x260   :  { %v4170_v23 = vpop.eup %4169  ;;  %v3205_v28 = vsel %vm2806_vm4, %v5515_v35, %v3111_v4  ;;  %v3113_v2 = vmul.f32 0.6931472, %v4168_v0  ;;  %v5602_v40 = vadd.f32 %v2672_v58, %v2409_v45  ;;  %v3676_v24 = vpop.f32.mrf.mxu1  ;;  %v2957_v21 = vmul.f32 1.442695, %v2872_v59 }
 0x261   :  { %3262 = vst [vmem:[%s5904_s3 + $0x98] sm:$0xff] %v3205_v28  ;;  %v3039_v13 = vadd.f32 1.0, %v4170_v23  ;;  %v2413_v34 = vpop.f32.mrf.mxu0 }
 0x262   :  { %v3206_v52 = vsel %vm2807_vm5, %v5521_v25, %v3113_v2  ;;  %v2873_v5 = vmin.f32 %v5602_v40, 20.0  ;;  %v2414_v9 = vadd.f32 %v2413_v34, %v5119_v22  ;;  %v2677_v35 = vpop.f32.mrf.mxu1  ;;  %vm2816_vm14 = vcmp.gt.f32.partialorder %v5602_v40, 20.0 }
 0x263   :  { %3263 = vst [vmem:[%s5904_s3 + $0xa0] sm:$0xff] %v3206_v52  ;;  %4183 = vlog2.f32 %v3039_v13  ;;  %v2415_v61 = vpop.f32.mrf.mxu0 }
 0x264   :  { %v4172_v8 = vpop.eup %4171  ;;  %4185 = vpow2.f32 %v2957_v21  ;;  %v2959_v14 = vmul.f32 1.442695, %v2873_v5  ;;  %v5614_v17 = vadd.f32 %v2677_v35, %v2414_v9  ;;  %v3679_v31 = vpop.f32.mrf.mxu1 }
 0x265   :  { %v4174_v57 = vpop.eup %4173  ;;  %v3115_v42 = vmul.f32 0.6931472, %v4172_v8  ;;  %v2416_v25 = vpop.f32.mrf.mxu0 }
 0x266   :  { %v3040_v55 = vadd.f32 1.0, %v4174_v57  ;;  %4187 = vpow2.f32 %v2959_v14  ;;  %v2874_v22 = vmin.f32 %v5614_v17, 20.0  ;;  %v2680_v16 = vpop.f32.mrf.mxu1  ;;  %v2417_v48 = vadd.f32 %v2416_v25, %v5131_v41 }
 0x267   :  { %v4176_v37 = vpop.eup %4175  ;;  %v3207_v62 = vsel %vm2808_vm6, %v5533_v32, %v3115_v42  ;;  %v2418_v11 = vpop.f32.mrf.mxu0  ;;  %vm2817_vm15 = vcmp.gt.f32.partialorder %v5614_v17, 20.0 }
 0x268   :  { %3264 = vst [vmem:[%s5904_s3 + $0xa8] sm:$0xff] %v3207_v62  ;;  %4189 = vlog2.f32 %v3040_v55  ;;  %v3041_v60 = vadd.f32 1.0, %v4176_v37  ;;  %v2961_v39 = vmul.f32 1.442695, %v2874_v22  ;;  %v3680_v49 = vpop.f32.mrf.mxu1  ;;  %v5623_v53 = vadd.f32 %v2680_v16, %v2417_v48 }
 0x269   :  { %v4178_v36 = vpop.eup %4177  ;;  %v2421_v63 = vpop.f32.mrf.mxu0 }
 0x26a   :  { %v3117_v7 = vmul.f32 0.6931472, %v4178_v36  ;;  %4191 = vlog2.f32 %v3041_v60  ;;  %v2422_v33 = vadd.f32 %v2421_v63, %v5136_v54  ;;  %v2685_v32 = vpop.f32.mrf.mxu1  ;;  %v2875_v41 = vmin.f32 %v5623_v53, 20.0 }
 0x26b   :  { %v4180_v50 = vpop.eup %4179  ;;  %4193 = vpow2.f32 %v2961_v39  ;;  %v2423_v4 = vpop.f32.mrf.mxu0  ;;  %vm2818_vm0 = vcmp.gt.f32.partialorder %v5623_v53, 20.0 }
 0x26c   :  { %v4182_v45 = vpop.eup %4181  ;;  %v3208_v58 = vsel %vm2809_vm7, %v5542_v19, %v3117_v7  ;;  %v3119_v0 = vmul.f32 0.6931472, %v4180_v50  ;;  %v5629_v59 = vadd.f32 %v2685_v32, %v2422_v33  ;;  %v3683_v43 = vpop.f32.mrf.mxu1  ;;  %v2963_v23 = vmul.f32 1.442695, %v2875_v41 }
 0x26d   :  { %3265 = vst [vmem:[%s5904_s3 + $0xb0] sm:$0xff] %v3208_v58  ;;  %v3042_v54 = vadd.f32 1.0, %v4182_v45  ;;  %v2424_v28 = vpop.f32.mrf.mxu0 }
 0x26e   :  { %v3209_v2 = vsel %vm2810_vm8, %v5551_v26, %v3119_v0  ;;  %v2876_v24 = vmin.f32 %v5629_v59, 20.0  ;;  %v2425_v13 = vadd.f32 %v2424_v28, %v5148_v6  ;;  %v2688_v19 = vpop.f32.mrf.mxu1  ;;  %vm2819_vm1 = vcmp.gt.f32.partialorder %v5629_v59, 20.0 }
 0x26f   :  { %3266 = vst [vmem:[%s5904_s3 + $0xb8] sm:$0xff] %v3209_v2  ;;  %4195 = vlog2.f32 %v3042_v54  ;;  %v2426_v21 = vpop.f32.mrf.mxu0 }
 0x270   :  { %v4184_v34 = vpop.eup %4183  ;;  %4197 = vpow2.f32 %v2963_v23  ;;  %v2965_v52 = vmul.f32 1.442695, %v2876_v24  ;;  %v5641_v5 = vadd.f32 %v2688_v19, %v2425_v13  ;;  %v3684_v9 = vpop.f32.mrf.mxu1 }
 0x271   :  { %v4186_v35 = vpop.eup %4185  ;;  %v3121_v61 = vmul.f32 0.6931472, %v4184_v34  ;;  %v2429_v26 = vpop.f32.mrf.mxu0 }
 0x272   :  { %v3043_v8 = vadd.f32 1.0, %v4186_v35  ;;  %4199 = vpow2.f32 %v2965_v52  ;;  %v2877_v6 = vmin.f32 %v5641_v5, 20.0  ;;  %v2693_v14 = vpop.f32.mrf.mxu1  ;;  %v2430_v42 = vadd.f32 %v2429_v26, %v5153_v18 }
 0x273   :  { %v4188_v31 = vpop.eup %4187  ;;  %v3210_v57 = vsel %vm2811_vm9, %v5560_v20, %v3121_v61  ;;  %v2431_v25 = vpop.f32.mrf.mxu0  ;;  %vm2820_vm2 = vcmp.gt.f32.partialorder %v5641_v5, 20.0 }
 0x274   :  { %3267 = vst [vmem:[%s5904_s3 + $0xc0] sm:$0xff] %v3210_v57  ;;  %4201 = vlog2.f32 %v3043_v8  ;;  %v3044_v55 = vadd.f32 1.0, %v4188_v31  ;;  %v2967_v22 = vmul.f32 1.442695, %v2877_v6  ;;  %v3687_v16 = vpop.f32.mrf.mxu1  ;;  %v5650_v62 = vadd.f32 %v2693_v14, %v2430_v42 }
 0x275   :  { %v4190_v37 = vpop.eup %4189  ;;  %v2432_v48 = vpop.f32.mrf.mxu0 }
 0x276   :  { %v3123_v11 = vmul.f32 0.6931472, %v4190_v37  ;;  %4203 = vlog2.f32 %v3044_v55  ;;  %v2433_v60 = vadd.f32 %v2432_v48, %v5165_v38  ;;  %v2696_v20 = vpop.f32.mrf.mxu1  ;;  %v2878_v18 = vmin.f32 %v5650_v62, 20.0 }
 0x277   :  { %v4192_v39 = vpop.eup %4191  ;;  %4205 = vpow2.f32 %v2967_v22  ;;  %v2434_v49 = vpop.f32.mrf.mxu0  ;;  %vm2821_vm3 = vcmp.gt.f32.partialorder %v5650_v62, 20.0 }
 0x278   :  { %v4194_v36 = vpop.eup %4193  ;;  %v3211_v63 = vsel %vm2812_vm10, %v5569_v44, %v3123_v11  ;;  %v3125_v7 = vmul.f32 0.6931472, %v4192_v39  ;;  %v5656_v33 = vadd.f32 %v2696_v20, %v2433_v60  ;;  %v3688_v32 = vpop.f32.mrf.mxu1  ;;  %v2969_v50 = vmul.f32 1.442695, %v2878_v18 }
 0x279   :  { %3268 = vst [vmem:[%s5904_s3 + $0xc8] sm:$0xff] %v3211_v63  ;;  %v3045_v38 = vadd.f32 1.0, %v4194_v36  ;;  %v2437_v41 = vpop.f32.mrf.mxu0 }
 0x27a   :  { %v3212_v4 = vsel %vm2813_vm11, %v5575_v1, %v3125_v7  ;;  %v2879_v45 = vmin.f32 %v5656_v33, 20.0  ;;  %v2438_v58 = vadd.f32 %v2437_v41, %v5170_v56  ;;  %v2701_v44 = vpop.f32.mrf.mxu1  ;;  %vm2822_vm4 = vcmp.gt.f32.partialorder %v5656_v33, 20.0 }
 0x27b   :  { %3269 = vst [vmem:[%s5904_s3 + $0xd0] sm:$0xff] %v3212_v4  ;;  %4207 = vlog2.f32 %v3045_v38  ;;  %v2439_v0 = vpop.f32.mrf.mxu0 }
 0x27c   :  { %v4196_v43 = vpop.eup %4195  ;;  %4209 = vpow2.f32 %v2969_v50  ;;  %v2971_v54 = vmul.f32 1.442695, %v2879_v45  ;;  %v5668_v23 = vadd.f32 %v2701_v44, %v2438_v58  ;;  %v3691_v28 = vpop.f32.mrf.mxu1 }
 0x27d   :  { %v4198_v2 = vpop.eup %4197  ;;  %v3127_v24 = vmul.f32 0.6931472, %v4196_v43  ;;  %v2440_v1 = vpop.f32.mrf.mxu0 }
 0x27e   :  { %v3046_v13 = vadd.f32 1.0, %v4198_v2  ;;  %4211 = vpow2.f32 %v2971_v54  ;;  %v2880_v56 = vmin.f32 %v5668_v23, 20.0  ;;  %v2704_v19 = vpop.f32.mrf.mxu1  ;;  %v2441_v52 = vadd.f32 %v2440_v1, %v5182_v12 }
 0x27f   :  { %v4200_v21 = vpop.eup %4199  ;;  %v3213_v34 = vsel %vm2814_vm12, %v5587_v51, %v3127_v24  ;;  %v2442_v9 = vpop.f32.mrf.mxu0  ;;  %vm2823_vm5 = vcmp.gt.f32.partialorder %v5668_v23, 20.0 }
 0x280   :  { %3270 = vst [vmem:[%s5904_s3 + $0xd8] sm:$0xff] %v3213_v34  ;;  %4213 = vlog2.f32 %v3046_v13  ;;  %v3047_v35 = vadd.f32 1.0, %v4200_v21  ;;  %v2973_v61 = vmul.f32 1.442695, %v2880_v56  ;;  %v3692_v26 = vpop.f32.mrf.mxu1  ;;  %v5677_v6 = vadd.f32 %v2704_v19, %v2441_v52 }
 0x281   :  { %v4202_v8 = vpop.eup %4201  ;;  %v2445_v14 = vpop.f32.mrf.mxu0 }
 0x282   :  { %v3129_v31 = vmul.f32 0.6931472, %v4202_v8  ;;  %4215 = vlog2.f32 %v3047_v35  ;;  %v2446_v57 = vadd.f32 %v2445_v14, %v5187_v27  ;;  %v2709_v51 = vpop.f32.mrf.mxu1  ;;  %v2881_v12 = vmin.f32 %v5677_v6, 20.0 }
 0x283   :  { %v4204_v42 = vpop.eup %4203  ;;  %4217 = vpow2.f32 %v2973_v61  ;;  %v2447_v25 = vpop.f32.mrf.mxu0  ;;  %vm2824_vm6 = vcmp.gt.f32.partialorder %v5677_v6, 20.0 }
 0x284   :  { %v4206_v55 = vpop.eup %4205  ;;  %v3214_v22 = vsel %vm2815_vm13, %v5596_v15, %v3129_v31  ;;  %v3131_v16 = vmul.f32 0.6931472, %v4204_v42  ;;  %v5683_v37 = vadd.f32 %v2709_v51, %v2446_v57  ;;  %v3695_v48 = vpop.f32.mrf.mxu1  ;;  %v2975_v11 = vmul.f32 1.442695, %v2881_v12 }
 0x285   :  { %3271 = vst [vmem:[%s5904_s3 + $0xe0] sm:$0xff] %v3214_v22  ;;  %v3048_v27 = vadd.f32 1.0, %v4206_v55  ;;  %v2448_v60 = vpop.f32.mrf.mxu0 }
 0x286   :  { %v3215_v20 = vsel %vm2816_vm14, %v5602_v40, %v3131_v16  ;;  %v2882_v39 = vmin.f32 %v5683_v37, 20.0  ;;  %v2449_v18 = vadd.f32 %v2448_v60, %v5199_v47  ;;  %v2712_v15 = vpop.f32.mrf.mxu1  ;;  %vm2825_vm7 = vcmp.gt.f32.partialorder %v5683_v37, 20.0 }
 0x287   :  { %3272 = vst [vmem:[%s5904_s3 + $0xe8] sm:$0xff] %v3215_v20  ;;  %4219 = vlog2.f32 %v3048_v27  ;;  %v2450_v49 = vpop.f32.mrf.mxu0 }
 0x288   :  { %v4208_v36 = vpop.eup %4207  ;;  %4221 = vpow2.f32 %v2975_v11  ;;  %v2977_v63 = vmul.f32 1.442695, %v2882_v39  ;;  %v5695_v7 = vadd.f32 %v2712_v15, %v2449_v18  ;;  %v3696_v32 = vpop.f32.mrf.mxu1 }
 0x289   :  { %v4210_v38 = vpop.eup %4209  ;;  %v3133_v50 = vmul.f32 0.6931472, %v4208_v36  ;;  %v2453_v40 = vpop.f32.mrf.mxu0 }
 0x28a   :  { %v3049_v41 = vadd.f32 1.0, %v4210_v38  ;;  %4223 = vpow2.f32 %v2977_v63  ;;  %v2883_v47 = vmin.f32 %v5695_v7, 20.0  ;;  %v2717_v4 = vpop.f32.mrf.mxu1  ;;  %v2454_v44 = vadd.f32 %v2453_v40, %v5204_v3 }
 0x28b   :  { %v4212_v45 = vpop.eup %4211  ;;  %v3216_v58 = vsel %vm2817_vm15, %v5614_v17, %v3133_v50  ;;  %v2455_v0 = vpop.f32.mrf.mxu0  ;;  %vm2826_vm8 = vcmp.gt.f32.partialorder %v5695_v7, 20.0 }
 0x28c   :  { %3273 = vst [vmem:[%s5904_s3 + $0xf0] sm:$0xff] %v3216_v58  ;;  %4225 = vlog2.f32 %v3049_v41  ;;  %v3050_v43 = vadd.f32 1.0, %v4212_v45  ;;  %v2979_v54 = vmul.f32 1.442695, %v2883_v47  ;;  %v3699_v28 = vpop.f32.mrf.mxu1  ;;  %v5704_v24 = vadd.f32 %v2717_v4, %v2454_v44 }
 0x28d   :  { %v4214_v2 = vpop.eup %4213  ;;  %v2456_v1 = vpop.f32.mrf.mxu0 }
 0x28e   :  { %v3135_v13 = vmul.f32 0.6931472, %v4214_v2  ;;  %4227 = vlog2.f32 %v3050_v43  ;;  %v2457_v56 = vadd.f32 %v2456_v1, %v5216_v29  ;;  %v2720_v17 = vpop.f32.mrf.mxu1  ;;  %v2884_v3 = vmin.f32 %v5704_v24, 20.0  ;;  %v5919_v2 = vld [vmem:[#allocation2_spill] sm:$0xff] }
 0x28f   :  { %v4216_v19 = vpop.eup %4215  ;;  %4229 = vpow2.f32 %v2979_v54  ;;  %v2458_v21 = vpop.f32.mrf.mxu0  ;;  %vm2827_vm9 = vcmp.gt.f32.partialorder %v5704_v24, 20.0 }
 0x290   :  { %v4218_v34 = vpop.eup %4217  ;;  %v3217_v52 = vsel %vm2818_vm0, %v5623_v53, %v3135_v13  ;;  %v3137_v9 = vmul.f32 0.6931472, %v4216_v19  ;;  %v5710_v35 = vadd.f32 %v2720_v17, %v2457_v56  ;;  %v3700_v61 = vpop.f32.mrf.mxu1  ;;  %v2981_v26 = vmul.f32 1.442695, %v2884_v3 }
 0x291   :  { %3274 = vst [vmem:[%s5904_s3 + $0xf8] sm:$0xff] %v3217_v52  ;;  %v3051_v29 = vadd.f32 1.0, %v4218_v34  ;;  %v2461_v8 = vpop.f32.mrf.mxu0 }
 0x292   :  { %v3218_v14 = vsel %vm2819_vm1, %v5629_v59, %v3137_v9  ;;  %v2885_v31 = vmin.f32 %v5710_v35, 20.0  ;;  %v2462_v57 = vadd.f32 %v2461_v8, %v5221_v46  ;;  %v2725_v53 = vpop.f32.mrf.mxu1  ;;  %v5920_v8 = vld [vmem:[#allocation3_spill] sm:$0xff]  ;;  %vm2828_vm10 = vcmp.gt.f32.partialorder %v5710_v35, 20.0 }
 0x293   :  { %3275 = vst [vmem:[%s5904_s3 + $0x100] sm:$0xff] %v3218_v14  ;;  %4231 = vlog2.f32 %v3051_v29  ;;  %v2463_v51 = vpop.f32.mrf.mxu0 }
 0x294   :  { %v4220_v42 = vpop.eup %4219  ;;  %4233 = vpow2.f32 %v2981_v26  ;;  %v2983_v12 = vmul.f32 1.442695, %v2885_v31  ;;  %v5722_v25 = vadd.f32 %v2725_v53, %v2462_v57  ;;  %v3703_v55 = vpop.f32.mrf.mxu1 }
 0x295   :  { %v4222_v22 = vpop.eup %4221  ;;  %v3139_v16 = vmul.f32 0.6931472, %v4220_v42  ;;  %v2464_v59 = vpop.f32.mrf.mxu0 }
 0x296   :  { %v3052_v48 = vadd.f32 1.0, %v4222_v22  ;;  %4235 = vpow2.f32 %v2983_v12  ;;  %v2886_v46 = vmin.f32 %v5722_v25, 20.0  ;;  %v2728_v27 = vpop.f32.mrf.mxu1  ;;  %v2465_v20 = vadd.f32 %v2464_v59, %v5233_v10 }
 0x297   :  { %v4224_v11 = vpop.eup %4223  ;;  %v3219_v60 = vsel %vm2820_vm2, %v5641_v5, %v3139_v16  ;;  %v2466_v39 = vpop.f32.mrf.mxu0  ;;  %v5921_v16 = vld [vmem:[#allocation4_spill] sm:$0xff]  ;;  %vm2829_vm11 = vcmp.gt.f32.partialorder %v5722_v25, 20.0 }
 0x298   :  { %3276 = vst [vmem:[%s5904_s3 + $0x108] sm:$0xff] %v3219_v60  ;;  %4237 = vlog2.f32 %v3052_v48  ;;  %v3053_v18 = vadd.f32 1.0, %v4224_v11  ;;  %v2985_v15 = vmul.f32 1.442695, %v2886_v46  ;;  %v3704_v49 = vpop.f32.mrf.mxu1  ;;  %v5731_v63 = vadd.f32 %v2728_v27, %v2465_v20 }
 0x299   :  { %v4226_v36 = vpop.eup %4225  ;;  %v2469_v32 = vpop.f32.mrf.mxu0 }
 0x29a   :  { %v3141_v38 = vmul.f32 0.6931472, %v4226_v36  ;;  %4239 = vlog2.f32 %v3053_v18  ;;  %v2470_v50 = vadd.f32 %v2469_v32, %v5238_v30  ;;  %v2733_v5 = vpop.f32.mrf.mxu1  ;;  %v2887_v10 = vmin.f32 %v5731_v63, 20.0 }
 0x29b   :  { %v4228_v40 = vpop.eup %4227  ;;  %4241 = vpow2.f32 %v2985_v15  ;;  %v2471_v41 = vpop.f32.mrf.mxu0  ;;  %vm2830_vm12 = vcmp.gt.f32.partialorder %v5731_v63, 20.0 }
 0x29c   :  { %v4230_v47 = vpop.eup %4229  ;;  %v3220_v4 = vsel %vm2821_vm3, %v5650_v62, %v3141_v38  ;;  %v3143_v45 = vmul.f32 0.6931472, %v4228_v40  ;;  %v5737_v58 = vadd.f32 %v2733_v5, %v2470_v50  ;;  %v3707_v44 = vpop.f32.mrf.mxu1  ;;  %v2987_v0 = vmul.f32 1.442695, %v2887_v10  ;;  %v5922_v50 = vld [vmem:[#allocation5_spill] sm:$0xff] }
 0x29d   :  { %3277 = vst [vmem:[%s5904_s3 + $0x110] sm:$0xff] %v3220_v4  ;;  %v3054_v30 = vadd.f32 1.0, %v4230_v47  ;;  %v2472_v43 = vpop.f32.mrf.mxu0 }
 0x29e   :  { %v3221_v54 = vsel %vm2822_vm4, %v5656_v33, %v3143_v45  ;;  %v2888_v28 = vmin.f32 %v5737_v58, 20.0  ;;  %v2473_v1 = vadd.f32 %v2472_v43, %v5919_v2  ;;  %v2736_v62 = vpop.f32.mrf.mxu1  ;;  %v5923_v2 = vld [vmem:[#allocation6_spill] sm:$0xff]  ;;  %vm2831_vm13 = vcmp.gt.f32.partialorder %v5737_v58, 20.0 }
 0x29f   :  { %3278 = vst [vmem:[%s5904_s3 + $0x118] sm:$0xff] %v3221_v54  ;;  %4243 = vlog2.f32 %v3054_v30  ;;  %v2474_v13 = vpop.f32.mrf.mxu0 }
 0x2a0   :  { %v4232_v56 = vpop.eup %4231  ;;  %4245 = vpow2.f32 %v2987_v0  ;;  %v2989_v17 = vmul.f32 1.442695, %v2888_v28  ;;  %v5749_v19 = vadd.f32 %v2736_v62, %v2473_v1  ;;  %v3708_v3 = vpop.f32.mrf.mxu1 }
 0x2a1   :  { %v4234_v21 = vpop.eup %4233  ;;  %v3145_v34 = vmul.f32 0.6931472, %v4232_v56  ;;  %v2477_v33 = vpop.f32.mrf.mxu0 }
 0x2a2   :  { %v3055_v52 = vadd.f32 1.0, %v4234_v21  ;;  %4247 = vpow2.f32 %v2989_v17  ;;  %v2889_v9 = vmin.f32 %v5749_v19, 20.0  ;;  %v2741_v61 = vpop.f32.mrf.mxu1  ;;  %v2478_v14 = vadd.f32 %v2477_v33, %v5920_v8 }
 0x2a3   :  { %v4236_v29 = vpop.eup %4235  ;;  %v3222_v26 = vsel %vm2823_vm5, %v5668_v23, %v3145_v34  ;;  %v2479_v31 = vpop.f32.mrf.mxu0  ;;  %vm2832_vm14 = vcmp.gt.f32.partialorder %v5749_v19, 20.0 }
 0x2a4   :  { %3279 = vst [vmem:[%s5904_s3 + $0x120] sm:$0xff] %v3222_v26  ;;  %4249 = vlog2.f32 %v3055_v52  ;;  %v3056_v57 = vadd.f32 1.0, %v4236_v29  ;;  %v2991_v53 = vmul.f32 1.442695, %v2889_v9  ;;  %v3711_v51 = vpop.f32.mrf.mxu1  ;;  %v5758_v12 = vadd.f32 %v2741_v61, %v2478_v14  ;;  %v5924_v52 = vld [vmem:[#allocation7_spill] sm:$0xff] }
 0x2a5   :  { %v4238_v42 = vpop.eup %4237  ;;  %v2480_v55 = vpop.f32.mrf.mxu0 }
 0x2a6   :  { %v3147_v22 = vmul.f32 0.6931472, %v4238_v42  ;;  %4251 = vlog2.f32 %v3056_v57  ;;  %v2481_v59 = vadd.f32 %v2480_v55, %v5921_v16  ;;  %v2744_v23 = vpop.f32.mrf.mxu1  ;;  %v2890_v46 = vmin.f32 %v5758_v12, 20.0 }
 0x2a7   :  { %v4240_v48 = vpop.eup %4239  ;;  %4253 = vpow2.f32 %v2991_v53  ;;  %v2482_v27 = vpop.f32.mrf.mxu0  ;;  %vm2833_vm15 = vcmp.gt.f32.partialorder %v5758_v12, 20.0 }
 0x2a8   :  { %v4242_v11 = vpop.eup %4241  ;;  %v3223_v60 = vsel %vm2824_vm6, %v5677_v6, %v3147_v22  ;;  %v3149_v20 = vmul.f32 0.6931472, %v4240_v48  ;;  %v5764_v39 = vadd.f32 %v2744_v23, %v2481_v59  ;;  %v3712_v18 = vpop.f32.mrf.mxu1  ;;  %v2993_v49 = vmul.f32 1.442695, %v2890_v46  ;;  %v5925_v59 = vld [vmem:[#allocation8_spill] sm:$0xff] }
 0x2a9   :  { %3280 = vst [vmem:[%s5904_s3 + $0x128] sm:$0xff] %v3223_v60  ;;  %v3057_v15 = vadd.f32 1.0, %v4242_v11  ;;  %v2485_v36 = vpop.f32.mrf.mxu0 }
 0x2aa   :  { %v3224_v32 = vsel %vm2825_vm7, %v5683_v37, %v3149_v20  ;;  %v2891_v38 = vmin.f32 %v5764_v39, 20.0  ;;  %v2486_v5 = vadd.f32 %v2485_v36, %v5922_v50  ;;  %v2749_v6 = vpop.f32.mrf.mxu1  ;;  %v5926_v50 = vld [vmem:[#allocation9_spill] sm:$0xff]  ;;  %vm2834_vm0 = vcmp.gt.f32.partialorder %v5764_v39, 20.0 }
 0x2ab   :  { %3281 = vst [vmem:[%s5904_s3 + $0x130] sm:$0xff] %v3224_v32  ;;  %4255 = vlog2.f32 %v3057_v15  ;;  %v2487_v40 = vpop.f32.mrf.mxu0 }
 0x2ac   :  { %v4244_v10 = vpop.eup %4243  ;;  %4257 = vpow2.f32 %v2993_v49  ;;  %v2995_v41 = vmul.f32 1.442695, %v2891_v38  ;;  %v5776_v47 = vadd.f32 %v2749_v6, %v2486_v5  ;;  %v3715_v4 = vpop.f32.mrf.mxu1 }
 0x2ad   :  { %v4246_v45 = vpop.eup %4245  ;;  %v3151_v44 = vmul.f32 0.6931472, %v4244_v10  ;;  %v2488_v37 = vpop.f32.mrf.mxu0 }
 0x2ae   :  { %v3058_v30 = vadd.f32 1.0, %v4246_v45  ;;  %4259 = vpow2.f32 %v2995_v41  ;;  %v2892_v0 = vmin.f32 %v5776_v47, 20.0  ;;  %v2752_v43 = vpop.f32.mrf.mxu1  ;;  %v2489_v1 = vadd.f32 %v2488_v37, %v5923_v2 }
 0x2af   :  { %v4248_v54 = vpop.eup %4247  ;;  %v3225_v28 = vsel %vm2826_vm8, %v5695_v7, %v3151_v44  ;;  %v2490_v62 = vpop.f32.mrf.mxu0  ;;  %vm2835_vm1 = vcmp.gt.f32.partialorder %v5776_v47, 20.0 }
 0x2b0   :  { %3282 = vst [vmem:[%s5904_s3 + $0x138] sm:$0xff] %v3225_v28  ;;  %4261 = vlog2.f32 %v3058_v30  ;;  %v3059_v13 = vadd.f32 1.0, %v4248_v54  ;;  %v2997_v56 = vmul.f32 1.442695, %v2892_v0  ;;  %v3716_v17 = vpop.f32.mrf.mxu1  ;;  %v5785_v21 = vadd.f32 %v2752_v43, %v2489_v1  ;;  %v5927_v30 = vld [vmem:[#allocation10_spill] sm:$0xff] }
 0x2b1   :  { %v4250_v3 = vpop.eup %4249  ;;  %v2493_v34 = vpop.f32.mrf.mxu0 }
 0x2b2   :  { %v3153_v33 = vmul.f32 0.6931472, %v4250_v3  ;;  %4263 = vlog2.f32 %v3059_v13  ;;  %v2494_v9 = vadd.f32 %v2493_v34, %v5924_v52  ;;  %v2757_v7 = vpop.f32.mrf.mxu1  ;;  %v2893_v29 = vmin.f32 %v5785_v21, 20.0 }
 0x2b3   :  { %v4252_v61 = vpop.eup %4251  ;;  %4265 = vpow2.f32 %v2997_v56  ;;  %v2495_v26 = vpop.f32.mrf.mxu0  ;;  %vm2836_vm2 = vcmp.gt.f32.partialorder %v5785_v21, 20.0 }
 0x2b4   :  { %v4254_v8 = vpop.eup %4253  ;;  %v3226_v14 = vsel %vm2827_vm9, %v5704_v24, %v3153_v33  ;;  %v3155_v31 = vmul.f32 0.6931472, %v4252_v61  ;;  %v5791_v57 = vadd.f32 %v2757_v7, %v2494_v9  ;;  %v3719_v53 = vpop.f32.mrf.mxu1  ;;  %v2999_v42 = vmul.f32 1.442695, %v2893_v29  ;;  %v5928_v9 = vld [vmem:[#allocation11_spill] sm:$0xff] }
 0x2b5   :  { %3283 = vst [vmem:[%s5904_s3 + $0x140] sm:$0xff] %v3226_v14  ;;  %v3060_v51 = vadd.f32 1.0, %v4254_v8  ;;  %v2496_v55 = vpop.f32.mrf.mxu0 }
 0x2b6   :  { %v3227_v22 = vsel %vm2828_vm10, %v5710_v35, %v3155_v31  ;;  %v2894_v16 = vmin.f32 %v5791_v57, 20.0  ;;  %v2497_v23 = vadd.f32 %v2496_v55, %v5925_v59  ;;  %v2760_v24 = vpop.f32.mrf.mxu1  ;;  %v5929_v59 = vld [vmem:[#allocation12_spill] sm:$0xff]  ;;  %vm2837_vm3 = vcmp.gt.f32.partialorder %v5791_v57, 20.0 }
 0x2b7   :  { %3284 = vst [vmem:[%s5904_s3 + $0x148] sm:$0xff] %v3227_v22  ;;  %4267 = vlog2.f32 %v3060_v51  ;;  %v2498_v48 = vpop.f32.mrf.mxu0 }
 0x2b8   :  { %v4256_v46 = vpop.eup %4255  ;;  %4269 = vpow2.f32 %v2999_v42  ;;  %v3001_v27 = vmul.f32 1.442695, %v2894_v16  ;;  %v5803_v11 = vadd.f32 %v2760_v24, %v2497_v23  ;;  %v3720_v60 = vpop.f32.mrf.mxu1 }
 0x2b9   :  { %v4258_v20 = vpop.eup %4257  ;;  %v3157_v18 = vmul.f32 0.6931472, %v4256_v46  ;;  %v2501_v35 = vpop.f32.mrf.mxu0 }
 0x2ba   :  { %v3061_v15 = vadd.f32 1.0, %v4258_v20  ;;  %4271 = vpow2.f32 %v3001_v27  ;;  %v2895_v49 = vmin.f32 %v5803_v11, 20.0  ;;  %v2765_v36 = vpop.f32.mrf.mxu1  ;;  %v2502_v5 = vadd.f32 %v2501_v35, %v5926_v50 }
 0x2bb   :  { %v4260_v32 = vpop.eup %4259  ;;  %v3228_v38 = vsel %vm2829_vm11, %v5722_v25, %v3157_v18  ;;  %v2503_v6 = vpop.f32.mrf.mxu0  ;;  %vm2838_vm4 = vcmp.gt.f32.partialorder %v5803_v11, 20.0 }
 0x2bc   :  { %3285 = vst [vmem:[%s5904_s3 + $0x150] sm:$0xff] %v3228_v38  ;;  %4273 = vlog2.f32 %v3061_v15  ;;  %v3062_v40 = vadd.f32 1.0, %v4260_v32  ;;  %v3003_v10 = vmul.f32 1.442695, %v2895_v49  ;;  %v3723_v41 = vpop.f32.mrf.mxu1  ;;  %v5812_v45 = vadd.f32 %v2765_v36, %v2502_v5  ;;  %v5930_v15 = vld [vmem:[#allocation13_spill] sm:$0xff] }
 0x2bd   :  { %v4262_v4 = vpop.eup %4261  ;;  %v2504_v44 = vpop.f32.mrf.mxu0 }
 0x2be   :  { %v3159_v37 = vmul.f32 0.6931472, %v4262_v4  ;;  %4275 = vlog2.f32 %v3062_v40  ;;  %v2505_v0 = vadd.f32 %v2504_v44, %v5927_v30  ;;  %v2768_v25 = vpop.f32.mrf.mxu1  ;;  %v2896_v54 = vmin.f32 %v5812_v45, 20.0 }
 0x2bf   :  { %v4264_v43 = vpop.eup %4263  ;;  %4277 = vpow2.f32 %v3003_v10  ;;  %v2506_v28 = vpop.f32.mrf.mxu0  ;;  %vm2839_vm5 = vcmp.gt.f32.partialorder %v5812_v45, 20.0 }
 0x2c0   :  { %v4266_v2 = vpop.eup %4265  ;;  %v3229_v1 = vsel %vm2830_vm12, %v5731_v63, %v3159_v37  ;;  %v3161_v62 = vmul.f32 0.6931472, %v4264_v43  ;;  %v5818_v13 = vadd.f32 %v2768_v25, %v2505_v0  ;;  %v3724_v56 = vpop.f32.mrf.mxu1  ;;  %v3005_v3 = vmul.f32 1.442695, %v2896_v54 }
 0x2c1   :  { %3286 = vst [vmem:[%s5904_s3 + $0x158] sm:$0xff] %v3229_v1  ;;  %v3063_v17 = vadd.f32 1.0, %v4266_v2  ;;  %v2509_v34 = vpop.f32.mrf.mxu0 }
 0x2c2   :  { %v3230_v33 = vsel %vm2831_vm13, %v5737_v58, %v3161_v62  ;;  %v2897_v52 = vmin.f32 %v5818_v13, 20.0  ;;  %v2510_v7 = vadd.f32 %v2509_v34, %v5928_v9  ;;  %v2773_v63 = vpop.f32.mrf.mxu1  ;;  %vm2840_vm6 = vcmp.gt.f32.partialorder %v5818_v13, 20.0 }
 0x2c3   :  { %3287 = vst [vmem:[%s5904_s3 + $0x160] sm:$0xff] %v3230_v33  ;;  %4279 = vlog2.f32 %v3063_v17  ;;  %v2511_v61 = vpop.f32.mrf.mxu0 }
 0x2c4   :  { %v4268_v29 = vpop.eup %4267  ;;  %4281 = vpow2.f32 %v3005_v3  ;;  %v3007_v26 = vmul.f32 1.442695, %v2897_v52  ;;  %v5830_v8 = vadd.f32 %v2773_v63, %v2510_v7  ;;  %v3727_v14 = vpop.f32.mrf.mxu1 }
 0x2c5   :  { %v4270_v31 = vpop.eup %4269  ;;  %v3163_v53 = vmul.f32 0.6931472, %v4268_v29  ;;  %v2512_v58 = vpop.f32.mrf.mxu0 }
 0x2c6   :  { %v3064_v51 = vadd.f32 1.0, %v4270_v31  ;;  %4283 = vpow2.f32 %v3007_v26  ;;  %v2898_v42 = vmin.f32 %v5830_v8, 20.0  ;;  %v2776_v55 = vpop.f32.mrf.mxu1  ;;  %v2513_v23 = vadd.f32 %v2512_v58, %v5929_v59 }
 0x2c7   :  { %v4272_v22 = vpop.eup %4271  ;;  %v3231_v16 = vsel %vm2832_vm14, %v5749_v19, %v3163_v53  ;;  %v2514_v24 = vpop.f32.mrf.mxu0  ;;  %vm2841_vm7 = vcmp.gt.f32.partialorder %v5830_v8, 20.0 }
 0x2c8   :  { %3288 = vst [vmem:[%s5904_s3 + $0x168] sm:$0xff] %v3231_v16  ;;  %4285 = vlog2.f32 %v3064_v51  ;;  %v3065_v48 = vadd.f32 1.0, %v4272_v22  ;;  %v3009_v46 = vmul.f32 1.442695, %v2898_v42  ;;  %v3728_v27 = vpop.f32.mrf.mxu1  ;;  %v5839_v20 = vadd.f32 %v2776_v55, %v2513_v23 }
 0x2c9   :  { %v4274_v60 = vpop.eup %4273  ;;  %v2517_v18 = vpop.f32.mrf.mxu0 }
 0x2ca   :  { %v3165_v35 = vmul.f32 0.6931472, %v4274_v60  ;;  %4287 = vlog2.f32 %v3065_v48  ;;  %v2518_v49 = vadd.f32 %v2517_v18, %v5930_v15  ;;  %v2781_v19 = vpop.f32.mrf.mxu1  ;;  %v2899_v32 = vmin.f32 %v5839_v20, 20.0 }
 0x2cb   :  { %v4276_v36 = vpop.eup %4275  ;;  %4289 = vpow2.f32 %v3009_v46  ;;  %v2519_v38 = vpop.f32.mrf.mxu0  ;;  %vm2842_vm8 = vcmp.gt.f32.partialorder %v5839_v20, 20.0 }
 0x2cc   :  { %v4278_v50 = vpop.eup %4277  ;;  %v3232_v5 = vsel %vm2833_vm15, %v5758_v12, %v3165_v35  ;;  %v3167_v6 = vmul.f32 0.6931472, %v4276_v36  ;;  %v5845_v40 = vadd.f32 %v2781_v19, %v2518_v49  ;;  %v3731_v10 = vpop.f32.mrf.mxu1  ;;  %v3011_v4 = vmul.f32 1.442695, %v2899_v32 }
 0x2cd   :  { %3289 = vst [vmem:[%s5904_s3 + $0x170] sm:$0xff] %v3232_v5  ;;  %v3066_v41 = vadd.f32 1.0, %v4278_v50  ;;  %v2520_v44 = vpop.f32.mrf.mxu0 }
 0x2ce   :  { %v3233_v37 = vsel %vm2834_vm0, %v5764_v39, %v3167_v6  ;;  %v2900_v30 = vmin.f32 %v5845_v40, 20.0  ;;  %v2784_v0 = vpop.f32.mrf.mxu1  ;;  %vm2843_vm9 = vcmp.gt.f32.partialorder %v5845_v40, 20.0 }
 0x2cf   :  { %3290 = vst [vmem:[%s5904_s3 + $0x178] sm:$0xff] %v3233_v37  ;;  %4291 = vlog2.f32 %v3066_v41  ;;  %v2521_v12 = vpop.f32.mrf.mxu0 }
 0x2d0   :  { %v4280_v25 = vpop.eup %4279  ;;  %4293 = vpow2.f32 %v3011_v4  ;;  %v3013_v43 = vmul.f32 1.442695, %v2900_v30  ;;  %v3732_v54 = vpop.f32.mrf.mxu1 }
 0x2d1   :  { %v4282_v28 = vpop.eup %4281  ;;  %v3169_v2 = vmul.f32 0.6931472, %v4280_v25 }
 0x2d2   :  { %v3067_v1 = vadd.f32 1.0, %v4282_v28  ;;  %4295 = vpow2.f32 %v3013_v43 }
 0x2d3   :  { %v4284_v39 = vpop.eup %4283  ;;  %v3234_v62 = vsel %vm2835_vm1, %v5776_v47, %v3169_v2 }
 0x2d4   :  { %3291 = vst [vmem:[%s5904_s3 + $0x180] sm:$0xff] %v3234_v62  ;;  %4297 = vlog2.f32 %v3067_v1  ;;  %v3068_v56 = vadd.f32 1.0, %v4284_v39 }
 0x2d5   :  { %v4286_v17 = vpop.eup %4285 }
 0x2d6   :  { %v3171_v3 = vmul.f32 0.6931472, %v4286_v17  ;;  %4299 = vlog2.f32 %v3068_v56 }
 0x2d7   :  { %v4288_v34 = vpop.eup %4287 }
 0x2d8   :  { %v4290_v33 = vpop.eup %4289  ;;  %v3235_v52 = vsel %vm2836_vm2, %v5785_v21, %v3171_v3  ;;  %v3173_v9 = vmul.f32 0.6931472, %v4288_v34 }
 0x2d9   :  { %3292 = vst [vmem:[%s5904_s3 + $0x188] sm:$0xff] %v3235_v52  ;;  %v3069_v47 = vadd.f32 1.0, %v4290_v33 }
 0x2da   :  { %v3236_v7 = vsel %vm2837_vm3, %v5791_v57, %v3173_v9 }
 0x2db   :  { %3293 = vst [vmem:[%s5904_s3 + $0x190] sm:$0xff] %v3236_v7  ;;  %4301 = vlog2.f32 %v3069_v47 }
 0x2dc   :  { %v4292_v63 = vpop.eup %4291 }
 0x2dd   :  { %v4294_v61 = vpop.eup %4293  ;;  %v3175_v29 = vmul.f32 0.6931472, %v4292_v63 }
 0x2de   :  { %v3070_v21 = vadd.f32 1.0, %v4294_v61 }
 0x2df   :  { %v4296_v26 = vpop.eup %4295  ;;  %v3237_v14 = vsel %vm2838_vm4, %v5803_v11, %v3175_v29 }
 0x2e0   :  { %3294 = vst [vmem:[%s5904_s3 + $0x198] sm:$0xff] %v3237_v14  ;;  %4303 = vlog2.f32 %v3070_v21  ;;  %v3071_v57 = vadd.f32 1.0, %v4296_v26 }
 0x2e1   :  { %v4298_v31 = vpop.eup %4297 }
 0x2e2   :  { %v3177_v53 = vmul.f32 0.6931472, %v4298_v31  ;;  %4305 = vlog2.f32 %v3071_v57 }
 0x2e3   :  { %v4300_v58 = vpop.eup %4299 }
 0x2e4   :  { %v3238_v51 = vsel %vm2839_vm5, %v5812_v45, %v3177_v53  ;;  %v3179_v42 = vmul.f32 0.6931472, %v4300_v58 }
 0x2e5   :  { %3295 = vst [vmem:[%s5904_s3 + $0x1a0] sm:$0xff] %v3238_v51 }
 0x2e6   :  { %v3239_v11 = vsel %vm2840_vm6, %v5818_v13, %v3179_v42 }
 0x2e7   :  { %3296 = vst [vmem:[%s5904_s3 + $0x1a8] sm:$0xff] %v3239_v11 }
 0x2e8   :  { %v4302_v55 = vpop.eup %4301 }
 0x2e9   :  { %v3181_v22 = vmul.f32 0.6931472, %v4302_v55 }
 0x2eb   :  { %v3240_v16 = vsel %vm2841_vm7, %v5830_v8, %v3181_v22 }
 0x2ec   :  { %3297 = vst [vmem:[%s5904_s3 + $0x1b0] sm:$0xff] %v3240_v16 }
 0x2ed   :  { %v4304_v45 = vpop.eup %4303 }
 0x2ee   :  { %v3183_v59 = vmul.f32 0.6931472, %v4304_v45 }
 0x2ef   :  { %v4306_v23 = vpop.eup %4305 }
 0x2f0   :  { %v3241_v13 = vsel %vm2842_vm8, %v5839_v20, %v3183_v59  ;;  %v3185_v24 = vmul.f32 0.6931472, %v4306_v23 }
 0x2f1   :  { %3298 = vst [vmem:[%s5904_s3 + $0x1b8] sm:$0xff] %v3241_v13 }
 0x2f2   :  { %v3242_v8 = vsel %vm2843_vm9, %v5845_v40, %v3185_v24 }
 0x2f3   :  { %3299 = vst [vmem:[%s5904_s3 + $0x1c0] sm:$0xff] %v3242_v8 }

// kernel: f4conv3fc_forward.6
= control target key start
LH: loop header
LB: loop body
LE: loop exit
PB: predicated region body
PF: predicated region fallthrough
CT: control target
= control target key end

     0   :  { %s2905_s1 = inlined_call_operand.vmem [shape: bf16[1664,128], index: 1, kind: input, shape index: {}]   ;;  %s2906_s0 = inlined_call_operand.vmem [shape: bf16[56,1664], index: 0, kind: input, shape index: {}]   ;;  %s2907_s2 = inlined_call_operand.vmem [shape: f32[1,128], index: 2, kind: input, shape index: {}]   ;;  %s2908_s3 = inlined_call_operand.vmem [shape: f32[56,128], index: 3, kind: output, shape index: {}]  }
   0x1   :  { %v2111_v0 = vld [vmem:[%s2905_s1 + $0x78] sm:$0xff]   ;;  %v2115_v4 = vld [vmem:[%s2905_s1 + $0x70] sm:$0xff]   ;;  %v2119_v8 = vld [vmem:[%s2905_s1 + $0x68] sm:$0xff]  }
   0x2   :  { %v2112_v1 = vld [vmem:[%s2905_s1 + $0xf8] sm:$0xff]   ;;  %1819 = vmatprep.subr.bf16.mxu0 %v2111_v0  ;;  %v2116_v5 = vld [vmem:[%s2905_s1 + $0xf0] sm:$0xff]   ;;  %v2120_v9 = vld [vmem:[%s2905_s1 + $0xe8] sm:$0xff]  }
   0x3   :  { %v2113_v2 = vld [vmem:[%s2905_s1 + $0x38] sm:$0xff]   ;;  %1859 = vmatprep.subr.bf16.mxu1 %v2112_v1  ;;  %v2117_v6 = vld [vmem:[%s2905_s1 + $0x30] sm:$0xff]   ;;  %v2121_v10 = vld [vmem:[%s2905_s1 + $0x28] sm:$0xff]  }
   0x4   :  { %v2114_v3 = vld [vmem:[%s2905_s1 + $0xb8] sm:$0xff]   ;;  %1820 = vmatpush3.bf16.msra.mxu0 %v2113_v2  ;;  %v2118_v7 = vld [vmem:[%s2905_s1 + $0xb0] sm:$0xff]   ;;  %v2122_v11 = vld [vmem:[%s2905_s1 + $0xa8] sm:$0xff]  }
   0x5   :  { %1860 = vmatpush3.bf16.msra.mxu1 %v2114_v3  ;;  %1821 = vmatprep.subr.bf16.mxu0 %v2115_v4  ;;  %v2123_v12 = vld [vmem:[%s2905_s1 + $0x60] sm:$0xff]   ;;  %v2127_v16 = vld [vmem:[%s2905_s1 + $0x58] sm:$0xff]   ;;  %v2131_v20 = vld [vmem:[%s2905_s1 + $0x50] sm:$0xff]  }
   0x6   :  { %1861 = vmatprep.subr.bf16.mxu1 %v2116_v5  ;;  %v2124_v13 = vld [vmem:[%s2905_s1 + $0xe0] sm:$0xff]   ;;  %v2128_v17 = vld [vmem:[%s2905_s1 + $0xd8] sm:$0xff]   ;;  %v2132_v21 = vld [vmem:[%s2905_s1 + $0xd0] sm:$0xff]  }
   0x7   :  { %v2125_v14 = vld [vmem:[%s2905_s1 + $0x20] sm:$0xff]   ;;  %v2129_v18 = vld [vmem:[%s2905_s1 + $0x18] sm:$0xff]   ;;  %v2133_v22 = vld [vmem:[%s2905_s1 + $0x10] sm:$0xff]  }
   0x8   :  { %1822 = vmatpush3.bf16.msra.mxu0 %v2117_v6  ;;  %v2126_v15 = vld [vmem:[%s2905_s1 + $0xa0] sm:$0xff]   ;;  %v2130_v19 = vld [vmem:[%s2905_s1 + $0x98] sm:$0xff]   ;;  %v2134_v23 = vld [vmem:[%s2905_s1 + $0x90] sm:$0xff]  }
   0x9   :  { %1862 = vmatpush3.bf16.msra.mxu1 %v2118_v7  ;;  %1823 = vmatprep.subr.bf16.mxu0 %v2119_v8  ;;  %v2135_v24 = vld [vmem:[%s2905_s1 + $0x48] sm:$0xff]   ;;  %v2139_v28 = vld [vmem:[%s2905_s1 + $0x40] sm:$0xff]   ;;  %v2149_v36 = vld [vmem:[%s2905_s1 + $0x178] sm:$0xff]  }
   0xa   :  { %1863 = vmatprep.subr.bf16.mxu1 %v2120_v9  ;;  %v2136_v25 = vld [vmem:[%s2905_s1 + $0xc8] sm:$0xff]   ;;  %v2140_v29 = vld [vmem:[%s2905_s1 + $0xc0] sm:$0xff]   ;;  %v2150_v37 = vld [vmem:[%s2905_s1 + $0x1f8] sm:$0xff]  }
   0xb   :  { %v2137_v26 = vld [vmem:[%s2905_s1 + $0x8] sm:$0xff]   ;;  %v2141_v30 = vld [vmem:[%s2905_s1] sm:$0xff]   ;;  %v2151_v38 = vld [vmem:[%s2905_s1 + $0x138] sm:$0xff]  }
   0xc   :  { %1824 = vmatpush3.bf16.msra.mxu0 %v2121_v10  ;;  %v2138_v27 = vld [vmem:[%s2905_s1 + $0x88] sm:$0xff]   ;;  %v2142_v31 = vld [vmem:[%s2905_s1 + $0x80] sm:$0xff]   ;;  %v2152_v39 = vld [vmem:[%s2905_s1 + $0x1b8] sm:$0xff]  }
   0xd   :  { %1864 = vmatpush3.bf16.msra.mxu1 %v2122_v11  ;;  %1825 = vmatprep.subr.bf16.mxu0 %v2123_v12  ;;  %v2143_v32 = vld [vmem:[%s2906_s0] ss:$52 sps:$4 sm:$0xff]   ;;  %v2145_v33 = vld [vmem:[%s2906_s0 + $0x4] ss:$52 sps:$4 sm:$0xff]   ;;  %v2146_v34 = vld [vmem:[%s2906_s0 + $0x8] ss:$52 sps:$4 sm:$0xff]  }
   0xe   :  { %1865 = vmatprep.subr.bf16.mxu1 %v2124_v13  ;;  %v2148_v35 = vld [vmem:[%s2906_s0 + $0xc] ss:$52 sps:$4 sm:$0xff]   ;;  %1179 = vmatprep.mubr.bf16.mxu0 %v2145_v33  ;;  %v2153_v40 = vld [vmem:[%s2905_s1 + $0x170] sm:$0xff]   ;;  %v2161_v46 = vld [vmem:[%s2906_s0 + $0x68] ss:$52 sps:$4 sm:$0xff]  }
   0xf   :  { %1243 = vmatprep.mubr.bf16.mxu1 %v2148_v35  ;;  %v2154_v41 = vld [vmem:[%s2905_s1 + $0x1f0] sm:$0xff]   ;;  %v2157_v44 = vld [vmem:[%s2906_s0 + $0x6c] ss:$52 sps:$4 sm:$0xff]   ;;  %v2177_v60 = vld [vmem:[%s2905_s1 + $0x158] sm:$0xff]  }
  0x10   :  { %1826 = vmatpush3.bf16.msra.mxu0 %v2125_v14  ;;  %v2155_v42 = vld [vmem:[%s2905_s1 + $0x130] sm:$0xff]   ;;  %v2163_v48 = vld [vmem:[%s2905_s1 + $0x168] sm:$0xff]   ;;  %v2167_v52 = vld [vmem:[%s2905_s1 + $0x160] sm:$0xff]  }
  0x11   :  { %1866 = vmatpush3.bf16.msra.mxu1 %v2126_v15  ;;  %1827 = vmatprep.subr.bf16.mxu0 %v2127_v16  ;;  %v2156_v43 = vld [vmem:[%s2905_s1 + $0x1b0] sm:$0xff]   ;;  %v2164_v49 = vld [vmem:[%s2905_s1 + $0x1e8] sm:$0xff]   ;;  %v2168_v53 = vld [vmem:[%s2905_s1 + $0x1e0] sm:$0xff]  }
  0x12   :  { %1867 = vmatprep.subr.bf16.mxu1 %v2128_v17  ;;  %v2159_v45 = vld [vmem:[%s2906_s0 + $0x74] ss:$52 sps:$4 sm:$0xff]   ;;  %v2162_v47 = vld [vmem:[%s2906_s0 + $0x70] ss:$52 sps:$4 sm:$0xff]   ;;  %v2176_v59 = vld [vmem:[%s2906_s0 + $0xd8] ss:$52 sps:$4 sm:$0xff]  }
  0x13   :  { %v2165_v50 = vld [vmem:[%s2905_s1 + $0x128] sm:$0xff]   ;;  %v2169_v54 = vld [vmem:[%s2905_s1 + $0x120] sm:$0xff]   ;;  %v2173_v57 = vld [vmem:[%s2906_s0 + $0xdc] ss:$52 sps:$4 sm:$0xff]  }
  0x14   :  { %1828 = vmatpush3.bf16.msra.mxu0 %v2129_v18  ;;  %v2166_v51 = vld [vmem:[%s2905_s1 + $0x1a8] sm:$0xff]   ;;  %v2170_v55 = vld [vmem:[%s2905_s1 + $0x1a0] sm:$0xff]   ;;  %v2178_v61 = vld [vmem:[%s2905_s1 + $0x1d8] sm:$0xff]  }
  0x15   :  { %1868 = vmatpush3.bf16.msra.mxu1 %v2130_v19  ;;  %1829 = vmatprep.subr.bf16.mxu0 %v2131_v20  ;;  %v2171_v56 = vld [vmem:[%s2906_s0 + $0xd4] ss:$52 sps:$4 sm:$0xff]   ;;  %v2175_v58 = vld [vmem:[%s2906_s0 + $0xd0] ss:$52 sps:$4 sm:$0xff]   ;;  %v2179_v62 = vld [vmem:[%s2905_s1 + $0x118] sm:$0xff]  }
  0x16   :  { %1869 = vmatprep.subr.bf16.mxu1 %v2132_v21  ;;  %v2180_v63 = vld [vmem:[%s2905_s1 + $0x198] sm:$0xff]   ;;  %v2181_v0 = vld [vmem:[%s2905_s1 + $0x150] sm:$0xff]   ;;  %v58_v5 = vld [vmem:[%s2906_s0 + $0x140] sm:$0xff] }
  0x17   :  { %v2182_v1 = vld [vmem:[%s2905_s1 + $0x1d0] sm:$0xff]   ;;  %v57_v4 = vld [vmem:[%s2906_s0 + $0x138] sm:$0xff]  ;;  %v1705_v7 = vcombine.high %v58_v5, %v58_v5  ;;  %v1704_v9 = vcombine.low %v58_v5, %v58_v5  ;;  %v2189_v10 = vld [vmem:[%s2905_s1 + $0x148] sm:$0xff]  }
  0x18   :  { %1830 = vmatpush3.bf16.msra.mxu0 %v2133_v22  ;;  %v2183_v2 = vld [vmem:[%s2905_s1 + $0x110] sm:$0xff]   ;;  %v1703_v6 = vcombine.high %v57_v4, %v57_v4  ;;  %v1702_v8 = vcombine.low %v57_v4, %v57_v4  ;;  %v2190_v11 = vld [vmem:[%s2905_s1 + $0x1c8] sm:$0xff]   ;;  %v2193_v14 = vld [vmem:[%s2905_s1 + $0x140] sm:$0xff]  }
  0x19   :  { %1870 = vmatpush3.bf16.msra.mxu1 %v2134_v23  ;;  %1831 = vmatprep.subr.bf16.mxu0 %v2135_v24  ;;  %v2184_v3 = vld [vmem:[%s2905_s1 + $0x190] sm:$0xff]   ;;  %v2191_v12 = vld [vmem:[%s2905_s1 + $0x108] sm:$0xff]   ;;  %v2194_v15 = vld [vmem:[%s2905_s1 + $0x1c0] sm:$0xff]  }
  0x1a   :  { %1871 = vmatprep.subr.bf16.mxu1 %v2136_v25  ;;  %v2192_v13 = vld [vmem:[%s2905_s1 + $0x188] sm:$0xff]   ;;  %v2195_v16 = vld [vmem:[%s2905_s1 + $0x100] sm:$0xff]   ;;  %v2202_v21 = vld [vmem:[%s2906_s0 + $0x1c] ss:$52 sps:$4 sm:$0xff]  }
  0x1b   :  { %v2196_v17 = vld [vmem:[%s2905_s1 + $0x180] sm:$0xff]   ;;  %v2199_v19 = vld [vmem:[%s2906_s0 + $0x14] ss:$52 sps:$4 sm:$0xff]   ;;  %v2200_v20 = vld [vmem:[%s2906_s0 + $0x18] ss:$52 sps:$4 sm:$0xff]  }
  0x1c   :  { %1832 = vmatpush3.bf16.msra.mxu0 %v2137_v26  ;;  %v2197_v18 = vld [vmem:[%s2906_s0 + $0x10] ss:$52 sps:$4 sm:$0xff]   ;;  %v2203_v22 = vld [vmem:[%s2905_s1 + $0x278] sm:$0xff]   ;;  %v2216_v33 = vld [vmem:[%s2906_s0 + $0x80] ss:$52 sps:$4 sm:$0xff]  }
  0x1d   :  { %1872 = vmatpush3.bf16.msra.mxu1 %v2138_v27  ;;  %1833 = vmatprep.subr.bf16.mxu0 %v2139_v28  ;;  %v2204_v23 = vld [vmem:[%s2905_s1 + $0x2f8] sm:$0xff]   ;;  %v2207_v26 = vld [vmem:[%s2905_s1 + $0x270] sm:$0xff]   ;;  %v2218_v35 = vld [vmem:[%s2905_s1 + $0x2e8] sm:$0xff]  }
  0x1e   :  { %1873 = vmatprep.subr.bf16.mxu1 %v2140_v29  ;;  %v2205_v24 = vld [vmem:[%s2905_s1 + $0x238] sm:$0xff]   ;;  %v2208_v27 = vld [vmem:[%s2905_s1 + $0x2f0] sm:$0xff]  }
  0x1f   :  { %v2206_v25 = vld [vmem:[%s2905_s1 + $0x2b8] sm:$0xff]   ;;  %v2209_v28 = vld [vmem:[%s2905_s1 + $0x230] sm:$0xff]  }
  0x20   :  { %1834 = vmatpush3.bf16.msra.mxu0 %v2141_v30  ;;  %v2210_v29 = vld [vmem:[%s2905_s1 + $0x2b0] sm:$0xff]   ;;  %v2253_v5 = vld [vmem:[%s2906_s0 + $0x24] ss:$52 sps:$4 sm:$0xff]  }
  0x21   :  { %1874 = vmatpush3.bf16.msra.mxu1 %v2142_v31  ;;  %1899 = vmatprep.subr.bf16.mxu0 %v2149_v36  ;;  %v2211_v30 = vld [vmem:[%s2906_s0 + $0x7c] ss:$52 sps:$4 sm:$0xff]   ;;  %v2213_v31 = vld [vmem:[%s2906_s0 + $0x84] ss:$52 sps:$4 sm:$0xff]   ;;  %v2219_v36 = vld [vmem:[%s2905_s1 + $0x228] sm:$0xff]  }
  0x22   :  { %1939 = vmatprep.subr.bf16.mxu1 %v2150_v37  ;;  %v2220_v37 = vld [vmem:[%s2905_s1 + $0x2a8] sm:$0xff]   ;;  %v2251_v4 = vld [vmem:[%s2906_s0 + $0x20] ss:$52 sps:$4 sm:$0xff]  }
  0x23   :  { %1180 = vmatmul.mubr.bf16.vlgmr.msra.gmra.mxu0 %v2143_v32  ;;  %v2215_v32 = vld [vmem:[%s2906_s0 + $0x78] ss:$52 sps:$4 sm:$0xff]  }
  0x24   :  { %1244 = vmatmul.mubr.bf16.vlgmr.msra.gmra.mxu1 %v2146_v34  ;;  %1900 = vmatpush3.bf16.msra.mxu0 %v2151_v38  ;;  %v2217_v34 = vld [vmem:[%s2905_s1 + $0x268] sm:$0xff]   ;;  %v2221_v38 = vld [vmem:[%s2905_s1 + $0x260] sm:$0xff]  }
  0x25   :  { %1940 = vmatpush3.bf16.msra.mxu1 %v2152_v39  ;;  %1901 = vmatprep.subr.bf16.mxu0 %v2153_v40  ;;  %v2222_v39 = vld [vmem:[%s2905_s1 + $0x2e0] sm:$0xff]  }
  0x26   :  { %1941 = vmatprep.subr.bf16.mxu1 %v2154_v41  ;;  %1187 = vmatprep.mubr.bf16.mxu0 %v2157_v44  ;;  %v2223_v40 = vld [vmem:[%s2905_s1 + $0x220] sm:$0xff]  }
  0x27   :  { %1251 = vmatprep.mubr.bf16.mxu1 %v2159_v45  ;;  %v2224_v41 = vld [vmem:[%s2905_s1 + $0x2a0] sm:$0xff]   ;;  %v2230_v45 = vld [vmem:[%s2906_s0 + $0xe8] ss:$52 sps:$4 sm:$0xff]  }
  0x28   :  { %1902 = vmatpush3.bf16.msra.mxu0 %v2155_v42  ;;  %v2225_v42 = vld [vmem:[%s2906_s0 + $0xe4] ss:$52 sps:$4 sm:$0xff]   ;;  %v2229_v44 = vld [vmem:[%s2906_s0 + $0xe0] ss:$52 sps:$4 sm:$0xff]  }
  0x29   :  { %1942 = vmatpush3.bf16.msra.mxu1 %v2156_v43  ;;  %1903 = vmatprep.subr.bf16.mxu0 %v2163_v48  ;;  %v2227_v43 = vld [vmem:[%s2906_s0 + $0xec] ss:$52 sps:$4 sm:$0xff]   ;;  %v2233_v48 = vld [vmem:[%s2905_s1 + $0x218] sm:$0xff]  }
  0x2a   :  { %1943 = vmatprep.subr.bf16.mxu1 %v2164_v49  ;;  %v2234_v49 = vld [vmem:[%s2905_s1 + $0x298] sm:$0xff]  }
  0x2b   :  { %1188 = vmatmul.mubr.bf16.gmra.mxu0 %v2161_v46  ;;  %v2231_v46 = vld [vmem:[%s2905_s1 + $0x258] sm:$0xff]  }
  0x2c   :  { %1252 = vmatmul.mubr.bf16.gmra.mxu1 %v2162_v47  ;;  %1904 = vmatpush3.bf16.msra.mxu0 %v2165_v50  ;;  %v2232_v47 = vld [vmem:[%s2905_s1 + $0x2d8] sm:$0xff]   ;;  %v2235_v50 = vld [vmem:[%s2905_s1 + $0x250] sm:$0xff]  }
  0x2d   :  { %1944 = vmatpush3.bf16.msra.mxu1 %v2166_v51  ;;  %1905 = vmatprep.subr.bf16.mxu0 %v2167_v52  ;;  %v2236_v51 = vld [vmem:[%s2905_s1 + $0x2d0] sm:$0xff]  }
  0x2e   :  { %1945 = vmatprep.subr.bf16.mxu1 %v2168_v53  ;;  %1195 = vmatprep.mubr.bf16.mxu0 %v2171_v56  ;;  %v2237_v52 = vld [vmem:[%s2905_s1 + $0x210] sm:$0xff]  }
  0x2f   :  { %1259 = vmatprep.mubr.bf16.mxu1 %v2173_v57  ;;  %v2238_v53 = vld [vmem:[%s2905_s1 + $0x290] sm:$0xff]  }
  0x30   :  { %1906 = vmatpush3.bf16.msra.mxu0 %v2169_v54  ;;  %v59_v54 = vld [vmem:[%s2906_s0 + $0x148] sm:$0xff]  ;;  %v60_v56 = vld [vmem:[%s2906_s0 + $0x150] sm:$0xff] }
  0x31   :  { %1946 = vmatpush3.bf16.msra.mxu1 %v2170_v55  ;;  %1907 = vmatprep.subr.bf16.mxu0 %v2177_v60  ;;  %v1707_v55 = vcombine.high %v59_v54, %v59_v54  ;;  %v1706_v57 = vcombine.low %v59_v54, %v59_v54  ;;  %v2243_v60 = vld [vmem:[%s2905_s1 + $0x248] sm:$0xff]  }
  0x32   :  { %1947 = vmatprep.subr.bf16.mxu1 %v2178_v61  ;;  %v2244_v61 = vld [vmem:[%s2905_s1 + $0x2c8] sm:$0xff]  }
  0x33   :  { %1196 = vmatmul.mubr.bf16.gmra.mxu0 %v2175_v58  ;;  %v1709_v58 = vcombine.high %v60_v56, %v60_v56 }
  0x34   :  { %1260 = vmatmul.mubr.bf16.gmra.mxu1 %v2176_v59  ;;  %1908 = vmatpush3.bf16.msra.mxu0 %v2179_v62  ;;  %v1708_v59 = vcombine.low %v60_v56, %v60_v56  ;;  %v2245_v62 = vld [vmem:[%s2905_s1 + $0x208] sm:$0xff]  }
  0x35   :  { %1948 = vmatpush3.bf16.msra.mxu1 %v2180_v63  ;;  %1909 = vmatprep.subr.bf16.mxu0 %v2181_v0  ;;  %v2246_v63 = vld [vmem:[%s2905_s1 + $0x288] sm:$0xff]   ;;  %v2247_v0 = vld [vmem:[%s2905_s1 + $0x240] sm:$0xff]  }
  0x36   :  { %1949 = vmatprep.subr.bf16.mxu1 %v2182_v1  ;;  %1203 = vmatprep.mubr.bf16.mxu0 %v1703_v6  ;;  %v2248_v1 = vld [vmem:[%s2905_s1 + $0x2c0] sm:$0xff]   ;;  %v2254_v6 = vld [vmem:[%s2906_s0 + $0x28] ss:$52 sps:$4 sm:$0xff]  }
  0x37   :  { %1267 = vmatprep.mubr.bf16.mxu1 %v1705_v7  ;;  %v2256_v7 = vld [vmem:[%s2906_s0 + $0x2c] ss:$52 sps:$4 sm:$0xff]  }
  0x38   :  { %1910 = vmatpush3.bf16.msra.mxu0 %v2183_v2  ;;  %v2249_v2 = vld [vmem:[%s2905_s1 + $0x200] sm:$0xff]  }
  0x39   :  { %1950 = vmatpush3.bf16.msra.mxu1 %v2184_v3  ;;  %1911 = vmatprep.subr.bf16.mxu0 %v2189_v10  ;;  %v2250_v3 = vld [vmem:[%s2905_s1 + $0x280] sm:$0xff]  }
  0x3a   :  { %1951 = vmatprep.subr.bf16.mxu1 %v2190_v11  ;;  %v2259_v10 = vld [vmem:[%s2906_s0 + $0x8c] ss:$52 sps:$4 sm:$0xff]   ;;  %v2261_v11 = vld [vmem:[%s2906_s0 + $0x94] ss:$52 sps:$4 sm:$0xff]  }
  0x3b   :  { %1204 = vmatmul.mubr.bf16.gmra.mxu0 %v1702_v8  ;;  %v2257_v8 = vld [vmem:[%s2905_s1 + $0x338] sm:$0xff]  }
  0x3c   :  { %1268 = vmatmul.mubr.bf16.gmra.mxu1 %v1704_v9  ;;  %1912 = vmatpush3.bf16.msra.mxu0 %v2191_v12  ;;  %v2258_v9 = vld [vmem:[%s2905_s1 + $0x330] sm:$0xff]   ;;  %v2263_v12 = vld [vmem:[%s2906_s0 + $0x88] ss:$52 sps:$4 sm:$0xff]  }
  0x3d   :  { %1952 = vmatpush3.bf16.msra.mxu1 %v2192_v13  ;;  %1913 = vmatprep.subr.bf16.mxu0 %v2193_v14  ;;  %v2265_v13 = vld [vmem:[%s2905_s1 + $0x328] sm:$0xff]   ;;  %v2264_v14 = vld [vmem:[%s2906_s0 + $0x90] ss:$52 sps:$4 sm:$0xff]  }
  0x3e   :  { %1953 = vmatprep.subr.bf16.mxu1 %v2194_v15  ;;  %1307 = vmatprep.mubr.bf16.mxu0 %v2199_v19  ;;  %v2267_v15 = vld [vmem:[%s2906_s0 + $0xf4] ss:$52 sps:$4 sm:$0xff]   ;;  %v61_v19 = vld [vmem:[%s2906_s0 + $0x158] sm:$0xff] }
  0x3f   :  { %1371 = vmatprep.mubr.bf16.mxu1 %v2202_v21  ;;  %v2271_v21 = vld [vmem:[%s2906_s0 + $0xf0] ss:$52 sps:$4 sm:$0xff]  }
  0x40   :  { %1914 = vmatpush3.bf16.msra.mxu0 %v2195_v16  ;;  %v2266_v16 = vld [vmem:[%s2905_s1 + $0x320] sm:$0xff]  }
  0x41   :  { %1954 = vmatpush3.bf16.msra.mxu1 %v2196_v17  ;;  %1979 = vmatprep.subr.bf16.mxu0 %v2203_v22  ;;  %v2269_v17 = vld [vmem:[%s2906_s0 + $0xfc] ss:$52 sps:$4 sm:$0xff]   ;;  %v2272_v22 = vld [vmem:[%s2906_s0 + $0xf8] ss:$52 sps:$4 sm:$0xff]  }
  0x42   :  { %2019 = vmatprep.subr.bf16.mxu1 %v2204_v23  ;;  %v1711_v23 = vcombine.high %v61_v19, %v61_v19 }
  0x43   :  { %1308 = vmatmul.mubr.bf16.vlgmr.msra.gmra.mxu0 %v2197_v18  ;;  %v2273_v18 = vld [vmem:[%s2905_s1 + $0x318] sm:$0xff]  }
  0x44   :  { %1372 = vmatmul.mubr.bf16.vlgmr.msra.gmra.mxu1 %v2200_v20  ;;  %1980 = vmatpush3.bf16.msra.mxu0 %v2205_v24  ;;  %v62_v20 = vld [vmem:[%s2906_s0 + $0x160] sm:$0xff] }
  0x45   :  { %2020 = vmatpush3.bf16.msra.mxu1 %v2206_v25  ;;  %1981 = vmatprep.subr.bf16.mxu0 %v2207_v26  ;;  %v1713_v24 = vcombine.high %v62_v20, %v62_v20  ;;  %v2274_v25 = vld [vmem:[%s2905_s1 + $0x310] sm:$0xff]   ;;  %v2279_v26 = vld [vmem:[%s2905_s1 + $0x308] sm:$0xff]  }
  0x46   :  { %2021 = vmatprep.subr.bf16.mxu1 %v2208_v27  ;;  %1315 = vmatprep.mubr.bf16.mxu0 %v2211_v30  ;;  %v1710_v27 = vcombine.low %v61_v19, %v61_v19  ;;  %v2282_v30 = vld [vmem:[%s2906_s0 + $0x100] ss:$52 sps:$4 sm:$0xff]  }
  0x47   :  { %1379 = vmatprep.mubr.bf16.mxu1 %v2213_v31  ;;  %v2280_v31 = vld [vmem:[%s2905_s1 + $0x300] sm:$0xff]  }
  0x48   :  { %1982 = vmatpush3.bf16.msra.mxu0 %v2209_v28  ;;  %v1712_v28 = vcombine.low %v62_v20, %v62_v20 }
  0x49   :  { %2022 = vmatpush3.bf16.msra.mxu1 %v2210_v29  ;;  %1983 = vmatprep.subr.bf16.mxu0 %v2217_v34  ;;  %v2281_v29 = vld [vmem:[%s2906_s0 + $0x30] ss:$52 sps:$4 sm:$0xff]  }
  0x4a   :  { %2023 = vmatprep.subr.bf16.mxu1 %v2218_v35 }
  0x4b   :  { %1316 = vmatmul.mubr.bf16.gmra.mxu0 %v2215_v32  ;;  %v2283_v32 = vld [vmem:[%s2906_s0 + $0x98] ss:$52 sps:$4 sm:$0xff]  }
  0x4c   :  { %1380 = vmatmul.mubr.bf16.gmra.mxu1 %v2216_v33  ;;  %1984 = vmatpush3.bf16.msra.mxu0 %v2219_v36  ;;  %v2284_v33 = vld [vmem:[%s2906_s0 + $0x168] ss:$0 sps:$4 sm:$0xff]   ;;  %v1662_v36 = vld [vmem:[%s2907_s2] ss:$0 sm:$0xff] }
  0x4d   :  { %2024 = vmatpush3.bf16.msra.mxu1 %v2220_v37  ;;  %1985 = vmatprep.subr.bf16.mxu0 %v2221_v38 }
  0x4e   :  { %2025 = vmatprep.subr.bf16.mxu1 %v2222_v39  ;;  %1323 = vmatprep.mubr.bf16.mxu0 %v2225_v42 }
  0x4f   :  { %1387 = vmatprep.mubr.bf16.mxu1 %v2227_v43 }
  0x50   :  { %1986 = vmatpush3.bf16.msra.mxu0 %v2223_v40 }
  0x51   :  { %2026 = vmatpush3.bf16.msra.mxu1 %v2224_v41  ;;  %1987 = vmatprep.subr.bf16.mxu0 %v2231_v46 }
  0x52   :  { %2027 = vmatprep.subr.bf16.mxu1 %v2232_v47 }
  0x53   :  { %1324 = vmatmul.mubr.bf16.gmra.mxu0 %v2229_v44 }
  0x54   :  { %1388 = vmatmul.mubr.bf16.gmra.mxu1 %v2230_v45  ;;  %1988 = vmatpush3.bf16.msra.mxu0 %v2233_v48 }
  0x55   :  { %2028 = vmatpush3.bf16.msra.mxu1 %v2234_v49  ;;  %1989 = vmatprep.subr.bf16.mxu0 %v2235_v50 }
  0x56   :  { %2029 = vmatprep.subr.bf16.mxu1 %v2236_v51  ;;  %1331 = vmatprep.mubr.bf16.mxu0 %v1707_v55 }
  0x57   :  { %1395 = vmatprep.mubr.bf16.mxu1 %v1709_v58 }
  0x58   :  { %1990 = vmatpush3.bf16.msra.mxu0 %v2237_v52 }
  0x59   :  { %2030 = vmatpush3.bf16.msra.mxu1 %v2238_v53  ;;  %1991 = vmatprep.subr.bf16.mxu0 %v2243_v60 }
  0x5a   :  { %2031 = vmatprep.subr.bf16.mxu1 %v2244_v61 }
  0x5b   :  { %1332 = vmatmul.mubr.bf16.gmra.mxu0 %v1706_v57 }
  0x5c   :  { %1396 = vmatmul.mubr.bf16.gmra.mxu1 %v1708_v59  ;;  %1992 = vmatpush3.bf16.msra.mxu0 %v2245_v62 }
  0x5d   :  { %2032 = vmatpush3.bf16.msra.mxu1 %v2246_v63  ;;  %1993 = vmatprep.subr.bf16.mxu0 %v2247_v0 }
  0x5e   :  { %2033 = vmatprep.subr.bf16.mxu1 %v2248_v1  ;;  %1435 = vmatprep.mubr.bf16.mxu0 %v2253_v5 }
  0x5f   :  { %1499 = vmatprep.mubr.bf16.mxu1 %v2256_v7 }
  0x60   :  { %1994 = vmatpush3.bf16.msra.mxu0 %v2249_v2 }
  0x61   :  { %2034 = vmatpush3.bf16.msra.mxu1 %v2250_v3  ;;  %2071 = vmatprep.subr.bf16.mxu0 %v2257_v8 }
  0x62   :  { %2095 = vmatprep.subr.bf16.mxu1 %v2257_v8 }
  0x63   :  { %1436 = vmatmul.mubr.bf16.vlgmr.msra.gmra.mxu0 %v2251_v4 }
  0x64   :  { %1500 = vmatmul.mubr.bf16.vlgmr.msra.gmra.mxu1 %v2254_v6  ;;  %2072 = vmatpush3.bf16.msra.mxu0 %v2257_v8 }
  0x65   :  { %2103 = vmatpush3.bf16.msra.mxu1 %v2257_v8  ;;  %2073 = vmatprep.subr.bf16.mxu0 %v2258_v9 }
  0x66   :  { %2096 = vmatprep.subr.bf16.mxu1 %v2258_v9  ;;  %1443 = vmatprep.mubr.bf16.mxu0 %v2259_v10 }
  0x67   :  { %1507 = vmatprep.mubr.bf16.mxu1 %v2261_v11 }
  0x68   :  { %2074 = vmatpush3.bf16.msra.mxu0 %v2258_v9 }
  0x69   :  { %2104 = vmatpush3.bf16.msra.mxu1 %v2258_v9  ;;  %2075 = vmatprep.subr.bf16.mxu0 %v2265_v13 }
  0x6a   :  { %2097 = vmatprep.subr.bf16.mxu1 %v2265_v13 }
  0x6b   :  { %1444 = vmatmul.mubr.bf16.gmra.mxu0 %v2263_v12 }
  0x6c   :  { %1508 = vmatmul.mubr.bf16.gmra.mxu1 %v2264_v14  ;;  %1451 = vmatprep.mubr.bf16.mxu0 %v2267_v15 }
  0x6d   :  { %2076 = vmatpush3.bf16.msra.mxu0 %v2265_v13  ;;  %1515 = vmatprep.mubr.bf16.mxu1 %v2269_v17 }
  0x6e   :  { %2105 = vmatpush3.bf16.msra.mxu1 %v2265_v13  ;;  %2077 = vmatprep.subr.bf16.mxu0 %v2266_v16 }
  0x6f   :  { %2098 = vmatprep.subr.bf16.mxu1 %v2266_v16 }
  0x71   :  { %2078 = vmatpush3.bf16.msra.mxu0 %v2266_v16 }
  0x72   :  { %2106 = vmatpush3.bf16.msra.mxu1 %v2266_v16  ;;  %2079 = vmatprep.subr.bf16.mxu0 %v2273_v18 }
  0x73   :  { %1452 = vmatmul.mubr.bf16.gmra.mxu0 %v2271_v21  ;;  %2099 = vmatprep.subr.bf16.mxu1 %v2273_v18 }
  0x74   :  { %1516 = vmatmul.mubr.bf16.gmra.mxu1 %v2272_v22  ;;  %1459 = vmatprep.mubr.bf16.mxu0 %v1711_v23 }
  0x75   :  { %2080 = vmatpush3.bf16.msra.mxu0 %v2273_v18  ;;  %1523 = vmatprep.mubr.bf16.mxu1 %v1713_v24 }
  0x76   :  { %2107 = vmatpush3.bf16.msra.mxu1 %v2273_v18  ;;  %2081 = vmatprep.subr.bf16.mxu0 %v2274_v25 }
  0x77   :  { %2100 = vmatprep.subr.bf16.mxu1 %v2274_v25 }
  0x79   :  { %2082 = vmatpush3.bf16.msra.mxu0 %v2274_v25 }
  0x7a   :  { %2108 = vmatpush3.bf16.msra.mxu1 %v2274_v25  ;;  %2083 = vmatprep.subr.bf16.mxu0 %v2279_v26 }
  0x7b   :  { %1460 = vmatmul.mubr.bf16.gmra.mxu0 %v1710_v27  ;;  %2101 = vmatprep.subr.bf16.mxu1 %v2279_v26 }
  0x7c   :  { %1524 = vmatmul.mubr.bf16.gmra.mxu1 %v1712_v28  ;;  %2087 = vmatprep.mubr.bf16.mxu0 %v2281_v29 }
  0x7d   :  { %2084 = vmatpush3.bf16.msra.mxu0 %v2279_v26  ;;  %2091 = vmatprep.mubr.bf16.mxu1 %v2282_v30 }
  0x7e   :  { %2109 = vmatpush3.bf16.msra.mxu1 %v2279_v26  ;;  %2085 = vmatprep.subr.bf16.mxu0 %v2280_v31 }
  0x7f   :  { %2102 = vmatprep.subr.bf16.mxu1 %v2280_v31 }
  0x81   :  { %2086 = vmatpush3.bf16.msra.mxu0 %v2280_v31 }
  0x82   :  { %2110 = vmatpush3.bf16.msra.mxu1 %v2280_v31 }
  0x84   :  { %2088 = vmatmul.mubr.bf16.vlgmr.msra.gmra.mxu0 %v2283_v32 }
  0x85   :  { %2092 = vmatmul.mubr.bf16.vlgmr.msra.gmra.mxu1 %v2284_v33 }
  0xe3   :  { %v1835_v34 = vpop.f32.mrf.mxu0 }
  0xe4   :  { %v1875_v35 = vpop.f32.mrf.mxu1 }
  0xe5   :  { %v1836_v37 = vpop.f32.mrf.mxu0 }
  0xe6   :  { %v1837_v38 = vadd.f32 %v1836_v37, %v1835_v34  ;;  %v1876_v39 = vpop.f32.mrf.mxu1 }
  0xe7   :  { %v1877_v40 = vadd.f32 %v1876_v39, %v1875_v35  ;;  %v1838_v41 = vpop.f32.mrf.mxu0 }
  0xe8   :  { %v1182_v42 = vadd.f32 %v1837_v38, %v1662_v36  ;;  %v1878_v43 = vpop.f32.mrf.mxu1 }
  0xe9   :  { %v1839_v44 = vpop.f32.mrf.mxu0 }
  0xea   :  { %v2786_v45 = vadd.f32 %v1877_v40, %v1182_v42  ;;  %v1840_v46 = vadd.f32 %v1839_v44, %v1838_v41  ;;  %v1879_v47 = vpop.f32.mrf.mxu1 }
  0xeb   :  { %v1880_v48 = vadd.f32 %v1879_v47, %v1878_v43  ;;  %v1841_v50 = vpop.f32.mrf.mxu0 }
  0xec   :  { %v1185_v49 = vadd.f32 %v1840_v46, %v1662_v36  ;;  %v1881_v52 = vpop.f32.mrf.mxu1 }
  0xed   :  { %v1842_v53 = vpop.f32.mrf.mxu0 }
  0xee   :  { %v2788_v51 = vadd.f32 %v1880_v48, %v1185_v49  ;;  %v1843_v54 = vadd.f32 %v1842_v53, %v1841_v50  ;;  %v1882_v55 = vpop.f32.mrf.mxu1 }
  0xef   :  { %v1883_v56 = vadd.f32 %v1882_v55, %v1881_v52  ;;  %v1844_v57 = vpop.f32.mrf.mxu0 }
  0xf0   :  { %v1190_v58 = vadd.f32 %v1843_v54, %v1662_v36  ;;  %v1884_v59 = vpop.f32.mrf.mxu1 }
  0xf1   :  { %v1845_v60 = vpop.f32.mrf.mxu0 }
  0xf2   :  { %v2790_v61 = vadd.f32 %v1883_v56, %v1190_v58  ;;  %v1846_v62 = vadd.f32 %v1845_v60, %v1844_v57  ;;  %v1885_v63 = vpop.f32.mrf.mxu1 }
  0xf3   :  { %v1886_v0 = vadd.f32 %v1885_v63, %v1884_v59  ;;  %v1847_v3 = vpop.f32.mrf.mxu0 }
  0xf4   :  { %v1193_v1 = vadd.f32 %v1846_v62, %v1662_v36  ;;  %v1887_v4 = vpop.f32.mrf.mxu1 }
  0xf5   :  { %v1848_v5 = vpop.f32.mrf.mxu0 }
  0xf6   :  { %v2792_v2 = vadd.f32 %v1886_v0, %v1193_v1  ;;  %v1849_v6 = vadd.f32 %v1848_v5, %v1847_v3  ;;  %v1888_v7 = vpop.f32.mrf.mxu1 }
  0xf7   :  { %v1889_v8 = vadd.f32 %v1888_v7, %v1887_v4  ;;  %v1850_v9 = vpop.f32.mrf.mxu0 }
  0xf8   :  { %v1198_v10 = vadd.f32 %v1849_v6, %v1662_v36  ;;  %v1890_v11 = vpop.f32.mrf.mxu1 }
  0xf9   :  { %v1851_v12 = vpop.f32.mrf.mxu0 }
  0xfa   :  { %v2794_v13 = vadd.f32 %v1889_v8, %v1198_v10  ;;  %v1852_v14 = vadd.f32 %v1851_v12, %v1850_v9  ;;  %v1891_v15 = vpop.f32.mrf.mxu1 }
  0xfb   :  { %v1892_v16 = vadd.f32 %v1891_v15, %v1890_v11  ;;  %v1853_v19 = vpop.f32.mrf.mxu0 }
  0xfc   :  { %v1201_v17 = vadd.f32 %v1852_v14, %v1662_v36  ;;  %v1893_v20 = vpop.f32.mrf.mxu1 }
  0xfd   :  { %v1854_v21 = vpop.f32.mrf.mxu0 }
  0xfe   :  { %v2796_v18 = vadd.f32 %v1892_v16, %v1201_v17  ;;  %v1894_v22 = vpop.f32.mrf.mxu1  ;;  %v1855_v23 = vadd.f32 %v1854_v21, %v1853_v19 }
  0xff   :  { %v1895_v24 = vadd.f32 %v1894_v22, %v1893_v20  ;;  %v1856_v25 = vpop.f32.mrf.mxu0 }
 0x100   :  { %v1896_v26 = vpop.f32.mrf.mxu1  ;;  %v1206_v27 = vadd.f32 %v1855_v23, %v1662_v36 }
 0x101   :  { %v1857_v28 = vpop.f32.mrf.mxu0 }
 0x102   :  { %v1897_v29 = vpop.f32.mrf.mxu1  ;;  %v2798_v30 = vadd.f32 %v1895_v24, %v1206_v27 }
 0x103   :  { %v1915_v31 = vpop.f32.mrf.mxu0 }
 0x104   :  { %v1955_v32 = vpop.f32.mrf.mxu1 }
 0x105   :  { %v1916_v33 = vpop.f32.mrf.mxu0 }
 0x106   :  { %v1956_v34 = vpop.f32.mrf.mxu1  ;;  %v1917_v22 = vadd.f32 %v1916_v33, %v1915_v31 }
 0x107   :  { %v1918_v35 = vpop.f32.mrf.mxu0 }
 0x108   :  { %v2800_v37 = vpop.f32.mrf.mxu1  ;;  %v1310_v29 = vadd.f32 %v1917_v22, %v2786_v45 }
 0x109   :  { %v1919_v38 = vpop.f32.mrf.mxu0 }
 0x10a   :  { %v2802_v39 = vpop.f32.mrf.mxu1  ;;  %v1920_v31 = vadd.f32 %v1919_v38, %v1918_v35 }
 0x10b   :  { %v1921_v40 = vpop.f32.mrf.mxu0 }
 0x10c   :  { %v1961_v41 = vpop.f32.mrf.mxu1 }
 0x10d   :  { %v1922_v42 = vpop.f32.mrf.mxu0 }
 0x10e   :  { %v1962_v43 = vpop.f32.mrf.mxu1  ;;  %v1923_v24 = vadd.f32 %v1922_v42, %v1921_v40 }
 0x10f   :  { %v1924_v44 = vpop.f32.mrf.mxu0  ;;  %v1963_v33 = vadd.f32 %v1962_v43, %v1961_v41  ;;  %v1313_v43 = vadd.f32 %v1920_v31, %v2788_v51 }
 0x110   :  { %v2804_v36 = vpop.f32.mrf.mxu1 }
 0x111   :  { %v1925_v46 = vpop.f32.mrf.mxu0 }
 0x112   :  { %v2806_v47 = vpop.f32.mrf.mxu1 }
 0x113   :  { %v1927_v48 = vpop.f32.mrf.mxu0 }
 0x114   :  { %v1967_v49 = vpop.f32.mrf.mxu1 }
 0x115   :  { %v1928_v50 = vpop.f32.mrf.mxu0 }
 0x116   :  { %v1968_v52 = vpop.f32.mrf.mxu1 }
 0x117   :  { %v1930_v53 = vpop.f32.mrf.mxu0 }
 0x118   :  { %v2808_v54 = vpop.f32.mrf.mxu1 }
 0x119   :  { %v1931_v55 = vpop.f32.mrf.mxu0 }
 0x11a   :  { %v2810_v56 = vpop.f32.mrf.mxu1 }
 0x11b   :  { %v1933_v57 = vpop.f32.mrf.mxu0 }
 0x11c   :  { %v1973_v58 = vpop.f32.mrf.mxu1 }
 0x11d   :  { %v1934_v59 = vpop.f32.mrf.mxu0 }
 0x11e   :  { %v1974_v60 = vpop.f32.mrf.mxu1  ;;  %v1935_v26 = vadd.f32 %v1934_v59, %v1933_v57 }
 0x11f   :  { %v1936_v62 = vpop.f32.mrf.mxu0  ;;  %v1975_v45 = vadd.f32 %v1974_v60, %v1973_v58 }
 0x120   :  { %v1976_v63 = vpop.f32.mrf.mxu1  ;;  %v1929_v62 = vadd.f32 %v1928_v50, %v1927_v48  ;;  %v1960_v50 = vadd.f32 %v2802_v39, %v2800_v37 }
 0x121   :  { %v1937_v0 = vpop.f32.mrf.mxu0 }
 0x122   :  { %v1977_v1 = vpop.f32.mrf.mxu1  ;;  %v1318_v0 = vadd.f32 %v1923_v24, %v2790_v61  ;;  %v1326_v59 = vadd.f32 %v1929_v62, %v2794_v13  ;;  %v1966_v13 = vadd.f32 %v2806_v47, %v2804_v36 }
 0x123   :  { %v1995_v3 = vpop.f32.mrf.mxu0  ;;  %v1926_v1 = vadd.f32 %v1925_v46, %v1924_v44 }
 0x124   :  { %v2812_v4 = vpop.f32.mrf.mxu1  ;;  %v1382_v61 = vadd.f32 %v1963_v33, %v1318_v0 }
 0x125   :  { %v1996_v5 = vpop.f32.mrf.mxu0  ;;  %v1321_v44 = vadd.f32 %v1926_v1, %v2792_v2 }
 0x126   :  { %v2814_v6 = vpop.f32.mrf.mxu1 }
 0x127   :  { %2909 = vst [vmem:[#allocation2_spill] sm:$0xff] %v2814_v6  ;;  %v2816_v7 = vpop.f32.mrf.mxu0  ;;  %v1932_v6 = vadd.f32 %v1931_v55, %v1930_v53 }
 0x128   :  { %v2818_v8 = vpop.f32.mrf.mxu1 }
 0x129   :  { %2910 = vst [vmem:[#allocation3_spill] sm:$0xff] %v2818_v8  ;;  %v1999_v9 = vpop.f32.mrf.mxu0  ;;  %v1957_v8 = vadd.f32 %v1956_v34, %v1955_v32  ;;  %v1997_v32 = vadd.f32 %v1996_v5, %v1995_v3  ;;  %v1329_v37 = vadd.f32 %v1932_v6, %v2796_v18  ;;  %v1385_v5 = vadd.f32 %v1966_v13, %v1321_v44 }
 0x12a   :  { %v2820_v10 = vpop.f32.mrf.mxu1  ;;  %v2000_v51 = vadd.f32 %v1999_v9, %v2816_v7 }
 0x12b   :  { %2911 = vst [vmem:[#allocation4_spill] sm:$0xff] %v2820_v10  ;;  %v2001_v11 = vpop.f32.mrf.mxu0  ;;  %v1374_v57 = vadd.f32 %v1957_v8, %v1310_v29 }
 0x12c   :  { %v2041_v12 = vpop.f32.mrf.mxu1 }
 0x12d   :  { %v2002_v14 = vpop.f32.mrf.mxu0 }
 0x12e   :  { %v2042_v15 = vpop.f32.mrf.mxu1  ;;  %v2003_v40 = vadd.f32 %v2002_v14, %v2001_v11 }
 0x12f   :  { %v2004_v16 = vpop.f32.mrf.mxu0  ;;  %v2043_v8 = vadd.f32 %v2042_v15, %v2041_v12 }
 0x130   :  { %v2822_v17 = vpop.f32.mrf.mxu1  ;;  %v1446_v53 = vadd.f32 %v2003_v40, %v1382_v61 }
 0x131   :  { %2912 = vst [vmem:[#allocation5_spill] sm:$0xff] %v2822_v17  ;;  %v2005_v19 = vpop.f32.mrf.mxu0 }
 0x132   :  { %v2824_v20 = vpop.f32.mrf.mxu1  ;;  %v2006_v55 = vadd.f32 %v2005_v19, %v2004_v16  ;;  %v2914_v19 = vld [vmem:[#allocation2_spill] sm:$0xff]  ;;  %v1510_v6 = vadd.f32 %v2043_v8, %v1446_v53  ;;  %v2918_v31 = vld [vmem:[#allocation4_spill] sm:$0xff] }
 0x133   :  { %2913 = vst [vmem:[#allocation6_spill] sm:$0xff] %v2824_v20  ;;  %v2007_v21 = vpop.f32.mrf.mxu0  ;;  %v1334_v20 = vadd.f32 %v1935_v26, %v2798_v30  ;;  %v1969_v30 = vadd.f32 %v1968_v52, %v1967_v49  ;;  %v1972_v49 = vadd.f32 %v2810_v56, %v2808_v54  ;;  %v1438_v52 = vadd.f32 %v1997_v32, %v1374_v57 }
 0x134   :  { %v2047_v23 = vpop.f32.mrf.mxu1  ;;  %v1449_v18 = vadd.f32 %v2006_v55, %v1385_v5 }
 0x135   :  { %v2008_v25 = vpop.f32.mrf.mxu0  ;;  %v1398_v46 = vadd.f32 %v1975_v45, %v1334_v20  ;;  %v1390_v60 = vadd.f32 %v1969_v30, %v1326_v59  ;;  %v2037_v20 = vadd.f32 %v2914_v19, %v2812_v4  ;;  %v1393_v22 = vadd.f32 %v1972_v49, %v1329_v37 }
 0x136   :  { %v2048_v27 = vpop.f32.mrf.mxu1  ;;  %v2009_v35 = vadd.f32 %v2008_v25, %v2007_v21  ;;  %v1377_v21 = vadd.f32 %v1960_v50, %v1313_v43 }
 0x137   :  { %v2010_v28 = vpop.f32.mrf.mxu0  ;;  %v2049_v24 = vadd.f32 %v2048_v27, %v2047_v23  ;;  %v1502_v7 = vadd.f32 %v2037_v20, %v1438_v52  ;;  %v2917_v27 = vld [vmem:[#allocation3_spill] sm:$0xff] }
 0x138   :  { %v2827_v63 = vpop.f32.mrf.mxu1  ;;  %v1454_v14 = vadd.f32 %v2009_v35, %v1390_v60  ;;  %v2915_v26 = vld [vmem:[#allocation5_spill] sm:$0xff]  ;;  %v1441_v9 = vadd.f32 %v2000_v51, %v1377_v21  ;;  %v2040_v33 = vadd.f32 %v2918_v31, %v2917_v27 }
 0x139   :  { %v2011_v10 = vpop.f32.mrf.mxu0 }
 0x13a   :  { %v2051_v17 = vpop.f32.mrf.mxu1  ;;  %v2012_v36 = vadd.f32 %v2011_v10, %v2010_v28  ;;  %v2916_v54 = vld [vmem:[#allocation6_spill] sm:$0xff]  ;;  %v1518_v62 = vadd.f32 %v2049_v24, %v1454_v14 }
 0x13b   :  { %v2013_v42 = vpop.f32.mrf.mxu0  ;;  %v2046_v56 = vadd.f32 %v2916_v54, %v2915_v26  ;;  %v2052_v40 = vadd.f32 %v2051_v17, %v2827_v63 }
 0x13c   :  { %v2053_v48 = vpop.f32.mrf.mxu1  ;;  %v1457_v10 = vadd.f32 %v2012_v36, %v1393_v22 }
 0x13d   :  { %v2014_v34 = vpop.f32.mrf.mxu0  ;;  %v1513_v23 = vadd.f32 %v2046_v56, %v1449_v18 }
 0x13e   :  { %v2015_v38 = vadd.f32 %v2014_v34, %v2013_v42  ;;  %v2054_v41 = vpop.f32.mrf.mxu1  ;;  %v1505_v34 = vadd.f32 %v2040_v33, %v1441_v9 }
 0x13f   :  { %v2016_v58 = vpop.f32.mrf.mxu0  ;;  %v2055_v2 = vadd.f32 %v2054_v41, %v2053_v48 }
 0x140   :  { %v1462_v39 = vadd.f32 %v2015_v38, %v1398_v46  ;;  %v2056_v3 = vpop.f32.mrf.mxu1  ;;  %v1521_v46 = vadd.f32 %v2052_v40, %v1457_v10 }
 0x141   :  { %v2017_v11 = vpop.f32.mrf.mxu0 }
 0x142   :  { %v2057_v47 = vpop.f32.mrf.mxu1  ;;  %v1526_v16 = vadd.f32 %v2055_v2, %v1462_v39 }
 0x144   :  { %v2089_v25 = vpop.f32.mrf.mxu0 }
 0x145   :  { %v2846_v12 = vadd.f32 %v2089_v25, %v1510_v6  ;;  %v2093_v15 = vpop.f32.mrf.mxu1 }
 0x146   :  { %v2848_v28 = vadd.f32 %v2093_v15, %v1526_v16  ;;  %v1565_v29 = vpop.f32.mrf.mxu0 }
 0x147   :  { %v1604_v4 = vmin.f32 %v2846_v12, 20.0  ;;  %v2851_v0 = vadd.f32 %v1565_v29, %v1502_v7  ;;  %v1581_v1 = vpop.f32.mrf.mxu1  ;;  %vm1597_vm0 = vcmp.gt.f32.partialorder %v2846_v12, 20.0 }
 0x148   :  { %v1608_v42 = vmin.f32 %v2848_v28, 20.0  ;;  %v2857_v57 = vadd.f32 %v1581_v1, %v1518_v62  ;;  %v2090_v59 = vpop.f32.mrf.mxu0  ;;  %vm1601_vm1 = vcmp.gt.f32.partialorder %v2848_v28, 20.0 }
 0x149   :  { %v1613_v45 = vmul.f32 1.442695, %v1604_v4  ;;  %v1602_v48 = vmin.f32 %v2851_v0, 20.0  ;;  %v2860_v50 = vadd.f32 %v2090_v59, %v1513_v23  ;;  %v2094_v61 = vpop.f32.mrf.mxu1  ;;  %vm1595_vm2 = vcmp.gt.f32.partialorder %v2851_v0, 20.0 }
 0x14a   :  { %v1621_v44 = vmul.f32 1.442695, %v1608_v42  ;;  %v1606_v32 = vmin.f32 %v2857_v57, 20.0  ;;  %v1568_v30 = vpop.f32.mrf.mxu0  ;;  %vm1599_vm3 = vcmp.gt.f32.partialorder %v2857_v57, 20.0 }
 0x14b   :  { %2285 = vpow2.f32 %v1613_v45  ;;  %v1609_v35 = vmul.f32 1.442695, %v1602_v48  ;;  %v1605_v17 = vmin.f32 %v2860_v50, 20.0  ;;  %v1584_v63 = vpop.f32.mrf.mxu1  ;;  %v2864_v41 = vadd.f32 %v1568_v30, %v1505_v34 }
 0x14c   :  { %2287 = vpow2.f32 %v1621_v44  ;;  %v1617_v38 = vmul.f32 1.442695, %v1606_v32  ;;  %v2866_v43 = vadd.f32 %v1584_v63, %v1521_v46  ;;  %vm1598_vm4 = vcmp.gt.f32.partialorder %v2860_v50, 20.0 }
 0x14d   :  { %2289 = vpow2.f32 %v1609_v35  ;;  %v1615_v13 = vmul.f32 1.442695, %v1605_v17  ;;  %v1603_v53 = vmin.f32 %v2864_v41, 20.0  ;;  %vm1596_vm5 = vcmp.gt.f32.partialorder %v2864_v41, 20.0 }
 0x14e   :  { %2291 = vpow2.f32 %v1617_v38  ;;  %v1607_v55 = vmin.f32 %v2866_v43, 20.0  ;;  %vm1600_vm6 = vcmp.gt.f32.partialorder %v2866_v43, 20.0 }
 0x14f   :  { %2293 = vpow2.f32 %v1615_v13  ;;  %v1611_v58 = vmul.f32 1.442695, %v1603_v53 }
 0x150   :  { %v1619_v60 = vmul.f32 1.442695, %v1607_v55 }
 0x151   :  { %2295 = vpow2.f32 %v1611_v58 }
 0x152   :  { %2297 = vpow2.f32 %v1619_v60 }
 0x158   :  { %v2286_v37 = vpop.eup %2285 }
 0x159   :  { %v2288_v39 = vpop.eup %2287  ;;  %v1625_v2 = vadd.f32 1.0, %v2286_v37 }
 0x15a   :  { %v2290_v3 = vpop.eup %2289  ;;  %v1629_v5 = vadd.f32 1.0, %v2288_v39 }
 0x15b   :  { %v2292_v49 = vpop.eup %2291  ;;  %2299 = vlog2.f32 %v1625_v2  ;;  %v1623_v52 = vadd.f32 1.0, %v2290_v3 }
 0x15c   :  { %v2294_v8 = vpop.eup %2293  ;;  %2301 = vlog2.f32 %v1629_v5  ;;  %v1627_v11 = vadd.f32 1.0, %v2292_v49 }
 0x15d   :  { %2303 = vlog2.f32 %v1623_v52  ;;  %v1626_v51 = vadd.f32 1.0, %v2294_v8 }
 0x15e   :  { %2305 = vlog2.f32 %v1627_v11  ;;  %v2296_v14 = vpop.eup %2295 }
 0x15f   :  { %2307 = vlog2.f32 %v1626_v51  ;;  %v2298_v36 = vpop.eup %2297  ;;  %v1624_v47 = vadd.f32 1.0, %v2296_v14 }
 0x160   :  { %v1628_v16 = vadd.f32 1.0, %v2298_v36 }
 0x161   :  { %2309 = vlog2.f32 %v1624_v47 }
 0x162   :  { %2311 = vlog2.f32 %v1628_v16 }
 0x168   :  { %v2300_v19 = vpop.eup %2299 }
 0x169   :  { %v2302_v20 = vpop.eup %2301  ;;  %v1635_v18 = vmul.f32 0.6931472, %v2300_v19 }
 0x16a   :  { %v2304_v6 = vpop.eup %2303  ;;  %v1643_v21 = vmul.f32 0.6931472, %v2302_v20 }
 0x16b   :  { %v2306_v22 = vpop.eup %2305  ;;  %v1646_v24 = vsel %vm1597_vm0, %v2846_v12, %v1635_v18  ;;  %v1631_v25 = vmul.f32 0.6931472, %v2304_v6 }
 0x16c   :  { %v2308_v26 = vpop.eup %2307  ;;  %1653 = vst [vmem:[%s2908_s3 + $0x10] sm:$0xff] %v1646_v24  ;;  %v1650_v54 = vsel %vm1601_vm1, %v2848_v28, %v1643_v21  ;;  %v1639_v56 = vmul.f32 0.6931472, %v2306_v22 }
 0x16d   :  { %1657 = vst [vmem:[%s2908_s3 + $0x30] sm:$0xff] %v1650_v54  ;;  %v1644_v15 = vsel %vm1595_vm2, %v2851_v0, %v1631_v25  ;;  %v1637_v12 = vmul.f32 0.6931472, %v2308_v26 }
 0x16e   :  { %1651 = vst [vmem:[%s2908_s3] sm:$0xff] %v1644_v15  ;;  %v1648_v7 = vsel %vm1599_vm3, %v2857_v57, %v1639_v56  ;;  %v2310_v9 = vpop.eup %2309 }
 0x16f   :  { %1655 = vst [vmem:[%s2908_s3 + $0x20] sm:$0xff] %v1648_v7  ;;  %v1647_v10 = vsel %vm1598_vm4, %v2860_v50, %v1637_v12  ;;  %v2312_v28 = vpop.eup %2311  ;;  %v1633_v29 = vmul.f32 0.6931472, %v2310_v9 }
 0x170   :  { %1654 = vst [vmem:[%s2908_s3 + $0x18] sm:$0xff] %v1647_v10  ;;  %v1641_v62 = vmul.f32 0.6931472, %v2312_v28 }
 0x171   :  { %v1645_v4 = vsel %vm1596_vm5, %v2864_v41, %v1633_v29 }
 0x172   :  { %1652 = vst [vmem:[%s2908_s3 + $0x8] sm:$0xff] %v1645_v4  ;;  %v1649_v0 = vsel %vm1600_vm6, %v2866_v43, %v1641_v62 }
 0x173   :  { %1656 = vst [vmem:[%s2908_s3 + $0x28] sm:$0xff] %v1649_v0 }

// kernel: f4conv3fc_forward.7
= control target key start
LH: loop header
LB: loop body
LE: loop exit
PB: predicated region body
PF: predicated region fallthrough
CT: control target
= control target key end

     0   :  { %s10442_s1 = inlined_call_operand.vmem [shape: bf16[512,1024], index: 1, kind: input, shape index: {}]   ;;  %s10443_s0 = inlined_call_operand.vmem [shape: bf16[8,512], index: 0, kind: input, shape index: {}]   ;;  %s10444_s3 = inlined_call_operand.vmem [shape: bf16[1024,1024], index: 3, kind: input, shape index: {}]   ;;  %s10445_s2 = inlined_call_operand.vmem [shape: f32[1,1024], index: 2, kind: input, shape index: {}]   ;;  %s10446_s4 = inlined_call_operand.vmem [shape: f32[1,1024], index: 4, kind: input, shape index: {}]   ;;  %s10447_s5 = inlined_call_operand.vmem [shape: bf16[1024,128], index: 5, kind: input, shape index: {}]   ;;  %s10448_s6 = inlined_call_operand.vmem [shape: f32[1,128], index: 6, kind: input, shape index: {}]   ;;  %s10449_s7 = inlined_call_operand.vmem [shape: f32[8,128], index: 7, kind: output, shape index: {}]  }
   0x1   :  { %v85_v0 = vld [vmem:[%s10442_s1 + $0x1c0] sm:$0xff]  ;;  %v7739_v54 = vld [vmem:[%s10443_s0 + $0x8] sm:$0xff] }
   0x2   :  { %v89_v1 = vld [vmem:[%s10442_s1 + $0x1e0] sm:$0xff]  ;;  %v7753_v59 = vcombine.high %v7739_v54, %v7739_v54 }
   0x3   :  { %v213_v2 = vld [vmem:[%s10442_s1 + $0x5c0] sm:$0xff]  ;;  %v6608_v3 = vcombine.high %v85_v0, %v89_v1  ;;  %v6607_v5 = vcombine.low %v85_v0, %v89_v1 }
   0x4   :  { %v217_v4 = vld [vmem:[%s10442_s1 + $0x5e0] sm:$0xff]  ;;  %1694 = vmatprep.mubr.bf16.mxu1 %v7753_v59 }
   0x5   :  { %v77_v6 = vld [vmem:[%s10442_s1 + $0x180] sm:$0xff]  ;;  %v6736_v8 = vcombine.high %v213_v2, %v217_v4  ;;  %v6735_v9 = vcombine.low %v213_v2, %v217_v4  ;;  %1621 = vmatprep.subr.bf16.mxu0 %v6608_v3 }
   0x6   :  { %v81_v7 = vld [vmem:[%s10442_s1 + $0x1a0] sm:$0xff]  ;;  %1622 = vmatpush1.bf16.msra.mxu0 %v6607_v5 }
   0x7   :  { %v6600_v10 = vcombine.high %v77_v6, %v81_v7  ;;  %v205_v11 = vld [vmem:[%s10442_s1 + $0x580] sm:$0xff]  ;;  %1662 = vmatprep.subr.bf16.mxu1 %v6736_v8  ;;  %v6599_v18 = vcombine.low %v77_v6, %v81_v7 }
   0x8   :  { %v209_v12 = vld [vmem:[%s10442_s1 + $0x5a0] sm:$0xff]  ;;  %1663 = vmatpush1.bf16.msra.mxu1 %v6735_v9 }
   0x9   :  { %v69_v13 = vld [vmem:[%s10442_s1 + $0x140] sm:$0xff]  ;;  %v6728_v14 = vcombine.high %v205_v11, %v209_v12  ;;  %1623 = vmatprep.subr.bf16.mxu0 %v6600_v10  ;;  %v6727_v19 = vcombine.low %v205_v11, %v209_v12 }
   0xa   :  { %v73_v15 = vld [vmem:[%s10442_s1 + $0x160] sm:$0xff]  ;;  %1624 = vmatpush1.bf16.msra.mxu0 %v6599_v18 }
   0xb   :  { %v197_v16 = vld [vmem:[%s10442_s1 + $0x540] sm:$0xff]  ;;  %v6592_v20 = vcombine.high %v69_v13, %v73_v15  ;;  %1664 = vmatprep.subr.bf16.mxu1 %v6728_v14  ;;  %v6591_v26 = vcombine.low %v69_v13, %v73_v15 }
   0xc   :  { %v201_v17 = vld [vmem:[%s10442_s1 + $0x560] sm:$0xff]  ;;  %1665 = vmatpush1.bf16.msra.mxu1 %v6727_v19 }
   0xd   :  { %v6720_v21 = vcombine.high %v197_v16, %v201_v17  ;;  %v61_v22 = vld [vmem:[%s10442_s1 + $0x100] sm:$0xff]  ;;  %1625 = vmatprep.subr.bf16.mxu0 %v6592_v20  ;;  %v6719_v27 = vcombine.low %v197_v16, %v201_v17 }
   0xe   :  { %v65_v23 = vld [vmem:[%s10442_s1 + $0x120] sm:$0xff]  ;;  %1626 = vmatpush1.bf16.msra.mxu0 %v6591_v26 }
   0xf   :  { %v189_v24 = vld [vmem:[%s10442_s1 + $0x500] sm:$0xff]  ;;  %v6584_v28 = vcombine.high %v61_v22, %v65_v23  ;;  %1666 = vmatprep.subr.bf16.mxu1 %v6720_v21  ;;  %v6583_v34 = vcombine.low %v61_v22, %v65_v23 }
  0x10   :  { %v193_v25 = vld [vmem:[%s10442_s1 + $0x520] sm:$0xff]  ;;  %1667 = vmatpush1.bf16.msra.mxu1 %v6719_v27 }
  0x11   :  { %v6712_v29 = vcombine.high %v189_v24, %v193_v25  ;;  %v53_v30 = vld [vmem:[%s10442_s1 + $0xc0] sm:$0xff]  ;;  %1627 = vmatprep.subr.bf16.mxu0 %v6584_v28  ;;  %v6711_v35 = vcombine.low %v189_v24, %v193_v25 }
  0x12   :  { %v57_v31 = vld [vmem:[%s10442_s1 + $0xe0] sm:$0xff]  ;;  %1628 = vmatpush1.bf16.msra.mxu0 %v6583_v34 }
  0x13   :  { %v181_v32 = vld [vmem:[%s10442_s1 + $0x4c0] sm:$0xff]  ;;  %v6576_v36 = vcombine.high %v53_v30, %v57_v31  ;;  %1668 = vmatprep.subr.bf16.mxu1 %v6712_v29  ;;  %v6575_v42 = vcombine.low %v53_v30, %v57_v31 }
  0x14   :  { %v185_v33 = vld [vmem:[%s10442_s1 + $0x4e0] sm:$0xff]  ;;  %1669 = vmatpush1.bf16.msra.mxu1 %v6711_v35 }
  0x15   :  { %v6704_v37 = vcombine.high %v181_v32, %v185_v33  ;;  %v45_v38 = vld [vmem:[%s10442_s1 + $0x80] sm:$0xff]  ;;  %1629 = vmatprep.subr.bf16.mxu0 %v6576_v36  ;;  %v6703_v43 = vcombine.low %v181_v32, %v185_v33 }
  0x16   :  { %v49_v39 = vld [vmem:[%s10442_s1 + $0xa0] sm:$0xff]  ;;  %1630 = vmatpush1.bf16.msra.mxu0 %v6575_v42 }
  0x17   :  { %v173_v40 = vld [vmem:[%s10442_s1 + $0x480] sm:$0xff]  ;;  %v6568_v44 = vcombine.high %v45_v38, %v49_v39  ;;  %1670 = vmatprep.subr.bf16.mxu1 %v6704_v37  ;;  %v6567_v50 = vcombine.low %v45_v38, %v49_v39 }
  0x18   :  { %v177_v41 = vld [vmem:[%s10442_s1 + $0x4a0] sm:$0xff]  ;;  %1671 = vmatpush1.bf16.msra.mxu1 %v6703_v43 }
  0x19   :  { %v6696_v45 = vcombine.high %v173_v40, %v177_v41  ;;  %v37_v46 = vld [vmem:[%s10442_s1 + $0x40] sm:$0xff]  ;;  %1631 = vmatprep.subr.bf16.mxu0 %v6568_v44  ;;  %v6695_v51 = vcombine.low %v173_v40, %v177_v41 }
  0x1a   :  { %v41_v47 = vld [vmem:[%s10442_s1 + $0x60] sm:$0xff]  ;;  %1632 = vmatpush1.bf16.msra.mxu0 %v6567_v50 }
  0x1b   :  { %v165_v48 = vld [vmem:[%s10442_s1 + $0x440] sm:$0xff]  ;;  %v6560_v52 = vcombine.high %v37_v46, %v41_v47  ;;  %1672 = vmatprep.subr.bf16.mxu1 %v6696_v45  ;;  %v6559_v62 = vcombine.low %v37_v46, %v41_v47 }
  0x1c   :  { %v169_v49 = vld [vmem:[%s10442_s1 + $0x460] sm:$0xff]  ;;  %1673 = vmatpush1.bf16.msra.mxu1 %v6695_v51 }
  0x1d   :  { %v7734_v53 = vld [vmem:[%s10443_s0] sm:$0xff]  ;;  %v6688_v55 = vcombine.high %v165_v48, %v169_v49  ;;  %1633 = vmatprep.subr.bf16.mxu0 %v6560_v52  ;;  %v6687_v63 = vcombine.low %v165_v48, %v169_v49 }
  0x1e   :  { %v29_v56 = vld [vmem:[%s10442_s1] sm:$0xff]  ;;  %v7749_v58 = vcombine.high %v7734_v53, %v7734_v53  ;;  %1634 = vmatpush1.bf16.msra.mxu0 %v6559_v62 }
  0x1f   :  { %v33_v57 = vld [vmem:[%s10442_s1 + $0x20] sm:$0xff]  ;;  %1674 = vmatprep.subr.bf16.mxu1 %v6688_v55 }
  0x20   :  { %v157_v60 = vld [vmem:[%s10442_s1 + $0x400] sm:$0xff]  ;;  %1653 = vmatprep.mubr.bf16.mxu0 %v7749_v58  ;;  %v6552_v0 = vcombine.high %v29_v56, %v33_v57  ;;  %v6551_v6 = vcombine.low %v29_v56, %v33_v57  ;;  %1675 = vmatpush1.bf16.msra.mxu1 %v6687_v63 }
  0x21   :  { %v161_v61 = vld [vmem:[%s10442_s1 + $0x420] sm:$0xff] }
  0x22   :  { %v6680_v1 = vcombine.high %v157_v60, %v161_v61  ;;  %v149_v2 = vld [vmem:[%s10442_s1 + $0x3c0] sm:$0xff]  ;;  %1635 = vmatprep.subr.bf16.mxu0 %v6552_v0  ;;  %v6679_v7 = vcombine.low %v157_v60, %v161_v61 }
  0x23   :  { %v153_v3 = vld [vmem:[%s10442_s1 + $0x3e0] sm:$0xff]  ;;  %1636 = vmatpush1.bf16.msra.mxu0 %v6551_v6  ;;  %v86_v6 = vld [vmem:[%s10442_s1 + $0x1c8] sm:$0xff] }
  0x24   :  { %v277_v4 = vld [vmem:[%s10442_s1 + $0x7c0] sm:$0xff]  ;;  %v6672_v8 = vcombine.high %v149_v2, %v153_v3  ;;  %1676 = vmatprep.subr.bf16.mxu1 %v6680_v1  ;;  %v6671_v14 = vcombine.low %v149_v2, %v153_v3 }
  0x25   :  { %v281_v5 = vld [vmem:[%s10442_s1 + $0x7e0] sm:$0xff]  ;;  %1677 = vmatpush1.bf16.msra.mxu1 %v6679_v7  ;;  %v90_v7 = vld [vmem:[%s10442_s1 + $0x1e8] sm:$0xff] }
  0x26   :  { %v6800_v9 = vcombine.high %v277_v4, %v281_v5  ;;  %v141_v10 = vld [vmem:[%s10442_s1 + $0x380] sm:$0xff]  ;;  %1637 = vmatprep.subr.bf16.mxu0 %v6672_v8  ;;  %v6799_v15 = vcombine.low %v277_v4, %v281_v5  ;;  %v214_v8 = vld [vmem:[%s10442_s1 + $0x5c8] sm:$0xff] }
  0x27   :  { %v145_v11 = vld [vmem:[%s10442_s1 + $0x3a0] sm:$0xff]  ;;  %1638 = vmatpush2.bf16.msra.mxu0 %v6671_v14  ;;  %v78_v14 = vld [vmem:[%s10442_s1 + $0x188] sm:$0xff] }
  0x28   :  { %v269_v12 = vld [vmem:[%s10442_s1 + $0x780] sm:$0xff]  ;;  %v6664_v16 = vcombine.high %v141_v10, %v145_v11  ;;  %1678 = vmatprep.subr.bf16.mxu1 %v6800_v9  ;;  %v6663_v22 = vcombine.low %v141_v10, %v145_v11  ;;  %v218_v9 = vld [vmem:[%s10442_s1 + $0x5e8] sm:$0xff] }
  0x29   :  { %v273_v13 = vld [vmem:[%s10442_s1 + $0x7a0] sm:$0xff]  ;;  %1679 = vmatpush2.bf16.msra.mxu1 %v6799_v15  ;;  %v82_v15 = vld [vmem:[%s10442_s1 + $0x1a8] sm:$0xff] }
  0x2a   :  { %v6792_v17 = vcombine.high %v269_v12, %v273_v13  ;;  %v133_v18 = vld [vmem:[%s10442_s1 + $0x340] sm:$0xff]  ;;  %1639 = vmatprep.subr.bf16.mxu0 %v6664_v16  ;;  %v6791_v23 = vcombine.low %v269_v12, %v273_v13  ;;  %v6610_v12 = vcombine.high %v86_v6, %v90_v7  ;;  %v6738_v13 = vcombine.high %v214_v8, %v218_v9 }
  0x2b   :  { %v137_v19 = vld [vmem:[%s10442_s1 + $0x360] sm:$0xff]  ;;  %1640 = vmatpush2.bf16.msra.mxu0 %v6663_v22  ;;  %v7879_v16 = vcombine.low %v7734_v53, %v7734_v53  ;;  %v6602_v22 = vcombine.high %v78_v14, %v82_v15 }
  0x2c   :  { %v261_v20 = vld [vmem:[%s10442_s1 + $0x740] sm:$0xff]  ;;  %v6656_v24 = vcombine.high %v133_v18, %v137_v19  ;;  %1680 = vmatprep.subr.bf16.mxu1 %v6792_v17  ;;  %v6655_v30 = vcombine.low %v133_v18, %v137_v19  ;;  %v206_v17 = vld [vmem:[%s10442_s1 + $0x588] sm:$0xff]  ;;  %v7889_v19 = vcombine.low %v7739_v54, %v7739_v54 }
  0x2d   :  { %v265_v21 = vld [vmem:[%s10442_s1 + $0x760] sm:$0xff]  ;;  %1681 = vmatpush2.bf16.msra.mxu1 %v6791_v23  ;;  %v210_v18 = vld [vmem:[%s10442_s1 + $0x5a8] sm:$0xff] }
  0x2e   :  { %v6784_v25 = vcombine.high %v261_v20, %v265_v21  ;;  %v125_v26 = vld [vmem:[%s10442_s1 + $0x300] sm:$0xff]  ;;  %1641 = vmatprep.subr.bf16.mxu0 %v6656_v24  ;;  %v6783_v31 = vcombine.low %v261_v20, %v265_v21  ;;  %v6609_v20 = vcombine.low %v86_v6, %v90_v7  ;;  %v6737_v21 = vcombine.low %v214_v8, %v218_v9  ;;  %v70_v23 = vld [vmem:[%s10442_s1 + $0x148] sm:$0xff] }
  0x2f   :  { %v129_v27 = vld [vmem:[%s10442_s1 + $0x320] sm:$0xff]  ;;  %1642 = vmatpush2.bf16.msra.mxu0 %v6655_v30  ;;  %v6730_v53 = vcombine.high %v206_v17, %v210_v18  ;;  %v74_v24 = vld [vmem:[%s10442_s1 + $0x168] sm:$0xff] }
  0x30   :  { %v253_v28 = vld [vmem:[%s10442_s1 + $0x700] sm:$0xff]  ;;  %v6648_v32 = vcombine.high %v125_v26, %v129_v27  ;;  %1682 = vmatprep.subr.bf16.mxu1 %v6784_v25  ;;  %v6647_v38 = vcombine.low %v125_v26, %v129_v27  ;;  %v198_v54 = vld [vmem:[%s10442_s1 + $0x548] sm:$0xff]  ;;  %v6601_v26 = vcombine.low %v78_v14, %v82_v15  ;;  %v6729_v27 = vcombine.low %v206_v17, %v210_v18 }
  0x31   :  { %v257_v29 = vld [vmem:[%s10442_s1 + $0x720] sm:$0xff]  ;;  %1683 = vmatpush2.bf16.msra.mxu1 %v6783_v31  ;;  %v202_v25 = vld [vmem:[%s10442_s1 + $0x568] sm:$0xff] }
  0x32   :  { %v6776_v33 = vcombine.high %v253_v28, %v257_v29  ;;  %v117_v34 = vld [vmem:[%s10442_s1 + $0x2c0] sm:$0xff]  ;;  %1643 = vmatprep.subr.bf16.mxu0 %v6648_v32  ;;  %v6775_v39 = vcombine.low %v253_v28, %v257_v29  ;;  %v6594_v28 = vcombine.high %v70_v23, %v74_v24  ;;  %v6722_v29 = vcombine.high %v198_v54, %v202_v25  ;;  %v62_v30 = vld [vmem:[%s10442_s1 + $0x108] sm:$0xff] }
  0x33   :  { %v121_v35 = vld [vmem:[%s10442_s1 + $0x2e0] sm:$0xff]  ;;  %1644 = vmatpush2.bf16.msra.mxu0 %v6647_v38  ;;  %v66_v31 = vld [vmem:[%s10442_s1 + $0x128] sm:$0xff] }
  0x34   :  { %v245_v36 = vld [vmem:[%s10442_s1 + $0x6c0] sm:$0xff]  ;;  %v6640_v40 = vcombine.high %v117_v34, %v121_v35  ;;  %1684 = vmatprep.subr.bf16.mxu1 %v6776_v33  ;;  %v6639_v46 = vcombine.low %v117_v34, %v121_v35  ;;  %v190_v32 = vld [vmem:[%s10442_s1 + $0x508] sm:$0xff]  ;;  %v6593_v34 = vcombine.low %v70_v23, %v74_v24  ;;  %v6721_v35 = vcombine.low %v198_v54, %v202_v25 }
  0x35   :  { %v249_v37 = vld [vmem:[%s10442_s1 + $0x6e0] sm:$0xff]  ;;  %1685 = vmatpush2.bf16.msra.mxu1 %v6775_v39  ;;  %v194_v33 = vld [vmem:[%s10442_s1 + $0x528] sm:$0xff] }
  0x36   :  { %v6768_v41 = vcombine.high %v245_v36, %v249_v37  ;;  %v109_v42 = vld [vmem:[%s10442_s1 + $0x280] sm:$0xff]  ;;  %1645 = vmatprep.subr.bf16.mxu0 %v6640_v40  ;;  %v6767_v47 = vcombine.low %v245_v36, %v249_v37  ;;  %v6586_v36 = vcombine.high %v62_v30, %v66_v31  ;;  %v6714_v37 = vcombine.high %v190_v32, %v194_v33  ;;  %v54_v38 = vld [vmem:[%s10442_s1 + $0xc8] sm:$0xff] }
  0x37   :  { %v113_v43 = vld [vmem:[%s10442_s1 + $0x2a0] sm:$0xff]  ;;  %1646 = vmatpush2.bf16.msra.mxu0 %v6639_v46  ;;  %v58_v39 = vld [vmem:[%s10442_s1 + $0xe8] sm:$0xff] }
  0x38   :  { %v237_v44 = vld [vmem:[%s10442_s1 + $0x680] sm:$0xff]  ;;  %v6632_v48 = vcombine.high %v109_v42, %v113_v43  ;;  %1686 = vmatprep.subr.bf16.mxu1 %v6768_v41  ;;  %v6631_v56 = vcombine.low %v109_v42, %v113_v43  ;;  %v182_v40 = vld [vmem:[%s10442_s1 + $0x4c8] sm:$0xff]  ;;  %v6585_v42 = vcombine.low %v62_v30, %v66_v31  ;;  %v6713_v43 = vcombine.low %v190_v32, %v194_v33 }
  0x39   :  { %v241_v45 = vld [vmem:[%s10442_s1 + $0x6a0] sm:$0xff]  ;;  %1687 = vmatpush2.bf16.msra.mxu1 %v6767_v47  ;;  %v186_v41 = vld [vmem:[%s10442_s1 + $0x4e8] sm:$0xff] }
  0x3a   :  { %v6760_v49 = vcombine.high %v237_v44, %v241_v45  ;;  %v101_v50 = vld [vmem:[%s10442_s1 + $0x240] sm:$0xff]  ;;  %1647 = vmatprep.subr.bf16.mxu0 %v6632_v48  ;;  %v6759_v57 = vcombine.low %v237_v44, %v241_v45  ;;  %v6578_v44 = vcombine.high %v54_v38, %v58_v39  ;;  %v6706_v45 = vcombine.high %v182_v40, %v186_v41  ;;  %v46_v46 = vld [vmem:[%s10442_s1 + $0x88] sm:$0xff] }
  0x3b   :  { %v105_v51 = vld [vmem:[%s10442_s1 + $0x260] sm:$0xff]  ;;  %1648 = vmatpush2.bf16.msra.mxu0 %v6631_v56  ;;  %v50_v47 = vld [vmem:[%s10442_s1 + $0xa8] sm:$0xff] }
  0x3c   :  { %v229_v52 = vld [vmem:[%s10442_s1 + $0x640] sm:$0xff]  ;;  %v6624_v60 = vcombine.high %v101_v50, %v105_v51  ;;  %1688 = vmatprep.subr.bf16.mxu1 %v6760_v49  ;;  %v6623_v2 = vcombine.low %v101_v50, %v105_v51  ;;  %v174_v48 = vld [vmem:[%s10442_s1 + $0x488] sm:$0xff]  ;;  %v6577_v50 = vcombine.low %v54_v38, %v58_v39  ;;  %v6705_v51 = vcombine.low %v182_v40, %v186_v41 }
  0x3d   :  { %v233_v55 = vld [vmem:[%s10442_s1 + $0x660] sm:$0xff]  ;;  %1689 = vmatpush2.bf16.msra.mxu1 %v6759_v57  ;;  %v178_v49 = vld [vmem:[%s10442_s1 + $0x4a8] sm:$0xff] }
  0x3e   :  { %v6752_v61 = vcombine.high %v229_v52, %v233_v55  ;;  %v93_v62 = vld [vmem:[%s10442_s1 + $0x200] sm:$0xff]  ;;  %1649 = vmatprep.subr.bf16.mxu0 %v6624_v60  ;;  %v6751_v3 = vcombine.low %v229_v52, %v233_v55  ;;  %v6570_v52 = vcombine.high %v46_v46, %v50_v47  ;;  %v6698_v55 = vcombine.high %v174_v48, %v178_v49  ;;  %v38_v56 = vld [vmem:[%s10442_s1 + $0x48] sm:$0xff] }
  0x3f   :  { %v97_v63 = vld [vmem:[%s10442_s1 + $0x220] sm:$0xff]  ;;  %1650 = vmatpush2.bf16.msra.mxu0 %v6623_v2  ;;  %v42_v57 = vld [vmem:[%s10442_s1 + $0x68] sm:$0xff] }
  0x40   :  { %v221_v0 = vld [vmem:[%s10442_s1 + $0x600] sm:$0xff]  ;;  %v6616_v4 = vcombine.high %v93_v62, %v97_v63  ;;  %1690 = vmatprep.subr.bf16.mxu1 %v6752_v61  ;;  %v6615_v10 = vcombine.low %v93_v62, %v97_v63  ;;  %v166_v60 = vld [vmem:[%s10442_s1 + $0x448] sm:$0xff]  ;;  %v6569_v62 = vcombine.low %v46_v46, %v50_v47  ;;  %v6697_v63 = vcombine.low %v174_v48, %v178_v49 }
  0x41   :  { %v225_v1 = vld [vmem:[%s10442_s1 + $0x620] sm:$0xff]  ;;  %1691 = vmatpush2.bf16.msra.mxu1 %v6751_v3  ;;  %v170_v61 = vld [vmem:[%s10442_s1 + $0x468] sm:$0xff]  ;;  %v6561_v6 = vcombine.low %v38_v56, %v42_v57 }
  0x42   :  { %v6744_v5 = vcombine.high %v221_v0, %v225_v1  ;;  %1651 = vmatprep.subr.bf16.mxu0 %v6616_v4  ;;  %v6743_v11 = vcombine.low %v221_v0, %v225_v1  ;;  %v6562_v0 = vcombine.high %v38_v56, %v42_v57  ;;  %v6690_v1 = vcombine.high %v166_v60, %v170_v61  ;;  %v30_v2 = vld [vmem:[%s10442_s1 + $0x8] sm:$0xff] }
  0x43   :  { %1652 = vmatpush2.bf16.msra.mxu0 %v6615_v10  ;;  %v34_v3 = vld [vmem:[%s10442_s1 + $0x28] sm:$0xff]  ;;  %v6689_v7 = vcombine.low %v166_v60, %v170_v61 }
  0x44   :  { %1692 = vmatprep.subr.bf16.mxu1 %v6744_v5  ;;  %1703 = vmatprep.subr.bf16.mxu0 %v6610_v12  ;;  %v158_v4 = vld [vmem:[%s10442_s1 + $0x408] sm:$0xff]  ;;  %v6554_v8 = vcombine.high %v30_v2, %v34_v3  ;;  %v6553_v14 = vcombine.low %v30_v2, %v34_v3 }
  0x45   :  { %1693 = vmatpush2.bf16.msra.mxu1 %v6743_v11  ;;  %v162_v5 = vld [vmem:[%s10442_s1 + $0x428] sm:$0xff] }
  0x46   :  { %1744 = vmatprep.subr.bf16.mxu1 %v6738_v13  ;;  %1654 = vmatmul.mubr.bf16.vlgmr.msra.gmra.mxu0 %v7879_v16  ;;  %v6682_v9 = vcombine.high %v158_v4, %v162_v5  ;;  %v150_v10 = vld [vmem:[%s10442_s1 + $0x3c8] sm:$0xff]  ;;  %v6681_v15 = vcombine.low %v158_v4, %v162_v5 }
  0x47   :  { %1704 = vmatpush1.bf16.msra.mxu0 %v6609_v20  ;;  %1735 = vmatprep.mubr.bf16.mxu0 %v7749_v58  ;;  %v154_v11 = vld [vmem:[%s10442_s1 + $0x3e8] sm:$0xff] }
  0x48   :  { %1695 = vmatmul.mubr.bf16.vlgmr.msra.gmra.mxu1 %v7889_v19  ;;  %1705 = vmatprep.subr.bf16.mxu0 %v6602_v22  ;;  %v278_v12 = vld [vmem:[%s10442_s1 + $0x7c8] sm:$0xff]  ;;  %v6674_v17 = vcombine.high %v150_v10, %v154_v11  ;;  %v6673_v23 = vcombine.low %v150_v10, %v154_v11 }
  0x49   :  { %1745 = vmatpush1.bf16.msra.mxu1 %v6737_v21  ;;  %1776 = vmatprep.mubr.bf16.mxu1 %v7753_v59  ;;  %v282_v13 = vld [vmem:[%s10442_s1 + $0x7e8] sm:$0xff] }
  0x4a   :  { %1746 = vmatprep.subr.bf16.mxu1 %v6730_v53  ;;  %v6802_v18 = vcombine.high %v278_v12, %v282_v13  ;;  %v142_v20 = vld [vmem:[%s10442_s1 + $0x388] sm:$0xff]  ;;  %v6801_v24 = vcombine.low %v278_v12, %v282_v13 }
  0x4b   :  { %1706 = vmatpush1.bf16.msra.mxu0 %v6601_v26  ;;  %v146_v21 = vld [vmem:[%s10442_s1 + $0x3a8] sm:$0xff] }
  0x4c   :  { %1707 = vmatprep.subr.bf16.mxu0 %v6594_v28  ;;  %v270_v22 = vld [vmem:[%s10442_s1 + $0x788] sm:$0xff]  ;;  %v6666_v54 = vcombine.high %v142_v20, %v146_v21  ;;  %v6665_v30 = vcombine.low %v142_v20, %v146_v21 }
  0x4d   :  { %1747 = vmatpush1.bf16.msra.mxu1 %v6729_v27  ;;  %v274_v53 = vld [vmem:[%s10442_s1 + $0x7a8] sm:$0xff] }
  0x4e   :  { %1748 = vmatprep.subr.bf16.mxu1 %v6722_v29  ;;  %v6794_v25 = vcombine.high %v270_v22, %v274_v53  ;;  %v134_v26 = vld [vmem:[%s10442_s1 + $0x348] sm:$0xff]  ;;  %v6793_v31 = vcombine.low %v270_v22, %v274_v53 }
  0x4f   :  { %1708 = vmatpush1.bf16.msra.mxu0 %v6593_v34  ;;  %v138_v27 = vld [vmem:[%s10442_s1 + $0x368] sm:$0xff] }
  0x50   :  { %1709 = vmatprep.subr.bf16.mxu0 %v6586_v36  ;;  %v262_v28 = vld [vmem:[%s10442_s1 + $0x748] sm:$0xff]  ;;  %v6658_v32 = vcombine.high %v134_v26, %v138_v27  ;;  %v6657_v38 = vcombine.low %v134_v26, %v138_v27 }
  0x51   :  { %1749 = vmatpush1.bf16.msra.mxu1 %v6721_v35  ;;  %v266_v29 = vld [vmem:[%s10442_s1 + $0x768] sm:$0xff] }
  0x52   :  { %1750 = vmatprep.subr.bf16.mxu1 %v6714_v37  ;;  %v6786_v33 = vcombine.high %v262_v28, %v266_v29  ;;  %v126_v34 = vld [vmem:[%s10442_s1 + $0x308] sm:$0xff]  ;;  %v6785_v39 = vcombine.low %v262_v28, %v266_v29 }
  0x53   :  { %1710 = vmatpush1.bf16.msra.mxu0 %v6585_v42  ;;  %v130_v35 = vld [vmem:[%s10442_s1 + $0x328] sm:$0xff] }
  0x54   :  { %1711 = vmatprep.subr.bf16.mxu0 %v6578_v44  ;;  %v254_v36 = vld [vmem:[%s10442_s1 + $0x708] sm:$0xff]  ;;  %v6650_v40 = vcombine.high %v126_v34, %v130_v35  ;;  %v6649_v46 = vcombine.low %v126_v34, %v130_v35 }
  0x55   :  { %1751 = vmatpush1.bf16.msra.mxu1 %v6713_v43  ;;  %v258_v37 = vld [vmem:[%s10442_s1 + $0x728] sm:$0xff] }
  0x56   :  { %1752 = vmatprep.subr.bf16.mxu1 %v6706_v45  ;;  %v6778_v41 = vcombine.high %v254_v36, %v258_v37  ;;  %v118_v42 = vld [vmem:[%s10442_s1 + $0x2c8] sm:$0xff]  ;;  %v6777_v47 = vcombine.low %v254_v36, %v258_v37 }
  0x57   :  { %1712 = vmatpush1.bf16.msra.mxu0 %v6577_v50  ;;  %v122_v43 = vld [vmem:[%s10442_s1 + $0x2e8] sm:$0xff] }
  0x58   :  { %1713 = vmatprep.subr.bf16.mxu0 %v6570_v52  ;;  %v246_v44 = vld [vmem:[%s10442_s1 + $0x6c8] sm:$0xff]  ;;  %v6642_v48 = vcombine.high %v118_v42, %v122_v43  ;;  %v6641_v56 = vcombine.low %v118_v42, %v122_v43 }
  0x59   :  { %1753 = vmatpush1.bf16.msra.mxu1 %v6705_v51  ;;  %v250_v45 = vld [vmem:[%s10442_s1 + $0x6e8] sm:$0xff] }
  0x5a   :  { %1754 = vmatprep.subr.bf16.mxu1 %v6698_v55  ;;  %v6770_v49 = vcombine.high %v246_v44, %v250_v45  ;;  %v110_v50 = vld [vmem:[%s10442_s1 + $0x288] sm:$0xff]  ;;  %v6769_v57 = vcombine.low %v246_v44, %v250_v45 }
  0x5b   :  { %1714 = vmatpush1.bf16.msra.mxu0 %v6569_v62  ;;  %v114_v51 = vld [vmem:[%s10442_s1 + $0x2a8] sm:$0xff] }
  0x5c   :  { %1715 = vmatprep.subr.bf16.mxu0 %v6562_v0  ;;  %v238_v52 = vld [vmem:[%s10442_s1 + $0x688] sm:$0xff]  ;;  %v6634_v60 = vcombine.high %v110_v50, %v114_v51  ;;  %v6633_v2 = vcombine.low %v110_v50, %v114_v51 }
  0x5d   :  { %1755 = vmatpush1.bf16.msra.mxu1 %v6697_v63  ;;  %v242_v55 = vld [vmem:[%s10442_s1 + $0x6a8] sm:$0xff] }
  0x5e   :  { %1756 = vmatprep.subr.bf16.mxu1 %v6690_v1  ;;  %v6762_v61 = vcombine.high %v238_v52, %v242_v55  ;;  %v102_v62 = vld [vmem:[%s10442_s1 + $0x248] sm:$0xff]  ;;  %v6761_v3 = vcombine.low %v238_v52, %v242_v55 }
  0x5f   :  { %1716 = vmatpush1.bf16.msra.mxu0 %v6561_v6  ;;  %v106_v63 = vld [vmem:[%s10442_s1 + $0x268] sm:$0xff] }
  0x60   :  { %1717 = vmatprep.subr.bf16.mxu0 %v6554_v8  ;;  %v230_v0 = vld [vmem:[%s10442_s1 + $0x648] sm:$0xff]  ;;  %v6626_v4 = vcombine.high %v102_v62, %v106_v63  ;;  %v6625_v10 = vcombine.low %v102_v62, %v106_v63 }
  0x61   :  { %1757 = vmatpush1.bf16.msra.mxu1 %v6689_v7  ;;  %v234_v1 = vld [vmem:[%s10442_s1 + $0x668] sm:$0xff] }
  0x62   :  { %1758 = vmatprep.subr.bf16.mxu1 %v6682_v9  ;;  %v6754_v5 = vcombine.high %v230_v0, %v234_v1  ;;  %v94_v6 = vld [vmem:[%s10442_s1 + $0x208] sm:$0xff]  ;;  %v6753_v11 = vcombine.low %v230_v0, %v234_v1 }
  0x63   :  { %1718 = vmatpush1.bf16.msra.mxu0 %v6553_v14  ;;  %v98_v7 = vld [vmem:[%s10442_s1 + $0x228] sm:$0xff]  ;;  %v87_v14 = vld [vmem:[%s10442_s1 + $0x1d0] sm:$0xff] }
  0x64   :  { %1719 = vmatprep.subr.bf16.mxu0 %v6674_v17  ;;  %v222_v8 = vld [vmem:[%s10442_s1 + $0x608] sm:$0xff]  ;;  %v6618_v12 = vcombine.high %v94_v6, %v98_v7  ;;  %v215_v17 = vld [vmem:[%s10442_s1 + $0x5d0] sm:$0xff]  ;;  %v6617_v20 = vcombine.low %v94_v6, %v98_v7 }
  0x65   :  { %1759 = vmatpush1.bf16.msra.mxu1 %v6681_v15  ;;  %v226_v9 = vld [vmem:[%s10442_s1 + $0x628] sm:$0xff]  ;;  %v91_v15 = vld [vmem:[%s10442_s1 + $0x1f0] sm:$0xff] }
  0x66   :  { %1760 = vmatprep.subr.bf16.mxu1 %v6802_v18  ;;  %v6746_v13 = vcombine.high %v222_v8, %v226_v9  ;;  %v219_v18 = vld [vmem:[%s10442_s1 + $0x5f0] sm:$0xff]  ;;  %v6745_v21 = vcombine.low %v222_v8, %v226_v9  ;;  %v6612_v22 = vcombine.high %v87_v14, %v91_v15  ;;  %v6611_v26 = vcombine.low %v87_v14, %v91_v15 }
  0x67   :  { %1720 = vmatpush2.bf16.msra.mxu0 %v6673_v23  ;;  %v6740_v53 = vcombine.high %v215_v17, %v219_v18  ;;  %v79_v23 = vld [vmem:[%s10442_s1 + $0x190] sm:$0xff]  ;;  %v6739_v27 = vcombine.low %v215_v17, %v219_v18 }
  0x68   :  { %1721 = vmatprep.subr.bf16.mxu0 %v6666_v54  ;;  %v207_v54 = vld [vmem:[%s10442_s1 + $0x590] sm:$0xff] }
  0x69   :  { %1761 = vmatpush2.bf16.msra.mxu1 %v6801_v24  ;;  %v83_v24 = vld [vmem:[%s10442_s1 + $0x1b0] sm:$0xff] }
  0x6a   :  { %1762 = vmatprep.subr.bf16.mxu1 %v6794_v25  ;;  %v211_v25 = vld [vmem:[%s10442_s1 + $0x5b0] sm:$0xff]  ;;  %v6604_v28 = vcombine.high %v79_v23, %v83_v24  ;;  %v6603_v34 = vcombine.low %v79_v23, %v83_v24 }
  0x6b   :  { %1722 = vmatpush2.bf16.msra.mxu0 %v6665_v30  ;;  %v6732_v29 = vcombine.high %v207_v54, %v211_v25  ;;  %v71_v30 = vld [vmem:[%s10442_s1 + $0x150] sm:$0xff]  ;;  %v6731_v35 = vcombine.low %v207_v54, %v211_v25 }
  0x6c   :  { %1723 = vmatprep.subr.bf16.mxu0 %v6658_v32  ;;  %v199_v32 = vld [vmem:[%s10442_s1 + $0x550] sm:$0xff] }
  0x6d   :  { %1763 = vmatpush2.bf16.msra.mxu1 %v6793_v31  ;;  %v75_v31 = vld [vmem:[%s10442_s1 + $0x170] sm:$0xff] }
  0x6e   :  { %1764 = vmatprep.subr.bf16.mxu1 %v6786_v33  ;;  %v203_v33 = vld [vmem:[%s10442_s1 + $0x570] sm:$0xff]  ;;  %v6596_v36 = vcombine.high %v71_v30, %v75_v31  ;;  %v6595_v42 = vcombine.low %v71_v30, %v75_v31 }
  0x6f   :  { %1724 = vmatpush2.bf16.msra.mxu0 %v6657_v38  ;;  %v6724_v37 = vcombine.high %v199_v32, %v203_v33  ;;  %v63_v38 = vld [vmem:[%s10442_s1 + $0x110] sm:$0xff]  ;;  %v6723_v43 = vcombine.low %v199_v32, %v203_v33 }
  0x70   :  { %1725 = vmatprep.subr.bf16.mxu0 %v6650_v40  ;;  %v191_v40 = vld [vmem:[%s10442_s1 + $0x510] sm:$0xff] }
  0x71   :  { %1765 = vmatpush2.bf16.msra.mxu1 %v6785_v39  ;;  %v67_v39 = vld [vmem:[%s10442_s1 + $0x130] sm:$0xff] }
  0x72   :  { %1766 = vmatprep.subr.bf16.mxu1 %v6778_v41  ;;  %v195_v41 = vld [vmem:[%s10442_s1 + $0x530] sm:$0xff]  ;;  %v6588_v44 = vcombine.high %v63_v38, %v67_v39  ;;  %v6587_v50 = vcombine.low %v63_v38, %v67_v39 }
  0x73   :  { %1726 = vmatpush2.bf16.msra.mxu0 %v6649_v46  ;;  %v6716_v45 = vcombine.high %v191_v40, %v195_v41  ;;  %v55_v46 = vld [vmem:[%s10442_s1 + $0xd0] sm:$0xff]  ;;  %v6715_v51 = vcombine.low %v191_v40, %v195_v41 }
  0x74   :  { %1727 = vmatprep.subr.bf16.mxu0 %v6642_v48  ;;  %v183_v48 = vld [vmem:[%s10442_s1 + $0x4d0] sm:$0xff] }
  0x75   :  { %1767 = vmatpush2.bf16.msra.mxu1 %v6777_v47  ;;  %v59_v47 = vld [vmem:[%s10442_s1 + $0xf0] sm:$0xff] }
  0x76   :  { %1768 = vmatprep.subr.bf16.mxu1 %v6770_v49  ;;  %v187_v49 = vld [vmem:[%s10442_s1 + $0x4f0] sm:$0xff]  ;;  %v6580_v52 = vcombine.high %v55_v46, %v59_v47  ;;  %v6579_v62 = vcombine.low %v55_v46, %v59_v47 }
  0x77   :  { %1728 = vmatpush2.bf16.msra.mxu0 %v6641_v56  ;;  %v6708_v55 = vcombine.high %v183_v48, %v187_v49  ;;  %v47_v56 = vld [vmem:[%s10442_s1 + $0x90] sm:$0xff]  ;;  %v6707_v63 = vcombine.low %v183_v48, %v187_v49 }
  0x78   :  { %1729 = vmatprep.subr.bf16.mxu0 %v6634_v60  ;;  %v175_v60 = vld [vmem:[%s10442_s1 + $0x490] sm:$0xff] }
  0x79   :  { %1769 = vmatpush2.bf16.msra.mxu1 %v6769_v57  ;;  %v51_v57 = vld [vmem:[%s10442_s1 + $0xb0] sm:$0xff] }
  0x7a   :  { %1770 = vmatprep.subr.bf16.mxu1 %v6762_v61  ;;  %v179_v61 = vld [vmem:[%s10442_s1 + $0x4b0] sm:$0xff]  ;;  %v6572_v0 = vcombine.high %v47_v56, %v51_v57  ;;  %v6571_v6 = vcombine.low %v47_v56, %v51_v57 }
  0x7b   :  { %1730 = vmatpush2.bf16.msra.mxu0 %v6633_v2  ;;  %v6700_v1 = vcombine.high %v175_v60, %v179_v61  ;;  %v39_v2 = vld [vmem:[%s10442_s1 + $0x50] sm:$0xff]  ;;  %v6699_v7 = vcombine.low %v175_v60, %v179_v61 }
  0x7c   :  { %1731 = vmatprep.subr.bf16.mxu0 %v6626_v4  ;;  %v167_v4 = vld [vmem:[%s10442_s1 + $0x450] sm:$0xff] }
  0x7d   :  { %1771 = vmatpush2.bf16.msra.mxu1 %v6761_v3  ;;  %v43_v3 = vld [vmem:[%s10442_s1 + $0x70] sm:$0xff] }
  0x7e   :  { %1772 = vmatprep.subr.bf16.mxu1 %v6754_v5  ;;  %v171_v5 = vld [vmem:[%s10442_s1 + $0x470] sm:$0xff]  ;;  %v6564_v8 = vcombine.high %v39_v2, %v43_v3  ;;  %v6563_v14 = vcombine.low %v39_v2, %v43_v3 }
  0x7f   :  { %1732 = vmatpush2.bf16.msra.mxu0 %v6625_v10  ;;  %v6692_v9 = vcombine.high %v167_v4, %v171_v5  ;;  %v31_v10 = vld [vmem:[%s10442_s1 + $0x10] sm:$0xff]  ;;  %v6691_v15 = vcombine.low %v167_v4, %v171_v5 }
  0x80   :  { %1733 = vmatprep.subr.bf16.mxu0 %v6618_v12  ;;  %v159_v12 = vld [vmem:[%s10442_s1 + $0x410] sm:$0xff] }
  0x81   :  { %1773 = vmatpush2.bf16.msra.mxu1 %v6753_v11  ;;  %v35_v11 = vld [vmem:[%s10442_s1 + $0x30] sm:$0xff] }
  0x82   :  { %1774 = vmatprep.subr.bf16.mxu1 %v6746_v13  ;;  %v163_v13 = vld [vmem:[%s10442_s1 + $0x430] sm:$0xff]  ;;  %v6556_v17 = vcombine.high %v31_v10, %v35_v11  ;;  %v6555_v23 = vcombine.low %v31_v10, %v35_v11 }
  0x83   :  { %1734 = vmatpush2.bf16.msra.mxu0 %v6617_v20  ;;  %v6684_v18 = vcombine.high %v159_v12, %v163_v13  ;;  %v151_v20 = vld [vmem:[%s10442_s1 + $0x3d0] sm:$0xff]  ;;  %v6683_v24 = vcombine.low %v159_v12, %v163_v13 }
  0x84   :  { %1785 = vmatprep.subr.bf16.mxu0 %v6612_v22  ;;  %v279_v22 = vld [vmem:[%s10442_s1 + $0x7d0] sm:$0xff] }
  0x85   :  { %1775 = vmatpush2.bf16.msra.mxu1 %v6745_v21  ;;  %v155_v21 = vld [vmem:[%s10442_s1 + $0x3f0] sm:$0xff] }
  0x86   :  { %1826 = vmatprep.subr.bf16.mxu1 %v6740_v53  ;;  %1736 = vmatmul.mubr.bf16.vlgmr.msra.gmra.mxu0 %v7879_v16  ;;  %v283_v53 = vld [vmem:[%s10442_s1 + $0x7f0] sm:$0xff]  ;;  %v6676_v54 = vcombine.high %v151_v20, %v155_v21  ;;  %v6675_v30 = vcombine.low %v151_v20, %v155_v21 }
  0x87   :  { %1786 = vmatpush1.bf16.msra.mxu0 %v6611_v26  ;;  %1817 = vmatprep.mubr.bf16.mxu0 %v7749_v58  ;;  %v6804_v25 = vcombine.high %v279_v22, %v283_v53  ;;  %v143_v26 = vld [vmem:[%s10442_s1 + $0x390] sm:$0xff]  ;;  %v6803_v31 = vcombine.low %v279_v22, %v283_v53 }
  0x88   :  { %1777 = vmatmul.mubr.bf16.vlgmr.msra.gmra.mxu1 %v7889_v19  ;;  %1787 = vmatprep.subr.bf16.mxu0 %v6604_v28  ;;  %v271_v28 = vld [vmem:[%s10442_s1 + $0x790] sm:$0xff] }
  0x89   :  { %1827 = vmatpush1.bf16.msra.mxu1 %v6739_v27  ;;  %1858 = vmatprep.mubr.bf16.mxu1 %v7753_v59  ;;  %v147_v27 = vld [vmem:[%s10442_s1 + $0x3b0] sm:$0xff] }
  0x8a   :  { %1828 = vmatprep.subr.bf16.mxu1 %v6732_v29  ;;  %v275_v29 = vld [vmem:[%s10442_s1 + $0x7b0] sm:$0xff]  ;;  %v6668_v32 = vcombine.high %v143_v26, %v147_v27  ;;  %v6667_v38 = vcombine.low %v143_v26, %v147_v27 }
  0x8b   :  { %1788 = vmatpush1.bf16.msra.mxu0 %v6603_v34  ;;  %v6796_v33 = vcombine.high %v271_v28, %v275_v29  ;;  %v135_v34 = vld [vmem:[%s10442_s1 + $0x350] sm:$0xff]  ;;  %v6795_v39 = vcombine.low %v271_v28, %v275_v29 }
  0x8c   :  { %1789 = vmatprep.subr.bf16.mxu0 %v6596_v36  ;;  %v263_v36 = vld [vmem:[%s10442_s1 + $0x750] sm:$0xff] }
  0x8d   :  { %1829 = vmatpush1.bf16.msra.mxu1 %v6731_v35  ;;  %v139_v35 = vld [vmem:[%s10442_s1 + $0x370] sm:$0xff] }
  0x8e   :  { %1830 = vmatprep.subr.bf16.mxu1 %v6724_v37  ;;  %v267_v37 = vld [vmem:[%s10442_s1 + $0x770] sm:$0xff]  ;;  %v6660_v40 = vcombine.high %v135_v34, %v139_v35  ;;  %v6659_v46 = vcombine.low %v135_v34, %v139_v35 }
  0x8f   :  { %1790 = vmatpush1.bf16.msra.mxu0 %v6595_v42  ;;  %v6788_v41 = vcombine.high %v263_v36, %v267_v37  ;;  %v127_v42 = vld [vmem:[%s10442_s1 + $0x310] sm:$0xff]  ;;  %v6787_v47 = vcombine.low %v263_v36, %v267_v37 }
  0x90   :  { %1791 = vmatprep.subr.bf16.mxu0 %v6588_v44  ;;  %v255_v44 = vld [vmem:[%s10442_s1 + $0x710] sm:$0xff] }
  0x91   :  { %1831 = vmatpush1.bf16.msra.mxu1 %v6723_v43  ;;  %v131_v43 = vld [vmem:[%s10442_s1 + $0x330] sm:$0xff] }
  0x92   :  { %1832 = vmatprep.subr.bf16.mxu1 %v6716_v45  ;;  %v259_v45 = vld [vmem:[%s10442_s1 + $0x730] sm:$0xff]  ;;  %v6652_v48 = vcombine.high %v127_v42, %v131_v43  ;;  %v6651_v56 = vcombine.low %v127_v42, %v131_v43 }
  0x93   :  { %1792 = vmatpush1.bf16.msra.mxu0 %v6587_v50  ;;  %v6780_v49 = vcombine.high %v255_v44, %v259_v45  ;;  %v119_v50 = vld [vmem:[%s10442_s1 + $0x2d0] sm:$0xff]  ;;  %v6779_v57 = vcombine.low %v255_v44, %v259_v45 }
  0x94   :  { %1793 = vmatprep.subr.bf16.mxu0 %v6580_v52  ;;  %v247_v52 = vld [vmem:[%s10442_s1 + $0x6d0] sm:$0xff] }
  0x95   :  { %1833 = vmatpush1.bf16.msra.mxu1 %v6715_v51  ;;  %v123_v51 = vld [vmem:[%s10442_s1 + $0x2f0] sm:$0xff] }
  0x96   :  { %1834 = vmatprep.subr.bf16.mxu1 %v6708_v55  ;;  %v251_v55 = vld [vmem:[%s10442_s1 + $0x6f0] sm:$0xff]  ;;  %v6644_v60 = vcombine.high %v119_v50, %v123_v51  ;;  %v6643_v2 = vcombine.low %v119_v50, %v123_v51 }
  0x97   :  { %1794 = vmatpush1.bf16.msra.mxu0 %v6579_v62  ;;  %v6772_v61 = vcombine.high %v247_v52, %v251_v55  ;;  %v111_v62 = vld [vmem:[%s10442_s1 + $0x290] sm:$0xff]  ;;  %v6771_v3 = vcombine.low %v247_v52, %v251_v55 }
  0x98   :  { %1795 = vmatprep.subr.bf16.mxu0 %v6572_v0  ;;  %v239_v0 = vld [vmem:[%s10442_s1 + $0x690] sm:$0xff] }
  0x99   :  { %1835 = vmatpush1.bf16.msra.mxu1 %v6707_v63  ;;  %v115_v63 = vld [vmem:[%s10442_s1 + $0x2b0] sm:$0xff] }
  0x9a   :  { %1836 = vmatprep.subr.bf16.mxu1 %v6700_v1  ;;  %v243_v1 = vld [vmem:[%s10442_s1 + $0x6b0] sm:$0xff]  ;;  %v6636_v4 = vcombine.high %v111_v62, %v115_v63  ;;  %v6635_v10 = vcombine.low %v111_v62, %v115_v63 }
  0x9b   :  { %1796 = vmatpush1.bf16.msra.mxu0 %v6571_v6  ;;  %v6764_v5 = vcombine.high %v239_v0, %v243_v1  ;;  %v103_v6 = vld [vmem:[%s10442_s1 + $0x250] sm:$0xff]  ;;  %v6763_v11 = vcombine.low %v239_v0, %v243_v1  ;;  %v48_v0 = vld [vmem:[%s10442_s1 + $0x98] sm:$0xff] }
  0x9c   :  { %1797 = vmatprep.subr.bf16.mxu0 %v6564_v8  ;;  %v231_v8 = vld [vmem:[%s10442_s1 + $0x650] sm:$0xff]  ;;  %v52_v1 = vld [vmem:[%s10442_s1 + $0xb8] sm:$0xff] }
  0x9d   :  { %1837 = vmatpush1.bf16.msra.mxu1 %v6699_v7  ;;  %v107_v7 = vld [vmem:[%s10442_s1 + $0x270] sm:$0xff] }
  0x9e   :  { %1838 = vmatprep.subr.bf16.mxu1 %v6692_v9  ;;  %v235_v9 = vld [vmem:[%s10442_s1 + $0x670] sm:$0xff]  ;;  %v6628_v12 = vcombine.high %v103_v6, %v107_v7  ;;  %v6627_v20 = vcombine.low %v103_v6, %v107_v7  ;;  %v6574_v6 = vcombine.high %v48_v0, %v52_v1 }
  0x9f   :  { %1798 = vmatpush1.bf16.msra.mxu0 %v6563_v14  ;;  %v6756_v13 = vcombine.high %v231_v8, %v235_v9  ;;  %v95_v14 = vld [vmem:[%s10442_s1 + $0x210] sm:$0xff]  ;;  %v6755_v21 = vcombine.low %v231_v8, %v235_v9  ;;  %v40_v8 = vld [vmem:[%s10442_s1 + $0x58] sm:$0xff] }
  0xa0   :  { %1799 = vmatprep.subr.bf16.mxu0 %v6556_v17  ;;  %v223_v17 = vld [vmem:[%s10442_s1 + $0x610] sm:$0xff]  ;;  %v44_v9 = vld [vmem:[%s10442_s1 + $0x78] sm:$0xff] }
  0xa1   :  { %1839 = vmatpush1.bf16.msra.mxu1 %v6691_v15  ;;  %v99_v15 = vld [vmem:[%s10442_s1 + $0x230] sm:$0xff] }
  0xa2   :  { %1840 = vmatprep.subr.bf16.mxu1 %v6684_v18  ;;  %v227_v18 = vld [vmem:[%s10442_s1 + $0x630] sm:$0xff]  ;;  %v6620_v22 = vcombine.high %v95_v14, %v99_v15  ;;  %v6619_v26 = vcombine.low %v95_v14, %v99_v15  ;;  %v6566_v14 = vcombine.high %v40_v8, %v44_v9 }
  0xa3   :  { %1800 = vmatpush1.bf16.msra.mxu0 %v6555_v23  ;;  %v6748_v53 = vcombine.high %v223_v17, %v227_v18  ;;  %v88_v23 = vld [vmem:[%s10442_s1 + $0x1d8] sm:$0xff]  ;;  %v6747_v27 = vcombine.low %v223_v17, %v227_v18 }
  0xa4   :  { %1801 = vmatprep.subr.bf16.mxu0 %v6676_v54  ;;  %v216_v54 = vld [vmem:[%s10442_s1 + $0x5d8] sm:$0xff] }
  0xa5   :  { %1841 = vmatpush1.bf16.msra.mxu1 %v6683_v24  ;;  %v92_v24 = vld [vmem:[%s10442_s1 + $0x1f8] sm:$0xff] }
  0xa6   :  { %1842 = vmatprep.subr.bf16.mxu1 %v6804_v25  ;;  %v220_v25 = vld [vmem:[%s10442_s1 + $0x5f8] sm:$0xff]  ;;  %v6614_v28 = vcombine.high %v88_v23, %v92_v24  ;;  %v6613_v34 = vcombine.low %v88_v23, %v92_v24 }
  0xa7   :  { %1802 = vmatpush2.bf16.msra.mxu0 %v6675_v30  ;;  %v6742_v29 = vcombine.high %v216_v54, %v220_v25  ;;  %v80_v30 = vld [vmem:[%s10442_s1 + $0x198] sm:$0xff]  ;;  %v6741_v35 = vcombine.low %v216_v54, %v220_v25 }
  0xa8   :  { %1803 = vmatprep.subr.bf16.mxu0 %v6668_v32  ;;  %v208_v32 = vld [vmem:[%s10442_s1 + $0x598] sm:$0xff] }
  0xa9   :  { %1843 = vmatpush2.bf16.msra.mxu1 %v6803_v31  ;;  %v84_v31 = vld [vmem:[%s10442_s1 + $0x1b8] sm:$0xff] }
  0xaa   :  { %1844 = vmatprep.subr.bf16.mxu1 %v6796_v33  ;;  %v212_v33 = vld [vmem:[%s10442_s1 + $0x5b8] sm:$0xff]  ;;  %v6606_v36 = vcombine.high %v80_v30, %v84_v31  ;;  %v6605_v42 = vcombine.low %v80_v30, %v84_v31 }
  0xab   :  { %1804 = vmatpush2.bf16.msra.mxu0 %v6667_v38  ;;  %v6734_v37 = vcombine.high %v208_v32, %v212_v33  ;;  %v72_v38 = vld [vmem:[%s10442_s1 + $0x158] sm:$0xff]  ;;  %v6733_v43 = vcombine.low %v208_v32, %v212_v33 }
  0xac   :  { %1805 = vmatprep.subr.bf16.mxu0 %v6660_v40  ;;  %v200_v40 = vld [vmem:[%s10442_s1 + $0x558] sm:$0xff] }
  0xad   :  { %1845 = vmatpush2.bf16.msra.mxu1 %v6795_v39  ;;  %v76_v39 = vld [vmem:[%s10442_s1 + $0x178] sm:$0xff] }
  0xae   :  { %1846 = vmatprep.subr.bf16.mxu1 %v6788_v41  ;;  %v204_v41 = vld [vmem:[%s10442_s1 + $0x578] sm:$0xff]  ;;  %v6598_v44 = vcombine.high %v72_v38, %v76_v39  ;;  %v6597_v50 = vcombine.low %v72_v38, %v76_v39 }
  0xaf   :  { %1806 = vmatpush2.bf16.msra.mxu0 %v6659_v46  ;;  %v6726_v45 = vcombine.high %v200_v40, %v204_v41  ;;  %v64_v46 = vld [vmem:[%s10442_s1 + $0x118] sm:$0xff]  ;;  %v6725_v51 = vcombine.low %v200_v40, %v204_v41 }
  0xb0   :  { %1807 = vmatprep.subr.bf16.mxu0 %v6652_v48  ;;  %v192_v48 = vld [vmem:[%s10442_s1 + $0x518] sm:$0xff] }
  0xb1   :  { %1847 = vmatpush2.bf16.msra.mxu1 %v6787_v47  ;;  %v68_v47 = vld [vmem:[%s10442_s1 + $0x138] sm:$0xff] }
  0xb2   :  { %1848 = vmatprep.subr.bf16.mxu1 %v6780_v49  ;;  %v196_v49 = vld [vmem:[%s10442_s1 + $0x538] sm:$0xff]  ;;  %v6590_v52 = vcombine.high %v64_v46, %v68_v47 }
  0xb3   :  { %1808 = vmatpush2.bf16.msra.mxu0 %v6651_v56  ;;  %v6718_v55 = vcombine.high %v192_v48, %v196_v49  ;;  %v60_v56 = vld [vmem:[%s10442_s1 + $0xf8] sm:$0xff] }
  0xb4   :  { %1809 = vmatprep.subr.bf16.mxu0 %v6644_v60  ;;  %v6589_v60 = vcombine.low %v64_v46, %v68_v47  ;;  %v32_v17 = vld [vmem:[%s10442_s1 + $0x18] sm:$0xff] }
  0xb5   :  { %1849 = vmatpush2.bf16.msra.mxu1 %v6779_v57  ;;  %v188_v57 = vld [vmem:[%s10442_s1 + $0x4f8] sm:$0xff] }
  0xb6   :  { %1850 = vmatprep.subr.bf16.mxu1 %v6772_v61  ;;  %v6717_v61 = vcombine.low %v192_v48, %v196_v49  ;;  %v36_v18 = vld [vmem:[%s10442_s1 + $0x38] sm:$0xff] }
  0xb7   :  { %1810 = vmatpush2.bf16.msra.mxu0 %v6643_v2  ;;  %v176_v2 = vld [vmem:[%s10442_s1 + $0x498] sm:$0xff]  ;;  %v6558_v23 = vcombine.high %v32_v17, %v36_v18 }
  0xb8   :  { %1811 = vmatprep.subr.bf16.mxu0 %v6636_v4  ;;  %v152_v54 = vld [vmem:[%s10442_s1 + $0x3d8] sm:$0xff] }
  0xb9   :  { %1851 = vmatpush2.bf16.msra.mxu1 %v6771_v3  ;;  %v180_v3 = vld [vmem:[%s10442_s1 + $0x4b8] sm:$0xff] }
  0xba   :  { %1852 = vmatprep.subr.bf16.mxu1 %v6764_v5  ;;  %v6702_v7 = vcombine.high %v176_v2, %v180_v3  ;;  %v156_v25 = vld [vmem:[%s10442_s1 + $0x3f8] sm:$0xff] }
  0xbb   :  { %1812 = vmatpush2.bf16.msra.mxu0 %v6635_v10  ;;  %v168_v10 = vld [vmem:[%s10442_s1 + $0x458] sm:$0xff]  ;;  %v6678_v30 = vcombine.high %v152_v54, %v156_v25 }
  0xbc   :  { %1813 = vmatprep.subr.bf16.mxu0 %v6628_v12  ;;  %v6573_v12 = vcombine.low %v48_v0, %v52_v1  ;;  %v144_v32 = vld [vmem:[%s10442_s1 + $0x398] sm:$0xff] }
  0xbd   :  { %1853 = vmatpush2.bf16.msra.mxu1 %v6763_v11  ;;  %v172_v11 = vld [vmem:[%s10442_s1 + $0x478] sm:$0xff] }
  0xbe   :  { %1854 = vmatprep.subr.bf16.mxu1 %v6756_v13  ;;  %v6701_v13 = vcombine.low %v176_v2, %v180_v3  ;;  %v6694_v15 = vcombine.high %v168_v10, %v172_v11  ;;  %v148_v33 = vld [vmem:[%s10442_s1 + $0x3b8] sm:$0xff] }
  0xbf   :  { %1814 = vmatpush2.bf16.msra.mxu0 %v6627_v20  ;;  %v160_v20 = vld [vmem:[%s10442_s1 + $0x418] sm:$0xff]  ;;  %v6670_v38 = vcombine.high %v144_v32, %v148_v33 }
  0xc0   :  { %1815 = vmatprep.subr.bf16.mxu0 %v6620_v22  ;;  %v6565_v22 = vcombine.low %v40_v8, %v44_v9  ;;  %v136_v40 = vld [vmem:[%s10442_s1 + $0x358] sm:$0xff] }
  0xc1   :  { %1855 = vmatpush2.bf16.msra.mxu1 %v6755_v21  ;;  %v164_v21 = vld [vmem:[%s10442_s1 + $0x438] sm:$0xff] }
  0xc2   :  { %1856 = vmatprep.subr.bf16.mxu1 %v6748_v53  ;;  %v6693_v53 = vcombine.low %v168_v10, %v172_v11  ;;  %v6686_v24 = vcombine.high %v160_v20, %v164_v21  ;;  %v140_v41 = vld [vmem:[%s10442_s1 + $0x378] sm:$0xff] }
  0xc3   :  { %1816 = vmatpush2.bf16.msra.mxu0 %v6619_v26  ;;  %v280_v26 = vld [vmem:[%s10442_s1 + $0x7d8] sm:$0xff]  ;;  %v6662_v46 = vcombine.high %v136_v40, %v140_v41 }
  0xc4   :  { %1867 = vmatprep.subr.bf16.mxu0 %v6614_v28  ;;  %v6557_v28 = vcombine.low %v32_v17, %v36_v18  ;;  %v128_v48 = vld [vmem:[%s10442_s1 + $0x318] sm:$0xff] }
  0xc5   :  { %1857 = vmatpush2.bf16.msra.mxu1 %v6747_v27  ;;  %v284_v27 = vld [vmem:[%s10442_s1 + $0x7f8] sm:$0xff] }
  0xc6   :  { %1908 = vmatprep.subr.bf16.mxu1 %v6742_v29  ;;  %1818 = vmatmul.mubr.bf16.vlgmr.msra.gmra.mxu0 %v7879_v16  ;;  %v6685_v29 = vcombine.low %v160_v20, %v164_v21  ;;  %v6806_v31 = vcombine.high %v280_v26, %v284_v27  ;;  %v132_v49 = vld [vmem:[%s10442_s1 + $0x338] sm:$0xff] }
  0xc7   :  { %1868 = vmatpush1.bf16.msra.mxu0 %v6613_v34  ;;  %1899 = vmatprep.mubr.bf16.mxu0 %v7749_v58  ;;  %v56_v58 = vld [vmem:[%s10442_s1 + $0xd8] sm:$0xff] }
  0xc8   :  { %1859 = vmatmul.mubr.bf16.vlgmr.msra.gmra.mxu1 %v7889_v19  ;;  %1869 = vmatprep.subr.bf16.mxu0 %v6606_v36  ;;  %v6582_v62 = vcombine.high %v56_v58, %v60_v56  ;;  %v6581_v4 = vcombine.low %v56_v58, %v60_v56  ;;  %v272_v34 = vld [vmem:[%s10442_s1 + $0x798] sm:$0xff]  ;;  %v6677_v36 = vcombine.low %v152_v54, %v156_v25 }
  0xc9   :  { %1909 = vmatpush1.bf16.msra.mxu1 %v6741_v35  ;;  %1940 = vmatprep.mubr.bf16.mxu1 %v7753_v59  ;;  %v184_v59 = vld [vmem:[%s10442_s1 + $0x4d8] sm:$0xff]  ;;  %v6654_v58 = vcombine.high %v128_v48, %v132_v49 }
  0xca   :  { %1910 = vmatprep.subr.bf16.mxu1 %v6734_v37  ;;  %v6710_v63 = vcombine.high %v184_v59, %v188_v57  ;;  %v6709_v5 = vcombine.low %v184_v59, %v188_v57  ;;  %v276_v35 = vld [vmem:[%s10442_s1 + $0x7b8] sm:$0xff]  ;;  %v6805_v37 = vcombine.low %v280_v26, %v284_v27 }
  0xcb   :  { %1870 = vmatpush1.bf16.msra.mxu0 %v6605_v42  ;;  %v6798_v39 = vcombine.high %v272_v34, %v276_v35  ;;  %v264_v42 = vld [vmem:[%s10442_s1 + $0x758] sm:$0xff] }
  0xcc   :  { %1871 = vmatprep.subr.bf16.mxu0 %v6598_v44  ;;  %v6669_v44 = vcombine.low %v144_v32, %v148_v33  ;;  %v120_v59 = vld [vmem:[%s10442_s1 + $0x2d8] sm:$0xff] }
  0xcd   :  { %1911 = vmatpush1.bf16.msra.mxu1 %v6733_v43  ;;  %v268_v43 = vld [vmem:[%s10442_s1 + $0x778] sm:$0xff] }
  0xce   :  { %1912 = vmatprep.subr.bf16.mxu1 %v6726_v45  ;;  %v6797_v45 = vcombine.low %v272_v34, %v276_v35  ;;  %v6790_v47 = vcombine.high %v264_v42, %v268_v43  ;;  %v124_v57 = vld [vmem:[%s10442_s1 + $0x2f8] sm:$0xff] }
  0xcf   :  { %1872 = vmatpush1.bf16.msra.mxu0 %v6597_v50  ;;  %v256_v50 = vld [vmem:[%s10442_s1 + $0x718] sm:$0xff]  ;;  %v6646_v0 = vcombine.high %v120_v59, %v124_v57 }
  0xd0   :  { %1873 = vmatprep.subr.bf16.mxu0 %v6590_v52  ;;  %v6661_v52 = vcombine.low %v136_v40, %v140_v41  ;;  %v112_v2 = vld [vmem:[%s10442_s1 + $0x298] sm:$0xff]  ;;  %v8480_v40 = vld [vmem:[%s10445_s2] sm:$0xff] }
  0xd1   :  { %1913 = vmatpush1.bf16.msra.mxu1 %v6725_v51  ;;  %v260_v51 = vld [vmem:[%s10442_s1 + $0x738] sm:$0xff]  ;;  %v2197_v41 = vld [vmem:[%s10444_s3 + $0x580] sm:$0xff] }
  0xd2   :  { %1914 = vmatprep.subr.bf16.mxu1 %v6718_v55  ;;  %v6789_v55 = vcombine.low %v264_v42, %v268_v43  ;;  %v6782_v56 = vcombine.high %v256_v50, %v260_v51  ;;  %v116_v3 = vld [vmem:[%s10442_s1 + $0x2b8] sm:$0xff]  ;;  %v2201_v42 = vld [vmem:[%s10444_s3 + $0x5a0] sm:$0xff] }
  0xd3   :  { %1874 = vmatpush1.bf16.msra.mxu0 %v6589_v60  ;;  %v248_v60 = vld [vmem:[%s10442_s1 + $0x6d8] sm:$0xff]  ;;  %v6638_v8 = vcombine.high %v112_v2, %v116_v3 }
  0xd4   :  { %1875 = vmatprep.subr.bf16.mxu0 %v6582_v62  ;;  %v6653_v62 = vcombine.low %v128_v48, %v132_v49  ;;  %v104_v10 = vld [vmem:[%s10442_s1 + $0x258] sm:$0xff]  ;;  %v2061_v48 = vld [vmem:[%s10444_s3 + $0x140] sm:$0xff] }
  0xd5   :  { %1915 = vmatpush1.bf16.msra.mxu1 %v6717_v61  ;;  %v252_v61 = vld [vmem:[%s10442_s1 + $0x6f8] sm:$0xff]  ;;  %v2065_v49 = vld [vmem:[%s10444_s3 + $0x160] sm:$0xff] }
  0xd6   :  { %1916 = vmatprep.subr.bf16.mxu1 %v6710_v63  ;;  %v6781_v63 = vcombine.low %v256_v50, %v260_v51  ;;  %v6774_v1 = vcombine.high %v248_v60, %v252_v61  ;;  %v108_v11 = vld [vmem:[%s10442_s1 + $0x278] sm:$0xff]  ;;  %v6984_v50 = vcombine.high %v2197_v41, %v2201_v42 }
  0xd7   :  { %1876 = vmatpush1.bf16.msra.mxu0 %v6581_v4  ;;  %v240_v4 = vld [vmem:[%s10442_s1 + $0x698] sm:$0xff]  ;;  %v6630_v17 = vcombine.high %v104_v10, %v108_v11 }
  0xd8   :  { %1877 = vmatprep.subr.bf16.mxu0 %v6574_v6  ;;  %v6645_v6 = vcombine.low %v120_v59, %v124_v57  ;;  %v96_v20 = vld [vmem:[%s10442_s1 + $0x218] sm:$0xff]  ;;  %v6848_v57 = vcombine.high %v2061_v48, %v2065_v49 }
  0xd9   :  { %1917 = vmatpush1.bf16.msra.mxu1 %v6709_v5  ;;  %v244_v5 = vld [vmem:[%s10442_s1 + $0x6b8] sm:$0xff] }
  0xda   :  { %1918 = vmatprep.subr.bf16.mxu1 %v6702_v7  ;;  %v6773_v7 = vcombine.low %v248_v60, %v252_v61  ;;  %v6766_v9 = vcombine.high %v240_v4, %v244_v5  ;;  %v100_v21 = vld [vmem:[%s10442_s1 + $0x238] sm:$0xff]  ;;  %v6983_v60 = vcombine.low %v2197_v41, %v2201_v42 }
  0xdb   :  { %1878 = vmatpush1.bf16.msra.mxu0 %v6573_v12  ;;  %v232_v12 = vld [vmem:[%s10442_s1 + $0x658] sm:$0xff]  ;;  %v6622_v25 = vcombine.high %v96_v20, %v100_v21  ;;  %v6621_v32 = vcombine.low %v96_v20, %v100_v21 }
  0xdc   :  { %1879 = vmatprep.subr.bf16.mxu0 %v6566_v14  ;;  %v6637_v14 = vcombine.low %v112_v2, %v116_v3  ;;  %v2181_v2 = vld [vmem:[%s10444_s3 + $0x500] sm:$0xff] }
  0xdd   :  { %1919 = vmatpush1.bf16.msra.mxu1 %v6701_v13  ;;  %v236_v13 = vld [vmem:[%s10442_s1 + $0x678] sm:$0xff]  ;;  %v2185_v3 = vld [vmem:[%s10444_s3 + $0x520] sm:$0xff] }
  0xde   :  { %1920 = vmatprep.subr.bf16.mxu1 %v6694_v15  ;;  %v6765_v15 = vcombine.low %v240_v4, %v244_v5  ;;  %v6758_v18 = vcombine.high %v232_v12, %v236_v13  ;;  %v6757_v54 = vcombine.low %v232_v12, %v236_v13  ;;  %v2045_v13 = vld [vmem:[%s10444_s3 + $0xc0] sm:$0xff] }
  0xdf   :  { %1880 = vmatpush1.bf16.msra.mxu0 %v6565_v22  ;;  %v287_v22 = vlaneseq }
  0xe0   :  { %1881 = vmatprep.subr.bf16.mxu0 %v6558_v23  ;;  %v228_v23 = vld [vmem:[%s10442_s1 + $0x638] sm:$0xff] }
  0xe1   :  { %1921 = vmatpush1.bf16.msra.mxu1 %v6693_v53  ;;  %v224_v53 = vld [vmem:[%s10442_s1 + $0x618] sm:$0xff]  ;;  %v8455_v27 = vshrl.u32 %v287_v22, 7 }
  0xe2   :  { %1922 = vmatprep.subr.bf16.mxu1 %v6686_v24  ;;  %v6629_v24 = vcombine.low %v104_v10, %v108_v11  ;;  %v6750_v26 = vcombine.high %v224_v53, %v228_v23  ;;  %v6749_v33 = vcombine.low %v224_v53, %v228_v23  ;;  %v6967_v53 = vcombine.low %v2181_v2, %v2185_v3 }
  0xe3   :  { %1882 = vmatpush1.bf16.msra.mxu0 %v6557_v28  ;;  %v2077_v28 = vld [vmem:[%s10444_s3 + $0x1c0] sm:$0xff]  ;;  %v289_v35 = vsub.s32 0, %v8455_v27 }
  0xe4   :  { %1883 = vmatprep.subr.bf16.mxu0 %v6678_v30  ;;  %v2205_v30 = vld [vmem:[%s10444_s3 + $0x5c0] sm:$0xff] }
  0xe5   :  { %1923 = vmatpush1.bf16.msra.mxu1 %v6685_v29  ;;  %v2081_v29 = vld [vmem:[%s10444_s3 + $0x1e0] sm:$0xff] }
  0xe6   :  { %1924 = vmatprep.subr.bf16.mxu1 %v6806_v31  ;;  %v2209_v31 = vld [vmem:[%s10444_s3 + $0x5e0] sm:$0xff]  ;;  %v6864_v34 = vcombine.high %v2077_v28, %v2081_v29  ;;  %v6863_v43 = vcombine.low %v2077_v28, %v2081_v29 }
  0xe7   :  { %1884 = vmatpush2.bf16.msra.mxu0 %v6677_v36  ;;  %v293_v36 = vsub.s32 1, %v8455_v27  ;;  %v2169_v28 = vld [vmem:[%s10444_s3 + $0x4a0] sm:$0xff] }
  0xe8   :  { %1885 = vmatprep.subr.bf16.mxu0 %v6670_v38  ;;  %v2073_v38 = vld [vmem:[%s10444_s3 + $0x1a0] sm:$0xff] }
  0xe9   :  { %1925 = vmatpush2.bf16.msra.mxu1 %v6805_v37  ;;  %v2069_v37 = vld [vmem:[%s10444_s3 + $0x180] sm:$0xff] }
  0xea   :  { %1926 = vmatprep.subr.bf16.mxu1 %v6798_v39  ;;  %v6992_v39 = vcombine.high %v2205_v30, %v2209_v31 }
  0xeb   :  { %1886 = vmatpush2.bf16.msra.mxu0 %v6669_v44  ;;  %v6856_v44 = vcombine.high %v2069_v37, %v2073_v38 }
  0xec   :  { %1887 = vmatprep.subr.bf16.mxu0 %v6662_v46  ;;  %v290_v46 = vrot.slane %v8480_v40, %v289_v35 }
  0xed   :  { %1927 = vmatpush2.bf16.msra.mxu1 %v6797_v45  ;;  %v6991_v45 = vcombine.low %v2205_v30, %v2209_v31 }
  0xee   :  { %1928 = vmatprep.subr.bf16.mxu1 %v6790_v47  ;;  %v294_v47 = vrot.slane %v8480_v40, %v293_v36 }
  0xef   :  { %1888 = vmatpush2.bf16.msra.mxu0 %v6661_v52  ;;  %v2189_v52 = vld [vmem:[%s10444_s3 + $0x540] sm:$0xff] }
  0xf0   :  { %1889 = vmatprep.subr.bf16.mxu0 %v6654_v58 }
  0xf1   :  { %1929 = vmatpush2.bf16.msra.mxu1 %v6789_v55  ;;  %v2193_v55 = vld [vmem:[%s10444_s3 + $0x560] sm:$0xff] }
  0xf2   :  { %1930 = vmatprep.subr.bf16.mxu1 %v6782_v56  ;;  %v6855_v56 = vcombine.low %v2069_v37, %v2073_v38  ;;  %v2157_v38 = vld [vmem:[%s10444_s3 + $0x440] sm:$0xff] }
  0xf3   :  { %1890 = vmatpush2.bf16.msra.mxu0 %v6653_v62 }
  0xf4   :  { %1891 = vmatprep.subr.bf16.mxu0 %v6646_v0  ;;  %v2057_v0 = vld [vmem:[%s10444_s3 + $0x120] sm:$0xff] }
  0xf5   :  { %1931 = vmatpush2.bf16.msra.mxu1 %v6781_v63  ;;  %v2053_v63 = vld [vmem:[%s10444_s3 + $0x100] sm:$0xff] }
  0xf6   :  { %1932 = vmatprep.subr.bf16.mxu1 %v6774_v1  ;;  %v6839_v21 = vcombine.low %v2053_v63, %v2057_v0 }
  0xf7   :  { %1892 = vmatpush2.bf16.msra.mxu0 %v6645_v6  ;;  %v6847_v6 = vcombine.low %v2061_v48, %v2065_v49  ;;  %v2153_v48 = vld [vmem:[%s10444_s3 + $0x420] sm:$0xff] }
  0xf8   :  { %1893 = vmatprep.subr.bf16.mxu0 %v6638_v8  ;;  %v6840_v8 = vcombine.high %v2053_v63, %v2057_v0  ;;  %v2133_v63 = vld [vmem:[%s10444_s3 + $0x380] sm:$0xff] }
  0xf9   :  { %1933 = vmatpush2.bf16.msra.mxu1 %v6773_v7  ;;  %v2137_v0 = vld [vmem:[%s10444_s3 + $0x3a0] sm:$0xff] }
  0xfa   :  { %1934 = vmatprep.subr.bf16.mxu1 %v6766_v9  ;;  %v6975_v9 = vcombine.low %v2189_v52, %v2193_v55 }
  0xfb   :  { %1894 = vmatpush2.bf16.msra.mxu0 %v6637_v14  ;;  %v2049_v14 = vld [vmem:[%s10444_s3 + $0xe0] sm:$0xff] }
  0xfc   :  { %1895 = vmatprep.subr.bf16.mxu0 %v6630_v17  ;;  %v2173_v17 = vld [vmem:[%s10444_s3 + $0x4c0] sm:$0xff]  ;;  %v6832_v22 = vcombine.high %v2045_v13, %v2049_v14  ;;  %v6831_v29 = vcombine.low %v2045_v13, %v2049_v14  ;;  %v6919_v14 = vcombine.low %v2133_v63, %v2137_v0 }
  0xfd   :  { %1935 = vmatpush2.bf16.msra.mxu1 %v6765_v15  ;;  %v6968_v15 = vcombine.high %v2181_v2, %v2185_v3  ;;  %v2265_v2 = vld [vmem:[%s10444_s3 + $0x7a0] sm:$0xff] }
  0xfe   :  { %1936 = vmatprep.subr.bf16.mxu1 %v6758_v18  ;;  %v2177_v18 = vld [vmem:[%s10444_s3 + $0x4e0] sm:$0xff] }
  0xff   :  { %1896 = vmatpush2.bf16.msra.mxu0 %v6629_v24  ;;  %v2037_v24 = vld [vmem:[%s10444_s3 + $0x80] sm:$0xff]  ;;  %v6959_v31 = vcombine.low %v2173_v17, %v2177_v18 }
 0x100   :  { %1897 = vmatprep.subr.bf16.mxu0 %v6622_v25  ;;  %v6960_v25 = vcombine.high %v2173_v17, %v2177_v18  ;;  %v2257_v13 = vld [vmem:[%s10444_s3 + $0x760] sm:$0xff] }
 0x101   :  { %1937 = vmatpush2.bf16.msra.mxu1 %v6757_v54  ;;  %v2041_v54 = vld [vmem:[%s10444_s3 + $0xa0] sm:$0xff] }
 0x102   :  { %1938 = vmatprep.subr.bf16.mxu1 %v6750_v26  ;;  %v2165_v26 = vld [vmem:[%s10444_s3 + $0x480] sm:$0xff]  ;;  %v6824_v30 = vcombine.high %v2037_v24, %v2041_v54  ;;  %v6823_v41 = vcombine.low %v2037_v24, %v2041_v54 }
 0x103   :  { %1898 = vmatpush2.bf16.msra.mxu0 %v6621_v32  ;;  %v6952_v37 = vcombine.high %v2165_v26, %v2169_v28 }
 0x104   :  { %5135 = vmatprep.subr.bf16.mxu0 %v6864_v34  ;;  %v2033_v34 = vld [vmem:[%s10444_s3 + $0x60] sm:$0xff] }
 0x105   :  { %1939 = vmatpush2.bf16.msra.mxu1 %v6749_v33  ;;  %v2029_v33 = vld [vmem:[%s10444_s3 + $0x40] sm:$0xff] }
 0x106   :  { %5176 = vmatprep.subr.bf16.mxu1 %v6992_v39  ;;  %v1655_v51 = vpop.f32.mrf.mxu0  ;;  %1900 = vmatmul.mubr.bf16.vlgmr.msra.gmra.mxu0 %v7879_v16  ;;  %v2161_v39 = vld [vmem:[%s10444_s3 + $0x460] sm:$0xff]  ;;  %v6816_v42 = vcombine.high %v2029_v33, %v2033_v34  ;;  %v6815_v49 = vcombine.low %v2029_v33, %v2033_v34 }
 0x107   :  { %5136 = vmatpush1.bf16.msra.mxu0 %v6863_v43  ;;  %v1656_v61 = vadd.f32 %v1655_v51, %v290_v46  ;;  %v6951_v43 = vcombine.low %v2165_v26, %v2169_v28  ;;  %v6944_v46 = vcombine.high %v2157_v38, %v2161_v39  ;;  %v6943_v51 = vcombine.low %v2157_v38, %v2161_v39  ;;  %v2109_v26 = vld [vmem:[%s10444_s3 + $0x2c0] sm:$0xff] }
 0x108   :  { %v1696_v58 = vpop.f32.mrf.mxu1  ;;  %1941 = vmatmul.mubr.bf16.vlgmr.msra.gmra.mxu1 %v7889_v19  ;;  %v1657_v59 = vpop.f32.mrf.mxu0  ;;  %5137 = vmatprep.subr.bf16.mxu0 %v6856_v44  ;;  %v6976_v19 = vcombine.high %v2189_v52, %v2193_v55  ;;  %v2021_v44 = vld [vmem:[%s10444_s3] sm:$0xff] }
 0x109   :  { %5177 = vmatpush1.bf16.msra.mxu1 %v6991_v45  ;;  %v1658_v16 = vadd.f32 %v1657_v59, %v294_v47  ;;  %v8522_v10 = vadd.f32 %v1696_v58, %v1656_v61  ;;  %v2025_v45 = vld [vmem:[%s10444_s3 + $0x20] sm:$0xff] }
 0x10a   :  { %v1698_v62 = vpop.f32.mrf.mxu1  ;;  %5178 = vmatprep.subr.bf16.mxu1 %v6984_v50  ;;  %v1659_v1 = vpop.f32.mrf.mxu0  ;;  %v2149_v47 = vld [vmem:[%s10444_s3 + $0x400] sm:$0xff]  ;;  %v6808_v50 = vcombine.high %v2021_v44, %v2025_v45  ;;  %v6807_v61 = vcombine.low %v2021_v44, %v2025_v45 }
 0x10b   :  { %v8520_v4 = vadd.f32 %v1698_v62, %v1658_v16  ;;  %5138 = vmatpush1.bf16.msra.mxu0 %v6855_v56  ;;  %v1957_v23 = vmin.f32 %v8522_v10, 20.0  ;;  %v2141_v52 = vld [vmem:[%s10444_s3 + $0x3c0] sm:$0xff]  ;;  %v6936_v58 = vcombine.high %v2149_v47, %v2153_v48  ;;  %v6935_v62 = vcombine.low %v2149_v47, %v2153_v48 }
 0x10c   :  { %v1700_v5 = vpop.f32.mrf.mxu1  ;;  %v1660_v7 = vpop.f32.mrf.mxu0  ;;  %5139 = vmatprep.subr.bf16.mxu0 %v6848_v57  ;;  %v2145_v55 = vld [vmem:[%s10444_s3 + $0x3e0] sm:$0xff]  ;;  %vm1949_vm1 = vcmp.gt.f32.partialorder %v8522_v10, 20.0 }
 0x10d   :  { %5179 = vmatpush1.bf16.msra.mxu1 %v6983_v60  ;;  %v1958_v11 = vmin.f32 %v8520_v4, 20.0  ;;  %v1965_v32 = vmul.f32 1.442695, %v1957_v23  ;;  %v2269_v59 = vld [vmem:[%s10444_s3 + $0x7c0] sm:$0xff]  ;;  %v6928_v16 = vcombine.high %v2141_v52, %v2145_v55  ;;  %v6927_v3 = vcombine.low %v2141_v52, %v2145_v55 }
 0x10e   :  { %v1701_v12 = vpop.f32.mrf.mxu1  ;;  %5180 = vmatprep.subr.bf16.mxu1 %v6976_v19  ;;  %v2273_v57 = vld [vmem:[%s10444_s3 + $0x7e0] sm:$0xff]  ;;  %v6920_v5 = vcombine.high %v2133_v63, %v2137_v0  ;;  %vm1950_vm0 = vcmp.gt.f32.partialorder %v8520_v4, 20.0 }
 0x10f   :  { %v1967_v20 = vmul.f32 1.442695, %v1958_v11  ;;  %5140 = vmatpush1.bf16.msra.mxu0 %v6847_v6  ;;  %v7056_v19 = vcombine.high %v2269_v59, %v2273_v57  ;;  %v2261_v1 = vld [vmem:[%s10444_s3 + $0x780] sm:$0xff]  ;;  %v7055_v6 = vcombine.low %v2269_v59, %v2273_v57 }
 0x110   :  { %5141 = vmatprep.subr.bf16.mxu0 %v6840_v8  ;;  %v2125_v7 = vld [vmem:[%s10444_s3 + $0x340] sm:$0xff]  ;;  %v7047_v17 = vcombine.low %v2261_v1, %v2265_v2 }
 0x111   :  { %5181 = vmatpush1.bf16.msra.mxu1 %v6975_v9  ;;  %7540 = vpow2.f32 %v1967_v20  ;;  %v2129_v8 = vld [vmem:[%s10444_s3 + $0x360] sm:$0xff]  ;;  %v7048_v9 = vcombine.high %v2261_v1, %v2265_v2 }
 0x112   :  { %5182 = vmatprep.subr.bf16.mxu1 %v6968_v15  ;;  %7542 = vpow2.f32 %v1965_v32  ;;  %v2253_v12 = vld [vmem:[%s10444_s3 + $0x740] sm:$0xff]  ;;  %v6912_v15 = vcombine.high %v2125_v7, %v2129_v8  ;;  %v6911_v24 = vcombine.low %v2125_v7, %v2129_v8  ;;  %v297_v8 = vsub.s32 2, %v8455_v27 }
 0x113   :  { %5142 = vmatpush1.bf16.msra.mxu0 %v6839_v21  ;;  %v2117_v20 = vld [vmem:[%s10444_s3 + $0x300] sm:$0xff] }
 0x114   :  { %5143 = vmatprep.subr.bf16.mxu0 %v6832_v22  ;;  %v2121_v21 = vld [vmem:[%s10444_s3 + $0x320] sm:$0xff]  ;;  %v7040_v22 = vcombine.high %v2253_v12, %v2257_v13 }
 0x115   :  { %5183 = vmatpush1.bf16.msra.mxu1 %v6967_v53  ;;  %v2245_v53 = vld [vmem:[%s10444_s3 + $0x700] sm:$0xff]  ;;  %v6904_v54 = vcombine.high %v2117_v20, %v2121_v21  ;;  %v6903_v32 = vcombine.low %v2117_v20, %v2121_v21 }
 0x116   :  { %5184 = vmatprep.subr.bf16.mxu1 %v6960_v25  ;;  %v2249_v23 = vld [vmem:[%s10444_s3 + $0x720] sm:$0xff]  ;;  %v7039_v25 = vcombine.low %v2253_v12, %v2257_v13 }
 0x117   :  { %5144 = vmatpush1.bf16.msra.mxu0 %v6831_v29  ;;  %v2113_v28 = vld [vmem:[%s10444_s3 + $0x2e0] sm:$0xff]  ;;  %v7032_v29 = vcombine.high %v2245_v53, %v2249_v23 }
 0x118   :  { %5145 = vmatprep.subr.bf16.mxu0 %v6824_v30  ;;  %v2237_v33 = vld [vmem:[%s10444_s3 + $0x6c0] sm:$0xff]  ;;  %v6895_v45 = vcombine.low %v2109_v26, %v2113_v28 }
 0x119   :  { %5185 = vmatpush1.bf16.msra.mxu1 %v6959_v31  ;;  %v2241_v34 = vld [vmem:[%s10444_s3 + $0x6e0] sm:$0xff] }
 0x11a   :  { %5186 = vmatprep.subr.bf16.mxu1 %v6952_v37  ;;  %v6896_v37 = vcombine.high %v2109_v26, %v2113_v28  ;;  %v2101_v39 = vld [vmem:[%s10444_s3 + $0x280] sm:$0xff]  ;;  %v7024_v44 = vcombine.high %v2237_v33, %v2241_v34 }
 0x11b   :  { %5146 = vmatpush1.bf16.msra.mxu0 %v6823_v41  ;;  %v2105_v41 = vld [vmem:[%s10444_s3 + $0x2a0] sm:$0xff] }
 0x11c   :  { %5147 = vmatprep.subr.bf16.mxu0 %v6816_v42  ;;  %v7031_v42 = vcombine.low %v2245_v53, %v2249_v23  ;;  %v6888_v47 = vcombine.high %v2101_v39, %v2105_v41  ;;  %v2093_v48 = vld [vmem:[%s10444_s3 + $0x240] sm:$0xff]  ;;  %v6887_v52 = vcombine.low %v2101_v39, %v2105_v41 }
 0x11d   :  { %5187 = vmatpush1.bf16.msra.mxu1 %v6951_v43  ;;  %v2221_v55 = vld [vmem:[%s10444_s3 + $0x640] sm:$0xff] }
 0x11e   :  { %5188 = vmatprep.subr.bf16.mxu1 %v6944_v46  ;;  %v7541_v56 = vpop.eup %7540  ;;  %v2229_v46 = vld [vmem:[%s10444_s3 + $0x680] sm:$0xff] }
 0x11f   :  { %v1982_v60 = vadd.f32 1.0, %v7541_v56  ;;  %5148 = vmatpush1.bf16.msra.mxu0 %v6815_v49  ;;  %v7543_v11 = vpop.eup %7542  ;;  %v2097_v49 = vld [vmem:[%s10444_s3 + $0x260] sm:$0xff] }
 0x120   :  { %5149 = vmatprep.subr.bf16.mxu0 %v6808_v50  ;;  %v1981_v18 = vadd.f32 1.0, %v7543_v11  ;;  %v7023_v50 = vcombine.low %v2237_v33, %v2241_v34  ;;  %v6880_v56 = vcombine.high %v2093_v48, %v2097_v49  ;;  %v2085_v59 = vld [vmem:[%s10444_s3 + $0x200] sm:$0xff] }
 0x121   :  { %5189 = vmatpush1.bf16.msra.mxu1 %v6943_v51  ;;  %7544 = vlog2.f32 %v1982_v60  ;;  %v2089_v57 = vld [vmem:[%s10444_s3 + $0x220] sm:$0xff] }
 0x122   :  { %5190 = vmatprep.subr.bf16.mxu1 %v6936_v58  ;;  %7546 = vlog2.f32 %v1981_v18  ;;  %v2225_v58 = vld [vmem:[%s10444_s3 + $0x660] sm:$0xff]  ;;  %v6871_v7 = vcombine.low %v2085_v59, %v2089_v57 }
 0x123   :  { %5150 = vmatpush1.bf16.msra.mxu0 %v6807_v61  ;;  %v2213_v63 = vld [vmem:[%s10444_s3 + $0x600] sm:$0xff]  ;;  %v7007_v2 = vcombine.low %v2221_v55, %v2225_v58 }
 0x124   :  { %5151 = vmatprep.subr.bf16.mxu0 %v6928_v16  ;;  %v7008_v16 = vcombine.high %v2221_v55, %v2225_v58  ;;  %v2217_v0 = vld [vmem:[%s10444_s3 + $0x620] sm:$0xff] }
 0x125   :  { %5191 = vmatpush1.bf16.msra.mxu1 %v6935_v62  ;;  %v6879_v62 = vcombine.low %v2093_v48, %v2097_v49  ;;  %v8690_v11 = vld [vmem:[%s10444_s3 + $0xde0] sm:$0xff] }
 0x126   :  { %5192 = vmatprep.subr.bf16.mxu1 %v7056_v19  ;;  %v6872_v19 = vcombine.high %v2085_v59, %v2089_v57  ;;  %v2329_v18 = vld [vmem:[%s10444_s3 + $0x9a0] sm:$0xff] }
 0x127   :  { %5152 = vmatpush2.bf16.msra.mxu0 %v6927_v3  ;;  %v2333_v3 = vld [vmem:[%s10444_s3 + $0x9c0] sm:$0xff] }
 0x128   :  { %5153 = vmatprep.subr.bf16.mxu0 %v6920_v5  ;;  %v2337_v5 = vld [vmem:[%s10444_s3 + $0x9e0] sm:$0xff] }
 0x129   :  { %5193 = vmatpush2.bf16.msra.mxu1 %v7055_v6  ;;  %v7000_v6 = vcombine.high %v2213_v63, %v2217_v0  ;;  %v7120_v12 = vcombine.high %v2333_v3, %v2337_v5  ;;  %v7119_v21 = vcombine.low %v2333_v3, %v2337_v5  ;;  %v2297_v59 = vld [vmem:[%s10444_s3 + $0x8a0] sm:$0xff] }
 0x12a   :  { %5194 = vmatprep.subr.bf16.mxu1 %v7048_v9  ;;  %v8685_v9 = vld [vmem:[%s10444_s3 + $0xdc0] sm:$0xff] }
 0x12b   :  { %5154 = vmatpush2.bf16.msra.mxu0 %v6919_v14  ;;  %v301_v14 = vsub.s32 3, %v8455_v27  ;;  %v7248_v20 = vcombine.high %v8685_v9, %v8690_v11 }
 0x12c   :  { %5155 = vmatprep.subr.bf16.mxu0 %v6912_v15  ;;  %v6999_v15 = vcombine.low %v2213_v63, %v2217_v0  ;;  %v2277_v0 = vld [vmem:[%s10444_s3 + $0x800] sm:$0xff] }
 0x12d   :  { %5195 = vmatpush2.bf16.msra.mxu1 %v7047_v17  ;;  %v2325_v17 = vld [vmem:[%s10444_s3 + $0x980] sm:$0xff]  ;;  %v302_v23 = vrot.slane %v8480_v40, %v301_v14 }
 0x12e   :  { %5196 = vmatprep.subr.bf16.mxu1 %v7040_v22  ;;  %v7545_v30 = vpop.eup %7544  ;;  %v7112_v53 = vcombine.high %v2325_v17, %v2329_v18 }
 0x12f   :  { %v1992_v31 = vmul.f32 0.6931472, %v7545_v30  ;;  %5156 = vmatpush2.bf16.msra.mxu0 %v6911_v24  ;;  %v7547_v61 = vpop.eup %7546  ;;  %v2317_v24 = vld [vmem:[%s10444_s3 + $0x940] sm:$0xff] }
 0x130   :  { %5157 = vmatprep.subr.bf16.mxu0 %v6904_v54  ;;  %v1990_v1 = vmul.f32 0.6931472, %v7547_v61  ;;  %v2321_v54 = vld [vmem:[%s10444_s3 + $0x960] sm:$0xff] }
 0x131   :  { %5197 = vmatpush2.bf16.msra.mxu1 %v7039_v25  ;;  %v2006_v38 = vsel %vm1950_vm0, %v8520_v4, %v1992_v31  ;;  %v2233_v4 = vld [vmem:[%s10444_s3 + $0x6a0] sm:$0xff]  ;;  %v7104_v31 = vcombine.high %v2317_v24, %v2321_v54 }
 0x132   :  { %5198 = vmatprep.subr.bf16.mxu1 %v7032_v29  ;;  %v8642_v43 = vpack.c.bf16 %v2006_v38, %v2006_v38  ;;  %v7016_v51 = vcombine.high %v2229_v46, %v2233_v4  ;;  %v7015_v60 = vcombine.low %v2229_v46, %v2233_v4  ;;  %v2005_v13 = vsel %vm1949_vm1, %v8522_v10, %v1990_v1  ;;  %v2313_v38 = vld [vmem:[%s10444_s3 + $0x920] sm:$0xff] }
 0x133   :  { %5158 = vmatpush2.bf16.msra.mxu0 %v6903_v32  ;;  %v298_v10 = vrot.slane %v8480_v40, %v297_v8  ;;  %v8706_v22 = vpack.c.bf16 %v2005_v13, %v2005_v13  ;;  %v7111_v29 = vcombine.low %v2325_v17, %v2329_v18  ;;  %v2285_v61 = vld [vmem:[%s10444_s3 + $0x840] sm:$0xff] }
 0x134   :  { %5167 = vmatprep.mubr.bf16.mxu0 %v8642_v43  ;;  %5159 = vmatprep.subr.bf16.mxu0 %v6896_v37  ;;  %v2309_v37 = vld [vmem:[%s10444_s3 + $0x900] sm:$0xff] }
 0x135   :  { %5199 = vmatpush2.bf16.msra.mxu1 %v7031_v42  ;;  %v7096_v4 = vcombine.high %v2309_v37, %v2313_v38  ;;  %v7095_v55 = vcombine.low %v2309_v37, %v2313_v38  ;;  %v2389_v18 = vld [vmem:[%s10444_s3 + $0xb80] sm:$0xff] }
 0x136   :  { %5200 = vmatprep.subr.bf16.mxu1 %v7024_v44 }
 0x137   :  { %5160 = vmatpush2.bf16.msra.mxu0 %v6895_v45  ;;  %v7103_v45 = vcombine.low %v2317_v24, %v2321_v54 }
 0x138   :  { %5161 = vmatprep.subr.bf16.mxu0 %v6888_v47 }
 0x139   :  { %5201 = vmatpush2.bf16.msra.mxu1 %v7023_v50  ;;  %v2301_v50 = vld [vmem:[%s10444_s3 + $0x8c0] sm:$0xff] }
 0x13a   :  { %5202 = vmatprep.subr.bf16.mxu1 %v7016_v51  ;;  %v2305_v51 = vld [vmem:[%s10444_s3 + $0x8e0] sm:$0xff] }
 0x13b   :  { %5162 = vmatpush2.bf16.msra.mxu0 %v6887_v52  ;;  %v7088_v58 = vcombine.high %v2301_v50, %v2305_v51  ;;  %v7087_v57 = vcombine.low %v2301_v50, %v2305_v51  ;;  %v8807_v50 = vld [vmem:[%s10444_s3 + $0x5c8] sm:$0xff] }
 0x13c   :  { %5163 = vmatprep.subr.bf16.mxu0 %v6880_v56  ;;  %v2293_v56 = vld [vmem:[%s10444_s3 + $0x880] sm:$0xff] }
 0x13d   :  { %5203 = vmatpush2.bf16.msra.mxu1 %v7015_v60  ;;  %v7080_v60 = vcombine.high %v2293_v56, %v2297_v59 }
 0x13e   :  { %5204 = vmatprep.subr.bf16.mxu1 %v7008_v16  ;;  %v2289_v16 = vld [vmem:[%s10444_s3 + $0x860] sm:$0xff] }
 0x13f   :  { %5164 = vmatpush2.bf16.msra.mxu0 %v6879_v62  ;;  %v7079_v62 = vcombine.low %v2293_v56, %v2297_v59  ;;  %v7072_v63 = vcombine.high %v2285_v61, %v2289_v16  ;;  %v7071_v1 = vcombine.low %v2285_v61, %v2289_v16  ;;  %v2349_v59 = vld [vmem:[%s10444_s3 + $0xa40] sm:$0xff] }
 0x140   :  { %5165 = vmatprep.subr.bf16.mxu0 %v6872_v19  ;;  %v2281_v19 = vld [vmem:[%s10444_s3 + $0x820] sm:$0xff] }
 0x141   :  { %5205 = vmatpush2.bf16.msra.mxu1 %v7007_v2  ;;  %v7064_v3 = vcombine.high %v2277_v0, %v2281_v19 }
 0x142   :  { %5206 = vmatprep.subr.bf16.mxu1 %v7000_v6  ;;  %v2397_v6 = vld [vmem:[%s10444_s3 + $0xbc0] sm:$0xff] }
 0x143   :  { %5166 = vmatpush2.bf16.msra.mxu0 %v6871_v7  ;;  %v2401_v7 = vld [vmem:[%s10444_s3 + $0xbe0] sm:$0xff] }
 0x144   :  { %5217 = vmatprep.subr.bf16.mxu0 %v7120_v12  ;;  %v7184_v17 = vcombine.high %v2397_v6, %v2401_v7 }
 0x145   :  { %5207 = vmatpush2.bf16.msra.mxu1 %v6999_v15  ;;  %v7063_v15 = vcombine.low %v2277_v0, %v2281_v19  ;;  %v2441_v0 = vld [vmem:[%s10444_s3 + $0xd20] sm:$0xff] }
 0x146   :  { %v1737_v25 = vpop.f32.mrf.mxu0  ;;  %5168 = vmatmul.mubr.bf16.vlgmr.msra.gmra.mxu0 %v8706_v22  ;;  %5258 = vmatprep.subr.bf16.mxu1 %v7248_v20  ;;  %v2393_v20 = vld [vmem:[%s10444_s3 + $0xba0] sm:$0xff] }
 0x147   :  { %v1738_v26 = vadd.f32 %v1737_v25, %v298_v10  ;;  %5218 = vmatpush1.bf16.msra.mxu0 %v7119_v21  ;;  %v7183_v10 = vcombine.low %v2397_v6, %v2401_v7  ;;  %v7176_v21 = vcombine.high %v2389_v18, %v2393_v20  ;;  %v7175_v24 = vcombine.low %v2389_v18, %v2393_v20  ;;  %v2373_v25 = vld [vmem:[%s10444_s3 + $0xb00] sm:$0xff] }
 0x148   :  { %v1778_v28 = vpop.f32.mrf.mxu1  ;;  %v1739_v30 = vpop.f32.mrf.mxu0  ;;  %5219 = vmatprep.subr.bf16.mxu0 %v7112_v53  ;;  %v2381_v53 = vld [vmem:[%s10444_s3 + $0xb40] sm:$0xff]  ;;  %v305_v18 = vsub.s32 4, %v8455_v27 }
 0x149   :  { %v8718_v32 = vadd.f32 %v1778_v28, %v1738_v26  ;;  %v1740_v33 = vadd.f32 %v1739_v30, %v302_v23  ;;  %v2385_v23 = vld [vmem:[%s10444_s3 + $0xb60] sm:$0xff] }
 0x14a   :  { %v1780_v34 = vpop.f32.mrf.mxu1  ;;  %v1741_v39 = vpop.f32.mrf.mxu0  ;;  %v7168_v54 = vcombine.high %v2381_v53, %v2385_v23  ;;  %v2377_v26 = vld [vmem:[%s10444_s3 + $0xb20] sm:$0xff]  ;;  %v7167_v28 = vcombine.low %v2381_v53, %v2385_v23 }
 0x14b   :  { %v1959_v41 = vmin.f32 %v8718_v32, 20.0  ;;  %v8727_v42 = vadd.f32 %v1780_v34, %v1740_v33  ;;  %5220 = vmatpush1.bf16.msra.mxu0 %v7111_v29  ;;  %v7160_v30 = vcombine.high %v2373_v25, %v2377_v26  ;;  %v2365_v33 = vld [vmem:[%s10444_s3 + $0xac0] sm:$0xff]  ;;  %vm1951_vm2 = vcmp.gt.f32.partialorder %v8718_v32, 20.0 }
 0x14c   :  { %v1782_v44 = vpop.f32.mrf.mxu1  ;;  %v1742_v46 = vpop.f32.mrf.mxu0  ;;  %5221 = vmatprep.subr.bf16.mxu0 %v7104_v31  ;;  %v2369_v34 = vld [vmem:[%s10444_s3 + $0xae0] sm:$0xff]  ;;  %v7159_v39 = vcombine.low %v2373_v25, %v2377_v26  ;;  %v306_v25 = vrot.slane %v8480_v40, %v305_v18 }
 0x14d   :  { %v1969_v47 = vmul.f32 1.442695, %v1959_v41  ;;  %v1960_v48 = vmin.f32 %v8727_v42, 20.0  ;;  %vm1952_vm3 = vcmp.gt.f32.partialorder %v8727_v42, 20.0  ;;  %v7152_v44 = vcombine.high %v2365_v33, %v2369_v34  ;;  %v2457_v46 = vld [vmem:[%s10444_s3 + $0xda0] sm:$0xff] }
 0x14e   :  { %v1783_v49 = vpop.f32.mrf.mxu1  ;;  %v2341_v19 = vld [vmem:[%s10444_s3 + $0xa00] sm:$0xff] }
 0x14f   :  { %7548 = vpow2.f32 %v1969_v47  ;;  %v1971_v52 = vmul.f32 1.442695, %v1960_v48  ;;  %5222 = vmatpush1.bf16.msra.mxu0 %v7103_v45  ;;  %v2453_v45 = vld [vmem:[%s10444_s3 + $0xd80] sm:$0xff]  ;;  %v7247_v49 = vcombine.low %v8685_v9, %v8690_v11 }
 0x150   :  { %5223 = vmatprep.subr.bf16.mxu0 %v7096_v4  ;;  %v2357_v47 = vld [vmem:[%s10444_s3 + $0xa80] sm:$0xff] }
 0x151   :  { %7550 = vpow2.f32 %v1971_v52  ;;  %v7151_v52 = vcombine.low %v2365_v33, %v2369_v34  ;;  %v2445_v9 = vld [vmem:[%s10444_s3 + $0xd40] sm:$0xff] }
 0x152   :  { %v2449_v11 = vld [vmem:[%s10444_s3 + $0xd60] sm:$0xff] }
 0x153   :  { %5224 = vmatpush1.bf16.msra.mxu0 %v7095_v55  ;;  %v7240_v55 = vcombine.high %v2453_v45, %v2457_v46  ;;  %v7232_v16 = vcombine.high %v2445_v9, %v2449_v11  ;;  %v2429_v7 = vld [vmem:[%s10444_s3 + $0xcc0] sm:$0xff] }
 0x154   :  { %5225 = vmatprep.subr.bf16.mxu0 %v7088_v58  ;;  %v2421_v53 = vld [vmem:[%s10444_s3 + $0xc80] sm:$0xff] }
 0x155   :  { %v2425_v23 = vld [vmem:[%s10444_s3 + $0xca0] sm:$0xff] }
 0x156   :  { %v7208_v26 = vcombine.high %v2421_v53, %v2425_v23  ;;  %v7207_v33 = vcombine.low %v2421_v53, %v2425_v23  ;;  %v2497_v53 = vld [vmem:[%s10444_s3 + $0xee0] sm:$0xff] }
 0x157   :  { %5226 = vmatpush1.bf16.msra.mxu0 %v7087_v57  ;;  %v2353_v57 = vld [vmem:[%s10444_s3 + $0xa60] sm:$0xff] }
 0x158   :  { %5227 = vmatprep.subr.bf16.mxu0 %v7080_v60  ;;  %v7239_v60 = vcombine.low %v2453_v45, %v2457_v46 }
 0x15b   :  { %5228 = vmatpush1.bf16.msra.mxu0 %v7079_v62  ;;  %v7136_v62 = vcombine.high %v2349_v59, %v2353_v57 }
 0x15c   :  { %v7549_v2 = vpop.eup %7548  ;;  %5229 = vmatprep.subr.bf16.mxu0 %v7072_v63  ;;  %v2437_v63 = vld [vmem:[%s10444_s3 + $0xd00] sm:$0xff] }
 0x15d   :  { %v1983_v5 = vadd.f32 1.0, %v7549_v2  ;;  %v7231_v2 = vcombine.low %v2445_v9, %v2449_v11  ;;  %v2525_v9 = vld [vmem:[%s10444_s3 + $0xfc0] sm:$0xff] }
 0x15e   :  { %v7551_v12 = vpop.eup %7550  ;;  %v2529_v11 = vld [vmem:[%s10444_s3 + $0xfe0] sm:$0xff] }
 0x15f   :  { %7552 = vlog2.f32 %v1983_v5  ;;  %v1984_v13 = vadd.f32 1.0, %v7551_v12  ;;  %5230 = vmatpush1.bf16.msra.mxu0 %v7071_v1  ;;  %v2345_v1 = vld [vmem:[%s10444_s3 + $0xa20] sm:$0xff]  ;;  %v7224_v5 = vcombine.high %v2437_v63, %v2441_v0 }
 0x160   :  { %5231 = vmatprep.subr.bf16.mxu0 %v7064_v3  ;;  %v7135_v3 = vcombine.low %v2349_v59, %v2353_v57  ;;  %v7128_v6 = vcombine.high %v2341_v19, %v2345_v1  ;;  %v2433_v12 = vld [vmem:[%s10444_s3 + $0xce0] sm:$0xff]  ;;  %v7127_v20 = vcombine.low %v2341_v19, %v2345_v1  ;;  %v7311_v19 = vcombine.low %v2525_v9, %v2529_v11 }
 0x161   :  { %7554 = vlog2.f32 %v1984_v13  ;;  %v8853_v13 = vld [vmem:[%s10444_s3 + $0x1c8] sm:$0xff] }
 0x163   :  { %5232 = vmatpush1.bf16.msra.mxu0 %v7063_v15  ;;  %v8858_v15 = vld [vmem:[%s10444_s3 + $0x1e8] sm:$0xff] }
 0x164   :  { %5233 = vmatprep.subr.bf16.mxu0 %v7184_v17  ;;  %v7223_v17 = vcombine.low %v2437_v63, %v2441_v0  ;;  %v2517_v63 = vld [vmem:[%s10444_s3 + $0xf80] sm:$0xff] }
 0x165   :  { %v2521_v0 = vld [vmem:[%s10444_s3 + $0xfa0] sm:$0xff] }
 0x166   :  { %v7304_v1 = vcombine.high %v2517_v63, %v2521_v0 }
 0x167   :  { %5234 = vmatpush2.bf16.msra.mxu0 %v7183_v10  ;;  %v7216_v10 = vcombine.high %v2429_v7, %v2433_v12 }
 0x168   :  { %5235 = vmatprep.subr.bf16.mxu0 %v7176_v21  ;;  %v6866_v21 = vcombine.high %v8853_v13, %v8858_v15 }
 0x16b   :  { %5236 = vmatpush2.bf16.msra.mxu0 %v7175_v24  ;;  %v309_v24 = vsub.s32 5, %v8455_v27 }
 0x16c   :  { %v7553_v29 = vpop.eup %7552  ;;  %5237 = vmatprep.subr.bf16.mxu0 %v7168_v54  ;;  %v7215_v54 = vcombine.low %v2429_v7, %v2433_v12  ;;  %v2501_v7 = vld [vmem:[%s10444_s3 + $0xf00] sm:$0xff] }
 0x16d   :  { %v1994_v31 = vmul.f32 0.6931472, %v7553_v29  ;;  %v2417_v29 = vld [vmem:[%s10444_s3 + $0xc60] sm:$0xff] }
 0x16e   :  { %v7555_v37 = vpop.eup %7554  ;;  %v2505_v12 = vld [vmem:[%s10444_s3 + $0xf20] sm:$0xff] }
 0x16f   :  { %v1996_v38 = vmul.f32 0.6931472, %v7555_v37  ;;  %5238 = vmatpush2.bf16.msra.mxu0 %v7167_v28  ;;  %v2007_v41 = vsel %vm1951_vm2, %v8718_v32, %v1994_v31  ;;  %v2361_v32 = vld [vmem:[%s10444_s3 + $0xaa0] sm:$0xff] }
 0x170   :  { %5239 = vmatprep.subr.bf16.mxu0 %v7160_v30  ;;  %v8814_v51 = vpack.c.bf16 %v2007_v41, %v2007_v41  ;;  %v7144_v58 = vcombine.high %v2357_v47, %v2361_v32  ;;  %v7143_v61 = vcombine.low %v2357_v47, %v2361_v32  ;;  %v2413_v28 = vld [vmem:[%s10444_s3 + $0xc40] sm:$0xff]  ;;  %v310_v30 = vrot.slane %v8480_v40, %v309_v24 }
 0x171   :  { %v2008_v4 = vsel %vm1952_vm3, %v8727_v42, %v1996_v38  ;;  %v8812_v42 = vld [vmem:[%s10444_s3 + $0x5e8] sm:$0xff]  ;;  %v7200_v38 = vcombine.high %v2413_v28, %v2417_v29  ;;  %v2405_v41 = vld [vmem:[%s10444_s3 + $0xc00] sm:$0xff]  ;;  %v7199_v47 = vcombine.low %v2413_v28, %v2417_v29 }
 0x172   :  { %v8800_v48 = vpack.c.bf16 %v2008_v4, %v2008_v4  ;;  %v6993_v56 = vcombine.low %v8807_v50, %v8812_v42  ;;  %v2485_v29 = vld [vmem:[%s10444_s3 + $0xe80] sm:$0xff] }
 0x173   :  { %5240 = vmatpush2.bf16.msra.mxu0 %v7159_v39 }
 0x174   :  { %5208 = vmatprep.mubr.bf16.mxu1 %v8800_v48  ;;  %5241 = vmatprep.subr.bf16.mxu0 %v7152_v44  ;;  %v2409_v44 = vld [vmem:[%s10444_s3 + $0xc20] sm:$0xff] }
 0x175   :  { %5209 = vmatmul.mubr.bf16.vlgmr.msra.gmra.mxu1 %v8814_v51 }
 0x176   :  { %5259 = vmatpush1.bf16.msra.mxu1 %v7247_v49 }
 0x177   :  { %5242 = vmatpush2.bf16.msra.mxu0 %v7151_v52  ;;  %5260 = vmatprep.subr.bf16.mxu1 %v7240_v55  ;;  %v7192_v55 = vcombine.high %v2405_v41, %v2409_v44 }
 0x178   :  { %5243 = vmatprep.subr.bf16.mxu0 %v7144_v58 }
 0x17a   :  { %5261 = vmatpush1.bf16.msra.mxu1 %v7239_v60 }
 0x17b   :  { %5244 = vmatpush2.bf16.msra.mxu0 %v7143_v61  ;;  %5262 = vmatprep.subr.bf16.mxu1 %v7232_v16  ;;  %v7191_v61 = vcombine.low %v2405_v41, %v2409_v44  ;;  %v2469_v41 = vld [vmem:[%s10444_s3 + $0xe00] sm:$0xff] }
 0x17c   :  { %5245 = vmatprep.subr.bf16.mxu0 %v7136_v62  ;;  %v7312_v62 = vcombine.high %v2525_v9, %v2529_v11  ;;  %v2473_v44 = vld [vmem:[%s10444_s3 + $0xe20] sm:$0xff]  ;;  %v2070_v11 = vld [vmem:[%s10444_s3 + $0x188] sm:$0xff] }
 0x17e   :  { %5263 = vmatpush1.bf16.msra.mxu1 %v7231_v2  ;;  %v2509_v2 = vld [vmem:[%s10444_s3 + $0xf40] sm:$0xff] }
 0x17f   :  { %5246 = vmatpush2.bf16.msra.mxu0 %v7135_v3  ;;  %5264 = vmatprep.subr.bf16.mxu1 %v7224_v5  ;;  %v2513_v3 = vld [vmem:[%s10444_s3 + $0xf60] sm:$0xff]  ;;  %v7303_v5 = vcombine.low %v2517_v63, %v2521_v0  ;;  %v2054_v63 = vld [vmem:[%s10444_s3 + $0x108] sm:$0xff] }
 0x180   :  { %5247 = vmatprep.subr.bf16.mxu0 %v7128_v6  ;;  %v7296_v6 = vcombine.high %v2509_v2, %v2513_v3  ;;  %v2058_v0 = vld [vmem:[%s10444_s3 + $0x128] sm:$0xff] }
 0x182   :  { %5265 = vmatpush1.bf16.msra.mxu1 %v7223_v17  ;;  %v7295_v17 = vcombine.low %v2509_v2, %v2513_v3  ;;  %v2046_v2 = vld [vmem:[%s10444_s3 + $0xc8] sm:$0xff] }
 0x183   :  { %5248 = vmatpush2.bf16.msra.mxu0 %v7127_v20  ;;  %5266 = vmatprep.subr.bf16.mxu1 %v7216_v10  ;;  %v7288_v20 = vcombine.high %v2501_v7, %v2505_v12  ;;  %v2050_v3 = vld [vmem:[%s10444_s3 + $0xe8] sm:$0xff] }
 0x184   :  { %5299 = vmatprep.subr.bf16.mxu0 %v6866_v21  ;;  %v2493_v21 = vld [vmem:[%s10444_s3 + $0xec0] sm:$0xff] }
 0x185   :  { %v7280_v28 = vcombine.high %v2493_v21, %v2497_v53 }
 0x186   :  { %v1819_v31 = vpop.f32.mrf.mxu0  ;;  %5267 = vmatpush1.bf16.msra.mxu1 %v7215_v54 }
 0x187   :  { %v1820_v34 = vadd.f32 %v1819_v31, %v306_v25  ;;  %5268 = vmatprep.subr.bf16.mxu1 %v7208_v26  ;;  %v7287_v25 = vcombine.low %v2501_v7, %v2505_v12  ;;  %v7279_v31 = vcombine.low %v2493_v21, %v2497_v53  ;;  %v313_v7 = vsub.s32 6, %v8455_v27  ;;  %v2038_v12 = vld [vmem:[%s10444_s3 + $0x88] sm:$0xff]  ;;  %v7604_v21 = vld [vmem:[%s10445_s2] sm:$0xff] }
 0x188   :  { %v1860_v37 = vpop.f32.mrf.mxu1  ;;  %v1821_v39 = vpop.f32.mrf.mxu0 }
 0x189   :  { %v8888_v45 = vadd.f32 %v1860_v37, %v1820_v34  ;;  %v1822_v46 = vadd.f32 %v1821_v39, %v310_v30  ;;  %v2489_v30 = vld [vmem:[%s10444_s3 + $0xea0] sm:$0xff]  ;;  %v314_v53 = vrot.slane %v7604_v21, %v313_v7 }
 0x18a   :  { %v1862_v40 = vpop.f32.mrf.mxu1  ;;  %v1823_v4 = vpop.f32.mrf.mxu0  ;;  %5269 = vmatpush1.bf16.msra.mxu1 %v7207_v33  ;;  %v7272_v33 = vcombine.high %v2485_v29, %v2489_v30  ;;  %v2477_v34 = vld [vmem:[%s10444_s3 + $0xe40] sm:$0xff] }
 0x18b   :  { %v1961_v32 = vmin.f32 %v8888_v45, 20.0  ;;  %v8891_v49 = vadd.f32 %v1862_v40, %v1822_v46  ;;  %5270 = vmatprep.subr.bf16.mxu1 %v7200_v38  ;;  %v2481_v37 = vld [vmem:[%s10444_s3 + $0xe60] sm:$0xff]  ;;  %v7271_v38 = vcombine.low %v2485_v29, %v2489_v30  ;;  %v7256_v40 = vcombine.high %v2469_v41, %v2473_v44 }
 0x18c   :  { %v1864_v52 = vpop.f32.mrf.mxu1  ;;  %v1824_v58 = vpop.f32.mrf.mxu0  ;;  %v7264_v39 = vcombine.high %v2477_v34, %v2481_v37  ;;  %v7263_v46 = vcombine.low %v2477_v34, %v2481_v37  ;;  %vm1953_vm4 = vcmp.gt.f32.partialorder %v8888_v45, 20.0  ;;  %v2022_v37 = vld [vmem:[%s10444_s3 + $0x8] sm:$0xff] }
 0x18d   :  { %v1973_v59 = vmul.f32 1.442695, %v1961_v32  ;;  %v1962_v57 = vmin.f32 %v8891_v49, 20.0  ;;  %v7255_v52 = vcombine.low %v2469_v41, %v2473_v44  ;;  %v6994_v58 = vcombine.high %v8807_v50, %v8812_v42  ;;  %v2186_v50 = vld [vmem:[%s10444_s3 + $0x528] sm:$0xff] }
 0x18e   :  { %v1865_v60 = vpop.f32.mrf.mxu1  ;;  %5271 = vmatpush1.bf16.msra.mxu1 %v7199_v47  ;;  %vm1954_vm5 = vcmp.gt.f32.partialorder %v8891_v49, 20.0  ;;  %v2310_v42 = vld [vmem:[%s10444_s3 + $0x908] sm:$0xff] }
 0x18f   :  { %7556 = vpow2.f32 %v1973_v59  ;;  %v1975_v16 = vmul.f32 1.442695, %v1962_v57  ;;  %5272 = vmatprep.subr.bf16.mxu1 %v7192_v55  ;;  %v2074_v59 = vld [vmem:[%s10444_s3 + $0x1a8] sm:$0xff] }
 0x191   :  { %7558 = vpow2.f32 %v1975_v16 }
 0x192   :  { %5273 = vmatpush1.bf16.msra.mxu1 %v7191_v61  ;;  %v6865_v61 = vcombine.low %v8853_v13, %v8858_v15  ;;  %v6857_v13 = vcombine.low %v2070_v11, %v2074_v59 }
 0x193   :  { %5274 = vmatprep.subr.bf16.mxu1 %v7312_v62  ;;  %v2062_v62 = vld [vmem:[%s10444_s3 + $0x148] sm:$0xff] }
 0x196   :  { %5275 = vmatpush2.bf16.msra.mxu1 %v7311_v19 }
 0x197   :  { %5276 = vmatprep.subr.bf16.mxu1 %v7304_v1  ;;  %v6842_v1 = vcombine.high %v2054_v63, %v2058_v0 }
 0x19a   :  { %5277 = vmatpush2.bf16.msra.mxu1 %v7303_v5  ;;  %v6841_v5 = vcombine.low %v2054_v63, %v2058_v0  ;;  %v2126_v0 = vld [vmem:[%s10444_s3 + $0x348] sm:$0xff] }
 0x19b   :  { %5278 = vmatprep.subr.bf16.mxu1 %v7296_v6  ;;  %v6834_v6 = vcombine.high %v2046_v2, %v2050_v3 }
 0x19c   :  { %v7557_v10 = vpop.eup %7556 }
 0x19d   :  { %v1985_v23 = vadd.f32 1.0, %v7557_v10  ;;  %v6833_v10 = vcombine.low %v2046_v2, %v2050_v3  ;;  %v2118_v3 = vld [vmem:[%s10444_s3 + $0x308] sm:$0xff] }
 0x19e   :  { %v7559_v54 = vpop.eup %7558  ;;  %5279 = vmatpush2.bf16.msra.mxu1 %v7295_v17  ;;  %v2042_v17 = vld [vmem:[%s10444_s3 + $0xa8] sm:$0xff] }
 0x19f   :  { %7560 = vlog2.f32 %v1985_v23  ;;  %v1986_v26 = vadd.f32 1.0, %v7559_v54  ;;  %5280 = vmatprep.subr.bf16.mxu1 %v7288_v20  ;;  %v317_v20 = vsub.s32 7, %v8455_v27  ;;  %v6826_v23 = vcombine.high %v2038_v12, %v2042_v17  ;;  %v2030_v54 = vld [vmem:[%s10444_s3 + $0x48] sm:$0xff] }
 0x1a0   :  { %v6825_v29 = vcombine.low %v2038_v12, %v2042_v17 }
 0x1a1   :  { %7562 = vlog2.f32 %v1986_v26  ;;  %v318_v26 = vrot.slane %v7604_v21, %v317_v20  ;;  %v2114_v21 = vld [vmem:[%s10444_s3 + $0x2e8] sm:$0xff] }
 0x1a2   :  { %5281 = vmatpush2.bf16.msra.mxu1 %v7287_v25  ;;  %v2034_v25 = vld [vmem:[%s10444_s3 + $0x68] sm:$0xff] }
 0x1a3   :  { %5282 = vmatprep.subr.bf16.mxu1 %v7280_v28 }
 0x1a6   :  { %5283 = vmatpush2.bf16.msra.mxu1 %v7279_v31 }
 0x1a7   :  { %5284 = vmatprep.subr.bf16.mxu1 %v7272_v33  ;;  %v6818_v33 = vcombine.high %v2030_v54, %v2034_v25 }
 0x1aa   :  { %5285 = vmatpush2.bf16.msra.mxu1 %v7271_v38  ;;  %v2026_v38 = vld [vmem:[%s10444_s3 + $0x28] sm:$0xff] }
 0x1ab   :  { %5286 = vmatprep.subr.bf16.mxu1 %v7264_v39 }
 0x1ac   :  { %v7561_v4 = vpop.eup %7560 }
 0x1ad   :  { %v1998_v47 = vmul.f32 0.6931472, %v7561_v4 }
 0x1ae   :  { %v7563_v32 = vpop.eup %7562  ;;  %5287 = vmatpush2.bf16.msra.mxu1 %v7263_v46 }
 0x1af   :  { %v2000_v55 = vmul.f32 0.6931472, %v7563_v32  ;;  %5288 = vmatprep.subr.bf16.mxu1 %v7256_v40  ;;  %v2009_v9 = vsel %vm1953_vm4, %v8888_v45, %v1998_v47  ;;  %v6858_v45 = vcombine.high %v2070_v11, %v2074_v59  ;;  %v6817_v40 = vcombine.low %v2030_v54, %v2034_v25 }
 0x1b0   :  { %v8958_v16 = vpack.c.bf16 %v2009_v9, %v2009_v9  ;;  %v2146_v9 = vld [vmem:[%s10444_s3 + $0x3e8] sm:$0xff] }
 0x1b1   :  { %v2010_v57 = vsel %vm1954_vm5, %v8891_v49, %v2000_v55  ;;  %v2066_v49 = vld [vmem:[%s10444_s3 + $0x168] sm:$0xff] }
 0x1b2   :  { %v8954_v60 = vpack.c.bf16 %v2010_v57, %v2010_v57  ;;  %5289 = vmatpush2.bf16.msra.mxu1 %v7255_v52  ;;  %v6850_v15 = vcombine.high %v2062_v62, %v2066_v49  ;;  %v6849_v19 = vcombine.low %v2062_v62, %v2066_v49  ;;  %v6810_v52 = vcombine.high %v2022_v37, %v2026_v38  ;;  %v2134_v49 = vld [vmem:[%s10444_s3 + $0x388] sm:$0xff] }
 0x1b3   :  { %5340 = vmatprep.subr.bf16.mxu1 %v6994_v58  ;;  %v2142_v58 = vld [vmem:[%s10444_s3 + $0x3c8] sm:$0xff] }
 0x1b4   :  { %5249 = vmatprep.mubr.bf16.mxu0 %v8954_v60  ;;  %v6930_v62 = vcombine.high %v2142_v58, %v2146_v9 }
 0x1b5   :  { %5250 = vmatmul.mubr.bf16.vlgmr.msra.gmra.mxu0 %v8958_v16 }
 0x1b6   :  { %5300 = vmatpush1.bf16.msra.mxu0 %v6865_v61  ;;  %5331 = vmatprep.mubr.bf16.mxu0 %v8642_v43  ;;  %v6809_v61 = vcombine.low %v2022_v37, %v2026_v38 }
 0x1b7   :  { %5301 = vmatprep.subr.bf16.mxu0 %v6858_v45 }
 0x1ba   :  { %5302 = vmatpush1.bf16.msra.mxu0 %v6857_v13  ;;  %v2138_v13 = vld [vmem:[%s10444_s3 + $0x3a8] sm:$0xff] }
 0x1bb   :  { %5303 = vmatprep.subr.bf16.mxu0 %v6850_v15  ;;  %v6929_v15 = vcombine.low %v2142_v58, %v2146_v9  ;;  %v6922_v63 = vcombine.high %v2134_v49, %v2138_v13 }
 0x1be   :  { %5304 = vmatpush1.bf16.msra.mxu0 %v6849_v19  ;;  %v2130_v19 = vld [vmem:[%s10444_s3 + $0x368] sm:$0xff] }
 0x1bf   :  { %5305 = vmatprep.subr.bf16.mxu0 %v6842_v1  ;;  %v6921_v1 = vcombine.low %v2134_v49, %v2138_v13  ;;  %v6914_v2 = vcombine.high %v2126_v0, %v2130_v19  ;;  %v2326_v49 = vld [vmem:[%s10444_s3 + $0x988] sm:$0xff] }
 0x1c2   :  { %5306 = vmatpush1.bf16.msra.mxu0 %v6841_v5  ;;  %v2122_v5 = vld [vmem:[%s10444_s3 + $0x328] sm:$0xff] }
 0x1c3   :  { %5307 = vmatprep.subr.bf16.mxu0 %v6834_v6  ;;  %v6913_v6 = vcombine.low %v2126_v0, %v2130_v19  ;;  %v6906_v12 = vcombine.high %v2118_v3, %v2122_v5  ;;  %v6905_v54 = vcombine.low %v2118_v3, %v2122_v5  ;;  %v2322_v3 = vld [vmem:[%s10444_s3 + $0x968] sm:$0xff] }
 0x1c6   :  { %5308 = vmatpush1.bf16.msra.mxu0 %v6833_v10  ;;  %v1901_v28 = vpop.f32.mrf.mxu0  ;;  %v2110_v10 = vld [vmem:[%s10444_s3 + $0x2c8] sm:$0xff] }
 0x1c7   :  { %v1902_v30 = vadd.f32 %v1901_v28, %v314_v53  ;;  %5309 = vmatprep.subr.bf16.mxu0 %v6826_v23  ;;  %v2102_v28 = vld [vmem:[%s10444_s3 + $0x288] sm:$0xff] }
 0x1c8   :  { %v1942_v31 = vpop.f32.mrf.mxu1  ;;  %v1903_v34 = vpop.f32.mrf.mxu0 }
 0x1c9   :  { %v9008_v39 = vadd.f32 %v1942_v31, %v1902_v30  ;;  %v1904_v41 = vadd.f32 %v1903_v34, %v318_v26  ;;  %v6898_v26 = vcombine.high %v2110_v10, %v2114_v21  ;;  %v6897_v30 = vcombine.low %v2110_v10, %v2114_v21  ;;  %v2098_v34 = vld [vmem:[%s10444_s3 + $0x268] sm:$0xff] }
 0x1ca   :  { %v1944_v44 = vpop.f32.mrf.mxu1  ;;  %5310 = vmatpush1.bf16.msra.mxu0 %v6825_v29  ;;  %v1905_v46 = vpop.f32.mrf.mxu0  ;;  %v2106_v29 = vld [vmem:[%s10444_s3 + $0x2a8] sm:$0xff] }
 0x1cb   :  { %v1963_v4 = vmin.f32 %v9008_v39, 20.0  ;;  %v9011_v47 = vadd.f32 %v1944_v44, %v1904_v41  ;;  %5311 = vmatprep.subr.bf16.mxu0 %v6818_v33  ;;  %v6890_v31 = vcombine.high %v2102_v28, %v2106_v29  ;;  %v2094_v33 = vld [vmem:[%s10444_s3 + $0x248] sm:$0xff]  ;;  %v6889_v37 = vcombine.low %v2102_v28, %v2106_v29 }
 0x1cc   :  { %v1946_v32 = vpop.f32.mrf.mxu1  ;;  %v1906_v55 = vpop.f32.mrf.mxu0  ;;  %v6882_v38 = vcombine.high %v2094_v33, %v2098_v34  ;;  %v2086_v41 = vld [vmem:[%s10444_s3 + $0x208] sm:$0xff]  ;;  %v6881_v46 = vcombine.low %v2094_v33, %v2098_v34  ;;  %vm1955_vm6 = vcmp.gt.f32.partialorder %v9008_v39, 20.0 }
 0x1cd   :  { %v1977_v11 = vmul.f32 1.442695, %v1963_v4  ;;  %v1964_v59 = vmin.f32 %v9011_v47, 20.0  ;;  %v2090_v44 = vld [vmem:[%s10444_s3 + $0x228] sm:$0xff]  ;;  %vm1956_vm7 = vcmp.gt.f32.partialorder %v9011_v47, 20.0 }
 0x1ce   :  { %v1947_v57 = vpop.f32.mrf.mxu1  ;;  %5312 = vmatpush1.bf16.msra.mxu0 %v6817_v40  ;;  %v6874_v40 = vcombine.high %v2086_v41, %v2090_v44  ;;  %v2334_v32 = vld [vmem:[%s10444_s3 + $0x9c8] sm:$0xff]  ;;  %v6873_v9 = vcombine.low %v2086_v41, %v2090_v44 }
 0x1cf   :  { %7564 = vpow2.f32 %v1977_v11  ;;  %v1979_v45 = vmul.f32 1.442695, %v1964_v59  ;;  %5313 = vmatprep.subr.bf16.mxu0 %v6810_v52  ;;  %v2338_v52 = vld [vmem:[%s10444_s3 + $0x9e8] sm:$0xff] }
 0x1d0   :  { %v7122_v59 = vcombine.high %v2334_v32, %v2338_v52  ;;  %v2182_v10 = vld [vmem:[%s10444_s3 + $0x508] sm:$0xff] }
 0x1d1   :  { %7566 = vpow2.f32 %v1979_v45  ;;  %v2302_v28 = vld [vmem:[%s10444_s3 + $0x8c8] sm:$0xff] }
 0x1d2   :  { %5314 = vmatpush1.bf16.msra.mxu0 %v6809_v61  ;;  %v2198_v61 = vld [vmem:[%s10444_s3 + $0x588] sm:$0xff] }
 0x1d3   :  { %5315 = vmatprep.subr.bf16.mxu0 %v6930_v62  ;;  %v2202_v62 = vld [vmem:[%s10444_s3 + $0x5a8] sm:$0xff] }
 0x1d4   :  { %v6986_v0 = vcombine.high %v2198_v61, %v2202_v62  ;;  %v6985_v5 = vcombine.low %v2198_v61, %v2202_v62  ;;  %v2306_v29 = vld [vmem:[%s10444_s3 + $0x8e8] sm:$0xff] }
 0x1d5   :  { %v7090_v34 = vcombine.high %v2302_v28, %v2306_v29  ;;  %v2294_v41 = vld [vmem:[%s10444_s3 + $0x888] sm:$0xff] }
 0x1d6   :  { %5316 = vmatpush2.bf16.msra.mxu0 %v6929_v15  ;;  %v7121_v15 = vcombine.low %v2334_v32, %v2338_v52  ;;  %v2298_v44 = vld [vmem:[%s10444_s3 + $0x8a8] sm:$0xff] }
 0x1d7   :  { %5317 = vmatprep.subr.bf16.mxu0 %v6922_v63  ;;  %v7082_v32 = vcombine.high %v2294_v41, %v2298_v44  ;;  %v2158_v52 = vld [vmem:[%s10444_s3 + $0x448] sm:$0xff] }
 0x1d8   :  { %v2150_v62 = vld [vmem:[%s10444_s3 + $0x408] sm:$0xff] }
 0x1da   :  { %5318 = vmatpush2.bf16.msra.mxu0 %v6921_v1  ;;  %v2194_v1 = vld [vmem:[%s10444_s3 + $0x568] sm:$0xff] }
 0x1db   :  { %5319 = vmatprep.subr.bf16.mxu0 %v6914_v2  ;;  %v2318_v2 = vld [vmem:[%s10444_s3 + $0x948] sm:$0xff] }
 0x1dc   :  { %v7565_v17 = vpop.eup %7564 }
 0x1dd   :  { %v1987_v53 = vadd.f32 1.0, %v7565_v17  ;;  %v7106_v17 = vcombine.high %v2318_v2, %v2322_v3 }
 0x1de   :  { %v7567_v23 = vpop.eup %7566  ;;  %5320 = vmatpush2.bf16.msra.mxu0 %v6913_v6 }
 0x1df   :  { %7568 = vlog2.f32 %v1987_v53  ;;  %v1988_v25 = vadd.f32 1.0, %v7567_v23  ;;  %5321 = vmatprep.subr.bf16.mxu0 %v6906_v12  ;;  %v7105_v53 = vcombine.low %v2318_v2, %v2322_v3  ;;  %v6970_v23 = vcombine.high %v2182_v10, %v2186_v50 }
 0x1e1   :  { %7570 = vlog2.f32 %v1988_v25  ;;  %v2174_v25 = vld [vmem:[%s10444_s3 + $0x4c8] sm:$0xff] }
 0x1e2   :  { %5322 = vmatpush2.bf16.msra.mxu0 %v6905_v54 }
 0x1e3   :  { %5323 = vmatprep.subr.bf16.mxu0 %v6898_v26  ;;  %v2178_v26 = vld [vmem:[%s10444_s3 + $0x4e8] sm:$0xff] }
 0x1e4   :  { %v6962_v33 = vcombine.high %v2174_v25, %v2178_v26 }
 0x1e6   :  { %5324 = vmatpush2.bf16.msra.mxu0 %v6897_v30  ;;  %v6969_v30 = vcombine.low %v2182_v10, %v2186_v50  ;;  %v2402_v10 = vld [vmem:[%s10444_s3 + $0xbe8] sm:$0xff] }
 0x1e7   :  { %5325 = vmatprep.subr.bf16.mxu0 %v6890_v31 }
 0x1ea   :  { %5326 = vmatpush2.bf16.msra.mxu0 %v6889_v37  ;;  %v2166_v37 = vld [vmem:[%s10444_s3 + $0x488] sm:$0xff] }
 0x1eb   :  { %5327 = vmatprep.subr.bf16.mxu0 %v6882_v38  ;;  %v2170_v38 = vld [vmem:[%s10444_s3 + $0x4a8] sm:$0xff] }
 0x1ec   :  { %v7569_v4 = vpop.eup %7568 }
 0x1ed   :  { %v2002_v55 = vmul.f32 0.6931472, %v7569_v4  ;;  %v6954_v4 = vcombine.high %v2166_v37, %v2170_v38 }
 0x1ee   :  { %v7571_v58 = vpop.eup %7570  ;;  %5328 = vmatpush2.bf16.msra.mxu0 %v6881_v46  ;;  %v6961_v46 = vcombine.low %v2174_v25, %v2178_v26  ;;  %v2394_v25 = vld [vmem:[%s10444_s3 + $0xba8] sm:$0xff] }
 0x1ef   :  { %v2004_v11 = vmul.f32 0.6931472, %v7571_v58  ;;  %5329 = vmatprep.subr.bf16.mxu0 %v6874_v40  ;;  %v2011_v57 = vsel %vm1955_vm6, %v9008_v39, %v2002_v55  ;;  %v2330_v39 = vld [vmem:[%s10444_s3 + $0x9a8] sm:$0xff]  ;;  %v7089_v40 = vcombine.low %v2302_v28, %v2306_v29 }
 0x1f0   :  { %v9086_v63 = vpack.c.bf16 %v2011_v57, %v2011_v57  ;;  %v7114_v19 = vcombine.high %v2326_v49, %v2330_v39  ;;  %v7113_v6 = vcombine.low %v2326_v49, %v2330_v39  ;;  %v2162_v55 = vld [vmem:[%s10444_s3 + $0x468] sm:$0xff]  ;;  %v7081_v57 = vcombine.low %v2294_v41, %v2298_v44 }
 0x1f1   :  { %v2012_v45 = vsel %vm1956_vm7, %v9011_v47, %v2004_v11  ;;  %v2190_v47 = vld [vmem:[%s10444_s3 + $0x548] sm:$0xff]  ;;  %v6946_v61 = vcombine.high %v2158_v52, %v2162_v55 }
 0x1f2   :  { %v9084_v13 = vpack.c.bf16 %v2012_v45, %v2012_v45  ;;  %5330 = vmatpush2.bf16.msra.mxu0 %v6873_v9  ;;  %v6978_v12 = vcombine.high %v2190_v47, %v2194_v1  ;;  %v6977_v21 = vcombine.low %v2190_v47, %v2194_v1  ;;  %v2286_v58 = vld [vmem:[%s10444_s3 + $0x848] sm:$0xff] }
 0x1f3   :  { %5381 = vmatprep.subr.bf16.mxu0 %v7122_v59  ;;  %v2290_v9 = vld [vmem:[%s10444_s3 + $0x868] sm:$0xff]  ;;  %v6953_v59 = vcombine.low %v2166_v37, %v2170_v38 }
 0x1f4   :  { %5290 = vmatprep.mubr.bf16.mxu1 %v9084_v13  ;;  %v7074_v45 = vcombine.high %v2286_v58, %v2290_v9  ;;  %v2154_v39 = vld [vmem:[%s10444_s3 + $0x428] sm:$0xff]  ;;  %v7073_v1 = vcombine.low %v2286_v58, %v2290_v9 }
 0x1f5   :  { %5332 = vmatmul.mubr.bf16.vlgmr.msra.gmra.mxu0 %v8706_v22  ;;  %5291 = vmatmul.mubr.bf16.vlgmr.msra.gmra.mxu1 %v9086_v63  ;;  %v2282_v47 = vld [vmem:[%s10444_s3 + $0x828] sm:$0xff]  ;;  %v6938_v2 = vcombine.high %v2150_v62, %v2154_v39  ;;  %v6937_v50 = vcombine.low %v2150_v62, %v2154_v39 }
 0x1f6   :  { %5341 = vmatpush1.bf16.msra.mxu1 %v6993_v56  ;;  %5382 = vmatpush1.bf16.msra.mxu0 %v7121_v15  ;;  %v2314_v56 = vld [vmem:[%s10444_s3 + $0x928] sm:$0xff] }
 0x1f7   :  { %5413 = vmatprep.mubr.bf16.mxu0 %v8954_v60  ;;  %5372 = vmatprep.mubr.bf16.mxu1 %v8800_v48  ;;  %v7098_v54 = vcombine.high %v2310_v42, %v2314_v56  ;;  %v7097_v31 = vcombine.low %v2310_v42, %v2314_v56  ;;  %v2278_v15 = vld [vmem:[%s10444_s3 + $0x808] sm:$0xff] }
 0x1f8   :  { %5342 = vmatprep.subr.bf16.mxu1 %v6986_v0  ;;  %5383 = vmatprep.subr.bf16.mxu0 %v7114_v19  ;;  %v6945_v19 = vcombine.low %v2158_v52, %v2162_v55  ;;  %v7066_v3 = vcombine.high %v2278_v15, %v2282_v47  ;;  %v7065_v42 = vcombine.low %v2278_v15, %v2282_v47  ;;  %v2386_v37 = vld [vmem:[%s10444_s3 + $0xb68] sm:$0xff] }
 0x1f9   :  { %v2378_v52 = vld [vmem:[%s10444_s3 + $0xb28] sm:$0xff] }
 0x1fa   :  { %5343 = vmatpush1.bf16.msra.mxu1 %v6985_v5  ;;  %5384 = vmatpush1.bf16.msra.mxu0 %v7113_v6  ;;  %v2270_v5 = vld [vmem:[%s10444_s3 + $0x7c8] sm:$0xff] }
 0x1fb   :  { %5344 = vmatprep.subr.bf16.mxu1 %v6978_v12  ;;  %5385 = vmatprep.subr.bf16.mxu0 %v7106_v17  ;;  %v2274_v12 = vld [vmem:[%s10444_s3 + $0x7e8] sm:$0xff] }
 0x1fc   :  { %v2398_v17 = vld [vmem:[%s10444_s3 + $0xbc8] sm:$0xff]  ;;  %v7058_v56 = vcombine.high %v2270_v5, %v2274_v12  ;;  %v7057_v26 = vcombine.low %v2270_v5, %v2274_v12 }
 0x1fd   :  { %v7185_v28 = vcombine.low %v2398_v17, %v2402_v10  ;;  %v2370_v62 = vld [vmem:[%s10444_s3 + $0xae8] sm:$0xff] }
 0x1fe   :  { %5345 = vmatpush1.bf16.msra.mxu1 %v6977_v21  ;;  %5386 = vmatpush1.bf16.msra.mxu0 %v7105_v53  ;;  %v7186_v21 = vcombine.high %v2398_v17, %v2402_v10  ;;  %v2262_v53 = vld [vmem:[%s10444_s3 + $0x788] sm:$0xff] }
 0x1ff   :  { %5346 = vmatprep.subr.bf16.mxu1 %v6970_v23  ;;  %5387 = vmatprep.subr.bf16.mxu0 %v7098_v54  ;;  %v2266_v23 = vld [vmem:[%s10444_s3 + $0x7a8] sm:$0xff] }
 0x200   :  { %v2390_v54 = vld [vmem:[%s10444_s3 + $0xb88] sm:$0xff]  ;;  %v7050_v29 = vcombine.high %v2262_v53, %v2266_v23  ;;  %v7049_v38 = vcombine.low %v2262_v53, %v2266_v23 }
 0x201   :  { %v7177_v41 = vcombine.low %v2390_v54, %v2394_v25  ;;  %v2222_v10 = vld [vmem:[%s10444_s3 + $0x648] sm:$0xff] }
 0x202   :  { %5347 = vmatpush1.bf16.msra.mxu1 %v6969_v30  ;;  %5388 = vmatpush1.bf16.msra.mxu0 %v7097_v31  ;;  %v7178_v30 = vcombine.high %v2390_v54, %v2394_v25  ;;  %v2254_v31 = vld [vmem:[%s10444_s3 + $0x748] sm:$0xff] }
 0x203   :  { %5348 = vmatprep.subr.bf16.mxu1 %v6962_v33  ;;  %5389 = vmatprep.subr.bf16.mxu0 %v7090_v34  ;;  %v2258_v33 = vld [vmem:[%s10444_s3 + $0x768] sm:$0xff] }
 0x204   :  { %v2382_v34 = vld [vmem:[%s10444_s3 + $0xb48] sm:$0xff]  ;;  %v7042_v44 = vcombine.high %v2254_v31, %v2258_v33  ;;  %v7041_v55 = vcombine.low %v2254_v31, %v2258_v33 }
 0x205   :  { %v7169_v58 = vcombine.low %v2382_v34, %v2386_v37  ;;  %v2214_v25 = vld [vmem:[%s10444_s3 + $0x608] sm:$0xff] }
 0x206   :  { %5349 = vmatpush1.bf16.msra.mxu1 %v6961_v46  ;;  %5390 = vmatpush1.bf16.msra.mxu0 %v7089_v40  ;;  %v9156_v11 = vpop.f32.mrf.mxu0  ;;  %v7170_v46 = vcombine.high %v2382_v34, %v2386_v37  ;;  %v2246_v40 = vld [vmem:[%s10444_s3 + $0x708] sm:$0xff] }
 0x207   :  { %5350 = vmatprep.subr.bf16.mxu1 %v6954_v4  ;;  %5391 = vmatprep.subr.bf16.mxu0 %v7082_v32  ;;  %v2250_v4 = vld [vmem:[%s10444_s3 + $0x728] sm:$0xff] }
 0x208   :  { %v9161_v49 = vpop.f32.mrf.mxu0  ;;  %v2374_v32 = vld [vmem:[%s10444_s3 + $0xb08] sm:$0xff]  ;;  %v7034_v9 = vcombine.high %v2246_v40, %v2250_v4  ;;  %v7033_v39 = vcombine.low %v2246_v40, %v2250_v4 }
 0x209   :  { %v7161_v15 = vcombine.low %v2374_v32, %v2378_v52  ;;  %v2462_v37 = vld [vmem:[%s10444_s3 + $0xdc8] sm:$0xff] }
 0x20a   :  { %5351 = vmatpush1.bf16.msra.mxu1 %v6953_v59  ;;  %5392 = vmatpush1.bf16.msra.mxu0 %v7081_v57  ;;  %v5173_v0 = vpop.f32.mrf.mxu0  ;;  %v7162_v59 = vcombine.high %v2374_v32, %v2378_v52  ;;  %v2238_v57 = vld [vmem:[%s10444_s3 + $0x6c8] sm:$0xff] }
 0x20b   :  { %5352 = vmatprep.subr.bf16.mxu1 %v6946_v61  ;;  %5393 = vmatprep.subr.bf16.mxu0 %v7074_v45  ;;  %v2242_v61 = vld [vmem:[%s10444_s3 + $0x6e8] sm:$0xff] }
 0x20c   :  { %v5174_v6 = vpop.f32.mrf.mxu0  ;;  %v2366_v45 = vld [vmem:[%s10444_s3 + $0xac8] sm:$0xff]  ;;  %v7026_v47 = vcombine.high %v2238_v57, %v2242_v61  ;;  %v7025_v5 = vcombine.low %v2238_v57, %v2242_v61  ;;  %v2075_v57 = vld [vmem:[%s10444_s3 + $0x1b0] sm:$0xff] }
 0x20d   :  { %v7154_v0 = vcombine.high %v2366_v45, %v2370_v62  ;;  %v7153_v6 = vcombine.low %v2366_v45, %v2370_v62 }
 0x20e   :  { %5353 = vmatpush1.bf16.msra.mxu1 %v6945_v19  ;;  %5394 = vmatpush1.bf16.msra.mxu0 %v7073_v1  ;;  %v2230_v19 = vld [vmem:[%s10444_s3 + $0x688] sm:$0xff] }
 0x20f   :  { %5354 = vmatprep.subr.bf16.mxu1 %v6938_v2  ;;  %5395 = vmatprep.subr.bf16.mxu0 %v7066_v3  ;;  %v2234_v1 = vld [vmem:[%s10444_s3 + $0x6a8] sm:$0xff] }
 0x210   :  { %v2358_v2 = vld [vmem:[%s10444_s3 + $0xa88] sm:$0xff]  ;;  %v7018_v12 = vcombine.high %v2230_v19, %v2234_v1 }
 0x211   :  { %v2362_v3 = vld [vmem:[%s10444_s3 + $0xaa8] sm:$0xff] }
 0x212   :  { %5355 = vmatpush1.bf16.msra.mxu1 %v6937_v50  ;;  %5396 = vmatpush1.bf16.msra.mxu0 %v7065_v42  ;;  %v7146_v17 = vcombine.high %v2358_v2, %v2362_v3  ;;  %v2226_v50 = vld [vmem:[%s10444_s3 + $0x668] sm:$0xff]  ;;  %v7145_v53 = vcombine.low %v2358_v2, %v2362_v3 }
 0x213   :  { %5356 = vmatprep.subr.bf16.mxu1 %v7058_v56  ;;  %5397 = vmatprep.subr.bf16.mxu0 %v7186_v21  ;;  %v2350_v42 = vld [vmem:[%s10444_s3 + $0xa48] sm:$0xff]  ;;  %v7017_v21 = vcombine.low %v2230_v19, %v2234_v1  ;;  %v7010_v23 = vcombine.high %v2222_v10, %v2226_v50  ;;  %v2063_v19 = vld [vmem:[%s10444_s3 + $0x150] sm:$0xff] }
 0x214   :  { %v2354_v56 = vld [vmem:[%s10444_s3 + $0xa68] sm:$0xff] }
 0x215   :  { %v7138_v54 = vcombine.high %v2350_v42, %v2354_v56  ;;  %v7137_v31 = vcombine.low %v2350_v42, %v2354_v56  ;;  %v2055_v56 = vld [vmem:[%s10444_s3 + $0x110] sm:$0xff] }
 0x216   :  { %5357 = vmatpush2.bf16.msra.mxu1 %v7057_v26  ;;  %5398 = vmatpush2.bf16.msra.mxu0 %v7185_v28  ;;  %v2218_v26 = vld [vmem:[%s10444_s3 + $0x628] sm:$0xff] }
 0x217   :  { %5358 = vmatprep.subr.bf16.mxu1 %v7050_v29  ;;  %5399 = vmatprep.subr.bf16.mxu0 %v7178_v30  ;;  %v2342_v28 = vld [vmem:[%s10444_s3 + $0xa08] sm:$0xff]  ;;  %v7009_v30 = vcombine.low %v2222_v10, %v2226_v50  ;;  %v7002_v33 = vcombine.high %v2214_v25, %v2218_v26  ;;  %v7001_v40 = vcombine.low %v2214_v25, %v2218_v26 }
 0x218   :  { %v2346_v29 = vld [vmem:[%s10444_s3 + $0xa28] sm:$0xff] }
 0x219   :  { %v7130_v34 = vcombine.high %v2342_v28, %v2346_v29  ;;  %v7129_v4 = vcombine.low %v2342_v28, %v2346_v29  ;;  %v2442_v50 = vld [vmem:[%s10444_s3 + $0xd28] sm:$0xff] }
 0x21a   :  { %5359 = vmatpush2.bf16.msra.mxu1 %v7049_v38  ;;  %5400 = vmatpush2.bf16.msra.mxu0 %v7177_v41  ;;  %v2466_v38 = vld [vmem:[%s10444_s3 + $0xde8] sm:$0xff]  ;;  %v2079_v41 = vld [vmem:[%s10444_s3 + $0x1d0] sm:$0xff] }
 0x21b   :  { %5360 = vmatprep.subr.bf16.mxu1 %v7042_v44  ;;  %5401 = vmatprep.subr.bf16.mxu0 %v7170_v46  ;;  %v2083_v44 = vld [vmem:[%s10444_s3 + $0x1f0] sm:$0xff]  ;;  %v2533_v46 = vld [vmem:[%s10446_s4] sm:$0xff]  ;;  %v7250_v32 = vcombine.high %v2462_v37, %v2466_v38  ;;  %v2430_v28 = vld [vmem:[%s10444_s3 + $0xcc8] sm:$0xff] }
 0x21c   :  { %v6868_v52 = vcombine.high %v2079_v41, %v2083_v44  ;;  %v2542_v61 = vrot.slane %v2533_v46, %v293_v36  ;;  %v6867_v45 = vcombine.low %v2079_v41, %v2083_v44  ;;  %v2434_v29 = vld [vmem:[%s10444_s3 + $0xce8] sm:$0xff] }
 0x21d   :  { %v2422_v41 = vld [vmem:[%s10444_s3 + $0xc88] sm:$0xff] }
 0x21e   :  { %5361 = vmatpush2.bf16.msra.mxu1 %v7041_v55  ;;  %5402 = vmatpush2.bf16.msra.mxu0 %v7169_v58  ;;  %v2538_v55 = vrot.slane %v2533_v46, %v289_v35  ;;  %v2454_v58 = vld [vmem:[%s10444_s3 + $0xd88] sm:$0xff]  ;;  %v7249_v35 = vcombine.low %v2462_v37, %v2466_v38  ;;  %v5172_v1 = vadd.f32 %v9161_v49, %v2542_v61  ;;  %v2039_v46 = vld [vmem:[%s10444_s3 + $0x90] sm:$0xff] }
 0x21f   :  { %5362 = vmatprep.subr.bf16.mxu1 %v7034_v9  ;;  %5403 = vmatprep.subr.bf16.mxu0 %v7162_v59  ;;  %v2458_v9 = vld [vmem:[%s10444_s3 + $0xda8] sm:$0xff]  ;;  %v2071_v59 = vld [vmem:[%s10444_s3 + $0x190] sm:$0xff]  ;;  %v7218_v37 = vcombine.high %v2430_v28, %v2434_v29 }
 0x220   :  { %v5170_v62 = vadd.f32 %v9156_v11, %v2538_v55  ;;  %v2067_v11 = vld [vmem:[%s10444_s3 + $0x170] sm:$0xff]  ;;  %v7241_v3 = vcombine.low %v2454_v58, %v2458_v9  ;;  %v2438_v49 = vld [vmem:[%s10444_s3 + $0xd08] sm:$0xff] }
 0x221   :  { %v6852_v10 = vcombine.high %v2063_v19, %v2067_v11  ;;  %v7226_v25 = vcombine.high %v2438_v49, %v2442_v50  ;;  %v2426_v44 = vld [vmem:[%s10444_s3 + $0xca8] sm:$0xff] }
 0x222   :  { %5363 = vmatpush2.bf16.msra.mxu1 %v7033_v39  ;;  %5404 = vmatpush2.bf16.msra.mxu0 %v7161_v15  ;;  %v7242_v39 = vcombine.high %v2454_v58, %v2458_v9  ;;  %v6860_v15 = vcombine.high %v2071_v59, %v2075_v57  ;;  %v2414_v58 = vld [vmem:[%s10444_s3 + $0xc48] sm:$0xff]  ;;  %v7209_v61 = vcombine.low %v2422_v41, %v2426_v44 }
 0x223   :  { %5364 = vmatprep.subr.bf16.mxu1 %v7026_v47  ;;  %5405 = vmatprep.subr.bf16.mxu0 %v7154_v0  ;;  %v2446_v47 = vld [vmem:[%s10444_s3 + $0xd48] sm:$0xff] }
 0x224   :  { %v2450_v0 = vld [vmem:[%s10444_s3 + $0xd68] sm:$0xff] }
 0x225   :  { %v2418_v9 = vld [vmem:[%s10444_s3 + $0xc68] sm:$0xff] }
 0x226   :  { %5365 = vmatpush2.bf16.msra.mxu1 %v7025_v5  ;;  %5406 = vmatpush2.bf16.msra.mxu0 %v7153_v6  ;;  %v6859_v6 = vcombine.low %v2071_v59, %v2075_v57  ;;  %v2031_v59 = vld [vmem:[%s10444_s3 + $0x50] sm:$0xff] }
 0x227   :  { %5366 = vmatprep.subr.bf16.mxu1 %v7018_v12  ;;  %5407 = vmatprep.subr.bf16.mxu0 %v7146_v17  ;;  %v7234_v12 = vcombine.high %v2446_v47, %v2450_v0  ;;  %v2035_v57 = vld [vmem:[%s10444_s3 + $0x70] sm:$0xff] }
 0x22a   :  { %5367 = vmatpush2.bf16.msra.mxu1 %v7017_v21  ;;  %5408 = vmatpush2.bf16.msra.mxu0 %v7145_v53  ;;  %v2059_v21 = vld [vmem:[%s10444_s3 + $0x130] sm:$0xff]  ;;  %v7233_v53 = vcombine.low %v2446_v47, %v2450_v0 }
 0x22b   :  { %5368 = vmatprep.subr.bf16.mxu1 %v7010_v23  ;;  %5409 = vmatprep.subr.bf16.mxu0 %v7138_v54  ;;  %v6851_v54 = vcombine.low %v2063_v19, %v2067_v11  ;;  %v6844_v26 = vcombine.high %v2055_v56, %v2059_v21  ;;  %v2023_v47 = vld [vmem:[%s10444_s3 + $0x10] sm:$0xff]  ;;  %v6819_v19 = vcombine.low %v2031_v59, %v2035_v57 }
 0x22c   :  { %v2027_v0 = vld [vmem:[%s10444_s3 + $0x30] sm:$0xff] }
 0x22e   :  { %5369 = vmatpush2.bf16.msra.mxu1 %v7009_v30  ;;  %5410 = vmatpush2.bf16.msra.mxu0 %v7137_v31  ;;  %v2047_v30 = vld [vmem:[%s10444_s3 + $0xd0] sm:$0xff] }
 0x22f   :  { %5370 = vmatprep.subr.bf16.mxu1 %v7002_v33  ;;  %5411 = vmatprep.subr.bf16.mxu0 %v7130_v34  ;;  %v2051_v31 = vld [vmem:[%s10444_s3 + $0xf0] sm:$0xff]  ;;  %v7225_v33 = vcombine.low %v2438_v49, %v2442_v50  ;;  %v6843_v34 = vcombine.low %v2055_v56, %v2059_v21  ;;  %v6811_v49 = vcombine.low %v2023_v47, %v2027_v0  ;;  %v2518_v56 = vld [vmem:[%s10444_s3 + $0xf88] sm:$0xff] }
 0x230   :  { %v6836_v38 = vcombine.high %v2047_v30, %v2051_v31  ;;  %v2522_v21 = vld [vmem:[%s10444_s3 + $0xfa8] sm:$0xff] }
 0x232   :  { %5371 = vmatpush2.bf16.msra.mxu1 %v7001_v40  ;;  %5412 = vmatpush2.bf16.msra.mxu0 %v7129_v4  ;;  %v2043_v40 = vld [vmem:[%s10444_s3 + $0xb0] sm:$0xff]  ;;  %v7217_v4 = vcombine.low %v2430_v28, %v2434_v29  ;;  %v2510_v29 = vld [vmem:[%s10444_s3 + $0xf48] sm:$0xff] }
 0x233   :  { %5422 = vmatprep.subr.bf16.mxu1 %v7250_v32  ;;  %5463 = vmatprep.subr.bf16.mxu0 %v6868_v52  ;;  %v6835_v32 = vcombine.low %v2047_v30, %v2051_v31  ;;  %v7210_v52 = vcombine.high %v2422_v41, %v2426_v44  ;;  %v6828_v55 = vcombine.high %v2039_v46, %v2043_v40  ;;  %v2514_v30 = vld [vmem:[%s10444_s3 + $0xf68] sm:$0xff]  ;;  %v2127_v31 = vld [vmem:[%s10444_s3 + $0x350] sm:$0xff] }
 0x234   :  { %v2502_v44 = vld [vmem:[%s10444_s3 + $0xf08] sm:$0xff] }
 0x235   :  { %5373 = vmatmul.mubr.bf16.vlgmr.msra.gmra.mxu1 %v8814_v51  ;;  %5414 = vmatmul.mubr.bf16.vlgmr.msra.gmra.mxu0 %v8958_v16  ;;  %v5210_v36 = vpop.f32.mrf.mxu1 }
 0x236   :  { %v9315_v2 = vadd.f32 %v5210_v36, %v5170_v62  ;;  %5423 = vmatpush1.bf16.msra.mxu1 %v7249_v35  ;;  %5454 = vmatprep.mubr.bf16.mxu1 %v9084_v13  ;;  %v6827_v35 = vcombine.low %v2039_v46, %v2043_v40  ;;  %v6820_v62 = vcombine.high %v2031_v59, %v2035_v57  ;;  %v2506_v46 = vld [vmem:[%s10444_s3 + $0xf28] sm:$0xff]  ;;  %v2119_v40 = vld [vmem:[%s10444_s3 + $0x310] sm:$0xff] }
 0x237   :  { %5464 = vmatpush1.bf16.msra.mxu0 %v6867_v45  ;;  %5495 = vmatprep.mubr.bf16.mxu0 %v8642_v43  ;;  %v5212_v5 = vpop.f32.mrf.mxu1  ;;  %v7202_v45 = vcombine.high %v2414_v58, %v2418_v9  ;;  %v7201_v36 = vcombine.low %v2414_v58, %v2418_v9  ;;  %v2494_v9 = vld [vmem:[%s10444_s3 + $0xec8] sm:$0xff]  ;;  %v2111_v57 = vld [vmem:[%s10444_s3 + $0x2d0] sm:$0xff] }
 0x238   :  { %v9319_v17 = vadd.f32 %v5212_v5, %v5172_v1  ;;  %5424 = vmatprep.subr.bf16.mxu1 %v7242_v39  ;;  %5465 = vmatprep.subr.bf16.mxu0 %v6860_v15  ;;  %v2406_v39 = vld [vmem:[%s10444_s3 + $0xc08] sm:$0xff]  ;;  %v6812_v1 = vcombine.high %v2023_v47, %v2027_v0  ;;  %v2103_v0 = vld [vmem:[%s10444_s3 + $0x290] sm:$0xff] }
 0x239   :  { %v5214_v42 = vpop.f32.mrf.mxu1  ;;  %v2410_v15 = vld [vmem:[%s10444_s3 + $0xc28] sm:$0xff] }
 0x23a   :  { %5425 = vmatpush1.bf16.msra.mxu1 %v7241_v3  ;;  %v7194_v11 = vcombine.high %v2406_v39, %v2410_v15  ;;  %v2526_v3 = vld [vmem:[%s10444_s3 + $0xfc8] sm:$0xff] }
 0x23b   :  { %5466 = vmatpush1.bf16.msra.mxu0 %v6859_v6  ;;  %v5215_v23 = vpop.f32.mrf.mxu1  ;;  %5426 = vmatprep.subr.bf16.mxu1 %v7234_v12  ;;  %v2530_v5 = vld [vmem:[%s10444_s3 + $0xfe8] sm:$0xff]  ;;  %v2143_v6 = vld [vmem:[%s10444_s3 + $0x3d0] sm:$0xff] }
 0x23c   :  { %5467 = vmatprep.subr.bf16.mxu0 %v6852_v10  ;;  %v2147_v12 = vld [vmem:[%s10444_s3 + $0x3f0] sm:$0xff]  ;;  %v7193_v10 = vcombine.low %v2406_v39, %v2410_v15  ;;  %v7314_v50 = vcombine.high %v2526_v3, %v2530_v5  ;;  %v2498_v59 = vld [vmem:[%s10444_s3 + $0xee8] sm:$0xff] }
 0x23d   :  { %v6932_v42 = vcombine.high %v2143_v6, %v2147_v12  ;;  %v2139_v23 = vld [vmem:[%s10444_s3 + $0x3b0] sm:$0xff]  ;;  %v2486_v15 = vld [vmem:[%s10444_s3 + $0xe88] sm:$0xff] }
 0x23e   :  { %5427 = vmatpush1.bf16.msra.mxu1 %v7233_v53  ;;  %v2135_v53 = vld [vmem:[%s10444_s3 + $0x390] sm:$0xff]  ;;  %v2490_v47 = vld [vmem:[%s10444_s3 + $0xea8] sm:$0xff] }
 0x23f   :  { %5468 = vmatpush1.bf16.msra.mxu0 %v6851_v54  ;;  %5428 = vmatprep.subr.bf16.mxu1 %v7226_v25  ;;  %v7313_v54 = vcombine.low %v2526_v3, %v2530_v5  ;;  %v6931_v25 = vcombine.low %v2143_v6, %v2147_v12  ;;  %v6924_v28 = vcombine.high %v2135_v53, %v2139_v23  ;;  %v2478_v5 = vld [vmem:[%s10444_s3 + $0xe48] sm:$0xff]  ;;  %v2095_v12 = vld [vmem:[%s10444_s3 + $0x250] sm:$0xff] }
 0x240   :  { %5469 = vmatprep.subr.bf16.mxu0 %v6844_v26  ;;  %v7306_v26 = vcombine.high %v2518_v56, %v2522_v21  ;;  %v2482_v6 = vld [vmem:[%s10444_s3 + $0xe68] sm:$0xff] }
 0x242   :  { %5429 = vmatpush1.bf16.msra.mxu1 %v7225_v33  ;;  %v2131_v33 = vld [vmem:[%s10444_s3 + $0x370] sm:$0xff] }
 0x243   :  { %5470 = vmatpush1.bf16.msra.mxu0 %v6843_v34  ;;  %5430 = vmatprep.subr.bf16.mxu1 %v7218_v37  ;;  %v7305_v34 = vcombine.low %v2518_v56, %v2522_v21  ;;  %v6923_v37 = vcombine.low %v2135_v53, %v2139_v23  ;;  %v6916_v41 = vcombine.high %v2127_v31, %v2131_v33  ;;  %v2470_v21 = vld [vmem:[%s10444_s3 + $0xe08] sm:$0xff]  ;;  %v2087_v23 = vld [vmem:[%s10444_s3 + $0x210] sm:$0xff] }
 0x244   :  { %5471 = vmatprep.subr.bf16.mxu0 %v6836_v38  ;;  %v7298_v38 = vcombine.high %v2510_v29, %v2514_v30  ;;  %v2474_v53 = vld [vmem:[%s10444_s3 + $0xe28] sm:$0xff] }
 0x246   :  { %5431 = vmatpush1.bf16.msra.mxu1 %v7217_v4  ;;  %v2123_v4 = vld [vmem:[%s10444_s3 + $0x330] sm:$0xff] }
 0x247   :  { %5472 = vmatpush1.bf16.msra.mxu0 %v6835_v32  ;;  %5432 = vmatprep.subr.bf16.mxu1 %v7210_v52  ;;  %v7297_v32 = vcombine.low %v2510_v29, %v2514_v30  ;;  %v6915_v52 = vcombine.low %v2127_v31, %v2131_v33  ;;  %v6908_v58 = vcombine.high %v2119_v40, %v2123_v4  ;;  %v2207_v30 = vld [vmem:[%s10444_s3 + $0x5d0] sm:$0xff] }
 0x248   :  { %5473 = vmatprep.subr.bf16.mxu0 %v6828_v55  ;;  %v7290_v55 = vcombine.high %v2502_v44, %v2506_v46  ;;  %v2211_v31 = vld [vmem:[%s10444_s3 + $0x5f0] sm:$0xff] }
 0x249   :  { %v2335_v33 = vld [vmem:[%s10444_s3 + $0x9d0] sm:$0xff] }
 0x24a   :  { %5433 = vmatpush1.bf16.msra.mxu1 %v7209_v61  ;;  %v2115_v61 = vld [vmem:[%s10444_s3 + $0x2f0] sm:$0xff] }
 0x24b   :  { %5474 = vmatpush1.bf16.msra.mxu0 %v6827_v35  ;;  %5434 = vmatprep.subr.bf16.mxu1 %v7202_v45  ;;  %v7289_v35 = vcombine.low %v2502_v44, %v2506_v46  ;;  %v6907_v45 = vcombine.low %v2119_v40, %v2123_v4  ;;  %v6900_v39 = vcombine.high %v2111_v57, %v2115_v61  ;;  %v2199_v46 = vld [vmem:[%s10444_s3 + $0x590] sm:$0xff] }
 0x24c   :  { %5475 = vmatprep.subr.bf16.mxu0 %v6820_v62  ;;  %v7282_v62 = vcombine.high %v2494_v9, %v2498_v59  ;;  %v2203_v40 = vld [vmem:[%s10444_s3 + $0x5b0] sm:$0xff]  ;;  %v6995_v4 = vcombine.low %v2207_v30, %v2211_v31 }
 0x24e   :  { %5435 = vmatpush1.bf16.msra.mxu1 %v7201_v36  ;;  %v2107_v36 = vld [vmem:[%s10444_s3 + $0x2b0] sm:$0xff] }
 0x24f   :  { %5476 = vmatpush1.bf16.msra.mxu0 %v6819_v19  ;;  %5436 = vmatprep.subr.bf16.mxu1 %v7194_v11  ;;  %v7281_v19 = vcombine.low %v2494_v9, %v2498_v59  ;;  %v6899_v11 = vcombine.low %v2111_v57, %v2115_v61  ;;  %v6892_v3 = vcombine.high %v2103_v0, %v2107_v36  ;;  %v2191_v9 = vld [vmem:[%s10444_s3 + $0x550] sm:$0xff] }
 0x250   :  { %5477 = vmatprep.subr.bf16.mxu0 %v6812_v1  ;;  %v7274_v1 = vcombine.high %v2486_v15, %v2490_v47  ;;  %v2195_v59 = vld [vmem:[%s10444_s3 + $0x570] sm:$0xff] }
 0x252   :  { %5437 = vmatpush1.bf16.msra.mxu1 %v7193_v10  ;;  %v2099_v10 = vld [vmem:[%s10444_s3 + $0x270] sm:$0xff] }
 0x253   :  { %5478 = vmatpush1.bf16.msra.mxu0 %v6811_v49  ;;  %5438 = vmatprep.subr.bf16.mxu1 %v7314_v50  ;;  %v7273_v49 = vcombine.low %v2486_v15, %v2490_v47  ;;  %v6891_v50 = vcombine.low %v2103_v0, %v2107_v36  ;;  %v6884_v56 = vcombine.high %v2095_v12, %v2099_v10 }
 0x254   :  { %5479 = vmatprep.subr.bf16.mxu0 %v6932_v42  ;;  %v7266_v42 = vcombine.high %v2478_v5, %v2482_v6  ;;  %v6980_v0 = vcombine.high %v2191_v9, %v2195_v59 }
 0x256   :  { %5439 = vmatpush2.bf16.msra.mxu1 %v7313_v54  ;;  %v2091_v54 = vld [vmem:[%s10444_s3 + $0x230] sm:$0xff] }
 0x257   :  { %5480 = vmatpush2.bf16.msra.mxu0 %v6931_v25  ;;  %5440 = vmatprep.subr.bf16.mxu1 %v7306_v26  ;;  %v7265_v25 = vcombine.low %v2478_v5, %v2482_v6  ;;  %v6883_v26 = vcombine.low %v2095_v12, %v2099_v10  ;;  %v6876_v29 = vcombine.high %v2087_v23, %v2091_v54 }
 0x258   :  { %5481 = vmatprep.subr.bf16.mxu0 %v6924_v28  ;;  %v7258_v28 = vcombine.high %v2470_v21, %v2474_v53  ;;  %v6979_v5 = vcombine.low %v2191_v9, %v2195_v59  ;;  %v2279_v9 = vld [vmem:[%s10444_s3 + $0x810] sm:$0xff] }
 0x259   :  { %v2283_v59 = vld [vmem:[%s10444_s3 + $0x830] sm:$0xff] }
 0x25a   :  { %5441 = vmatpush2.bf16.msra.mxu1 %v7305_v34  ;;  %v2339_v34 = vld [vmem:[%s10444_s3 + $0x9f0] sm:$0xff] }
 0x25b   :  { %5482 = vmatpush2.bf16.msra.mxu0 %v6923_v37  ;;  %5442 = vmatprep.subr.bf16.mxu1 %v7298_v38  ;;  %v7257_v37 = vcombine.low %v2470_v21, %v2474_v53  ;;  %v6875_v38 = vcombine.low %v2087_v23, %v2091_v54  ;;  %v7124_v44 = vcombine.high %v2335_v33, %v2339_v34  ;;  %v2307_v21 = vld [vmem:[%s10444_s3 + $0x8f0] sm:$0xff] }
 0x25c   :  { %5483 = vmatprep.subr.bf16.mxu0 %v6916_v41  ;;  %v6996_v41 = vcombine.high %v2207_v30, %v2211_v31  ;;  %v2299_v30 = vld [vmem:[%s10444_s3 + $0x8b0] sm:$0xff] }
 0x25e   :  { %5443 = vmatpush2.bf16.msra.mxu1 %v7297_v32  ;;  %v2327_v32 = vld [vmem:[%s10444_s3 + $0x990] sm:$0xff] }
 0x25f   :  { %5484 = vmatpush2.bf16.msra.mxu0 %v6915_v52  ;;  %5444 = vmatprep.subr.bf16.mxu1 %v7290_v55  ;;  %v2331_v52 = vld [vmem:[%s10444_s3 + $0x9b0] sm:$0xff]  ;;  %v7123_v55 = vcombine.low %v2335_v33, %v2339_v34 }
 0x260   :  { %5485 = vmatprep.subr.bf16.mxu0 %v6908_v58  ;;  %v6988_v58 = vcombine.high %v2199_v46, %v2203_v40  ;;  %v7116_v61 = vcombine.high %v2327_v32, %v2331_v52  ;;  %v7115_v47 = vcombine.low %v2327_v32, %v2331_v52 }
 0x262   :  { %5445 = vmatpush2.bf16.msra.mxu1 %v7289_v35  ;;  %v2319_v35 = vld [vmem:[%s10444_s3 + $0x950] sm:$0xff] }
 0x263   :  { %5486 = vmatpush2.bf16.msra.mxu0 %v6907_v45  ;;  %5446 = vmatprep.subr.bf16.mxu1 %v7282_v62  ;;  %v2323_v45 = vld [vmem:[%s10444_s3 + $0x970] sm:$0xff] }
 0x264   :  { %5487 = vmatprep.subr.bf16.mxu0 %v6900_v39  ;;  %v6987_v39 = vcombine.low %v2199_v46, %v2203_v40  ;;  %v7107_v12 = vcombine.low %v2319_v35, %v2323_v45  ;;  %v2291_v46 = vld [vmem:[%s10444_s3 + $0x870] sm:$0xff] }
 0x266   :  { %5447 = vmatpush2.bf16.msra.mxu1 %v7281_v19  ;;  %v7108_v19 = vcombine.high %v2319_v35, %v2323_v45  ;;  %v7068_v45 = vcombine.high %v2279_v9, %v2283_v59 }
 0x267   :  { %5488 = vmatpush2.bf16.msra.mxu0 %v6899_v11  ;;  %5448 = vmatprep.subr.bf16.mxu1 %v7274_v1  ;;  %v2187_v11 = vld [vmem:[%s10444_s3 + $0x530] sm:$0xff] }
 0x268   :  { %5489 = vmatprep.subr.bf16.mxu0 %v6892_v3  ;;  %v2311_v3 = vld [vmem:[%s10444_s3 + $0x910] sm:$0xff] }
 0x26a   :  { %5449 = vmatpush2.bf16.msra.mxu1 %v7273_v49 }
 0x26b   :  { %5490 = vmatpush2.bf16.msra.mxu0 %v6891_v50  ;;  %5450 = vmatprep.subr.bf16.mxu1 %v7266_v42  ;;  %v2175_v50 = vld [vmem:[%s10444_s3 + $0x4d0] sm:$0xff] }
 0x26c   :  { %5491 = vmatprep.subr.bf16.mxu0 %v6884_v56  ;;  %v2179_v42 = vld [vmem:[%s10444_s3 + $0x4f0] sm:$0xff] }
 0x26d   :  { %v2303_v56 = vld [vmem:[%s10444_s3 + $0x8d0] sm:$0xff]  ;;  %v6964_v54 = vcombine.high %v2175_v50, %v2179_v42  ;;  %v6963_v31 = vcombine.low %v2175_v50, %v2179_v42 }
 0x26e   :  { %5451 = vmatpush2.bf16.msra.mxu1 %v7265_v25  ;;  %v7092_v25 = vcombine.high %v2303_v56, %v2307_v21  ;;  %v7091_v33 = vcombine.low %v2303_v56, %v2307_v21  ;;  %v2255_v42 = vld [vmem:[%s10444_s3 + $0x750] sm:$0xff] }
 0x26f   :  { %5492 = vmatpush2.bf16.msra.mxu0 %v6883_v26  ;;  %5452 = vmatprep.subr.bf16.mxu1 %v7258_v28  ;;  %v2167_v26 = vld [vmem:[%s10444_s3 + $0x490] sm:$0xff] }
 0x270   :  { %5493 = vmatprep.subr.bf16.mxu0 %v6876_v29  ;;  %v2171_v28 = vld [vmem:[%s10444_s3 + $0x4b0] sm:$0xff] }
 0x271   :  { %v2295_v29 = vld [vmem:[%s10444_s3 + $0x890] sm:$0xff]  ;;  %v6956_v34 = vcombine.high %v2167_v26, %v2171_v28  ;;  %v6955_v40 = vcombine.low %v2167_v26, %v2171_v28 }
 0x272   :  { %5453 = vmatpush2.bf16.msra.mxu1 %v7257_v37  ;;  %v7084_v37 = vcombine.high %v2295_v29, %v2299_v30  ;;  %v2259_v56 = vld [vmem:[%s10444_s3 + $0x770] sm:$0xff] }
 0x273   :  { %5494 = vmatpush2.bf16.msra.mxu0 %v6875_v38  ;;  %5504 = vmatprep.subr.bf16.mxu1 %v6996_v41  ;;  %v2159_v38 = vld [vmem:[%s10444_s3 + $0x450] sm:$0xff] }
 0x274   :  { %5545 = vmatprep.subr.bf16.mxu0 %v7124_v44  ;;  %v2163_v41 = vld [vmem:[%s10444_s3 + $0x470] sm:$0xff] }
 0x275   :  { %5455 = vmatmul.mubr.bf16.vlgmr.msra.gmra.mxu1 %v9086_v63  ;;  %v5251_v57 = vpop.f32.mrf.mxu0  ;;  %v2287_v44 = vld [vmem:[%s10444_s3 + $0x850] sm:$0xff]  ;;  %v6948_v32 = vcombine.high %v2159_v38, %v2163_v41 }
 0x276   :  { %5496 = vmatmul.mubr.bf16.vlgmr.msra.gmra.mxu0 %v8706_v22  ;;  %v9516_v62 = vadd.f32 %v5251_v57, %v9315_v2  ;;  %5505 = vmatpush1.bf16.msra.mxu1 %v6995_v4  ;;  %v2183_v2 = vld [vmem:[%s10444_s3 + $0x510] sm:$0xff]  ;;  %v7083_v4 = vcombine.low %v2295_v29, %v2299_v30  ;;  %v7076_v52 = vcombine.high %v2287_v44, %v2291_v46 }
 0x277   :  { %5536 = vmatprep.mubr.bf16.mxu1 %v8800_v48  ;;  %5546 = vmatpush1.bf16.msra.mxu0 %v7123_v55  ;;  %v5253_v15 = vpop.f32.mrf.mxu0  ;;  %v6972_v10 = vcombine.high %v2183_v2, %v2187_v11  ;;  %v6971_v53 = vcombine.low %v2183_v2, %v2187_v11  ;;  %v2151_v55 = vld [vmem:[%s10444_s3 + $0x410] sm:$0xff]  ;;  %v6947_v57 = vcombine.low %v2159_v38, %v2163_v41 }
 0x278   :  { %5577 = vmatprep.mubr.bf16.mxu0 %v8954_v60  ;;  %v9521_v36 = vadd.f32 %v5253_v15, %v9319_v17  ;;  %5506 = vmatprep.subr.bf16.mxu1 %v6988_v58  ;;  %v2315_v17 = vld [vmem:[%s10444_s3 + $0x930] sm:$0xff]  ;;  %v7067_v2 = vcombine.low %v2279_v9, %v2283_v59 }
 0x279   :  { %5547 = vmatprep.subr.bf16.mxu0 %v7116_v61  ;;  %v5255_v1 = vpop.f32.mrf.mxu0  ;;  %v7100_v49 = vcombine.high %v2311_v3, %v2315_v17  ;;  %v7099_v23 = vcombine.low %v2311_v3, %v2315_v17  ;;  %v2155_v58 = vld [vmem:[%s10444_s3 + $0x430] sm:$0xff]  ;;  %v7075_v61 = vcombine.low %v2287_v44, %v2291_v46 }
 0x27a   :  { %5507 = vmatpush1.bf16.msra.mxu1 %v6987_v39  ;;  %v6940_v35 = vcombine.high %v2151_v55, %v2155_v58  ;;  %v2271_v39 = vld [vmem:[%s10444_s3 + $0x7d0] sm:$0xff] }
 0x27b   :  { %5548 = vmatpush1.bf16.msra.mxu0 %v7115_v47  ;;  %v5256_v6 = vpop.f32.mrf.mxu0  ;;  %5508 = vmatprep.subr.bf16.mxu1 %v6980_v0  ;;  %v2275_v15 = vld [vmem:[%s10444_s3 + $0x7f0] sm:$0xff] }
 0x27c   :  { %5549 = vmatprep.subr.bf16.mxu0 %v7108_v19  ;;  %v2399_v47 = vld [vmem:[%s10444_s3 + $0xbd0] sm:$0xff]  ;;  %v6939_v19 = vcombine.low %v2151_v55, %v2155_v58  ;;  %v7060_v11 = vcombine.high %v2271_v39, %v2275_v15 }
 0x27d   :  { %v2403_v0 = vld [vmem:[%s10444_s3 + $0xbf0] sm:$0xff] }
 0x27e   :  { %5509 = vmatpush1.bf16.msra.mxu1 %v6979_v5  ;;  %v7188_v1 = vcombine.high %v2399_v47, %v2403_v0  ;;  %v2263_v3 = vld [vmem:[%s10444_s3 + $0x790] sm:$0xff] }
 0x27f   :  { %5550 = vmatpush1.bf16.msra.mxu0 %v7107_v12  ;;  %5510 = vmatprep.subr.bf16.mxu1 %v6972_v10  ;;  %v2267_v17 = vld [vmem:[%s10444_s3 + $0x7b0] sm:$0xff]  ;;  %v7059_v12 = vcombine.low %v2271_v39, %v2275_v15  ;;  %v7187_v10 = vcombine.low %v2399_v47, %v2403_v0 }
 0x280   :  { %5551 = vmatprep.subr.bf16.mxu0 %v7100_v49  ;;  %v2391_v5 = vld [vmem:[%s10444_s3 + $0xb90] sm:$0xff]  ;;  %v7052_v49 = vcombine.high %v2263_v3, %v2267_v17 }
 0x281   :  { %v2395_v6 = vld [vmem:[%s10444_s3 + $0xbb0] sm:$0xff] }
 0x282   :  { %5511 = vmatpush1.bf16.msra.mxu1 %v6971_v53  ;;  %v7180_v50 = vcombine.high %v2391_v5, %v2395_v6  ;;  %v2383_v21 = vld [vmem:[%s10444_s3 + $0xb50] sm:$0xff] }
 0x283   :  { %5552 = vmatpush1.bf16.msra.mxu0 %v7099_v23  ;;  %5512 = vmatprep.subr.bf16.mxu1 %v6964_v54  ;;  %v2387_v53 = vld [vmem:[%s10444_s3 + $0xb70] sm:$0xff]  ;;  %v7051_v23 = vcombine.low %v2263_v3, %v2267_v17  ;;  %v7179_v54 = vcombine.low %v2391_v5, %v2395_v6 }
 0x284   :  { %5553 = vmatprep.subr.bf16.mxu0 %v7092_v25  ;;  %v7044_v25 = vcombine.high %v2255_v42, %v2259_v56  ;;  %v7172_v26 = vcombine.high %v2383_v21, %v2387_v53  ;;  %v2247_v28 = vld [vmem:[%s10444_s3 + $0x710] sm:$0xff] }
 0x285   :  { %v2251_v29 = vld [vmem:[%s10444_s3 + $0x730] sm:$0xff] }
 0x286   :  { %5513 = vmatpush1.bf16.msra.mxu1 %v6963_v31  ;;  %v2375_v30 = vld [vmem:[%s10444_s3 + $0xb10] sm:$0xff] }
 0x287   :  { %5554 = vmatpush1.bf16.msra.mxu0 %v7091_v33  ;;  %5514 = vmatprep.subr.bf16.mxu1 %v6956_v34  ;;  %v2379_v31 = vld [vmem:[%s10444_s3 + $0xb30] sm:$0xff]  ;;  %v7043_v33 = vcombine.low %v2255_v42, %v2259_v56  ;;  %v7171_v34 = vcombine.low %v2383_v21, %v2387_v53  ;;  %v2080_v53 = vld [vmem:[%s10444_s3 + $0x1d8] sm:$0xff] }
 0x288   :  { %5555 = vmatprep.subr.bf16.mxu0 %v7084_v37  ;;  %v7036_v37 = vcombine.high %v2247_v28, %v2251_v29  ;;  %v7164_v38 = vcombine.high %v2375_v30, %v2379_v31  ;;  %v2239_v41 = vld [vmem:[%s10444_s3 + $0x6d0] sm:$0xff] }
 0x289   :  { %v2243_v44 = vld [vmem:[%s10444_s3 + $0x6f0] sm:$0xff] }
 0x28a   :  { %5515 = vmatpush1.bf16.msra.mxu1 %v6955_v40  ;;  %v2367_v46 = vld [vmem:[%s10444_s3 + $0xad0] sm:$0xff] }
 0x28b   :  { %5556 = vmatpush1.bf16.msra.mxu0 %v7083_v4  ;;  %5516 = vmatprep.subr.bf16.mxu1 %v6948_v32  ;;  %v2371_v40 = vld [vmem:[%s10444_s3 + $0xaf0] sm:$0xff]  ;;  %v7035_v4 = vcombine.low %v2247_v28, %v2251_v29  ;;  %v7163_v32 = vcombine.low %v2375_v30, %v2379_v31 }
 0x28c   :  { %5557 = vmatprep.subr.bf16.mxu0 %v7076_v52  ;;  %v7028_v52 = vcombine.high %v2239_v41, %v2243_v44  ;;  %v7156_v55 = vcombine.high %v2367_v46, %v2371_v40  ;;  %v2231_v58 = vld [vmem:[%s10444_s3 + $0x690] sm:$0xff] }
 0x28d   :  { %v2235_v9 = vld [vmem:[%s10444_s3 + $0x6b0] sm:$0xff] }
 0x28e   :  { %5517 = vmatpush1.bf16.msra.mxu1 %v6947_v57  ;;  %v2359_v59 = vld [vmem:[%s10444_s3 + $0xa90] sm:$0xff] }
 0x28f   :  { %5558 = vmatpush1.bf16.msra.mxu0 %v7075_v61  ;;  %5518 = vmatprep.subr.bf16.mxu1 %v6940_v35  ;;  %v2363_v57 = vld [vmem:[%s10444_s3 + $0xab0] sm:$0xff]  ;;  %v7027_v61 = vcombine.low %v2239_v41, %v2243_v44  ;;  %v7155_v35 = vcombine.low %v2367_v46, %v2371_v40  ;;  %v2064_v46 = vld [vmem:[%s10444_s3 + $0x158] sm:$0xff] }
 0x290   :  { %5559 = vmatprep.subr.bf16.mxu0 %v7068_v45  ;;  %v7020_v45 = vcombine.high %v2231_v58, %v2235_v9  ;;  %v7148_v39 = vcombine.high %v2359_v59, %v2363_v57  ;;  %v2223_v15 = vld [vmem:[%s10444_s3 + $0x650] sm:$0xff] }
 0x291   :  { %v2227_v47 = vld [vmem:[%s10444_s3 + $0x670] sm:$0xff] }
 0x292   :  { %5519 = vmatpush1.bf16.msra.mxu1 %v6939_v19  ;;  %v2351_v0 = vld [vmem:[%s10444_s3 + $0xa50] sm:$0xff] }
 0x293   :  { %5560 = vmatpush1.bf16.msra.mxu0 %v7067_v2  ;;  %5520 = vmatprep.subr.bf16.mxu1 %v7060_v11  ;;  %v2355_v19 = vld [vmem:[%s10444_s3 + $0xa70] sm:$0xff]  ;;  %v7019_v2 = vcombine.low %v2231_v58, %v2235_v9  ;;  %v7147_v11 = vcombine.low %v2359_v59, %v2363_v57 }
 0x294   :  { %5561 = vmatprep.subr.bf16.mxu0 %v7188_v1  ;;  %v7012_v1 = vcombine.high %v2223_v15, %v2227_v47  ;;  %v7140_v3 = vcombine.high %v2351_v0, %v2355_v19  ;;  %v2215_v17 = vld [vmem:[%s10444_s3 + $0x610] sm:$0xff] }
 0x295   :  { %v2219_v5 = vld [vmem:[%s10444_s3 + $0x630] sm:$0xff] }
 0x296   :  { %5521 = vmatpush2.bf16.msra.mxu1 %v7059_v12  ;;  %v2343_v6 = vld [vmem:[%s10444_s3 + $0xa10] sm:$0xff] }
 0x297   :  { %5562 = vmatpush2.bf16.msra.mxu0 %v7187_v10  ;;  %5522 = vmatprep.subr.bf16.mxu1 %v7052_v49  ;;  %v2347_v12 = vld [vmem:[%s10444_s3 + $0xa30] sm:$0xff]  ;;  %v7011_v10 = vcombine.low %v2223_v15, %v2227_v47  ;;  %v7139_v49 = vcombine.low %v2351_v0, %v2355_v19  ;;  %v2056_v15 = vld [vmem:[%s10444_s3 + $0x118] sm:$0xff] }
 0x298   :  { %5563 = vmatprep.subr.bf16.mxu0 %v7180_v50  ;;  %v7004_v50 = vcombine.high %v2215_v17, %v2219_v5  ;;  %v7132_v42 = vcombine.high %v2343_v6, %v2347_v12  ;;  %v2463_v56 = vld [vmem:[%s10444_s3 + $0xdd0] sm:$0xff] }
 0x299   :  { %v2467_v21 = vld [vmem:[%s10444_s3 + $0xdf0] sm:$0xff] }
 0x29a   :  { %5523 = vmatpush2.bf16.msra.mxu1 %v7051_v23  ;;  %v2084_v23 = vld [vmem:[%s10444_s3 + $0x1f8] sm:$0xff]  ;;  %v2455_v29 = vld [vmem:[%s10444_s3 + $0xd90] sm:$0xff]  ;;  %v7251_v31 = vcombine.low %v2463_v56, %v2467_v21 }
 0x29b   :  { %5564 = vmatpush2.bf16.msra.mxu0 %v7179_v54  ;;  %5524 = vmatprep.subr.bf16.mxu1 %v7044_v25  ;;  %v7003_v54 = vcombine.low %v2215_v17, %v2219_v5  ;;  %v7131_v25 = vcombine.low %v2343_v6, %v2347_v12  ;;  %v6870_v28 = vcombine.high %v2080_v53, %v2084_v23  ;;  %v2459_v30 = vld [vmem:[%s10444_s3 + $0xdb0] sm:$0xff]  ;;  %v2048_v6 = vld [vmem:[%s10444_s3 + $0xd8] sm:$0xff] }
 0x29c   :  { %5565 = vmatprep.subr.bf16.mxu0 %v7172_v26  ;;  %v7252_v26 = vcombine.high %v2463_v56, %v2467_v21  ;;  %v2447_v41 = vld [vmem:[%s10444_s3 + $0xd50] sm:$0xff]  ;;  %v7243_v58 = vcombine.low %v2455_v29, %v2459_v30  ;;  %v2052_v12 = vld [vmem:[%s10444_s3 + $0xf8] sm:$0xff] }
 0x29d   :  { %v2451_v44 = vld [vmem:[%s10444_s3 + $0xd70] sm:$0xff]  ;;  %v6838_v56 = vcombine.high %v2048_v6, %v2052_v12 }
 0x29e   :  { %5525 = vmatpush2.bf16.msra.mxu1 %v7043_v33  ;;  %v2072_v33 = vld [vmem:[%s10444_s3 + $0x198] sm:$0xff]  ;;  %v2439_v9 = vld [vmem:[%s10444_s3 + $0xd10] sm:$0xff] }
 0x29f   :  { %5566 = vmatpush2.bf16.msra.mxu0 %v7171_v34  ;;  %5526 = vmatprep.subr.bf16.mxu1 %v7036_v37  ;;  %v2076_v34 = vld [vmem:[%s10444_s3 + $0x1b8] sm:$0xff]  ;;  %v6869_v37 = vcombine.low %v2080_v53, %v2084_v23  ;;  %v2431_v19 = vld [vmem:[%s10444_s3 + $0xcd0] sm:$0xff] }
 0x2a0   :  { %5567 = vmatprep.subr.bf16.mxu0 %v7164_v38  ;;  %v7244_v38 = vcombine.high %v2455_v29, %v2459_v30  ;;  %v2435_v5 = vld [vmem:[%s10444_s3 + $0xcf0] sm:$0xff]  ;;  %v2040_v53 = vld [vmem:[%s10444_s3 + $0x98] sm:$0xff] }
 0x2a1   :  { %v2427_v21 = vld [vmem:[%s10444_s3 + $0xcb0] sm:$0xff]  ;;  %v2044_v23 = vld [vmem:[%s10444_s3 + $0xb8] sm:$0xff] }
 0x2a2   :  { %5527 = vmatpush2.bf16.msra.mxu1 %v7035_v4  ;;  %v6830_v29 = vcombine.high %v2040_v53, %v2044_v23  ;;  %v2419_v30 = vld [vmem:[%s10444_s3 + $0xc70] sm:$0xff] }
 0x2a3   :  { %5568 = vmatpush2.bf16.msra.mxu0 %v7163_v32  ;;  %5528 = vmatprep.subr.bf16.mxu1 %v7028_v52  ;;  %v6862_v32 = vcombine.high %v2072_v33, %v2076_v34  ;;  %v2068_v52 = vld [vmem:[%s10444_s3 + $0x178] sm:$0xff] }
 0x2a4   :  { %5569 = vmatprep.subr.bf16.mxu0 %v7156_v55 }
 0x2a6   :  { %5529 = vmatpush2.bf16.msra.mxu1 %v7027_v61  ;;  %v6861_v61 = vcombine.low %v2072_v33, %v2076_v34  ;;  %v2036_v33 = vld [vmem:[%s10444_s3 + $0x78] sm:$0xff] }
 0x2a7   :  { %5570 = vmatpush2.bf16.msra.mxu0 %v7155_v35  ;;  %5530 = vmatprep.subr.bf16.mxu1 %v7020_v45  ;;  %v7236_v35 = vcombine.high %v2447_v41, %v2451_v44 }
 0x2a8   :  { %5571 = vmatprep.subr.bf16.mxu0 %v7148_v39  ;;  %v2443_v39 = vld [vmem:[%s10444_s3 + $0xd30] sm:$0xff] }
 0x2aa   :  { %5531 = vmatpush2.bf16.msra.mxu1 %v7019_v2 }
 0x2ab   :  { %5572 = vmatpush2.bf16.msra.mxu0 %v7147_v11  ;;  %5532 = vmatprep.subr.bf16.mxu1 %v7012_v1  ;;  %v6853_v1 = vcombine.low %v2064_v46, %v2068_v52 }
 0x2ac   :  { %5573 = vmatprep.subr.bf16.mxu0 %v7140_v3  ;;  %v7228_v3 = vcombine.high %v2439_v9, %v2443_v39 }
 0x2ae   :  { %5533 = vmatpush2.bf16.msra.mxu1 %v7011_v10  ;;  %v7227_v10 = vcombine.low %v2439_v9, %v2443_v39  ;;  %v2148_v39 = vld [vmem:[%s10444_s3 + $0x3f8] sm:$0xff] }
 0x2af   :  { %5574 = vmatpush2.bf16.msra.mxu0 %v7139_v49  ;;  %5534 = vmatprep.subr.bf16.mxu1 %v7004_v50  ;;  %v2423_v49 = vld [vmem:[%s10444_s3 + $0xc90] sm:$0xff] }
 0x2b0   :  { %5575 = vmatprep.subr.bf16.mxu0 %v7132_v42  ;;  %v7220_v42 = vcombine.high %v2431_v19, %v2435_v5  ;;  %v7211_v34 = vcombine.low %v2423_v49, %v2427_v21 }
 0x2b2   :  { %5535 = vmatpush2.bf16.msra.mxu1 %v7003_v54  ;;  %v7219_v54 = vcombine.low %v2431_v19, %v2435_v5  ;;  %v2523_v19 = vld [vmem:[%s10444_s3 + $0xfb0] sm:$0xff] }
 0x2b3   :  { %5576 = vmatpush2.bf16.msra.mxu0 %v7131_v25  ;;  %5586 = vmatprep.subr.bf16.mxu1 %v7252_v26  ;;  %v2415_v25 = vld [vmem:[%s10444_s3 + $0xc50] sm:$0xff]  ;;  %v6837_v26 = vcombine.low %v2048_v6, %v2052_v12 }
 0x2b4   :  { %5627 = vmatprep.subr.bf16.mxu0 %v6870_v28  ;;  %v7212_v28 = vcombine.high %v2423_v49, %v2427_v21  ;;  %v2132_v49 = vld [vmem:[%s10444_s3 + $0x378] sm:$0xff] }
 0x2b5   :  { %v9712_v40 = vpop.f32.mrf.mxu0  ;;  %5537 = vmatmul.mubr.bf16.vlgmr.msra.gmra.mxu1 %v8814_v51  ;;  %v5292_v4 = vpop.f32.mrf.mxu1 }
 0x2b6   :  { %5578 = vmatmul.mubr.bf16.vlgmr.msra.gmra.mxu0 %v8958_v16  ;;  %v9720_v55 = vadd.f32 %v5292_v4, %v9516_v62  ;;  %5587 = vmatpush1.bf16.msra.mxu1 %v7251_v31  ;;  %v6854_v62 = vcombine.high %v2064_v46, %v2068_v52  ;;  %v2032_v31 = vld [vmem:[%s10444_s3 + $0x58] sm:$0xff]  ;;  %v2411_v46 = vld [vmem:[%s10444_s3 + $0xc30] sm:$0xff]  ;;  %v7203_v52 = vcombine.low %v2415_v25, %v2419_v30 }
 0x2b7   :  { %5618 = vmatprep.mubr.bf16.mxu1 %v9084_v13  ;;  %5628 = vmatpush1.bf16.msra.mxu0 %v6869_v37  ;;  %v9726_v59 = vpop.f32.mrf.mxu0  ;;  %v5294_v57 = vpop.f32.mrf.mxu1  ;;  %v2407_v37 = vld [vmem:[%s10444_s3 + $0xc10] sm:$0xff]  ;;  %v2024_v4 = vld [vmem:[%s10444_s3 + $0x18] sm:$0xff]  ;;  %v6821_v9 = vcombine.low %v2032_v31, %v2036_v33 }
 0x2b8   :  { %5659 = vmatprep.mubr.bf16.mxu0 %v8642_v43  ;;  %v9730_v45 = vadd.f32 %v5294_v57, %v9521_v36  ;;  %5588 = vmatprep.subr.bf16.mxu1 %v7244_v38  ;;  %v2060_v43 = vld [vmem:[%s10444_s3 + $0x138] sm:$0xff]  ;;  %v7235_v36 = vcombine.low %v2447_v41, %v2451_v44  ;;  %v6829_v38 = vcombine.low %v2040_v53, %v2044_v23  ;;  %vm5791_vm9 = vcmp.gt.f32.partialorder %v9720_v55, 20.0 }
 0x2b9   :  { %v5337_v47 = vpop.f32.mrf.mxu0  ;;  %5629 = vmatprep.subr.bf16.mxu0 %v6862_v32  ;;  %v5296_v0 = vpop.f32.mrf.mxu1  ;;  %v6846_v17 = vcombine.high %v2056_v15, %v2060_v43  ;;  %v6845_v50 = vcombine.low %v2056_v15, %v2060_v43  ;;  %v7204_v41 = vcombine.high %v2415_v25, %v2419_v30  ;;  %v6822_v44 = vcombine.high %v2032_v31, %v2036_v33  ;;  %v2028_v32 = vld [vmem:[%s10444_s3 + $0x38] sm:$0xff] }
 0x2ba   :  { %5589 = vmatpush1.bf16.msra.mxu1 %v7243_v58  ;;  %v2527_v58 = vld [vmem:[%s10444_s3 + $0xfd0] sm:$0xff]  ;;  %v7196_v57 = vcombine.high %v2407_v37, %v2411_v46  ;;  %v7195_v15 = vcombine.low %v2407_v37, %v2411_v46  ;;  %v6813_v0 = vcombine.low %v2024_v4, %v2028_v32  ;;  %v2124_v25 = vld [vmem:[%s10444_s3 + $0x338] sm:$0xff]  ;;  %vm5792_vm8 = vcmp.gt.f32.partialorder %v9730_v45, 20.0 }
 0x2bb   :  { %5630 = vmatpush1.bf16.msra.mxu0 %v6861_v61  ;;  %v5338_v2 = vpop.f32.mrf.mxu0  ;;  %v5297_v11 = vpop.f32.mrf.mxu1  ;;  %5590 = vmatprep.subr.bf16.mxu1 %v7236_v35  ;;  %v6814_v61 = vcombine.high %v2024_v4, %v2028_v32  ;;  %v2531_v35 = vld [vmem:[%s10444_s3 + $0xff0] sm:$0xff]  ;;  %v2116_v37 = vld [vmem:[%s10444_s3 + $0x2f8] sm:$0xff] }
 0x2bc   :  { %5631 = vmatprep.subr.bf16.mxu0 %v6854_v62  ;;  %v2144_v62 = vld [vmem:[%s10444_s3 + $0x3d8] sm:$0xff]  ;;  %v2519_v47 = vld [vmem:[%s10444_s3 + $0xf90] sm:$0xff]  ;;  %v7316_v43 = vcombine.high %v2527_v58, %v2531_v35 }
 0x2bd   :  { %v2136_v2 = vld [vmem:[%s10444_s3 + $0x398] sm:$0xff]  ;;  %v6933_v5 = vcombine.low %v2144_v62, %v2148_v39  ;;  %v7308_v6 = vcombine.high %v2519_v47, %v2523_v19 }
 0x2be   :  { %5591 = vmatpush1.bf16.msra.mxu1 %v7235_v36  ;;  %v6934_v36 = vcombine.high %v2144_v62, %v2148_v39  ;;  %v2140_v11 = vld [vmem:[%s10444_s3 + $0x3b8] sm:$0xff] }
 0x2bf   :  { %5632 = vmatpush1.bf16.msra.mxu0 %v6853_v1  ;;  %5592 = vmatprep.subr.bf16.mxu1 %v7228_v3  ;;  %v7315_v1 = vcombine.low %v2527_v58, %v2531_v35  ;;  %v2511_v3 = vld [vmem:[%s10444_s3 + $0xf50] sm:$0xff]  ;;  %v6926_v12 = vcombine.high %v2136_v2, %v2140_v11  ;;  %v6925_v21 = vcombine.low %v2136_v2, %v2140_v11  ;;  %v2104_v32 = vld [vmem:[%s10444_s3 + $0x298] sm:$0xff] }
 0x2c0   :  { %5633 = vmatprep.subr.bf16.mxu0 %v6846_v17  ;;  %v2515_v17 = vld [vmem:[%s10444_s3 + $0xf70] sm:$0xff]  ;;  %v2096_v39 = vld [vmem:[%s10444_s3 + $0x258] sm:$0xff] }
 0x2c1   :  { %v7300_v53 = vcombine.high %v2511_v3, %v2515_v17  ;;  %v2088_v11 = vld [vmem:[%s10444_s3 + $0x218] sm:$0xff] }
 0x2c2   :  { %5593 = vmatpush1.bf16.msra.mxu1 %v7227_v10  ;;  %v2128_v10 = vld [vmem:[%s10444_s3 + $0x358] sm:$0xff] }
 0x2c3   :  { %5634 = vmatpush1.bf16.msra.mxu0 %v6845_v50  ;;  %5594 = vmatprep.subr.bf16.mxu1 %v7220_v42  ;;  %v7307_v50 = vcombine.low %v2519_v47, %v2523_v19  ;;  %v2503_v42 = vld [vmem:[%s10444_s3 + $0xf10] sm:$0xff]  ;;  %v6918_v23 = vcombine.high %v2128_v10, %v2132_v49  ;;  %v6917_v30 = vcombine.low %v2128_v10, %v2132_v49  ;;  %v2336_v49 = vld [vmem:[%s10444_s3 + $0x9d8] sm:$0xff] }
 0x2c4   :  { %5635 = vmatprep.subr.bf16.mxu0 %v6838_v56  ;;  %v2507_v56 = vld [vmem:[%s10444_s3 + $0xf30] sm:$0xff] }
 0x2c5   :  { %v7292_v31 = vcombine.high %v2503_v42, %v2507_v56 }
 0x2c6   :  { %5595 = vmatpush1.bf16.msra.mxu1 %v7219_v54  ;;  %v2120_v54 = vld [vmem:[%s10444_s3 + $0x318] sm:$0xff] }
 0x2c7   :  { %5636 = vmatpush1.bf16.msra.mxu0 %v6837_v26  ;;  %5596 = vmatprep.subr.bf16.mxu1 %v7212_v28  ;;  %v7299_v26 = vcombine.low %v2511_v3, %v2515_v17  ;;  %v2495_v28 = vld [vmem:[%s10444_s3 + $0xed0] sm:$0xff]  ;;  %v6910_v33 = vcombine.high %v2120_v54, %v2124_v25  ;;  %v6909_v46 = vcombine.low %v2120_v54, %v2124_v25 }
 0x2c8   :  { %5637 = vmatprep.subr.bf16.mxu0 %v6830_v29  ;;  %v2499_v29 = vld [vmem:[%s10444_s3 + $0xef0] sm:$0xff] }
 0x2c9   :  { %v7284_v4 = vcombine.high %v2495_v28, %v2499_v29 }
 0x2ca   :  { %5597 = vmatpush1.bf16.msra.mxu1 %v7211_v34  ;;  %v2112_v34 = vld [vmem:[%s10444_s3 + $0x2d8] sm:$0xff] }
 0x2cb   :  { %5638 = vmatpush1.bf16.msra.mxu0 %v6829_v38  ;;  %5598 = vmatprep.subr.bf16.mxu1 %v7204_v41  ;;  %v7291_v38 = vcombine.low %v2503_v42, %v2507_v56  ;;  %v2487_v41 = vld [vmem:[%s10444_s3 + $0xe90] sm:$0xff]  ;;  %v6902_v58 = vcombine.high %v2112_v34, %v2116_v37  ;;  %v6901_v35 = vcombine.low %v2112_v34, %v2116_v37 }
 0x2cc   :  { %5639 = vmatprep.subr.bf16.mxu0 %v6822_v44  ;;  %v2491_v44 = vld [vmem:[%s10444_s3 + $0xeb0] sm:$0xff] }
 0x2cd   :  { %v7276_v62 = vcombine.high %v2487_v41, %v2491_v44 }
 0x2ce   :  { %5599 = vmatpush1.bf16.msra.mxu1 %v7203_v52  ;;  %v2108_v52 = vld [vmem:[%s10444_s3 + $0x2b8] sm:$0xff] }
 0x2cf   :  { %5640 = vmatpush1.bf16.msra.mxu0 %v6821_v9  ;;  %5600 = vmatprep.subr.bf16.mxu1 %v7196_v57  ;;  %v7283_v9 = vcombine.low %v2495_v28, %v2499_v29  ;;  %v2479_v57 = vld [vmem:[%s10444_s3 + $0xe50] sm:$0xff]  ;;  %v6894_v47 = vcombine.high %v2104_v32, %v2108_v52  ;;  %v6893_v19 = vcombine.low %v2104_v32, %v2108_v52  ;;  %v2204_v28 = vld [vmem:[%s10444_s3 + $0x5b8] sm:$0xff] }
 0x2d0   :  { %5641 = vmatprep.subr.bf16.mxu0 %v6814_v61  ;;  %v2483_v61 = vld [vmem:[%s10444_s3 + $0xe70] sm:$0xff] }
 0x2d1   :  { %v7268_v2 = vcombine.high %v2479_v57, %v2483_v61  ;;  %v7267_v17 = vcombine.low %v2479_v57, %v2483_v61 }
 0x2d2   :  { %5601 = vmatpush1.bf16.msra.mxu1 %v7195_v15  ;;  %v2100_v15 = vld [vmem:[%s10444_s3 + $0x278] sm:$0xff] }
 0x2d3   :  { %5642 = vmatpush1.bf16.msra.mxu0 %v6813_v0  ;;  %5602 = vmatprep.subr.bf16.mxu1 %v7316_v43  ;;  %v7275_v0 = vcombine.low %v2487_v41, %v2491_v44  ;;  %v2471_v43 = vld [vmem:[%s10444_s3 + $0xe10] sm:$0xff]  ;;  %v6886_v3 = vcombine.high %v2096_v39, %v2100_v15 }
 0x2d4   :  { %5643 = vmatprep.subr.bf16.mxu0 %v6934_v36  ;;  %v2475_v36 = vld [vmem:[%s10444_s3 + $0xe30] sm:$0xff] }
 0x2d5   :  { %v7260_v10 = vcombine.high %v2471_v43, %v2475_v36  ;;  %v7259_v56 = vcombine.low %v2471_v43, %v2475_v36 }
 0x2d6   :  { %5603 = vmatpush2.bf16.msra.mxu1 %v7315_v1  ;;  %v2092_v1 = vld [vmem:[%s10444_s3 + $0x238] sm:$0xff] }
 0x2d7   :  { %5644 = vmatpush2.bf16.msra.mxu0 %v6933_v5  ;;  %5604 = vmatprep.subr.bf16.mxu1 %v7308_v6  ;;  %v2208_v5 = vld [vmem:[%s10444_s3 + $0x5d8] sm:$0xff]  ;;  %v6878_v42 = vcombine.high %v2088_v11, %v2092_v1 }
 0x2d8   :  { %5645 = vmatprep.subr.bf16.mxu0 %v6926_v12  ;;  %v2212_v6 = vld [vmem:[%s10444_s3 + $0x5f8] sm:$0xff]  ;;  %v6885_v12 = vcombine.low %v2096_v39, %v2100_v15 }
 0x2da   :  { %5605 = vmatpush2.bf16.msra.mxu1 %v7307_v50  ;;  %v2340_v50 = vld [vmem:[%s10444_s3 + $0x9f8] sm:$0xff] }
 0x2db   :  { %5646 = vmatpush2.bf16.msra.mxu0 %v6925_v21  ;;  %5606 = vmatprep.subr.bf16.mxu1 %v7300_v53  ;;  %v6877_v21 = vcombine.low %v2088_v11, %v2092_v1  ;;  %v6998_v53 = vcombine.high %v2208_v5, %v2212_v6  ;;  %v7126_v25 = vcombine.high %v2336_v49, %v2340_v50 }
 0x2dc   :  { %5647 = vmatprep.subr.bf16.mxu0 %v6918_v23  ;;  %v9900_v23 = vld [vmem:[%s10446_s4] sm:$0xff] }
 0x2dd   :  { %v2546_v54 = vrot.slane %v9900_v23, %v297_v8  ;;  %v2550_v29 = vrot.slane %v9900_v23, %v301_v14  ;;  %v2328_v8 = vld [vmem:[%s10444_s3 + $0x998] sm:$0xff] }
 0x2de   :  { %5607 = vmatpush2.bf16.msra.mxu1 %v7299_v26  ;;  %v2200_v26 = vld [vmem:[%s10444_s3 + $0x598] sm:$0xff] }
 0x2df   :  { %5648 = vmatpush2.bf16.msra.mxu0 %v6917_v30  ;;  %5608 = vmatprep.subr.bf16.mxu1 %v7292_v31  ;;  %v6997_v30 = vcombine.low %v2208_v5, %v2212_v6  ;;  %v2332_v31 = vld [vmem:[%s10444_s3 + $0x9b8] sm:$0xff]  ;;  %v5334_v34 = vadd.f32 %v9712_v40, %v2546_v54  ;;  %v6990_v37 = vcombine.high %v2200_v26, %v2204_v28 }
 0x2e0   :  { %5649 = vmatprep.subr.bf16.mxu0 %v6910_v33  ;;  %v7125_v33 = vcombine.low %v2336_v49, %v2340_v50  ;;  %v2192_v14 = vld [vmem:[%s10444_s3 + $0x558] sm:$0xff]  ;;  %v5336_v32 = vadd.f32 %v9726_v59, %v2550_v29  ;;  %v7117_v61 = vcombine.low %v2328_v8, %v2332_v31 }
 0x2e1   :  { %v2324_v40 = vld [vmem:[%s10444_s3 + $0x978] sm:$0xff] }
 0x2e2   :  { %5609 = vmatpush2.bf16.msra.mxu1 %v7291_v38  ;;  %v2196_v38 = vld [vmem:[%s10444_s3 + $0x578] sm:$0xff] }
 0x2e3   :  { %5650 = vmatpush2.bf16.msra.mxu0 %v6909_v46  ;;  %5610 = vmatprep.subr.bf16.mxu1 %v7284_v4  ;;  %v7118_v46 = vcombine.high %v2328_v8, %v2332_v31  ;;  %v2320_v4 = vld [vmem:[%s10444_s3 + $0x958] sm:$0xff]  ;;  %v6981_v36 = vcombine.low %v2192_v14, %v2196_v38 }
 0x2e4   :  { %5651 = vmatprep.subr.bf16.mxu0 %v6902_v58  ;;  %v6989_v58 = vcombine.low %v2200_v26, %v2204_v28  ;;  %v7110_v15 = vcombine.high %v2320_v4, %v2324_v40  ;;  %v7109_v11 = vcombine.low %v2320_v4, %v2324_v40  ;;  %v2180_v5 = vld [vmem:[%s10444_s3 + $0x4f8] sm:$0xff]  ;;  %v5800_v26 = vmin.f32 %v9730_v45, 20.0 }
 0x2e5   :  { %v2304_v6 = vld [vmem:[%s10444_s3 + $0x8d8] sm:$0xff] }
 0x2e6   :  { %5611 = vmatpush2.bf16.msra.mxu1 %v7283_v9  ;;  %v2300_v54 = vld [vmem:[%s10444_s3 + $0x8b8] sm:$0xff] }
 0x2e7   :  { %5652 = vmatpush2.bf16.msra.mxu0 %v6901_v35  ;;  %5612 = vmatprep.subr.bf16.mxu1 %v7276_v62  ;;  %v6982_v35 = vcombine.high %v2192_v14, %v2196_v38  ;;  %v2160_v8 = vld [vmem:[%s10444_s3 + $0x458] sm:$0xff]  ;;  %v5809_v14 = vmul.f32 1.442695, %v5800_v26 }
 0x2e8   :  { %5653 = vmatprep.subr.bf16.mxu0 %v6894_v47  ;;  %v2164_v31 = vld [vmem:[%s10444_s3 + $0x478] sm:$0xff] }
 0x2e9   :  { %v2156_v4 = vld [vmem:[%s10444_s3 + $0x438] sm:$0xff]  ;;  %7572 = vpow2.f32 %v5809_v14 }
 0x2ea   :  { %5613 = vmatpush2.bf16.msra.mxu1 %v7275_v0  ;;  %v2312_v0 = vld [vmem:[%s10444_s3 + $0x918] sm:$0xff] }
 0x2eb   :  { %5654 = vmatpush2.bf16.msra.mxu0 %v6893_v19  ;;  %5614 = vmatprep.subr.bf16.mxu1 %v7268_v2  ;;  %v2280_v40 = vld [vmem:[%s10444_s3 + $0x818] sm:$0xff] }
 0x2ec   :  { %5655 = vmatprep.subr.bf16.mxu0 %v6886_v3 }
 0x2ee   :  { %5615 = vmatpush2.bf16.msra.mxu1 %v7267_v17  ;;  %v2176_v17 = vld [vmem:[%s10444_s3 + $0x4d8] sm:$0xff] }
 0x2ef   :  { %5656 = vmatpush2.bf16.msra.mxu0 %v6885_v12  ;;  %5616 = vmatprep.subr.bf16.mxu1 %v7260_v10  ;;  %v2308_v12 = vld [vmem:[%s10444_s3 + $0x8f8] sm:$0xff]  ;;  %v6966_v50 = vcombine.high %v2176_v17, %v2180_v5 }
 0x2f0   :  { %5657 = vmatprep.subr.bf16.mxu0 %v6878_v42  ;;  %v7094_v42 = vcombine.high %v2304_v6, %v2308_v12  ;;  %v7093_v28 = vcombine.low %v2304_v6, %v2308_v12  ;;  %v2384_v6 = vld [vmem:[%s10444_s3 + $0xb58] sm:$0xff] }
 0x2f1   :  { %v2388_v12 = vld [vmem:[%s10444_s3 + $0xb78] sm:$0xff] }
 0x2f2   :  { %5617 = vmatpush2.bf16.msra.mxu1 %v7259_v56  ;;  %v2168_v56 = vld [vmem:[%s10444_s3 + $0x498] sm:$0xff] }
 0x2f3   :  { %5658 = vmatpush2.bf16.msra.mxu0 %v6877_v21  ;;  %5668 = vmatprep.subr.bf16.mxu1 %v6998_v53  ;;  %v2172_v21 = vld [vmem:[%s10444_s3 + $0x4b8] sm:$0xff] }
 0x2f4   :  { %5709 = vmatprep.subr.bf16.mxu0 %v7126_v25  ;;  %v2296_v53 = vld [vmem:[%s10444_s3 + $0x898] sm:$0xff]  ;;  %v6965_v25 = vcombine.low %v2176_v17, %v2180_v5  ;;  %v6958_v29 = vcombine.high %v2168_v56, %v2172_v21 }
 0x2f5   :  { %v5374_v41 = vpop.f32.mrf.mxu1  ;;  %v5415_v44 = vpop.f32.mrf.mxu0  ;;  %5619 = vmatmul.mubr.bf16.vlgmr.msra.gmra.mxu1 %v9086_v63  ;;  %v7085_v38 = vcombine.low %v2296_v53, %v2300_v54  ;;  %v2256_v17 = vld [vmem:[%s10444_s3 + $0x758] sm:$0xff] }
 0x2f6   :  { %v5375_v52 = vadd.f32 %v5374_v41, %v5334_v34  ;;  %5660 = vmatmul.mubr.bf16.vlgmr.msra.gmra.mxu0 %v8706_v22  ;;  %5669 = vmatpush1.bf16.msra.mxu1 %v6997_v30  ;;  %v2184_v22 = vld [vmem:[%s10444_s3 + $0x518] sm:$0xff]  ;;  %v7086_v30 = vcombine.high %v2296_v53, %v2300_v54  ;;  %v6950_v41 = vcombine.high %v2160_v8, %v2164_v31 }
 0x2f7   :  { %5700 = vmatprep.mubr.bf16.mxu1 %v8800_v48  ;;  %5710 = vmatpush1.bf16.msra.mxu0 %v7125_v33  ;;  %v5376_v9 = vpop.f32.mrf.mxu1  ;;  %v5417_v57 = vpop.f32.mrf.mxu0  ;;  %v2188_v48 = vld [vmem:[%s10444_s3 + $0x538] sm:$0xff] }
 0x2f8   :  { %v9937_v62 = vadd.f32 %v5415_v44, %v5375_v52  ;;  %5741 = vmatprep.mubr.bf16.mxu0 %v8954_v60  ;;  %v5377_v39 = vadd.f32 %v5376_v9, %v5336_v32  ;;  %5670 = vmatprep.subr.bf16.mxu1 %v6990_v37  ;;  %v2316_v60 = vld [vmem:[%s10444_s3 + $0x938] sm:$0xff]  ;;  %v6974_v1 = vcombine.high %v2184_v22, %v2188_v48 }
 0x2f9   :  { %v5378_v59 = vpop.f32.mrf.mxu1  ;;  %v5419_v47 = vpop.f32.mrf.mxu0  ;;  %5711 = vmatprep.subr.bf16.mxu0 %v7118_v46  ;;  %v7102_v3 = vcombine.high %v2312_v0, %v2316_v60  ;;  %v6973_v10 = vcombine.low %v2184_v22, %v2188_v48  ;;  %v7101_v49 = vcombine.low %v2312_v0, %v2316_v60  ;;  %v2288_v33 = vld [vmem:[%s10444_s3 + $0x858] sm:$0xff]  ;;  %v6957_v37 = vcombine.low %v2168_v56, %v2172_v21 }
 0x2fa   :  { %v9952_v43 = vadd.f32 %v5417_v57, %v5377_v39  ;;  %5671 = vmatpush1.bf16.msra.mxu1 %v6989_v58  ;;  %v2292_v34 = vld [vmem:[%s10444_s3 + $0x878] sm:$0xff]  ;;  %v6949_v52 = vcombine.low %v2160_v8, %v2164_v31  ;;  %v7174_v56 = vcombine.high %v2384_v6, %v2388_v12 }
 0x2fb   :  { %5712 = vmatpush1.bf16.msra.mxu0 %v7117_v61  ;;  %v5379_v19 = vpop.f32.mrf.mxu1  ;;  %v5420_v2 = vpop.f32.mrf.mxu0  ;;  %5672 = vmatprep.subr.bf16.mxu1 %v6982_v35  ;;  %v7078_v44 = vcombine.high %v2288_v33, %v2292_v34  ;;  %v2152_v46 = vld [vmem:[%s10444_s3 + $0x418] sm:$0xff]  ;;  %v7077_v58 = vcombine.low %v2288_v33, %v2292_v34 }
 0x2fc   :  { %5713 = vmatprep.subr.bf16.mxu0 %v7110_v15  ;;  %v2284_v32 = vld [vmem:[%s10444_s3 + $0x838] sm:$0xff]  ;;  %v6942_v9 = vcombine.high %v2152_v46, %v2156_v4  ;;  %v6941_v22 = vcombine.low %v2152_v46, %v2156_v4 }
 0x2fd   :  { %v7070_v57 = vcombine.high %v2280_v40, %v2284_v32  ;;  %v2272_v61 = vld [vmem:[%s10444_s3 + $0x7d8] sm:$0xff]  ;;  %v7069_v48 = vcombine.low %v2280_v40, %v2284_v32  ;;  %v5799_v40 = vmin.f32 %v9720_v55, 20.0 }
 0x2fe   :  { %5673 = vmatpush1.bf16.msra.mxu1 %v6981_v36  ;;  %v2276_v35 = vld [vmem:[%s10444_s3 + $0x7f8] sm:$0xff] }
 0x2ff   :  { %5714 = vmatpush1.bf16.msra.mxu0 %v7109_v11  ;;  %5674 = vmatprep.subr.bf16.mxu1 %v6974_v1  ;;  %v2400_v39 = vld [vmem:[%s10444_s3 + $0xbd8] sm:$0xff]  ;;  %v7062_v59 = vcombine.high %v2272_v61, %v2276_v35  ;;  %v7061_v2 = vcombine.low %v2272_v61, %v2276_v35 }
 0x300   :  { %5715 = vmatprep.subr.bf16.mxu0 %v7102_v3  ;;  %v2404_v15 = vld [vmem:[%s10444_s3 + $0xbf8] sm:$0xff] }
 0x301   :  { %v7190_v47 = vcombine.high %v2400_v39, %v2404_v15  ;;  %v2264_v0 = vld [vmem:[%s10444_s3 + $0x798] sm:$0xff]  ;;  %v7189_v11 = vcombine.low %v2400_v39, %v2404_v15  ;;  %v5807_v15 = vmul.f32 1.442695, %v5799_v40 }
 0x302   :  { %5675 = vmatpush1.bf16.msra.mxu1 %v6973_v10  ;;  %v2268_v60 = vld [vmem:[%s10444_s3 + $0x7b8] sm:$0xff] }
 0x303   :  { %5716 = vmatpush1.bf16.msra.mxu0 %v7101_v49  ;;  %5676 = vmatprep.subr.bf16.mxu1 %v6966_v50  ;;  %v2392_v36 = vld [vmem:[%s10444_s3 + $0xb98] sm:$0xff]  ;;  %v7054_v1 = vcombine.high %v2264_v0, %v2268_v60  ;;  %v7053_v10 = vcombine.low %v2264_v0, %v2268_v60 }
 0x304   :  { %5717 = vmatprep.subr.bf16.mxu0 %v7094_v42  ;;  %v2396_v19 = vld [vmem:[%s10444_s3 + $0xbb8] sm:$0xff]  ;;  %v7573_v42 = vpop.eup %7572 }
 0x305   :  { %v7182_v3 = vcombine.high %v2392_v36, %v2396_v19  ;;  %v2260_v5 = vld [vmem:[%s10444_s3 + $0x778] sm:$0xff]  ;;  %v7181_v49 = vcombine.low %v2392_v36, %v2396_v19 }
 0x306   :  { %5677 = vmatpush1.bf16.msra.mxu1 %v6965_v25  ;;  %v7046_v50 = vcombine.high %v2256_v17, %v2260_v5  ;;  %v2248_v21 = vld [vmem:[%s10444_s3 + $0x718] sm:$0xff]  ;;  %v7045_v26 = vcombine.low %v2256_v17, %v2260_v5 }
 0x307   :  { %5718 = vmatpush1.bf16.msra.mxu0 %v7093_v28  ;;  %5678 = vmatprep.subr.bf16.mxu1 %v6958_v29  ;;  %v2252_v53 = vld [vmem:[%s10444_s3 + $0x738] sm:$0xff]  ;;  %v5824_v28 = vadd.f32 1.0, %v7573_v42  ;;  %v7173_v29 = vcombine.low %v2384_v6, %v2388_v12 }
 0x308   :  { %5719 = vmatprep.subr.bf16.mxu0 %v7086_v30  ;;  %v2376_v54 = vld [vmem:[%s10444_s3 + $0xb18] sm:$0xff]  ;;  %v7038_v30 = vcombine.high %v2248_v21, %v2252_v53  ;;  %v7037_v14 = vcombine.low %v2248_v21, %v2252_v53 }
 0x309   :  { %v2380_v25 = vld [vmem:[%s10444_s3 + $0xb38] sm:$0xff]  ;;  %7574 = vlog2.f32 %v5824_v28 }
 0x30a   :  { %5679 = vmatpush1.bf16.msra.mxu1 %v6957_v37  ;;  %v7166_v8 = vcombine.high %v2376_v54, %v2380_v25  ;;  %v2240_v31 = vld [vmem:[%s10444_s3 + $0x6d8] sm:$0xff]  ;;  %7576 = vpow2.f32 %v5807_v15 }
 0x30b   :  { %5720 = vmatpush1.bf16.msra.mxu0 %v7085_v38  ;;  %5680 = vmatprep.subr.bf16.mxu1 %v6950_v41  ;;  %v2244_v33 = vld [vmem:[%s10444_s3 + $0x6f8] sm:$0xff]  ;;  %v7165_v38 = vcombine.low %v2376_v54, %v2380_v25 }
 0x30c   :  { %5721 = vmatprep.subr.bf16.mxu0 %v7078_v44  ;;  %v2368_v34 = vld [vmem:[%s10444_s3 + $0xad8] sm:$0xff]  ;;  %v7030_v41 = vcombine.high %v2240_v31, %v2244_v33 }
 0x30d   :  { %v2372_v37 = vld [vmem:[%s10444_s3 + $0xaf8] sm:$0xff] }
 0x30e   :  { %5681 = vmatpush1.bf16.msra.mxu1 %v6949_v52  ;;  %v7158_v44 = vcombine.high %v2368_v34, %v2372_v37  ;;  %v2232_v46 = vld [vmem:[%s10444_s3 + $0x698] sm:$0xff] }
 0x30f   :  { %5722 = vmatpush1.bf16.msra.mxu0 %v7077_v58  ;;  %5682 = vmatprep.subr.bf16.mxu1 %v6942_v9  ;;  %v2236_v4 = vld [vmem:[%s10444_s3 + $0x6b8] sm:$0xff]  ;;  %v7029_v58 = vcombine.low %v2240_v31, %v2244_v33  ;;  %v7157_v9 = vcombine.low %v2368_v34, %v2372_v37  ;;  %v7478_v33 = vld [vmem:[%s10447_s5 + $0x70] sm:$0xff]  }
 0x310   :  { %5723 = vmatprep.subr.bf16.mxu0 %v7070_v57  ;;  %v2360_v32 = vld [vmem:[%s10444_s3 + $0xa98] sm:$0xff]  ;;  %v7022_v57 = vcombine.high %v2232_v46, %v2236_v4 }
 0x311   :  { %v2364_v52 = vld [vmem:[%s10444_s3 + $0xab8] sm:$0xff] }
 0x312   :  { %5683 = vmatpush1.bf16.msra.mxu1 %v6941_v22  ;;  %v7150_v61 = vcombine.high %v2360_v32, %v2364_v52  ;;  %v2224_v35 = vld [vmem:[%s10444_s3 + $0x658] sm:$0xff] }
 0x313   :  { %5724 = vmatpush1.bf16.msra.mxu0 %v7069_v48  ;;  %5684 = vmatprep.subr.bf16.mxu1 %v7062_v59  ;;  %v2228_v39 = vld [vmem:[%s10444_s3 + $0x678] sm:$0xff]  ;;  %v7021_v59 = vcombine.low %v2232_v46, %v2236_v4 }
 0x314   :  { %5725 = vmatprep.subr.bf16.mxu0 %v7190_v47  ;;  %v2352_v22 = vld [vmem:[%s10444_s3 + $0xa58] sm:$0xff]  ;;  %v7149_v47 = vcombine.low %v2360_v32, %v2364_v52  ;;  %v7014_v0 = vcombine.high %v2224_v35, %v2228_v39 }
 0x315   :  { %v2356_v48 = vld [vmem:[%s10444_s3 + $0xa78] sm:$0xff] }
 0x316   :  { %5685 = vmatpush2.bf16.msra.mxu1 %v7061_v2  ;;  %v7142_v60 = vcombine.high %v2352_v22, %v2356_v48  ;;  %v2216_v36 = vld [vmem:[%s10444_s3 + $0x618] sm:$0xff]  ;;  %v7575_v5 = vpop.eup %7574 }
 0x317   :  { %5726 = vmatpush2.bf16.msra.mxu0 %v7189_v11  ;;  %5686 = vmatprep.subr.bf16.mxu1 %v7054_v1  ;;  %v2220_v19 = vld [vmem:[%s10444_s3 + $0x638] sm:$0xff]  ;;  %v7013_v1 = vcombine.low %v2224_v35, %v2228_v39  ;;  %v7577_v34 = vpop.eup %7576  ;;  %v7482_v35 = vld [vmem:[%s10447_s5 + $0x60] sm:$0xff]  }
 0x318   :  { %5727 = vmatprep.subr.bf16.mxu0 %v7182_v3  ;;  %v2344_v2 = vld [vmem:[%s10444_s3 + $0xa18] sm:$0xff]  ;;  %v7141_v3 = vcombine.low %v2352_v22, %v2356_v48  ;;  %v7006_v17 = vcombine.high %v2216_v36, %v2220_v19  ;;  %v5823_v4 = vadd.f32 1.0, %v7577_v34 }
 0x319   :  { %v2348_v11 = vld [vmem:[%s10444_s3 + $0xa38] sm:$0xff] }
 0x31a   :  { %5687 = vmatpush2.bf16.msra.mxu1 %v7053_v10  ;;  %v7134_v6 = vcombine.high %v2344_v2, %v2348_v11  ;;  %v2464_v12 = vld [vmem:[%s10444_s3 + $0xdd8] sm:$0xff]  ;;  %7578 = vlog2.f32 %v5823_v4 }
 0x31b   :  { %5728 = vmatpush2.bf16.msra.mxu0 %v7181_v49  ;;  %5688 = vmatprep.subr.bf16.mxu1 %v7046_v50  ;;  %v2468_v10 = vld [vmem:[%s10444_s3 + $0xdf8] sm:$0xff]  ;;  %v7005_v49 = vcombine.low %v2216_v36, %v2220_v19  ;;  %v7133_v50 = vcombine.low %v2344_v2, %v2348_v11 }
 0x31c   :  { %5729 = vmatprep.subr.bf16.mxu0 %v7174_v56  ;;  %v7254_v42 = vcombine.high %v2464_v12, %v2468_v10  ;;  %v5834_v56 = vmul.f32 0.6931472, %v7575_v5  ;;  %v7476_v21 = vld [vmem:[%s10447_s5 + $0x78] sm:$0xff]   ;;  %v7253_v25 = vcombine.low %v2464_v12, %v2468_v10  ;;  %v7487_v12 = vld [vmem:[%s10447_s5 + $0x10] sm:$0xff]  }
 0x31d   :  { %v2456_v53 = vld [vmem:[%s10444_s3 + $0xd98] sm:$0xff] }
 0x31e   :  { %5689 = vmatpush2.bf16.msra.mxu1 %v7045_v26  ;;  %v2460_v54 = vld [vmem:[%s10444_s3 + $0xdb8] sm:$0xff]  ;;  %v5848_v28 = vsel %vm5792_vm8, %v9730_v45, %v5834_v56 }
 0x31f   :  { %5730 = vmatpush2.bf16.msra.mxu0 %v7173_v29  ;;  %5690 = vmatprep.subr.bf16.mxu1 %v7038_v30  ;;  %v7477_v26 = vld [vmem:[%s10447_s5 + $0x38] sm:$0xff]   ;;  %v7246_v29 = vcombine.high %v2456_v53, %v2460_v54  ;;  %v5856_v37 = vpack.c.bf16 %v5848_v28, %v5848_v28 }
 0x320   :  { %5731 = vmatprep.subr.bf16.mxu0 %v7166_v8  ;;  %v2448_v30 = vld [vmem:[%s10444_s3 + $0xd58] sm:$0xff] }
 0x321   :  { %v2452_v8 = vld [vmem:[%s10444_s3 + $0xd78] sm:$0xff] }
 0x322   :  { %5691 = vmatpush2.bf16.msra.mxu1 %v7037_v14  ;;  %v7245_v14 = vcombine.low %v2456_v53, %v2460_v54  ;;  %v2440_v46 = vld [vmem:[%s10444_s3 + $0xd18] sm:$0xff]  ;;  %v7237_v52 = vcombine.low %v2448_v30, %v2452_v8  ;;  %v7489_v53 = vld [vmem:[%s10447_s5 + $0x8] sm:$0xff]  }
 0x323   :  { %5732 = vmatpush2.bf16.msra.mxu0 %v7165_v38  ;;  %5692 = vmatprep.subr.bf16.mxu1 %v7030_v41  ;;  %v7238_v41 = vcombine.high %v2448_v30, %v2452_v8  ;;  %v2432_v39 = vld [vmem:[%s10444_s3 + $0xcd8] sm:$0xff]  ;;  %v7491_v8 = vld [vmem:[%s10447_s5] sm:$0xff]  }
 0x324   :  { %5733 = vmatprep.subr.bf16.mxu0 %v7158_v44  ;;  %v2436_v15 = vld [vmem:[%s10444_s3 + $0xcf8] sm:$0xff] }
 0x325   :  { %v7221_v19 = vcombine.low %v2432_v39, %v2436_v15  ;;  %v7485_v2 = vld [vmem:[%s10447_s5 + $0x18] sm:$0xff]  }
 0x326   :  { %5693 = vmatpush2.bf16.msra.mxu1 %v7029_v58  ;;  %v2532_v28 = vld [vmem:[%s10444_s3 + $0xff8] sm:$0xff] }
 0x327   :  { %5734 = vmatpush2.bf16.msra.mxu0 %v7157_v9  ;;  %5694 = vmatprep.subr.bf16.mxu1 %v7022_v57  ;;  %v7481_v9 = vld [vmem:[%s10447_s5 + $0x28] sm:$0xff]   ;;  %v7579_v56 = vpop.eup %7578  ;;  %v2520_v34 = vld [vmem:[%s10444_s3 + $0xf98] sm:$0xff] }
 0x328   :  { %5735 = vmatprep.subr.bf16.mxu0 %v7150_v61  ;;  %v2516_v4 = vld [vmem:[%s10444_s3 + $0xf78] sm:$0xff] }
 0x32a   :  { %5695 = vmatpush2.bf16.msra.mxu1 %v7021_v59  ;;  %v7483_v59 = vld [vmem:[%s10447_s5 + $0x20] sm:$0xff]  }
 0x32b   :  { %5736 = vmatpush2.bf16.msra.mxu0 %v7149_v47  ;;  %5696 = vmatprep.subr.bf16.mxu1 %v7014_v0  ;;  %v7222_v47 = vcombine.high %v2432_v39, %v2436_v15  ;;  %v7484_v0 = vld [vmem:[%s10447_s5 + $0x58] sm:$0xff]  }
 0x32c   :  { %5737 = vmatprep.subr.bf16.mxu0 %v7142_v60  ;;  %v2424_v60 = vld [vmem:[%s10444_s3 + $0xc98] sm:$0xff] }
 0x32e   :  { %5697 = vmatpush2.bf16.msra.mxu1 %v7013_v1  ;;  %v7486_v1 = vld [vmem:[%s10447_s5 + $0x50] sm:$0xff]  }
 0x32f   :  { %5738 = vmatpush2.bf16.msra.mxu0 %v7141_v3  ;;  %5698 = vmatprep.subr.bf16.mxu1 %v7006_v17  ;;  %v2416_v3 = vld [vmem:[%s10444_s3 + $0xc58] sm:$0xff] }
 0x330   :  { %5739 = vmatprep.subr.bf16.mxu0 %v7134_v6  ;;  %v2420_v17 = vld [vmem:[%s10444_s3 + $0xc78] sm:$0xff] }
 0x331   :  { %v7206_v10 = vcombine.high %v2416_v3, %v2420_v17 }
 0x332   :  { %5699 = vmatpush2.bf16.msra.mxu1 %v7005_v49  ;;  %v7488_v49 = vld [vmem:[%s10447_s5 + $0x48] sm:$0xff]  }
 0x333   :  { %5740 = vmatpush2.bf16.msra.mxu0 %v7133_v50  ;;  %5750 = vmatprep.subr.bf16.mxu1 %v7254_v42  ;;  %v2408_v50 = vld [vmem:[%s10444_s3 + $0xc18] sm:$0xff] }
 0x334   :  { %7384 = vmatprep.subr.bf16.mxu0 %v7476_v21  ;;  %v2412_v42 = vld [vmem:[%s10444_s3 + $0xc38] sm:$0xff]  ;;  %v7205_v21 = vcombine.low %v2416_v3, %v2420_v17 }
 0x335   :  { %v10126_v31 = vpop.f32.mrf.mxu1  ;;  %5701 = vmatmul.mubr.bf16.vlgmr.msra.gmra.mxu1 %v8814_v51  ;;  %v7479_v51 = vld [vmem:[%s10447_s5 + $0x30] sm:$0xff]   ;;  %v7198_v54 = vcombine.high %v2408_v50, %v2412_v42  ;;  %v7197_v30 = vcombine.low %v2408_v50, %v2412_v42  ;;  %v7517_v17 = vld [vmem:[%s10447_s5 + $0x118] sm:$0xff]  }
 0x336   :  { %v10132_v45 = vpop.f32.mrf.mxu0  ;;  %5742 = vmatmul.mubr.bf16.vlgmr.msra.gmra.mxu0 %v8958_v16  ;;  %5751 = vmatpush1.bf16.msra.mxu1 %v7253_v25  ;;  %v7480_v16 = vld [vmem:[%s10447_s5 + $0x68] sm:$0xff]   ;;  %v7490_v25 = vld [vmem:[%s10447_s5 + $0x40] sm:$0xff]   ;;  %v7519_v42 = vld [vmem:[%s10447_s5 + $0x110] sm:$0xff]  }
 0x337   :  { %5782 = vmatprep.mubr.bf16.mxu1 %v9084_v13  ;;  %7385 = vmatpush3.bf16.msra.mxu0 %v7477_v26  ;;  %v5458_v38 = vpop.f32.mrf.mxu1  ;;  %v2444_v13 = vld [vmem:[%s10444_s3 + $0xd38] sm:$0xff] }
 0x338   :  { %6414 = vmatprep.mubr.bf16.mxu0 %v5856_v37  ;;  %v10139_v44 = vpop.f32.mrf.mxu0  ;;  %5752 = vmatprep.subr.bf16.mxu1 %v7246_v29  ;;  %v7230_v57 = vcombine.high %v2440_v46, %v2444_v13  ;;  %v10163_v22 = vadd.f32 %v5458_v38, %v9952_v43  ;;  %v7229_v48 = vcombine.low %v2440_v46, %v2444_v13  ;;  %v2428_v43 = vld [vmem:[%s10444_s3 + $0xcb8] sm:$0xff]  ;;  %v5832_v29 = vmul.f32 0.6931472, %v7579_v56 }
 0x339   :  { %v5460_v40 = vpop.f32.mrf.mxu1  ;;  %7386 = vmatprep.subr.bf16.mxu0 %v7478_v33  ;;  %v7214_v11 = vcombine.high %v2424_v60, %v2428_v43  ;;  %v7213_v6 = vcombine.low %v2424_v60, %v2428_v43  ;;  %v2528_v26 = vld [vmem:[%s10444_s3 + $0xfd8] sm:$0xff]  ;;  %v7514_v60 = vld [vmem:[%s10447_s5 + $0x160] sm:$0xff]  }
 0x33a   :  { %v5501_v32 = vpop.f32.mrf.mxu0  ;;  %5753 = vmatpush1.bf16.msra.mxu1 %v7245_v14  ;;  %v5802_v36 = vmin.f32 %v10163_v22, 20.0  ;;  %v7318_v33 = vcombine.high %v2528_v26, %v2532_v28  ;;  %v2524_v37 = vld [vmem:[%s10444_s3 + $0xfb8] sm:$0xff]  ;;  %v5847_v38 = vsel %vm5791_vm9, %v9720_v55, %v5832_v29  ;;  %v7510_v55 = vld [vmem:[%s10447_s5 + $0x170] sm:$0xff]   ;;  %v7522_v29 = vld [vmem:[%s10447_s5 + $0x140] sm:$0xff]   ;;  %vm5794_vm10 = vcmp.gt.f32.partialorder %v10163_v22, 20.0 }
 0x33b   :  { %7387 = vmatpush3.bf16.msra.mxu0 %v7479_v51  ;;  %v5461_v58 = vpop.f32.mrf.mxu1  ;;  %5754 = vmatprep.subr.bf16.mxu1 %v7238_v41  ;;  %v7508_v14 = vld [vmem:[%s10447_s5 + $0x178] sm:$0xff]   ;;  %v7317_v51 = vcombine.low %v2528_v26, %v2532_v28  ;;  %v7310_v41 = vcombine.high %v2520_v34, %v2524_v37  ;;  %v5855_v46 = vpack.c.bf16 %v5847_v38, %v5847_v38  ;;  %v7521_v28 = vld [vmem:[%s10447_s5 + $0x108] sm:$0xff]  }
 0x33c   :  { %v5502_v61 = vpop.f32.mrf.mxu0  ;;  %7388 = vmatprep.subr.bf16.mxu0 %v7480_v16  ;;  %v5813_v5 = vmul.f32 1.442695, %v5802_v36  ;;  %v7509_v16 = vld [vmem:[%s10447_s5 + $0x138] sm:$0xff]   ;;  %v7309_v32 = vcombine.low %v2520_v34, %v2524_v37  ;;  %v7511_v58 = vld [vmem:[%s10447_s5 + $0x130] sm:$0xff]   ;;  %v7523_v34 = vld [vmem:[%s10447_s5 + $0x100] sm:$0xff]   ;;  %v2554_v37 = vrot.slane %v9900_v23, %v305_v18 }
 0x33d   :  { %v2512_v13 = vld [vmem:[%s10444_s3 + $0xf58] sm:$0xff]  ;;  %v7512_v61 = vld [vmem:[%s10447_s5 + $0x168] sm:$0xff]  }
 0x33e   :  { %5755 = vmatpush1.bf16.msra.mxu1 %v7237_v52  ;;  %7580 = vpow2.f32 %v5813_v5  ;;  %v7302_v52 = vcombine.high %v2512_v13, %v2516_v4  ;;  %v7301_v39 = vcombine.low %v2512_v13, %v2516_v4  ;;  %v2472_v56 = vld [vmem:[%s10444_s3 + $0xe18] sm:$0xff]  ;;  %v7495_v4 = vld [vmem:[%s10447_s5 + $0xb0] sm:$0xff]  }
 0x33f   :  { %7389 = vmatpush3.bf16.msra.mxu0 %v7481_v9  ;;  %5756 = vmatprep.subr.bf16.mxu1 %v7230_v57  ;;  %v2504_v9 = vld [vmem:[%s10444_s3 + $0xf18] sm:$0xff] }
 0x340   :  { %7390 = vmatprep.subr.bf16.mxu0 %v7482_v35  ;;  %v2508_v57 = vld [vmem:[%s10444_s3 + $0xf38] sm:$0xff] }
 0x341   :  { %v7294_v15 = vcombine.high %v2504_v9, %v2508_v57  ;;  %v7293_v43 = vcombine.low %v2504_v9, %v2508_v57  ;;  %v7493_v38 = vld [vmem:[%s10447_s5 + $0xb8] sm:$0xff]  }
 0x342   :  { %5757 = vmatpush1.bf16.msra.mxu1 %v7229_v48  ;;  %v7513_v48 = vld [vmem:[%s10447_s5 + $0x128] sm:$0xff]  }
 0x343   :  { %7391 = vmatpush3.bf16.msra.mxu0 %v7483_v59  ;;  %5758 = vmatprep.subr.bf16.mxu1 %v7222_v47  ;;  %v10257_v59 = vadd.f32 %v10126_v31, %v9937_v62  ;;  %v2496_v47 = vld [vmem:[%s10444_s3 + $0xed8] sm:$0xff]  ;;  %v7515_v62 = vld [vmem:[%s10447_s5 + $0x120] sm:$0xff]  }
 0x344   :  { %7392 = vmatprep.subr.bf16.mxu0 %v7484_v0  ;;  %v2500_v0 = vld [vmem:[%s10444_s3 + $0xef8] sm:$0xff] }
 0x345   :  { %v7286_v36 = vcombine.high %v2496_v47, %v2500_v0  ;;  %v5801_v31 = vmin.f32 %v10257_v59, 20.0  ;;  %vm5793_vm11 = vcmp.gt.f32.partialorder %v10257_v59, 20.0 }
 0x346   :  { %5759 = vmatpush1.bf16.msra.mxu1 %v7221_v19  ;;  %v2488_v19 = vld [vmem:[%s10444_s3 + $0xe98] sm:$0xff] }
 0x347   :  { %7393 = vmatpush3.bf16.msra.mxu0 %v7485_v2  ;;  %5760 = vmatprep.subr.bf16.mxu1 %v7214_v11  ;;  %v2492_v2 = vld [vmem:[%s10444_s3 + $0xeb8] sm:$0xff]  ;;  %v5811_v5 = vmul.f32 1.442695, %v5801_v31 }
 0x348   :  { %7394 = vmatprep.subr.bf16.mxu0 %v7486_v1  ;;  %v7516_v11 = vld [vmem:[%s10447_s5 + $0x158] sm:$0xff]   ;;  %v7285_v1 = vcombine.low %v2496_v47, %v2500_v0  ;;  %v7278_v3 = vcombine.high %v2488_v19, %v2492_v2  ;;  %v7502_v47 = vld [vmem:[%s10447_s5 + $0xd0] sm:$0xff]  }
 0x349   :  { %v7503_v0 = vld [vmem:[%s10447_s5 + $0x90] sm:$0xff]  }
 0x34a   :  { %5761 = vmatpush1.bf16.msra.mxu1 %v7213_v6  ;;  %v2480_v6 = vld [vmem:[%s10444_s3 + $0xe58] sm:$0xff] }
 0x34b   :  { %7395 = vmatpush3.bf16.msra.mxu0 %v7487_v12  ;;  %5762 = vmatprep.subr.bf16.mxu1 %v7206_v10  ;;  %v7581_v40 = vpop.eup %7580  ;;  %v2484_v12 = vld [vmem:[%s10444_s3 + $0xe78] sm:$0xff]  ;;  %v7518_v10 = vld [vmem:[%s10447_s5 + $0x150] sm:$0xff]  }
 0x34c   :  { %7396 = vmatprep.subr.bf16.mxu0 %v7488_v49  ;;  %v5826_v35 = vadd.f32 1.0, %v7581_v40  ;;  %v7277_v49 = vcombine.low %v2488_v19, %v2492_v2  ;;  %v7270_v50 = vcombine.high %v2480_v6, %v2484_v12  ;;  %v7496_v40 = vld [vmem:[%s10447_s5 + $0xe8] sm:$0xff]   ;;  %v7507_v19 = vld [vmem:[%s10447_s5 + $0x80] sm:$0xff]  }
 0x34e   :  { %5763 = vmatpush1.bf16.msra.mxu1 %v7205_v21  ;;  %7582 = vlog2.f32 %v5826_v35  ;;  %v2476_v21 = vld [vmem:[%s10444_s3 + $0xe38] sm:$0xff] }
 0x34f   :  { %7397 = vmatpush3.bf16.msra.mxu0 %v7489_v53  ;;  %5764 = vmatprep.subr.bf16.mxu1 %v7198_v54  ;;  %7584 = vpow2.f32 %v5811_v5  ;;  %v7520_v53 = vld [vmem:[%s10447_s5 + $0x148] sm:$0xff]   ;;  %v7262_v26 = vcombine.high %v2472_v56, %v2476_v21 }
 0x350   :  { %7398 = vmatprep.subr.bf16.mxu0 %v7490_v25  ;;  %v7269_v25 = vcombine.low %v2480_v6, %v2484_v12 }
 0x352   :  { %5765 = vmatpush1.bf16.msra.mxu1 %v7197_v30 }
 0x353   :  { %7399 = vmatpush3.bf16.msra.mxu0 %v7491_v8  ;;  %5766 = vmatprep.subr.bf16.mxu1 %v7318_v33  ;;  %v7261_v8 = vcombine.low %v2472_v56, %v2476_v21  ;;  %v7492_v33 = vld [vmem:[%s10447_s5 + $0xf8] sm:$0xff]  }
 0x354   :  { %7428 = vmatprep.subr.bf16.mxu0 %v7508_v14 }
 0x356   :  { %6415 = vmatmul.mubr.bf16.vlgmr.msra.gmra.mxu0 %v5855_v46  ;;  %5767 = vmatpush2.bf16.msra.mxu1 %v7317_v51  ;;  %v7494_v51 = vld [vmem:[%s10447_s5 + $0xf0] sm:$0xff]  }
 0x357   :  { %5768 = vmatprep.subr.bf16.mxu1 %v7310_v41  ;;  %7429 = vmatpush3.bf16.msra.mxu0 %v7509_v16  ;;  %v5498_v41 = vadd.f32 %v10132_v45, %v2554_v37  ;;  %v7529_v37 = vld [vmem:[%s10447_s5 + $0x1a8] sm:$0xff]  }
 0x358   :  { %7430 = vmatprep.subr.bf16.mxu0 %v7510_v55 }
 0x35a   :  { %5769 = vmatpush2.bf16.msra.mxu1 %v7309_v32 }
 0x35b   :  { %5770 = vmatprep.subr.bf16.mxu1 %v7302_v52  ;;  %7431 = vmatpush3.bf16.msra.mxu0 %v7511_v58  ;;  %v7583_v54 = vpop.eup %7582 }
 0x35c   :  { %7432 = vmatprep.subr.bf16.mxu0 %v7512_v61  ;;  %v5838_v30 = vmul.f32 0.6931472, %v7583_v54  ;;  %v7585_v18 = vpop.eup %7584  ;;  %v7498_v61 = vld [vmem:[%s10447_s5 + $0xe0] sm:$0xff]  }
 0x35d   :  { %v5825_v45 = vadd.f32 1.0, %v7585_v18  ;;  %v7534_v18 = vld [vmem:[%s10447_s5 + $0x1d0] sm:$0xff]  }
 0x35e   :  { %5771 = vmatpush2.bf16.msra.mxu1 %v7301_v39  ;;  %v5850_v14 = vsel %vm5794_vm10, %v10163_v22, %v5838_v30  ;;  %v7499_v39 = vld [vmem:[%s10447_s5 + $0xa0] sm:$0xff]  }
 0x35f   :  { %5772 = vmatprep.subr.bf16.mxu1 %v7294_v15  ;;  %7433 = vmatpush3.bf16.msra.mxu0 %v7513_v48  ;;  %v5858_v16 = vpack.c.bf16 %v5850_v14, %v5850_v14  ;;  %7586 = vlog2.f32 %v5825_v45  ;;  %v7500_v15 = vld [vmem:[%s10447_s5 + $0xd8] sm:$0xff]  }
 0x360   :  { %7434 = vmatprep.subr.bf16.mxu0 %v7514_v60  ;;  %v7501_v48 = vld [vmem:[%s10447_s5 + $0x98] sm:$0xff]   ;;  %v7504_v60 = vld [vmem:[%s10447_s5 + $0xc8] sm:$0xff]  }
 0x362   :  { %5773 = vmatpush2.bf16.msra.mxu1 %v7293_v43 }
 0x363   :  { %5774 = vmatprep.subr.bf16.mxu1 %v7286_v36  ;;  %7435 = vmatpush3.bf16.msra.mxu0 %v7515_v62  ;;  %v7505_v36 = vld [vmem:[%s10447_s5 + $0x88] sm:$0xff]   ;;  %v7506_v62 = vld [vmem:[%s10447_s5 + $0xc0] sm:$0xff]  }
 0x364   :  { %7436 = vmatprep.subr.bf16.mxu0 %v7516_v11 }
 0x366   :  { %5775 = vmatpush2.bf16.msra.mxu1 %v7285_v1  ;;  %v2558_v1 = vrot.slane %v9900_v23, %v309_v24 }
 0x367   :  { %5776 = vmatprep.subr.bf16.mxu1 %v7278_v3  ;;  %7437 = vmatpush3.bf16.msra.mxu0 %v7517_v17 }
 0x368   :  { %7438 = vmatprep.subr.bf16.mxu0 %v7518_v10  ;;  %v5500_v3 = vadd.f32 %v10139_v44, %v2558_v1  ;;  %v7524_v44 = vld [vmem:[%s10447_s5 + $0x1f8] sm:$0xff]  }
 0x36a   :  { %5777 = vmatpush2.bf16.msra.mxu1 %v7277_v49 }
 0x36b   :  { %5778 = vmatprep.subr.bf16.mxu1 %v7270_v50  ;;  %7439 = vmatpush3.bf16.msra.mxu0 %v7519_v42 }
 0x36c   :  { %7440 = vmatprep.subr.bf16.mxu0 %v7520_v53  ;;  %v7587_v43 = vpop.eup %7586 }
 0x36d   :  { %v5836_v31 = vmul.f32 0.6931472, %v7587_v43 }
 0x36e   :  { %5779 = vmatpush2.bf16.msra.mxu1 %v7269_v25 }
 0x36f   :  { %5780 = vmatprep.subr.bf16.mxu1 %v7262_v26  ;;  %7441 = vmatpush3.bf16.msra.mxu0 %v7521_v28  ;;  %v5849_v2 = vsel %vm5793_vm11, %v10257_v59, %v5836_v31  ;;  %v7525_v26 = vld [vmem:[%s10447_s5 + $0x1b8] sm:$0xff]   ;;  %v7526_v28 = vld [vmem:[%s10447_s5 + $0x1f0] sm:$0xff]  }
 0x370   :  { %7442 = vmatprep.subr.bf16.mxu0 %v7522_v29  ;;  %v5857_v11 = vpack.c.bf16 %v5849_v2, %v5849_v2  ;;  %v7527_v29 = vld [vmem:[%s10447_s5 + $0x1b0] sm:$0xff]  }
 0x372   :  { %5781 = vmatpush2.bf16.msra.mxu1 %v7261_v8 }
 0x373   :  { %7406 = vmatprep.subr.bf16.mxu1 %v7492_v33  ;;  %7443 = vmatpush3.bf16.msra.mxu0 %v7523_v34  ;;  %v7528_v33 = vld [vmem:[%s10447_s5 + $0x1e8] sm:$0xff]  }
 0x375   :  { %v5538_v46 = vpop.f32.mrf.mxu1  ;;  %5783 = vmatmul.mubr.bf16.vlgmr.msra.gmra.mxu1 %v9086_v63  ;;  %v7497_v63 = vld [vmem:[%s10447_s5 + $0xa8] sm:$0xff]  }
 0x376   :  { %v5539_v13 = vadd.f32 %v5538_v46, %v5498_v41  ;;  %v5579_v22 = vpop.f32.mrf.mxu0  ;;  %7407 = vmatpush3.bf16.msra.mxu1 %v7493_v38  ;;  %6454 = vmatprep.mubr.bf16.mxu1 %v5858_v16  ;;  %v7530_v38 = vld [vmem:[%s10447_s5 + $0x1e0] sm:$0xff]   ;;  %v7532_v41 = vld [vmem:[%s10447_s5 + $0x1d8] sm:$0xff]   ;;  %v7535_v46 = vld [vmem:[%s10447_s5 + $0x190] sm:$0xff]  }
 0x377   :  { %v5540_v55 = vpop.f32.mrf.mxu1  ;;  %7408 = vmatprep.subr.bf16.mxu1 %v7494_v51  ;;  %v7531_v51 = vld [vmem:[%s10447_s5 + $0x1a0] sm:$0xff]   ;;  %v7533_v16 = vld [vmem:[%s10447_s5 + $0x198] sm:$0xff]  }
 0x378   :  { %v5580_v32 = vadd.f32 %v5579_v22, %v5539_v13  ;;  %v5581_v52 = vpop.f32.mrf.mxu0  ;;  %v5541_v17 = vadd.f32 %v5540_v55, %v5500_v3 }
 0x379   :  { %v5542_v58 = vpop.f32.mrf.mxu1 }
 0x37a   :  { %v5583_v9 = vpop.f32.mrf.mxu0  ;;  %7409 = vmatpush3.bf16.msra.mxu1 %v7495_v4  ;;  %v5582_v6 = vadd.f32 %v5581_v52, %v5541_v17  ;;  %v7536_v4 = vld [vmem:[%s10447_s5 + $0x1c8] sm:$0xff]   ;;  %v7538_v52 = vld [vmem:[%s10447_s5 + $0x1c0] sm:$0xff]  }
 0x37b   :  { %v5543_v57 = vpop.f32.mrf.mxu1  ;;  %7410 = vmatprep.subr.bf16.mxu1 %v7496_v40  ;;  %v7537_v40 = vld [vmem:[%s10447_s5 + $0x188] sm:$0xff]   ;;  %v7539_v58 = vld [vmem:[%s10447_s5 + $0x180] sm:$0xff]  }
 0x37c   :  { %v5584_v35 = vpop.f32.mrf.mxu0 }
 0x37e   :  { %7411 = vmatpush3.bf16.msra.mxu1 %v7497_v63 }
 0x37f   :  { %7412 = vmatprep.subr.bf16.mxu1 %v7498_v61  ;;  %v7606_v61 = vld [vmem:[%s10446_s4] sm:$0xff] }
 0x380   :  { %v2562_v35 = vrot.slane %v7606_v61, %v313_v7  ;;  %v2566_v7 = vrot.slane %v7606_v61, %v317_v20 }
 0x382   :  { %7413 = vmatpush3.bf16.msra.mxu1 %v7499_v39 }
 0x383   :  { %7414 = vmatprep.subr.bf16.mxu1 %v7500_v15 }
 0x386   :  { %7415 = vmatpush3.bf16.msra.mxu1 %v7501_v48 }
 0x387   :  { %7416 = vmatprep.subr.bf16.mxu1 %v7502_v47 }
 0x38a   :  { %7417 = vmatpush3.bf16.msra.mxu1 %v7503_v0 }
 0x38b   :  { %7418 = vmatprep.subr.bf16.mxu1 %v7504_v60 }
 0x38e   :  { %7419 = vmatpush3.bf16.msra.mxu1 %v7505_v36 }
 0x38f   :  { %7420 = vmatprep.subr.bf16.mxu1 %v7506_v62 }
 0x392   :  { %7421 = vmatpush3.bf16.msra.mxu1 %v7507_v19 }
 0x393   :  { %7450 = vmatprep.subr.bf16.mxu1 %v7524_v44 }
 0x395   :  { %6455 = vmatmul.mubr.bf16.vlgmr.msra.gmra.mxu1 %v5857_v11 }
 0x396   :  { %7451 = vmatpush3.bf16.msra.mxu1 %v7525_v26 }
 0x397   :  { %7452 = vmatprep.subr.bf16.mxu1 %v7526_v28 }
 0x39a   :  { %7453 = vmatpush3.bf16.msra.mxu1 %v7527_v29 }
 0x39b   :  { %7454 = vmatprep.subr.bf16.mxu1 %v7528_v33 }
 0x39e   :  { %7455 = vmatpush3.bf16.msra.mxu1 %v7529_v37 }
 0x39f   :  { %7456 = vmatprep.subr.bf16.mxu1 %v7530_v38 }
 0x3a2   :  { %7457 = vmatpush3.bf16.msra.mxu1 %v7531_v51 }
 0x3a3   :  { %7458 = vmatprep.subr.bf16.mxu1 %v7532_v41 }
 0x3a6   :  { %7459 = vmatpush3.bf16.msra.mxu1 %v7533_v16 }
 0x3a7   :  { %7460 = vmatprep.subr.bf16.mxu1 %v7534_v18 }
 0x3aa   :  { %7461 = vmatpush3.bf16.msra.mxu1 %v7535_v46 }
 0x3ab   :  { %7462 = vmatprep.subr.bf16.mxu1 %v7536_v4 }
 0x3ae   :  { %7463 = vmatpush3.bf16.msra.mxu1 %v7537_v40 }
 0x3af   :  { %7464 = vmatprep.subr.bf16.mxu1 %v7538_v52 }
 0x3b2   :  { %7465 = vmatpush3.bf16.msra.mxu1 %v7539_v58 }
 0x3b5   :  { %v5620_v5 = vpop.f32.mrf.mxu1 }
 0x3b6   :  { %v5621_v12 = vadd.f32 %v5620_v5, %v5580_v32  ;;  %v10375_v10 = vpop.f32.mrf.mxu0 }
 0x3b7   :  { %v5622_v49 = vpop.f32.mrf.mxu1  ;;  %v5662_v39 = vadd.f32 %v10375_v10, %v2562_v35 }
 0x3b8   :  { %v5803_v50 = vmin.f32 %v5621_v12, 20.0  ;;  %v5623_v42 = vadd.f32 %v5622_v49, %v5582_v6  ;;  %v10377_v56 = vpop.f32.mrf.mxu0  ;;  %vm5795_vm12 = vcmp.gt.f32.partialorder %v5621_v12, 20.0 }
 0x3b9   :  { %v5624_v59 = vpop.f32.mrf.mxu1  ;;  %v5664_v5 = vadd.f32 %v10377_v56, %v2566_v7  ;;  %v7319_v56 = vld [vmem:[%s10448_s6] ss:$0 sm:$0xff] }
 0x3ba   :  { %v5815_v21 = vmul.f32 1.442695, %v5803_v50  ;;  %v5804_v53 = vmin.f32 %v5623_v42, 20.0  ;;  %v5665_v54 = vpop.f32.mrf.mxu0  ;;  %vm5796_vm13 = vcmp.gt.f32.partialorder %v5623_v42, 20.0 }
 0x3bb   :  { %v5625_v25 = vpop.f32.mrf.mxu1 }
 0x3bc   :  { %7588 = vpow2.f32 %v5815_v21  ;;  %v5817_v24 = vmul.f32 1.442695, %v5804_v53  ;;  %v5666_v23 = vpop.f32.mrf.mxu0 }
 0x3be   :  { %7590 = vpow2.f32 %v5817_v24 }
 0x3c9   :  { %v7589_v30 = vpop.eup %7588 }
 0x3ca   :  { %v5827_v8 = vadd.f32 1.0, %v7589_v30 }
 0x3cb   :  { %v7591_v34 = vpop.eup %7590 }
 0x3cc   :  { %7592 = vlog2.f32 %v5827_v8  ;;  %v5828_v14 = vadd.f32 1.0, %v7591_v34 }
 0x3ce   :  { %7594 = vlog2.f32 %v5828_v14 }
 0x3d9   :  { %v7593_v13 = vpop.eup %7592 }
 0x3da   :  { %v5840_v22 = vmul.f32 0.6931472, %v7593_v13 }
 0x3db   :  { %v7595_v55 = vpop.eup %7594 }
 0x3dc   :  { %v5842_v45 = vmul.f32 0.6931472, %v7595_v55  ;;  %v5851_v32 = vsel %vm5795_vm12, %v5621_v12, %v5840_v22 }
 0x3dd   :  { %v5859_v57 = vpack.c.bf16 %v5851_v32, %v5851_v32 }
 0x3de   :  { %v5852_v9 = vsel %vm5796_vm13, %v5623_v42, %v5842_v45 }
 0x3df   :  { %v5860_v63 = vpack.c.bf16 %v5852_v9, %v5852_v9 }
 0x3e1   :  { %6494 = vmatprep.mubr.bf16.mxu0 %v5860_v63 }
 0x3e2   :  { %6495 = vmatmul.mubr.bf16.vlgmr.msra.gmra.mxu0 %v5859_v57 }
 0x3f5   :  { %v5702_v15 = vpop.f32.mrf.mxu1 }
 0x3f6   :  { %v5703_v48 = vadd.f32 %v5702_v15, %v5662_v39  ;;  %v5743_v47 = vpop.f32.mrf.mxu0 }
 0x3f7   :  { %v5704_v0 = vpop.f32.mrf.mxu1 }
 0x3f8   :  { %v5744_v60 = vadd.f32 %v5743_v47, %v5703_v48  ;;  %v5745_v43 = vpop.f32.mrf.mxu0  ;;  %v5705_v6 = vadd.f32 %v5704_v0, %v5664_v5 }
 0x3f9   :  { %v5706_v36 = vpop.f32.mrf.mxu1 }
 0x3fa   :  { %v5747_v62 = vpop.f32.mrf.mxu0  ;;  %v5746_v10 = vadd.f32 %v5745_v43, %v5705_v6 }
 0x3fb   :  { %v5707_v31 = vpop.f32.mrf.mxu1 }
 0x3fc   :  { %v5748_v19 = vpop.f32.mrf.mxu0 }
 0x416   :  { %v7400_v2 = vpop.f32.mrf.mxu0 }
 0x418   :  { %v7401_v11 = vpop.f32.mrf.mxu0 }
 0x419   :  { %v7402_v1 = vadd.f32 %v7401_v11, %v7400_v2 }
 0x41a   :  { %v7403_v3 = vpop.f32.mrf.mxu0 }
 0x41b   :  { %v6417_v29 = vadd.f32 %v7402_v1, %v7319_v56 }
 0x41c   :  { %v7404_v17 = vpop.f32.mrf.mxu0 }
 0x435   :  { %v5784_v12 = vpop.f32.mrf.mxu1 }
 0x436   :  { %v5785_v49 = vadd.f32 %v5784_v12, %v5744_v60 }
 0x437   :  { %v5786_v50 = vpop.f32.mrf.mxu1 }
 0x438   :  { %v5805_v42 = vmin.f32 %v5785_v49, 20.0  ;;  %v5787_v59 = vadd.f32 %v5786_v50, %v5746_v10  ;;  %vm5797_vm14 = vcmp.gt.f32.partialorder %v5785_v49, 20.0 }
 0x439   :  { %v5788_v21 = vpop.f32.mrf.mxu1 }
 0x43a   :  { %v5819_v53 = vmul.f32 1.442695, %v5805_v42  ;;  %v5806_v54 = vmin.f32 %v5787_v59, 20.0  ;;  %vm5798_vm15 = vcmp.gt.f32.partialorder %v5787_v59, 20.0 }
 0x43b   :  { %v5789_v25 = vpop.f32.mrf.mxu1 }
 0x43c   :  { %7596 = vpow2.f32 %v5819_v53  ;;  %v5821_v24 = vmul.f32 1.442695, %v5806_v54 }
 0x43e   :  { %7598 = vpow2.f32 %v5821_v24 }
 0x449   :  { %v7597_v23 = vpop.eup %7596 }
 0x44a   :  { %v5829_v44 = vadd.f32 1.0, %v7597_v23 }
 0x44b   :  { %v7599_v27 = vpop.eup %7598 }
 0x44c   :  { %7600 = vlog2.f32 %v5829_v44  ;;  %v5830_v20 = vadd.f32 1.0, %v7599_v27 }
 0x44e   :  { %7602 = vlog2.f32 %v5830_v20 }
 0x455   :  { %v7422_v26 = vpop.f32.mrf.mxu1 }
 0x457   :  { %v7423_v28 = vpop.f32.mrf.mxu1 }
 0x458   :  { %v7424_v30 = vadd.f32 %v7423_v28, %v7422_v26 }
 0x459   :  { %v7601_v8 = vpop.eup %7600  ;;  %v7425_v33 = vpop.f32.mrf.mxu1 }
 0x45a   :  { %v5844_v34 = vmul.f32 0.6931472, %v7601_v8  ;;  %v6457_v37 = vadd.f32 %v7424_v30, %v6417_v29 }
 0x45b   :  { %v7603_v14 = vpop.eup %7602  ;;  %v7426_v38 = vpop.f32.mrf.mxu1 }
 0x45c   :  { %v5846_v51 = vmul.f32 0.6931472, %v7603_v14  ;;  %v5853_v41 = vsel %vm5797_vm14, %v5785_v49, %v5844_v34 }
 0x45d   :  { %v5861_v46 = vpack.c.bf16 %v5853_v41, %v5853_v41 }
 0x45e   :  { %v5854_v16 = vsel %vm5798_vm15, %v5787_v59, %v5846_v51 }
 0x45f   :  { %v5862_v18 = vpack.c.bf16 %v5854_v16, %v5854_v16 }
 0x461   :  { %6534 = vmatprep.mubr.bf16.mxu1 %v5862_v18 }
 0x462   :  { %6535 = vmatmul.mubr.bf16.vlgmr.msra.gmra.mxu1 %v5861_v46 }
 0x4a2   :  { %v7444_v13 = vpop.f32.mrf.mxu0 }
 0x4a4   :  { %v7445_v22 = vpop.f32.mrf.mxu0 }
 0x4a5   :  { %v7446_v4 = vadd.f32 %v7445_v22, %v7444_v13 }
 0x4a6   :  { %v7447_v55 = vpop.f32.mrf.mxu0 }
 0x4a7   :  { %v6497_v40 = vadd.f32 %v7446_v4, %v6457_v37 }
 0x4a8   :  { %v7448_v45 = vpop.f32.mrf.mxu0 }
 0x522   :  { %v7466_v32 = vpop.f32.mrf.mxu1 }
 0x524   :  { %v7467_v52 = vpop.f32.mrf.mxu1 }
 0x525   :  { %v7468_v58 = vadd.f32 %v7467_v52, %v7466_v32 }
 0x526   :  { %v7469_v9 = vpop.f32.mrf.mxu1 }
 0x527   :  { %v6537_v63 = vadd.f32 %v7468_v58, %v6497_v40 }
 0x528   :  { %v7470_v57 = vpop.f32.mrf.mxu1 }
 0x529   :  { %6542 = vst [vmem:[%s10449_s7] sm:$0xff] %v6537_v63 }

</bundles_post_ra>
